<compile_context>
chip_gen: v6e
topology: v6e:2x2x1
jax: 0.10.0
libtpu: 0.0.40
codegen_flags: <defaults>
</compile_context>

<pallas_src>
import functools

import jax
import jax.numpy as jnp
import numpy as np
from jax.experimental import pallas as pl
from jax.experimental.pallas import tpu as pltpu

MARGIN = 128  # lane margin so the repack body store starts 128-aligned


# ------------------------------------------------------------------
# In-kernel helpers (all shapes static, loops unrolled at trace time)
# ------------------------------------------------------------------
def _conv3x3(pad_ref, w_ref, b_ref, *, base, Ws, L, act):
    """3x3 conv over padded plane(s) held in a VMEM slab.

    pad_ref: (Cin, MARGIN + B*PLANE); padded-plane flat position f (row-major,
             row stride Ws) lives at lane `base + f`.
    w_ref:   (9, Cout, Cin), tap index = kh*3 + kw.
    b_ref:   (Cout, 1).
    Returns (Cout, L) f32; output (y, x) sits at column y*Ws + x.  Columns
    with x >= Wout are wrap-around garbage and are masked by the caller.
    """
    cout = w_ref.shape[1]
    acc = jnp.zeros((cout, L), jnp.float32)
    for kh in range(3):
        for kw in range(3):
            s = base + kh * Ws + kw
            acc = acc + jnp.dot(w_ref[kh * 3 + kw], pad_ref[:, s:s + L],
                                preferred_element_type=jnp.float32)
    acc = acc + b_ref[...]                                # (Cout,1) broadcast
    if act == "relu":
        return jnp.maximum(acc, 0.0)
    return jax.nn.sigmoid(acc)


def _maxpool2x2_s1(slab, Ws, L):
    """2x2 / stride-1 max-pool on a stride-Ws flattened slab (VPU only)."""
    return jnp.maximum(
        jnp.maximum(slab[:, 0:L], slab[:, 1:1 + L]),
        jnp.maximum(slab[:, Ws:Ws + L], slab[:, Ws + 1:Ws + 1 + L]))


def _fill_padded(pad_ref, val, *, delta):
    """Build the next layer's zero-padded plane slab from `val`.

    `val` already has zeros in all positions that would land on padding
    (either wrapper zero-padding or the {0,1} mask applied by the caller),
    so placing it is ONE lane-aligned body store at lane MARGIN plus a tiny
    head-zero store (top/left border) and a tiny tail-zero store.
    Plane flat position f ends up at lane (MARGIN - delta) + f.
    """
    c, n = pad_ref.shape
    lv = val.shape[1]
    pad_ref[:, MARGIN - delta:MARGIN] = jnp.zeros((c, delta), jnp.float32)
    pad_ref[:, MARGIN:MARGIN + lv] = val
    if MARGIN + lv < n:                                   # static check
        pad_ref[:, MARGIN + lv:] = jnp.zeros((c, n - MARGIN - lv), jnp.float32)


# ------------------------------------------------------------------
# Fused forward kernel: B batch elements (folded onto lanes) per grid step
# ------------------------------------------------------------------
def _an_fused_kernel(x_ref, m1_ref, m2_ref,
                     w1, b1, w2, b2, w3, b3, w4, b4,
                     o_ref, pad1, pad2, pad3, pad4, *, H, W, B):
    Ws, Hs = W + 4, H + 4
    PLANE = Hs * Ws
    BP = B * PLANE

    def blen(l_elem):           # total length when B planes sit side by side
        return (B - 1) * PLANE + l_elem

    # per-element output lengths of each stage (row stride Ws everywhere)
    L1 = (H - 1) * Ws + W              # conv1 out: H x W
    Lq1 = (H - 2) * Ws + (W - 1)       # pool1 out: (H-1) x (W-1)
    L2 = Lq1                           # conv2 out: (H-1) x (W-1)
    Lq2 = (H - 3) * Ws + (W - 2)       # pool2 out: (H-2) x (W-2)
    L3 = Lq2                           # conv3 out: (H-2) x (W-2)
    L4 = L1                            # conv4 out (pad=2): H x W

    d1 = Ws + 1                        # interior offset for pad=1
    d2 = 2 * Ws + 2                    # interior offset for pad=2

    # ---- encoder ----
    # Input planes were already zero-padded to (Hs, Ws) by the wrapper.
    _fill_padded(pad1, x_ref[0], delta=d1)
    c1 = _conv3x3(pad1, w1, b1, base=MARGIN - d1, Ws=Ws, L=blen(L1), act="relu")
    p1 = _maxpool2x2_s1(c1, Ws, blen(Lq1)) * m1_ref[:, :blen(Lq1)]

    _fill_padded(pad2, p1, delta=d1)
    c2 = _conv3x3(pad2, w2, b2, base=MARGIN - d1, Ws=Ws, L=blen(L2), act="relu")
    p2 = _maxpool2x2_s1(c2, Ws, blen(Lq2)) * m2_ref[:, :blen(Lq2)]

    # ---- decoder (Upsample scale_factor=1, mode='nearest' is the identity) ----
    _fill_padded(pad3, p2, delta=d1)
    c3 = _conv3x3(pad3, w3, b3, base=MARGIN - d1, Ws=Ws, L=blen(L3), act="relu")
    c3 = c3 * m2_ref[:, :blen(L3)]

    _fill_padded(pad4, c3, delta=d2)
    c4 = _conv3x3(pad4, w4, b4, base=MARGIN - d2, Ws=Ws, L=blen(L4), act="sigmoid")

    # ---- lane-dense output store (padded stride-Ws slab, stripped in wrapper) ----
    o_ref[0, :, :blen(L4)] = c4
    o_ref[0, :, blen(L4):] = jnp.zeros((c4.shape[0], BP - blen(L4)), jnp.float32)


# ------------------------------------------------------------------
# Wrapper: NCHW in / NCHW out, exactly like the PyTorch module
# ------------------------------------------------------------------
def an_model_forward(x_nchw, params, *, batch_block=1):
    N, C, H, W = x_nchw.shape
    assert C == 5, "ANmodel expects 5 input channels"
    assert H >= 4 and W >= 4
    B = batch_block
    assert N % B == 0
    G = N // B
    Ws, Hs = W + 4, H + 4
    PLANE = Hs * Ws
    BP = B * PLANE

    # ---- input: zero-pad each plane to (Hs, Ws), fold batch onto lanes ----
    x = x_nchw.astype(jnp.float32)
    xp = jnp.pad(x, ((0, 0), (0, 0), (0, Hs - H), (0, Ws - W)))
    xp = xp.reshape(G, B, 5, PLANE)
    xp = jnp.transpose(xp, (0, 2, 1, 3)).reshape(G, 5, BP)

    # ---- {0,1} validity masks (static, built with numpy) ----
    def make_mask(hv, wv):
        m = np.zeros((Hs, Ws), np.float32)
        m[:hv, :wv] = 1.0
        return jnp.asarray(np.tile(m.reshape(1, PLANE), (1, B)))

    m1 = make_mask(H - 1, W - 1)      # after pool1
    m2 = make_mask(H - 2, W - 2)      # after pool2 / conv3

    # ---- weights: HWIO (3,3,Cin,Cout) -> (9, Cout, Cin), tap = kh*3+kw ----
    def prep_w(w):
        cin, cout = w.shape[2], w.shape[3]
        return jnp.transpose(w, (0, 1, 3, 2)).reshape(9, cout, cin)

    def prep_b(b):
        return b.reshape(-1, 1).astype(jnp.float32)

    w1, b1 = prep_w(params["enc_w1"]), prep_b(params["enc_b1"])
    w2, b2 = prep_w(params["enc_w2"]), prep_b(params["enc_b2"])
    w3, b3 = prep_w(params["dec_w1"]), prep_b(params["dec_b1"])
    w4, b4 = prep_w(params["dec_w2"]), prep_b(params["dec_b2"])

    # ---- cost estimate (advisory) ----
    L1 = (H - 1) * Ws + W
    L2 = (H - 2) * Ws + (W - 1)
    L3 = (H - 3) * Ws + (W - 2)
    flops = 2 * 9 * N * (5 * 64 * L1 + 64 * 16 * L2 + 16 * 64 * L3 + 64 * 5 * L1)
    param_bytes = 4 * sum(int(np.prod(v.shape)) for v in params.values())
    cost = pl.CostEstimate(
        flops=int(flops),
        transcendentals=int(N * 5 * L1),
        bytes_accessed=int(4 * (2 * N * 5 * PLANE + 2 * BP) + param_bytes))

    kernel = functools.partial(_an_fused_kernel, H=H, W=W, B=B)
    const2 = lambda g: (0, 0)
    const3 = lambda g: (0, 0, 0)

    out = pl.pallas_call(
        kernel,
        out_shape=jax.ShapeDtypeStruct((G, 5, BP), jnp.float32),
        grid=(G,),
        in_specs=[
            pl.BlockSpec((1, 5, BP), lambda g: (g, 0, 0)),
            pl.BlockSpec((1, BP), const2),
            pl.BlockSpec((1, BP), const2),
            pl.BlockSpec((9, 64, 5), const3), pl.BlockSpec((64, 1), const2),
            pl.BlockSpec((9, 16, 64), const3), pl.BlockSpec((16, 1), const2),
            pl.BlockSpec((9, 64, 16), const3), pl.BlockSpec((64, 1), const2),
            pl.BlockSpec((9, 5, 64), const3), pl.BlockSpec((5, 1), const2),
        ],
        out_specs=pl.BlockSpec((1, 5, BP), lambda g: (g, 0, 0)),
        scratch_shapes=[
            pltpu.VMEM((5, MARGIN + BP), jnp.float32),
            pltpu.VMEM((64, MARGIN + BP), jnp.float32),
            pltpu.VMEM((16, MARGIN + BP), jnp.float32),
            pltpu.VMEM((64, MARGIN + BP), jnp.float32),
        ],
        compiler_params=pltpu.CompilerParams(
            dimension_semantics=("parallel",)),
        cost_estimate=cost,
    )(xp, m1, m2, w1, b1, w2, b2, w3, b3, w4, b4)

    # (G, 5, B*PLANE) -> (N, 5, H, W): strip pad columns with reshape + slice
    out = out.reshape(G, 5, B, Hs, Ws)
    out = jnp.transpose(out, (0, 2, 1, 3, 4)).reshape(N, 5, Hs, Ws)
    return out[:, :, :H, :W]


# ------------------------------------------------------------------
# Deterministic parameter init (PyTorch Conv2d default: U(-1/sqrt(fan_in), +))
# ------------------------------------------------------------------
def init_params(key):
    def conv_init(k, cin, cout):
        kw, kb = jax.random.split(k)
        bound = 1.0 / np.sqrt(cin * 9)
        w = jax.random.uniform(kw, (3, 3, cin, cout), jnp.float32, -bound, bound)
        b = jax.random.uniform(kb, (cout,), jnp.float32, -bound, bound)
        return w, b

    k1, k2, k3, k4 = jax.random.split(key, 4)
    p = {}
    p["enc_w1"], p["enc_b1"] = conv_init(k1, 5, 64)
    p["enc_w2"], p["enc_b2"] = conv_init(k2, 64, 16)
    p["dec_w1"], p["dec_b1"] = conv_init(k3, 16, 64)
    p["dec_w2"], p["dec_b2"] = conv_init(k4, 64, 5)
    return p


# ------------------------------------------------------------------
# Plain-XLA reference (correctness check only)
# ------------------------------------------------------------------
def reference_forward(x_nchw, params):
    x = jnp.transpose(x_nchw, (0, 2, 3, 1)).astype(jnp.float32)

    def conv(x, w, b, pad):
        y = jax.lax.conv_general_dilated(
            x, w, window_strides=(1, 1), padding=[(pad, pad), (pad, pad)],
            dimension_numbers=("NHWC", "HWIO", "NHWC"))
        return y + b

    def pool(x):
        return jax.lax.reduce_window(x, -jnp.inf, jax.lax.max,
                                     (1, 2, 2, 1), (1, 1, 1, 1), "VALID")

    h = jax.nn.relu(conv(x, params["enc_w1"], params["enc_b1"], 1)); h = pool(h)
    h = jax.nn.relu(conv(h, params["enc_w2"], params["enc_b2"], 1)); h = pool(h)
    h = jax.nn.relu(conv(h, params["dec_w1"], params["dec_b1"], 1))
    h = jax.nn.sigmoid(conv(h, params["dec_w2"], params["dec_b2"], 2))
    return jnp.transpose(h, (0, 3, 1, 2))


if __name__ == "__main__":
    key = jax.random.PRNGKey(0)
    kx, kp = jax.random.split(key)

    # Input matching Conv2d(5, ...): (N=2, C=5, H=16, W=16), NCHW.
    x = jax.random.normal(kx, (2, 5, 16, 16), dtype=jnp.float32)
    params = init_params(kp)
    ref = reference_forward(x, params)

    # v7x-friendly: one element per grid step -> 2 "parallel" steps (one per TC).
    fwd_split = jax.jit(functools.partial(an_model_forward, batch_block=1))
    out_split = jax.block_until_ready(fwd_split(x, params))
    assert out_split.shape == (2, 5, 16, 16), out_split.shape
    np.testing.assert_allclose(np.asarray(out_split), np.asarray(ref),
                               atol=1e-4, rtol=1e-4)

    # v5e/v6e-friendly: whole batch folded onto lanes -> grid=(1,).
    fwd_folded = jax.jit(functools.partial(an_model_forward, batch_block=2))
    out_folded = jax.block_until_ready(fwd_folded(x, params))
    np.testing.assert_allclose(np.asarray(out_folded), np.asarray(ref),
                               atol=1e-4, rtol=1e-4)

    print("KERNEL_OK")
</pallas_src>

<mosaic_0001>
module attributes {stable_mosaic.version = 11 : i64} {
  func.func @_an_fused_kernel(%arg0: i32, %arg1: memref<1x5x400xf32, #tpu.memory_space<vmem>>, %arg2: memref<1x400xf32, #tpu.memory_space<vmem>>, %arg3: memref<1x400xf32, #tpu.memory_space<vmem>>, %arg4: memref<9x64x5xf32, #tpu.memory_space<vmem>>, %arg5: memref<64x1xf32, #tpu.memory_space<vmem>>, %arg6: memref<9x16x64xf32, #tpu.memory_space<vmem>>, %arg7: memref<16x1xf32, #tpu.memory_space<vmem>>, %arg8: memref<9x64x16xf32, #tpu.memory_space<vmem>>, %arg9: memref<64x1xf32, #tpu.memory_space<vmem>>, %arg10: memref<9x5x64xf32, #tpu.memory_space<vmem>>, %arg11: memref<5x1xf32, #tpu.memory_space<vmem>>, %arg12: memref<1x5x400xf32, #tpu.memory_space<vmem>>, %arg13: memref<5x528xf32, #tpu.memory_space<vmem>>, %arg14: memref<64x528xf32, #tpu.memory_space<vmem>>, %arg15: memref<16x528xf32, #tpu.memory_space<vmem>>, %arg16: memref<64x528xf32, #tpu.memory_space<vmem>>) attributes {dimension_semantics = [#tpu.dimension_semantics<parallel>], iteration_bounds = array<i64: 2>, scalar_prefetch = 0 : i64, scratch_operands = 4 : i64, tpu.core_type = #tpu.core_type<tc>, window_params = [{transform_indices = @transform_0, window_bounds = array<i64: 1, 5, 400>}, {pipeline_mode = #tpu.pipeline_mode<synchronous>, transform_indices = @transform_1, window_bounds = array<i64: 1, 400>}, {pipeline_mode = #tpu.pipeline_mode<synchronous>, transform_indices = @transform_2, window_bounds = array<i64: 1, 400>}, {pipeline_mode = #tpu.pipeline_mode<synchronous>, transform_indices = @transform_3, window_bounds = array<i64: 9, 64, 5>}, {pipeline_mode = #tpu.pipeline_mode<synchronous>, transform_indices = @transform_4, window_bounds = array<i64: 64, 1>}, {pipeline_mode = #tpu.pipeline_mode<synchronous>, transform_indices = @transform_5, window_bounds = array<i64: 9, 16, 64>}, {pipeline_mode = #tpu.pipeline_mode<synchronous>, transform_indices = @transform_6, window_bounds = array<i64: 16, 1>}, {pipeline_mode = #tpu.pipeline_mode<synchronous>, transform_indices = @transform_7, window_bounds = array<i64: 9, 64, 16>}, {pipeline_mode = #tpu.pipeline_mode<synchronous>, transform_indices = @transform_8, window_bounds = array<i64: 64, 1>}, {pipeline_mode = #tpu.pipeline_mode<synchronous>, transform_indices = @transform_9, window_bounds = array<i64: 9, 5, 64>}, {pipeline_mode = #tpu.pipeline_mode<synchronous>, transform_indices = @transform_10, window_bounds = array<i64: 5, 1>}, {transform_indices = @transform_11, window_bounds = array<i64: 1, 5, 400>}]} {
    %c0 = arith.constant 0 : index
    %c0_0 = arith.constant 0 : index
    %c0_1 = arith.constant 0 : index
    %0 = vector.load %arg1[%c0, %c0_0, %c0_1] : memref<1x5x400xf32, #tpu.memory_space<vmem>>, vector<1x5x400xf32>
    %1 = vector.shape_cast %0 : vector<1x5x400xf32> to vector<5x400xf32>
    %cst = arith.constant 0.000000e+00 : f32
    %2 = vector.broadcast %cst : f32 to vector<5x21xf32>
    %c0_2 = arith.constant 0 : index
    %c107 = arith.constant 107 : index
    %3 = vector.load %arg13[%c0_2, %c107] : memref<5x528xf32, #tpu.memory_space<vmem>>, vector<5x21xf32>
    tpu.vector_store %arg13[%c0_2, %c107], %2 {strides = array<i32>} : memref<5x528xf32, #tpu.memory_space<vmem>>, vector<5x21xf32>,
    %c0_3 = arith.constant 0 : index
    %c128 = arith.constant 128 : index
    %4 = vector.load %arg13[%c0_3, %c128] : memref<5x528xf32, #tpu.memory_space<vmem>>, vector<5x400xf32>
    tpu.vector_store %arg13[%c0_3, %c128], %1 {strides = array<i32>} : memref<5x528xf32, #tpu.memory_space<vmem>>, vector<5x400xf32>,
    %cst_4 = arith.constant 0.000000e+00 : f32
    %5 = vector.broadcast %cst_4 : f32 to vector<64x316xf32>
    %c0_5 = arith.constant 0 : index
    %c0_6 = arith.constant 0 : index
    %c0_7 = arith.constant 0 : index
    %6 = vector.load %arg4[%c0_5, %c0_6, %c0_7] : memref<9x64x5xf32, #tpu.memory_space<vmem>>, vector<1x64x5xf32>
    %7 = vector.shape_cast %6 : vector<1x64x5xf32> to vector<64x5xf32>
    %c0_8 = arith.constant 0 : index
    %c107_9 = arith.constant 107 : index
    %8 = vector.load %arg13[%c0_8, %c107_9] : memref<5x528xf32, #tpu.memory_space<vmem>>, vector<5x316xf32>
    %cst_10 = arith.constant dense<0.000000e+00> : vector<64x316xf32>
    %9 = tpu.matmul %7, %8, %cst_10 {dimension_numbers = #tpu.dot_dimension_numbers<[1], [0], [0], [1], [0, 0, 1, 1], [], []>} : vector<64x5xf32>, vector<5x316xf32>, vector<64x316xf32> -> vector<64x316xf32>
    %10 = arith.addf %5, %9 : vector<64x316xf32>
    %c1 = arith.constant 1 : index
    %c0_11 = arith.constant 0 : index
    %c0_12 = arith.constant 0 : index
    %11 = vector.load %arg4[%c1, %c0_11, %c0_12] : memref<9x64x5xf32, #tpu.memory_space<vmem>>, vector<1x64x5xf32>
    %12 = vector.shape_cast %11 : vector<1x64x5xf32> to vector<64x5xf32>
    %c0_13 = arith.constant 0 : index
    %c108 = arith.constant 108 : index
    %13 = vector.load %arg13[%c0_13, %c108] : memref<5x528xf32, #tpu.memory_space<vmem>>, vector<5x316xf32>
    %cst_14 = arith.constant dense<0.000000e+00> : vector<64x316xf32>
    %14 = tpu.matmul %12, %13, %cst_14 {dimension_numbers = #tpu.dot_dimension_numbers<[1], [0], [0], [1], [0, 0, 1, 1], [], []>} : vector<64x5xf32>, vector<5x316xf32>, vector<64x316xf32> -> vector<64x316xf32>
    %15 = arith.addf %10, %14 : vector<64x316xf32>
    %c2 = arith.constant 2 : index
    %c0_15 = arith.constant 0 : index
    %c0_16 = arith.constant 0 : index
    %16 = vector.load %arg4[%c2, %c0_15, %c0_16] : memref<9x64x5xf32, #tpu.memory_space<vmem>>, vector<1x64x5xf32>
    %17 = vector.shape_cast %16 : vector<1x64x5xf32> to vector<64x5xf32>
    %c0_17 = arith.constant 0 : index
    %c109 = arith.constant 109 : index
    %18 = vector.load %arg13[%c0_17, %c109] : memref<5x528xf32, #tpu.memory_space<vmem>>, vector<5x316xf32>
    %cst_18 = arith.constant dense<0.000000e+00> : vector<64x316xf32>
    %19 = tpu.matmul %17, %18, %cst_18 {dimension_numbers = #tpu.dot_dimension_numbers<[1], [0], [0], [1], [0, 0, 1, 1], [], []>} : vector<64x5xf32>, vector<5x316xf32>, vector<64x316xf32> -> vector<64x316xf32>
    %20 = arith.addf %15, %19 : vector<64x316xf32>
    %c3 = arith.constant 3 : index
    %c0_19 = arith.constant 0 : index
    %c0_20 = arith.constant 0 : index
    %21 = vector.load %arg4[%c3, %c0_19, %c0_20] : memref<9x64x5xf32, #tpu.memory_space<vmem>>, vector<1x64x5xf32>
    %22 = vector.shape_cast %21 : vector<1x64x5xf32> to vector<64x5xf32>
    %c0_21 = arith.constant 0 : index
    %c127 = arith.constant 127 : index
    %23 = vector.load %arg13[%c0_21, %c127] : memref<5x528xf32, #tpu.memory_space<vmem>>, vector<5x316xf32>
    %cst_22 = arith.constant dense<0.000000e+00> : vector<64x316xf32>
    %24 = tpu.matmul %22, %23, %cst_22 {dimension_numbers = #tpu.dot_dimension_numbers<[1], [0], [0], [1], [0, 0, 1, 1], [], []>} : vector<64x5xf32>, vector<5x316xf32>, vector<64x316xf32> -> vector<64x316xf32>
    %25 = arith.addf %20, %24 : vector<64x316xf32>
    %c4 = arith.constant 4 : index
    %c0_23 = arith.constant 0 : index
    %c0_24 = arith.constant 0 : index
    %26 = vector.load %arg4[%c4, %c0_23, %c0_24] : memref<9x64x5xf32, #tpu.memory_space<vmem>>, vector<1x64x5xf32>
    %27 = vector.shape_cast %26 : vector<1x64x5xf32> to vector<64x5xf32>
    %c0_25 = arith.constant 0 : index
    %c128_26 = arith.constant 128 : index
    %28 = vector.load %arg13[%c0_25, %c128_26] : memref<5x528xf32, #tpu.memory_space<vmem>>, vector<5x316xf32>
    %cst_27 = arith.constant dense<0.000000e+00> : vector<64x316xf32>
    %29 = tpu.matmul %27, %28, %cst_27 {dimension_numbers = #tpu.dot_dimension_numbers<[1], [0], [0], [1], [0, 0, 1, 1], [], []>} : vector<64x5xf32>, vector<5x316xf32>, vector<64x316xf32> -> vector<64x316xf32>
    %30 = arith.addf %25, %29 : vector<64x316xf32>
    %c5 = arith.constant 5 : index
    %c0_28 = arith.constant 0 : index
    %c0_29 = arith.constant 0 : index
    %31 = vector.load %arg4[%c5, %c0_28, %c0_29] : memref<9x64x5xf32, #tpu.memory_space<vmem>>, vector<1x64x5xf32>
    %32 = vector.shape_cast %31 : vector<1x64x5xf32> to vector<64x5xf32>
    %c0_30 = arith.constant 0 : index
    %c129 = arith.constant 129 : index
    %33 = vector.load %arg13[%c0_30, %c129] : memref<5x528xf32, #tpu.memory_space<vmem>>, vector<5x316xf32>
    %cst_31 = arith.constant dense<0.000000e+00> : vector<64x316xf32>
    %34 = tpu.matmul %32, %33, %cst_31 {dimension_numbers = #tpu.dot_dimension_numbers<[1], [0], [0], [1], [0, 0, 1, 1], [], []>} : vector<64x5xf32>, vector<5x316xf32>, vector<64x316xf32> -> vector<64x316xf32>
    %35 = arith.addf %30, %34 : vector<64x316xf32>
    %c6 = arith.constant 6 : index
    %c0_32 = arith.constant 0 : index
    %c0_33 = arith.constant 0 : index
    %36 = vector.load %arg4[%c6, %c0_32, %c0_33] : memref<9x64x5xf32, #tpu.memory_space<vmem>>, vector<1x64x5xf32>
    %37 = vector.shape_cast %36 : vector<1x64x5xf32> to vector<64x5xf32>
    %c0_34 = arith.constant 0 : index
    %c147 = arith.constant 147 : index
    %38 = vector.load %arg13[%c0_34, %c147] : memref<5x528xf32, #tpu.memory_space<vmem>>, vector<5x316xf32>
    %cst_35 = arith.constant dense<0.000000e+00> : vector<64x316xf32>
    %39 = tpu.matmul %37, %38, %cst_35 {dimension_numbers = #tpu.dot_dimension_numbers<[1], [0], [0], [1], [0, 0, 1, 1], [], []>} : vector<64x5xf32>, vector<5x316xf32>, vector<64x316xf32> -> vector<64x316xf32>
    %40 = arith.addf %35, %39 : vector<64x316xf32>
    %c7 = arith.constant 7 : index
    %c0_36 = arith.constant 0 : index
    %c0_37 = arith.constant 0 : index
    %41 = vector.load %arg4[%c7, %c0_36, %c0_37] : memref<9x64x5xf32, #tpu.memory_space<vmem>>, vector<1x64x5xf32>
    %42 = vector.shape_cast %41 : vector<1x64x5xf32> to vector<64x5xf32>
    %c0_38 = arith.constant 0 : index
    %c148 = arith.constant 148 : index
    %43 = vector.load %arg13[%c0_38, %c148] : memref<5x528xf32, #tpu.memory_space<vmem>>, vector<5x316xf32>
    %cst_39 = arith.constant dense<0.000000e+00> : vector<64x316xf32>
    %44 = tpu.matmul %42, %43, %cst_39 {dimension_numbers = #tpu.dot_dimension_numbers<[1], [0], [0], [1], [0, 0, 1, 1], [], []>} : vector<64x5xf32>, vector<5x316xf32>, vector<64x316xf32> -> vector<64x316xf32>
    %45 = arith.addf %40, %44 : vector<64x316xf32>
    %c8 = arith.constant 8 : index
    %c0_40 = arith.constant 0 : index
    %c0_41 = arith.constant 0 : index
    %46 = vector.load %arg4[%c8, %c0_40, %c0_41] : memref<9x64x5xf32, #tpu.memory_space<vmem>>, vector<1x64x5xf32>
    %47 = vector.shape_cast %46 : vector<1x64x5xf32> to vector<64x5xf32>
    %c0_42 = arith.constant 0 : index
    %c149 = arith.constant 149 : index
    %48 = vector.load %arg13[%c0_42, %c149] : memref<5x528xf32, #tpu.memory_space<vmem>>, vector<5x316xf32>
    %cst_43 = arith.constant dense<0.000000e+00> : vector<64x316xf32>
    %49 = tpu.matmul %47, %48, %cst_43 {dimension_numbers = #tpu.dot_dimension_numbers<[1], [0], [0], [1], [0, 0, 1, 1], [], []>} : vector<64x5xf32>, vector<5x316xf32>, vector<64x316xf32> -> vector<64x316xf32>
    %50 = arith.addf %45, %49 : vector<64x316xf32>
    %c0_44 = arith.constant 0 : index
    %c0_45 = arith.constant 0 : index
    %51 = vector.load %arg5[%c0_44, %c0_45] : memref<64x1xf32, #tpu.memory_space<vmem>>, vector<64x1xf32>
    %52 = vector.broadcast %51 : vector<64x1xf32> to vector<64x316xf32>
    %53 = arith.addf %50, %52 : vector<64x316xf32>
    %cst_46 = arith.constant 0.000000e+00 : f32
    %54 = vector.broadcast %cst_46 : f32 to vector<64x316xf32>
    %55 = arith.maximumf %53, %54 : vector<64x316xf32>
    %56 = vector.extract_strided_slice %55 {offsets = [0, 0], sizes = [64, 295], strides = [1, 1]} : vector<64x316xf32> to vector<64x295xf32>
    %57 = vector.extract_strided_slice %55 {offsets = [0, 1], sizes = [64, 295], strides = [1, 1]} : vector<64x316xf32> to vector<64x295xf32>
    %58 = arith.maximumf %56, %57 : vector<64x295xf32>
    %59 = vector.extract_strided_slice %55 {offsets = [0, 20], sizes = [64, 295], strides = [1, 1]} : vector<64x316xf32> to vector<64x295xf32>
    %60 = vector.extract_strided_slice %55 {offsets = [0, 21], sizes = [64, 295], strides = [1, 1]} : vector<64x316xf32> to vector<64x295xf32>
    %61 = arith.maximumf %59, %60 : vector<64x295xf32>
    %62 = arith.maximumf %58, %61 : vector<64x295xf32>
    %c0_47 = arith.constant 0 : index
    %c0_48 = arith.constant 0 : index
    %63 = vector.load %arg2[%c0_47, %c0_48] : memref<1x400xf32, #tpu.memory_space<vmem>>, vector<1x295xf32>
    %64 = vector.broadcast %63 : vector<1x295xf32> to vector<64x295xf32>
    %65 = arith.mulf %62, %64 : vector<64x295xf32>
    %cst_49 = arith.constant 0.000000e+00 : f32
    %66 = vector.broadcast %cst_49 : f32 to vector<64x21xf32>
    %c0_50 = arith.constant 0 : index
    %c107_51 = arith.constant 107 : index
    %67 = vector.load %arg14[%c0_50, %c107_51] : memref<64x528xf32, #tpu.memory_space<vmem>>, vector<64x21xf32>
    tpu.vector_store %arg14[%c0_50, %c107_51], %66 {strides = array<i32>} : memref<64x528xf32, #tpu.memory_space<vmem>>, vector<64x21xf32>,
    %c0_52 = arith.constant 0 : index
    %c128_53 = arith.constant 128 : index
    %68 = vector.load %arg14[%c0_52, %c128_53] : memref<64x528xf32, #tpu.memory_space<vmem>>, vector<64x295xf32>
    tpu.vector_store %arg14[%c0_52, %c128_53], %65 {strides = array<i32>} : memref<64x528xf32, #tpu.memory_space<vmem>>, vector<64x295xf32>,
    %cst_54 = arith.constant 0.000000e+00 : f32
    %69 = vector.broadcast %cst_54 : f32 to vector<64x105xf32>
    %c0_55 = arith.constant 0 : index
    %c423 = arith.constant 423 : index
    %70 = vector.load %arg14[%c0_55, %c423] : memref<64x528xf32, #tpu.memory_space<vmem>>, vector<64x105xf32>
    tpu.vector_store %arg14[%c0_55, %c423], %69 {strides = array<i32>} : memref<64x528xf32, #tpu.memory_space<vmem>>, vector<64x105xf32>,
    %cst_56 = arith.constant 0.000000e+00 : f32
    %71 = vector.broadcast %cst_56 : f32 to vector<16x295xf32>
    %c0_57 = arith.constant 0 : index
    %c0_58 = arith.constant 0 : index
    %c0_59 = arith.constant 0 : index
    %72 = vector.load %arg6[%c0_57, %c0_58, %c0_59] : memref<9x16x64xf32, #tpu.memory_space<vmem>>, vector<1x16x64xf32>
    %73 = vector.shape_cast %72 : vector<1x16x64xf32> to vector<16x64xf32>
    %c0_60 = arith.constant 0 : index
    %c107_61 = arith.constant 107 : index
    %74 = vector.load %arg14[%c0_60, %c107_61] : memref<64x528xf32, #tpu.memory_space<vmem>>, vector<64x295xf32>
    %cst_62 = arith.constant dense<0.000000e+00> : vector<16x295xf32>
    %75 = tpu.matmul %73, %74, %cst_62 {dimension_numbers = #tpu.dot_dimension_numbers<[1], [0], [0], [1], [0, 0, 1, 1], [], []>} : vector<16x64xf32>, vector<64x295xf32>, vector<16x295xf32> -> vector<16x295xf32>
    %76 = arith.addf %71, %75 : vector<16x295xf32>
    %c1_63 = arith.constant 1 : index
    %c0_64 = arith.constant 0 : index
    %c0_65 = arith.constant 0 : index
    %77 = vector.load %arg6[%c1_63, %c0_64, %c0_65] : memref<9x16x64xf32, #tpu.memory_space<vmem>>, vector<1x16x64xf32>
    %78 = vector.shape_cast %77 : vector<1x16x64xf32> to vector<16x64xf32>
    %c0_66 = arith.constant 0 : index
    %c108_67 = arith.constant 108 : index
    %79 = vector.load %arg14[%c0_66, %c108_67] : memref<64x528xf32, #tpu.memory_space<vmem>>, vector<64x295xf32>
    %cst_68 = arith.constant dense<0.000000e+00> : vector<16x295xf32>
    %80 = tpu.matmul %78, %79, %cst_68 {dimension_numbers = #tpu.dot_dimension_numbers<[1], [0], [0], [1], [0, 0, 1, 1], [], []>} : vector<16x64xf32>, vector<64x295xf32>, vector<16x295xf32> -> vector<16x295xf32>
    %81 = arith.addf %76, %80 : vector<16x295xf32>
    %c2_69 = arith.constant 2 : index
    %c0_70 = arith.constant 0 : index
    %c0_71 = arith.constant 0 : index
    %82 = vector.load %arg6[%c2_69, %c0_70, %c0_71] : memref<9x16x64xf32, #tpu.memory_space<vmem>>, vector<1x16x64xf32>
    %83 = vector.shape_cast %82 : vector<1x16x64xf32> to vector<16x64xf32>
    %c0_72 = arith.constant 0 : index
    %c109_73 = arith.constant 109 : index
    %84 = vector.load %arg14[%c0_72, %c109_73] : memref<64x528xf32, #tpu.memory_space<vmem>>, vector<64x295xf32>
    %cst_74 = arith.constant dense<0.000000e+00> : vector<16x295xf32>
    %85 = tpu.matmul %83, %84, %cst_74 {dimension_numbers = #tpu.dot_dimension_numbers<[1], [0], [0], [1], [0, 0, 1, 1], [], []>} : vector<16x64xf32>, vector<64x295xf32>, vector<16x295xf32> -> vector<16x295xf32>
    %86 = arith.addf %81, %85 : vector<16x295xf32>
    %c3_75 = arith.constant 3 : index
    %c0_76 = arith.constant 0 : index
    %c0_77 = arith.constant 0 : index
    %87 = vector.load %arg6[%c3_75, %c0_76, %c0_77] : memref<9x16x64xf32, #tpu.memory_space<vmem>>, vector<1x16x64xf32>
    %88 = vector.shape_cast %87 : vector<1x16x64xf32> to vector<16x64xf32>
    %c0_78 = arith.constant 0 : index
    %c127_79 = arith.constant 127 : index
    %89 = vector.load %arg14[%c0_78, %c127_79] : memref<64x528xf32, #tpu.memory_space<vmem>>, vector<64x295xf32>
    %cst_80 = arith.constant dense<0.000000e+00> : vector<16x295xf32>
    %90 = tpu.matmul %88, %89, %cst_80 {dimension_numbers = #tpu.dot_dimension_numbers<[1], [0], [0], [1], [0, 0, 1, 1], [], []>} : vector<16x64xf32>, vector<64x295xf32>, vector<16x295xf32> -> vector<16x295xf32>
    %91 = arith.addf %86, %90 : vector<16x295xf32>
    %c4_81 = arith.constant 4 : index
    %c0_82 = arith.constant 0 : index
    %c0_83 = arith.constant 0 : index
    %92 = vector.load %arg6[%c4_81, %c0_82, %c0_83] : memref<9x16x64xf32, #tpu.memory_space<vmem>>, vector<1x16x64xf32>
    %93 = vector.shape_cast %92 : vector<1x16x64xf32> to vector<16x64xf32>
    %c0_84 = arith.constant 0 : index
    %c128_85 = arith.constant 128 : index
    %94 = vector.load %arg14[%c0_84, %c128_85] : memref<64x528xf32, #tpu.memory_space<vmem>>, vector<64x295xf32>
    %cst_86 = arith.constant dense<0.000000e+00> : vector<16x295xf32>
    %95 = tpu.matmul %93, %94, %cst_86 {dimension_numbers = #tpu.dot_dimension_numbers<[1], [0], [0], [1], [0, 0, 1, 1], [], []>} : vector<16x64xf32>, vector<64x295xf32>, vector<16x295xf32> -> vector<16x295xf32>
    %96 = arith.addf %91, %95 : vector<16x295xf32>
    %c5_87 = arith.constant 5 : index
    %c0_88 = arith.constant 0 : index
    %c0_89 = arith.constant 0 : index
    %97 = vector.load %arg6[%c5_87, %c0_88, %c0_89] : memref<9x16x64xf32, #tpu.memory_space<vmem>>, vector<1x16x64xf32>
    %98 = vector.shape_cast %97 : vector<1x16x64xf32> to vector<16x64xf32>
    %c0_90 = arith.constant 0 : index
    %c129_91 = arith.constant 129 : index
    %99 = vector.load %arg14[%c0_90, %c129_91] : memref<64x528xf32, #tpu.memory_space<vmem>>, vector<64x295xf32>
    %cst_92 = arith.constant dense<0.000000e+00> : vector<16x295xf32>
    %100 = tpu.matmul %98, %99, %cst_92 {dimension_numbers = #tpu.dot_dimension_numbers<[1], [0], [0], [1], [0, 0, 1, 1], [], []>} : vector<16x64xf32>, vector<64x295xf32>, vector<16x295xf32> -> vector<16x295xf32>
    %101 = arith.addf %96, %100 : vector<16x295xf32>
    %c6_93 = arith.constant 6 : index
    %c0_94 = arith.constant 0 : index
    %c0_95 = arith.constant 0 : index
    %102 = vector.load %arg6[%c6_93, %c0_94, %c0_95] : memref<9x16x64xf32, #tpu.memory_space<vmem>>, vector<1x16x64xf32>
    %103 = vector.shape_cast %102 : vector<1x16x64xf32> to vector<16x64xf32>
    %c0_96 = arith.constant 0 : index
    %c147_97 = arith.constant 147 : index
    %104 = vector.load %arg14[%c0_96, %c147_97] : memref<64x528xf32, #tpu.memory_space<vmem>>, vector<64x295xf32>
    %cst_98 = arith.constant dense<0.000000e+00> : vector<16x295xf32>
    %105 = tpu.matmul %103, %104, %cst_98 {dimension_numbers = #tpu.dot_dimension_numbers<[1], [0], [0], [1], [0, 0, 1, 1], [], []>} : vector<16x64xf32>, vector<64x295xf32>, vector<16x295xf32> -> vector<16x295xf32>
    %106 = arith.addf %101, %105 : vector<16x295xf32>
    %c7_99 = arith.constant 7 : index
    %c0_100 = arith.constant 0 : index
    %c0_101 = arith.constant 0 : index
    %107 = vector.load %arg6[%c7_99, %c0_100, %c0_101] : memref<9x16x64xf32, #tpu.memory_space<vmem>>, vector<1x16x64xf32>
    %108 = vector.shape_cast %107 : vector<1x16x64xf32> to vector<16x64xf32>
    %c0_102 = arith.constant 0 : index
    %c148_103 = arith.constant 148 : index
    %109 = vector.load %arg14[%c0_102, %c148_103] : memref<64x528xf32, #tpu.memory_space<vmem>>, vector<64x295xf32>
    %cst_104 = arith.constant dense<0.000000e+00> : vector<16x295xf32>
    %110 = tpu.matmul %108, %109, %cst_104 {dimension_numbers = #tpu.dot_dimension_numbers<[1], [0], [0], [1], [0, 0, 1, 1], [], []>} : vector<16x64xf32>, vector<64x295xf32>, vector<16x295xf32> -> vector<16x295xf32>
    %111 = arith.addf %106, %110 : vector<16x295xf32>
    %c8_105 = arith.constant 8 : index
    %c0_106 = arith.constant 0 : index
    %c0_107 = arith.constant 0 : index
    %112 = vector.load %arg6[%c8_105, %c0_106, %c0_107] : memref<9x16x64xf32, #tpu.memory_space<vmem>>, vector<1x16x64xf32>
    %113 = vector.shape_cast %112 : vector<1x16x64xf32> to vector<16x64xf32>
    %c0_108 = arith.constant 0 : index
    %c149_109 = arith.constant 149 : index
    %114 = vector.load %arg14[%c0_108, %c149_109] : memref<64x528xf32, #tpu.memory_space<vmem>>, vector<64x295xf32>
    %cst_110 = arith.constant dense<0.000000e+00> : vector<16x295xf32>
    %115 = tpu.matmul %113, %114, %cst_110 {dimension_numbers = #tpu.dot_dimension_numbers<[1], [0], [0], [1], [0, 0, 1, 1], [], []>} : vector<16x64xf32>, vector<64x295xf32>, vector<16x295xf32> -> vector<16x295xf32>
    %116 = arith.addf %111, %115 : vector<16x295xf32>
    %c0_111 = arith.constant 0 : index
    %c0_112 = arith.constant 0 : index
    %117 = vector.load %arg7[%c0_111, %c0_112] : memref<16x1xf32, #tpu.memory_space<vmem>>, vector<16x1xf32>
    %118 = vector.broadcast %117 : vector<16x1xf32> to vector<16x295xf32>
    %119 = arith.addf %116, %118 : vector<16x295xf32>
    %cst_113 = arith.constant 0.000000e+00 : f32
    %120 = vector.broadcast %cst_113 : f32 to vector<16x295xf32>
    %121 = arith.maximumf %119, %120 : vector<16x295xf32>
    %122 = vector.extract_strided_slice %121 {offsets = [0, 0], sizes = [16, 274], strides = [1, 1]} : vector<16x295xf32> to vector<16x274xf32>
    %123 = vector.extract_strided_slice %121 {offsets = [0, 1], sizes = [16, 274], strides = [1, 1]} : vector<16x295xf32> to vector<16x274xf32>
    %124 = arith.maximumf %122, %123 : vector<16x274xf32>
    %125 = vector.extract_strided_slice %121 {offsets = [0, 20], sizes = [16, 274], strides = [1, 1]} : vector<16x295xf32> to vector<16x274xf32>
    %126 = vector.extract_strided_slice %121 {offsets = [0, 21], sizes = [16, 274], strides = [1, 1]} : vector<16x295xf32> to vector<16x274xf32>
    %127 = arith.maximumf %125, %126 : vector<16x274xf32>
    %128 = arith.maximumf %124, %127 : vector<16x274xf32>
    %c0_114 = arith.constant 0 : index
    %c0_115 = arith.constant 0 : index
    %129 = vector.load %arg3[%c0_114, %c0_115] : memref<1x400xf32, #tpu.memory_space<vmem>>, vector<1x274xf32>
    %130 = vector.broadcast %129 : vector<1x274xf32> to vector<16x274xf32>
    %131 = arith.mulf %128, %130 : vector<16x274xf32>
    %cst_116 = arith.constant 0.000000e+00 : f32
    %132 = vector.broadcast %cst_116 : f32 to vector<16x21xf32>
    %c0_117 = arith.constant 0 : index
    %c107_118 = arith.constant 107 : index
    %133 = vector.load %arg15[%c0_117, %c107_118] : memref<16x528xf32, #tpu.memory_space<vmem>>, vector<16x21xf32>
    tpu.vector_store %arg15[%c0_117, %c107_118], %132 {strides = array<i32>} : memref<16x528xf32, #tpu.memory_space<vmem>>, vector<16x21xf32>,
    %c0_119 = arith.constant 0 : index
    %c128_120 = arith.constant 128 : index
    %134 = vector.load %arg15[%c0_119, %c128_120] : memref<16x528xf32, #tpu.memory_space<vmem>>, vector<16x274xf32>
    tpu.vector_store %arg15[%c0_119, %c128_120], %131 {strides = array<i32>} : memref<16x528xf32, #tpu.memory_space<vmem>>, vector<16x274xf32>,
    %cst_121 = arith.constant 0.000000e+00 : f32
    %135 = vector.broadcast %cst_121 : f32 to vector<16x126xf32>
    %c0_122 = arith.constant 0 : index
    %c402 = arith.constant 402 : index
    %136 = vector.load %arg15[%c0_122, %c402] : memref<16x528xf32, #tpu.memory_space<vmem>>, vector<16x126xf32>
    tpu.vector_store %arg15[%c0_122, %c402], %135 {strides = array<i32>} : memref<16x528xf32, #tpu.memory_space<vmem>>, vector<16x126xf32>,
    %cst_123 = arith.constant 0.000000e+00 : f32
    %137 = vector.broadcast %cst_123 : f32 to vector<64x274xf32>
    %c0_124 = arith.constant 0 : index
    %c0_125 = arith.constant 0 : index
    %c0_126 = arith.constant 0 : index
    %138 = vector.load %arg8[%c0_124, %c0_125, %c0_126] : memref<9x64x16xf32, #tpu.memory_space<vmem>>, vector<1x64x16xf32>
    %139 = vector.shape_cast %138 : vector<1x64x16xf32> to vector<64x16xf32>
    %c0_127 = arith.constant 0 : index
    %c107_128 = arith.constant 107 : index
    %140 = vector.load %arg15[%c0_127, %c107_128] : memref<16x528xf32, #tpu.memory_space<vmem>>, vector<16x274xf32>
    %cst_129 = arith.constant dense<0.000000e+00> : vector<64x274xf32>
    %141 = tpu.matmul %139, %140, %cst_129 {dimension_numbers = #tpu.dot_dimension_numbers<[1], [0], [0], [1], [0, 0, 1, 1], [], []>} : vector<64x16xf32>, vector<16x274xf32>, vector<64x274xf32> -> vector<64x274xf32>
    %142 = arith.addf %137, %141 : vector<64x274xf32>
    %c1_130 = arith.constant 1 : index
    %c0_131 = arith.constant 0 : index
    %c0_132 = arith.constant 0 : index
    %143 = vector.load %arg8[%c1_130, %c0_131, %c0_132] : memref<9x64x16xf32, #tpu.memory_space<vmem>>, vector<1x64x16xf32>
    %144 = vector.shape_cast %143 : vector<1x64x16xf32> to vector<64x16xf32>
    %c0_133 = arith.constant 0 : index
    %c108_134 = arith.constant 108 : index
    %145 = vector.load %arg15[%c0_133, %c108_134] : memref<16x528xf32, #tpu.memory_space<vmem>>, vector<16x274xf32>
    %cst_135 = arith.constant dense<0.000000e+00> : vector<64x274xf32>
    %146 = tpu.matmul %144, %145, %cst_135 {dimension_numbers = #tpu.dot_dimension_numbers<[1], [0], [0], [1], [0, 0, 1, 1], [], []>} : vector<64x16xf32>, vector<16x274xf32>, vector<64x274xf32> -> vector<64x274xf32>
    %147 = arith.addf %142, %146 : vector<64x274xf32>
    %c2_136 = arith.constant 2 : index
    %c0_137 = arith.constant 0 : index
    %c0_138 = arith.constant 0 : index
    %148 = vector.load %arg8[%c2_136, %c0_137, %c0_138] : memref<9x64x16xf32, #tpu.memory_space<vmem>>, vector<1x64x16xf32>
    %149 = vector.shape_cast %148 : vector<1x64x16xf32> to vector<64x16xf32>
    %c0_139 = arith.constant 0 : index
    %c109_140 = arith.constant 109 : index
    %150 = vector.load %arg15[%c0_139, %c109_140] : memref<16x528xf32, #tpu.memory_space<vmem>>, vector<16x274xf32>
    %cst_141 = arith.constant dense<0.000000e+00> : vector<64x274xf32>
    %151 = tpu.matmul %149, %150, %cst_141 {dimension_numbers = #tpu.dot_dimension_numbers<[1], [0], [0], [1], [0, 0, 1, 1], [], []>} : vector<64x16xf32>, vector<16x274xf32>, vector<64x274xf32> -> vector<64x274xf32>
    %152 = arith.addf %147, %151 : vector<64x274xf32>
    %c3_142 = arith.constant 3 : index
    %c0_143 = arith.constant 0 : index
    %c0_144 = arith.constant 0 : index
    %153 = vector.load %arg8[%c3_142, %c0_143, %c0_144] : memref<9x64x16xf32, #tpu.memory_space<vmem>>, vector<1x64x16xf32>
    %154 = vector.shape_cast %153 : vector<1x64x16xf32> to vector<64x16xf32>
    %c0_145 = arith.constant 0 : index
    %c127_146 = arith.constant 127 : index
    %155 = vector.load %arg15[%c0_145, %c127_146] : memref<16x528xf32, #tpu.memory_space<vmem>>, vector<16x274xf32>
    %cst_147 = arith.constant dense<0.000000e+00> : vector<64x274xf32>
    %156 = tpu.matmul %154, %155, %cst_147 {dimension_numbers = #tpu.dot_dimension_numbers<[1], [0], [0], [1], [0, 0, 1, 1], [], []>} : vector<64x16xf32>, vector<16x274xf32>, vector<64x274xf32> -> vector<64x274xf32>
    %157 = arith.addf %152, %156 : vector<64x274xf32>
    %c4_148 = arith.constant 4 : index
    %c0_149 = arith.constant 0 : index
    %c0_150 = arith.constant 0 : index
    %158 = vector.load %arg8[%c4_148, %c0_149, %c0_150] : memref<9x64x16xf32, #tpu.memory_space<vmem>>, vector<1x64x16xf32>
    %159 = vector.shape_cast %158 : vector<1x64x16xf32> to vector<64x16xf32>
    %c0_151 = arith.constant 0 : index
    %c128_152 = arith.constant 128 : index
    %160 = vector.load %arg15[%c0_151, %c128_152] : memref<16x528xf32, #tpu.memory_space<vmem>>, vector<16x274xf32>
    %cst_153 = arith.constant dense<0.000000e+00> : vector<64x274xf32>
    %161 = tpu.matmul %159, %160, %cst_153 {dimension_numbers = #tpu.dot_dimension_numbers<[1], [0], [0], [1], [0, 0, 1, 1], [], []>} : vector<64x16xf32>, vector<16x274xf32>, vector<64x274xf32> -> vector<64x274xf32>
    %162 = arith.addf %157, %161 : vector<64x274xf32>
    %c5_154 = arith.constant 5 : index
    %c0_155 = arith.constant 0 : index
    %c0_156 = arith.constant 0 : index
    %163 = vector.load %arg8[%c5_154, %c0_155, %c0_156] : memref<9x64x16xf32, #tpu.memory_space<vmem>>, vector<1x64x16xf32>
    %164 = vector.shape_cast %163 : vector<1x64x16xf32> to vector<64x16xf32>
    %c0_157 = arith.constant 0 : index
    %c129_158 = arith.constant 129 : index
    %165 = vector.load %arg15[%c0_157, %c129_158] : memref<16x528xf32, #tpu.memory_space<vmem>>, vector<16x274xf32>
    %cst_159 = arith.constant dense<0.000000e+00> : vector<64x274xf32>
    %166 = tpu.matmul %164, %165, %cst_159 {dimension_numbers = #tpu.dot_dimension_numbers<[1], [0], [0], [1], [0, 0, 1, 1], [], []>} : vector<64x16xf32>, vector<16x274xf32>, vector<64x274xf32> -> vector<64x274xf32>
    %167 = arith.addf %162, %166 : vector<64x274xf32>
    %c6_160 = arith.constant 6 : index
    %c0_161 = arith.constant 0 : index
    %c0_162 = arith.constant 0 : index
    %168 = vector.load %arg8[%c6_160, %c0_161, %c0_162] : memref<9x64x16xf32, #tpu.memory_space<vmem>>, vector<1x64x16xf32>
    %169 = vector.shape_cast %168 : vector<1x64x16xf32> to vector<64x16xf32>
    %c0_163 = arith.constant 0 : index
    %c147_164 = arith.constant 147 : index
    %170 = vector.load %arg15[%c0_163, %c147_164] : memref<16x528xf32, #tpu.memory_space<vmem>>, vector<16x274xf32>
    %cst_165 = arith.constant dense<0.000000e+00> : vector<64x274xf32>
    %171 = tpu.matmul %169, %170, %cst_165 {dimension_numbers = #tpu.dot_dimension_numbers<[1], [0], [0], [1], [0, 0, 1, 1], [], []>} : vector<64x16xf32>, vector<16x274xf32>, vector<64x274xf32> -> vector<64x274xf32>
    %172 = arith.addf %167, %171 : vector<64x274xf32>
    %c7_166 = arith.constant 7 : index
    %c0_167 = arith.constant 0 : index
    %c0_168 = arith.constant 0 : index
    %173 = vector.load %arg8[%c7_166, %c0_167, %c0_168] : memref<9x64x16xf32, #tpu.memory_space<vmem>>, vector<1x64x16xf32>
    %174 = vector.shape_cast %173 : vector<1x64x16xf32> to vector<64x16xf32>
    %c0_169 = arith.constant 0 : index
    %c148_170 = arith.constant 148 : index
    %175 = vector.load %arg15[%c0_169, %c148_170] : memref<16x528xf32, #tpu.memory_space<vmem>>, vector<16x274xf32>
    %cst_171 = arith.constant dense<0.000000e+00> : vector<64x274xf32>
    %176 = tpu.matmul %174, %175, %cst_171 {dimension_numbers = #tpu.dot_dimension_numbers<[1], [0], [0], [1], [0, 0, 1, 1], [], []>} : vector<64x16xf32>, vector<16x274xf32>, vector<64x274xf32> -> vector<64x274xf32>
    %177 = arith.addf %172, %176 : vector<64x274xf32>
    %c8_172 = arith.constant 8 : index
    %c0_173 = arith.constant 0 : index
    %c0_174 = arith.constant 0 : index
    %178 = vector.load %arg8[%c8_172, %c0_173, %c0_174] : memref<9x64x16xf32, #tpu.memory_space<vmem>>, vector<1x64x16xf32>
    %179 = vector.shape_cast %178 : vector<1x64x16xf32> to vector<64x16xf32>
    %c0_175 = arith.constant 0 : index
    %c149_176 = arith.constant 149 : index
    %180 = vector.load %arg15[%c0_175, %c149_176] : memref<16x528xf32, #tpu.memory_space<vmem>>, vector<16x274xf32>
    %cst_177 = arith.constant dense<0.000000e+00> : vector<64x274xf32>
    %181 = tpu.matmul %179, %180, %cst_177 {dimension_numbers = #tpu.dot_dimension_numbers<[1], [0], [0], [1], [0, 0, 1, 1], [], []>} : vector<64x16xf32>, vector<16x274xf32>, vector<64x274xf32> -> vector<64x274xf32>
    %182 = arith.addf %177, %181 : vector<64x274xf32>
    %c0_178 = arith.constant 0 : index
    %c0_179 = arith.constant 0 : index
    %183 = vector.load %arg9[%c0_178, %c0_179] : memref<64x1xf32, #tpu.memory_space<vmem>>, vector<64x1xf32>
    %184 = vector.broadcast %183 : vector<64x1xf32> to vector<64x274xf32>
    %185 = arith.addf %182, %184 : vector<64x274xf32>
    %cst_180 = arith.constant 0.000000e+00 : f32
    %186 = vector.broadcast %cst_180 : f32 to vector<64x274xf32>
    %187 = arith.maximumf %185, %186 : vector<64x274xf32>
    %c0_181 = arith.constant 0 : index
    %c0_182 = arith.constant 0 : index
    %188 = vector.load %arg3[%c0_181, %c0_182] : memref<1x400xf32, #tpu.memory_space<vmem>>, vector<1x274xf32>
    %189 = vector.broadcast %188 : vector<1x274xf32> to vector<64x274xf32>
    %190 = arith.mulf %187, %189 : vector<64x274xf32>
    %cst_183 = arith.constant 0.000000e+00 : f32
    %191 = vector.broadcast %cst_183 : f32 to vector<64x42xf32>
    %c0_184 = arith.constant 0 : index
    %c86 = arith.constant 86 : index
    %192 = vector.load %arg16[%c0_184, %c86] : memref<64x528xf32, #tpu.memory_space<vmem>>, vector<64x42xf32>
    tpu.vector_store %arg16[%c0_184, %c86], %191 {strides = array<i32>} : memref<64x528xf32, #tpu.memory_space<vmem>>, vector<64x42xf32>,
    %c0_185 = arith.constant 0 : index
    %c128_186 = arith.constant 128 : index
    %193 = vector.load %arg16[%c0_185, %c128_186] : memref<64x528xf32, #tpu.memory_space<vmem>>, vector<64x274xf32>
    tpu.vector_store %arg16[%c0_185, %c128_186], %190 {strides = array<i32>} : memref<64x528xf32, #tpu.memory_space<vmem>>, vector<64x274xf32>,
    %cst_187 = arith.constant 0.000000e+00 : f32
    %194 = vector.broadcast %cst_187 : f32 to vector<64x126xf32>
    %c0_188 = arith.constant 0 : index
    %c402_189 = arith.constant 402 : index
    %195 = vector.load %arg16[%c0_188, %c402_189] : memref<64x528xf32, #tpu.memory_space<vmem>>, vector<64x126xf32>
    tpu.vector_store %arg16[%c0_188, %c402_189], %194 {strides = array<i32>} : memref<64x528xf32, #tpu.memory_space<vmem>>, vector<64x126xf32>,
    %cst_190 = arith.constant 0.000000e+00 : f32
    %196 = vector.broadcast %cst_190 : f32 to vector<5x316xf32>
    %c0_191 = arith.constant 0 : index
    %c0_192 = arith.constant 0 : index
    %c0_193 = arith.constant 0 : index
    %197 = vector.load %arg10[%c0_191, %c0_192, %c0_193] : memref<9x5x64xf32, #tpu.memory_space<vmem>>, vector<1x5x64xf32>
    %198 = vector.shape_cast %197 : vector<1x5x64xf32> to vector<5x64xf32>
    %c0_194 = arith.constant 0 : index
    %c86_195 = arith.constant 86 : index
    %199 = vector.load %arg16[%c0_194, %c86_195] : memref<64x528xf32, #tpu.memory_space<vmem>>, vector<64x316xf32>
    %cst_196 = arith.constant dense<0.000000e+00> : vector<5x316xf32>
    %200 = tpu.matmul %198, %199, %cst_196 {dimension_numbers = #tpu.dot_dimension_numbers<[1], [0], [0], [1], [0, 0, 1, 1], [], []>} : vector<5x64xf32>, vector<64x316xf32>, vector<5x316xf32> -> vector<5x316xf32>
    %201 = arith.addf %196, %200 : vector<5x316xf32>
    %c1_197 = arith.constant 1 : index
    %c0_198 = arith.constant 0 : index
    %c0_199 = arith.constant 0 : index
    %202 = vector.load %arg10[%c1_197, %c0_198, %c0_199] : memref<9x5x64xf32, #tpu.memory_space<vmem>>, vector<1x5x64xf32>
    %203 = vector.shape_cast %202 : vector<1x5x64xf32> to vector<5x64xf32>
    %c0_200 = arith.constant 0 : index
    %c87 = arith.constant 87 : index
    %204 = vector.load %arg16[%c0_200, %c87] : memref<64x528xf32, #tpu.memory_space<vmem>>, vector<64x316xf32>
    %cst_201 = arith.constant dense<0.000000e+00> : vector<5x316xf32>
    %205 = tpu.matmul %203, %204, %cst_201 {dimension_numbers = #tpu.dot_dimension_numbers<[1], [0], [0], [1], [0, 0, 1, 1], [], []>} : vector<5x64xf32>, vector<64x316xf32>, vector<5x316xf32> -> vector<5x316xf32>
    %206 = arith.addf %201, %205 : vector<5x316xf32>
    %c2_202 = arith.constant 2 : index
    %c0_203 = arith.constant 0 : index
    %c0_204 = arith.constant 0 : index
    %207 = vector.load %arg10[%c2_202, %c0_203, %c0_204] : memref<9x5x64xf32, #tpu.memory_space<vmem>>, vector<1x5x64xf32>
    %208 = vector.shape_cast %207 : vector<1x5x64xf32> to vector<5x64xf32>
    %c0_205 = arith.constant 0 : index
    %c88 = arith.constant 88 : index
    %209 = vector.load %arg16[%c0_205, %c88] : memref<64x528xf32, #tpu.memory_space<vmem>>, vector<64x316xf32>
    %cst_206 = arith.constant dense<0.000000e+00> : vector<5x316xf32>
    %210 = tpu.matmul %208, %209, %cst_206 {dimension_numbers = #tpu.dot_dimension_numbers<[1], [0], [0], [1], [0, 0, 1, 1], [], []>} : vector<5x64xf32>, vector<64x316xf32>, vector<5x316xf32> -> vector<5x316xf32>
    %211 = arith.addf %206, %210 : vector<5x316xf32>
    %c3_207 = arith.constant 3 : index
    %c0_208 = arith.constant 0 : index
    %c0_209 = arith.constant 0 : index
    %212 = vector.load %arg10[%c3_207, %c0_208, %c0_209] : memref<9x5x64xf32, #tpu.memory_space<vmem>>, vector<1x5x64xf32>
    %213 = vector.shape_cast %212 : vector<1x5x64xf32> to vector<5x64xf32>
    %c0_210 = arith.constant 0 : index
    %c106 = arith.constant 106 : index
    %214 = vector.load %arg16[%c0_210, %c106] : memref<64x528xf32, #tpu.memory_space<vmem>>, vector<64x316xf32>
    %cst_211 = arith.constant dense<0.000000e+00> : vector<5x316xf32>
    %215 = tpu.matmul %213, %214, %cst_211 {dimension_numbers = #tpu.dot_dimension_numbers<[1], [0], [0], [1], [0, 0, 1, 1], [], []>} : vector<5x64xf32>, vector<64x316xf32>, vector<5x316xf32> -> vector<5x316xf32>
    %216 = arith.addf %211, %215 : vector<5x316xf32>
    %c4_212 = arith.constant 4 : index
    %c0_213 = arith.constant 0 : index
    %c0_214 = arith.constant 0 : index
    %217 = vector.load %arg10[%c4_212, %c0_213, %c0_214] : memref<9x5x64xf32, #tpu.memory_space<vmem>>, vector<1x5x64xf32>
    %218 = vector.shape_cast %217 : vector<1x5x64xf32> to vector<5x64xf32>
    %c0_215 = arith.constant 0 : index
    %c107_216 = arith.constant 107 : index
    %219 = vector.load %arg16[%c0_215, %c107_216] : memref<64x528xf32, #tpu.memory_space<vmem>>, vector<64x316xf32>
    %cst_217 = arith.constant dense<0.000000e+00> : vector<5x316xf32>
    %220 = tpu.matmul %218, %219, %cst_217 {dimension_numbers = #tpu.dot_dimension_numbers<[1], [0], [0], [1], [0, 0, 1, 1], [], []>} : vector<5x64xf32>, vector<64x316xf32>, vector<5x316xf32> -> vector<5x316xf32>
    %221 = arith.addf %216, %220 : vector<5x316xf32>
    %c5_218 = arith.constant 5 : index
    %c0_219 = arith.constant 0 : index
    %c0_220 = arith.constant 0 : index
    %222 = vector.load %arg10[%c5_218, %c0_219, %c0_220] : memref<9x5x64xf32, #tpu.memory_space<vmem>>, vector<1x5x64xf32>
    %223 = vector.shape_cast %222 : vector<1x5x64xf32> to vector<5x64xf32>
    %c0_221 = arith.constant 0 : index
    %c108_222 = arith.constant 108 : index
    %224 = vector.load %arg16[%c0_221, %c108_222] : memref<64x528xf32, #tpu.memory_space<vmem>>, vector<64x316xf32>
    %cst_223 = arith.constant dense<0.000000e+00> : vector<5x316xf32>
    %225 = tpu.matmul %223, %224, %cst_223 {dimension_numbers = #tpu.dot_dimension_numbers<[1], [0], [0], [1], [0, 0, 1, 1], [], []>} : vector<5x64xf32>, vector<64x316xf32>, vector<5x316xf32> -> vector<5x316xf32>
    %226 = arith.addf %221, %225 : vector<5x316xf32>
    %c6_224 = arith.constant 6 : index
    %c0_225 = arith.constant 0 : index
    %c0_226 = arith.constant 0 : index
    %227 = vector.load %arg10[%c6_224, %c0_225, %c0_226] : memref<9x5x64xf32, #tpu.memory_space<vmem>>, vector<1x5x64xf32>
    %228 = vector.shape_cast %227 : vector<1x5x64xf32> to vector<5x64xf32>
    %c0_227 = arith.constant 0 : index
    %c126 = arith.constant 126 : index
    %229 = vector.load %arg16[%c0_227, %c126] : memref<64x528xf32, #tpu.memory_space<vmem>>, vector<64x316xf32>
    %cst_228 = arith.constant dense<0.000000e+00> : vector<5x316xf32>
    %230 = tpu.matmul %228, %229, %cst_228 {dimension_numbers = #tpu.dot_dimension_numbers<[1], [0], [0], [1], [0, 0, 1, 1], [], []>} : vector<5x64xf32>, vector<64x316xf32>, vector<5x316xf32> -> vector<5x316xf32>
    %231 = arith.addf %226, %230 : vector<5x316xf32>
    %c7_229 = arith.constant 7 : index
    %c0_230 = arith.constant 0 : index
    %c0_231 = arith.constant 0 : index
    %232 = vector.load %arg10[%c7_229, %c0_230, %c0_231] : memref<9x5x64xf32, #tpu.memory_space<vmem>>, vector<1x5x64xf32>
    %233 = vector.shape_cast %232 : vector<1x5x64xf32> to vector<5x64xf32>
    %c0_232 = arith.constant 0 : index
    %c127_233 = arith.constant 127 : index
    %234 = vector.load %arg16[%c0_232, %c127_233] : memref<64x528xf32, #tpu.memory_space<vmem>>, vector<64x316xf32>
    %cst_234 = arith.constant dense<0.000000e+00> : vector<5x316xf32>
    %235 = tpu.matmul %233, %234, %cst_234 {dimension_numbers = #tpu.dot_dimension_numbers<[1], [0], [0], [1], [0, 0, 1, 1], [], []>} : vector<5x64xf32>, vector<64x316xf32>, vector<5x316xf32> -> vector<5x316xf32>
    %236 = arith.addf %231, %235 : vector<5x316xf32>
    %c8_235 = arith.constant 8 : index
    %c0_236 = arith.constant 0 : index
    %c0_237 = arith.constant 0 : index
    %237 = vector.load %arg10[%c8_235, %c0_236, %c0_237] : memref<9x5x64xf32, #tpu.memory_space<vmem>>, vector<1x5x64xf32>
    %238 = vector.shape_cast %237 : vector<1x5x64xf32> to vector<5x64xf32>
    %c0_238 = arith.constant 0 : index
    %c128_239 = arith.constant 128 : index
    %239 = vector.load %arg16[%c0_238, %c128_239] : memref<64x528xf32, #tpu.memory_space<vmem>>, vector<64x316xf32>
    %cst_240 = arith.constant dense<0.000000e+00> : vector<5x316xf32>
    %240 = tpu.matmul %238, %239, %cst_240 {dimension_numbers = #tpu.dot_dimension_numbers<[1], [0], [0], [1], [0, 0, 1, 1], [], []>} : vector<5x64xf32>, vector<64x316xf32>, vector<5x316xf32> -> vector<5x316xf32>
    %241 = arith.addf %236, %240 : vector<5x316xf32>
    %c0_241 = arith.constant 0 : index
    %c0_242 = arith.constant 0 : index
    %242 = vector.load %arg11[%c0_241, %c0_242] : memref<5x1xf32, #tpu.memory_space<vmem>>, vector<5x1xf32>
    %243 = vector.broadcast %242 : vector<5x1xf32> to vector<5x316xf32>
    %244 = arith.addf %241, %243 : vector<5x316xf32>
    %245 = arith.negf %244 : vector<5x316xf32>
    %246 = math.exp %245 : vector<5x316xf32>
    %cst_243 = arith.constant 1.000000e+00 : f32
    %247 = vector.broadcast %cst_243 : f32 to vector<5x316xf32>
    %248 = arith.addf %247, %246 : vector<5x316xf32>
    %249 = arith.divf %247, %248 : vector<5x316xf32>
    %c0_244 = arith.constant 0 : index
    %c0_245 = arith.constant 0 : index
    %c0_246 = arith.constant 0 : index
    %250 = vector.load %arg12[%c0_244, %c0_245, %c0_246] : memref<1x5x400xf32, #tpu.memory_space<vmem>>, vector<1x5x316xf32>
    %251 = vector.shape_cast %250 : vector<1x5x316xf32> to vector<5x316xf32>
    %252 = vector.shape_cast %249 : vector<5x316xf32> to vector<1x5x316xf32>
    tpu.vector_store %arg12[%c0_244, %c0_245, %c0_246], %252 {strides = array<i32>} : memref<1x5x400xf32, #tpu.memory_space<vmem>>, vector<1x5x316xf32>,
    %cst_247 = arith.constant 0.000000e+00 : f32
    %253 = vector.broadcast %cst_247 : f32 to vector<5x84xf32>
    %c0_248 = arith.constant 0 : index
    %c0_249 = arith.constant 0 : index
    %c316 = arith.constant 316 : index
    %254 = vector.load %arg12[%c0_248, %c0_249, %c316] : memref<1x5x400xf32, #tpu.memory_space<vmem>>, vector<1x5x84xf32>
    %255 = vector.shape_cast %254 : vector<1x5x84xf32> to vector<5x84xf32>
    %256 = vector.shape_cast %253 : vector<5x84xf32> to vector<1x5x84xf32>
    tpu.vector_store %arg12[%c0_248, %c0_249, %c316], %256 {strides = array<i32>} : memref<1x5x400xf32, #tpu.memory_space<vmem>>, vector<1x5x84xf32>,
    return
  }
  func.func @transform_0(%arg0: i32) -> (i32, i32, i32) {
    %c0_i32 = arith.constant 0 : i32
    %c0_i32_0 = arith.constant 0 : i32
    %c0_i32_1 = arith.constant 0 : i32
    return %arg0, %c0_i32, %c0_i32_0 : i32, i32, i32
  }
  func.func @transform_1(%arg0: i32) -> (i32, i32) {
    %c0_i32 = arith.constant 0 : i32
    %c0_i32_0 = arith.constant 0 : i32
    %c0_i32_1 = arith.constant 0 : i32
    return %c0_i32, %c0_i32_0 : i32, i32
  }
  func.func @transform_2(%arg0: i32) -> (i32, i32) {
    %c0_i32 = arith.constant 0 : i32
    %c0_i32_0 = arith.constant 0 : i32
    %c0_i32_1 = arith.constant 0 : i32
    return %c0_i32, %c0_i32_0 : i32, i32
  }
  func.func @transform_3(%arg0: i32) -> (i32, i32, i32) {
    %c0_i32 = arith.constant 0 : i32
    %c0_i32_0 = arith.constant 0 : i32
    %c0_i32_1 = arith.constant 0 : i32
    %c0_i32_2 = arith.constant 0 : i32
    return %c0_i32, %c0_i32_0, %c0_i32_1 : i32, i32, i32
  }
  func.func @transform_4(%arg0: i32) -> (i32, i32) {
    %c0_i32 = arith.constant 0 : i32
    %c0_i32_0 = arith.constant 0 : i32
    %c0_i32_1 = arith.constant 0 : i32
    return %c0_i32, %c0_i32_0 : i32, i32
  }
  func.func @transform_5(%arg0: i32) -> (i32, i32, i32) {
    %c0_i32 = arith.constant 0 : i32
    %c0_i32_0 = arith.constant 0 : i32
    %c0_i32_1 = arith.constant 0 : i32
    %c0_i32_2 = arith.constant 0 : i32
    return %c0_i32, %c0_i32_0, %c0_i32_1 : i32, i32, i32
  }
  func.func @transform_6(%arg0: i32) -> (i32, i32) {
    %c0_i32 = arith.constant 0 : i32
    %c0_i32_0 = arith.constant 0 : i32
    %c0_i32_1 = arith.constant 0 : i32
    return %c0_i32, %c0_i32_0 : i32, i32
  }
  func.func @transform_7(%arg0: i32) -> (i32, i32, i32) {
    %c0_i32 = arith.constant 0 : i32
    %c0_i32_0 = arith.constant 0 : i32
    %c0_i32_1 = arith.constant 0 : i32
    %c0_i32_2 = arith.constant 0 : i32
    return %c0_i32, %c0_i32_0, %c0_i32_1 : i32, i32, i32
  }
  func.func @transform_8(%arg0: i32) -> (i32, i32) {
    %c0_i32 = arith.constant 0 : i32
    %c0_i32_0 = arith.constant 0 : i32
    %c0_i32_1 = arith.constant 0 : i32
    return %c0_i32, %c0_i32_0 : i32, i32
  }
  func.func @transform_9(%arg0: i32) -> (i32, i32, i32) {
    %c0_i32 = arith.constant 0 : i32
    %c0_i32_0 = arith.constant 0 : i32
    %c0_i32_1 = arith.constant 0 : i32
    %c0_i32_2 = arith.constant 0 : i32
    return %c0_i32, %c0_i32_0, %c0_i32_1 : i32, i32, i32
  }
  func.func @transform_10(%arg0: i32) -> (i32, i32) {
    %c0_i32 = arith.constant 0 : i32
    %c0_i32_0 = arith.constant 0 : i32
    %c0_i32_1 = arith.constant 0 : i32
    return %c0_i32, %c0_i32_0 : i32, i32
  }
  func.func @transform_11(%arg0: i32) -> (i32, i32, i32) {
    %c0_i32 = arith.constant 0 : i32
    %c0_i32_0 = arith.constant 0 : i32
    %c0_i32_1 = arith.constant 0 : i32
    return %arg0, %c0_i32, %c0_i32_0 : i32, i32, i32
  }
}

</mosaic_0001>

<bundles_post_ra>
// kernel: an_model_forward.1
= control target key start
LH: loop header
LB: loop body
LE: loop exit
PB: predicated region body
PF: predicated region fallthrough
CT: control target
= control target key end

     0   :  { %s12806_s17 = smov 0   ;;  %s18935_s0 = inlined_call_operand.vmem [shape: f32[2,5,400], index: 0, kind: input, shape index: {}]   ;;  %s18936_s1 = inlined_call_operand.vmem [shape: f32[1,400], index: 1, kind: input, shape index: {}]   ;;  %s18937_s2 = inlined_call_operand.vmem [shape: f32[1,400], index: 2, kind: input, shape index: {}]   ;;  %s18938_s3 = inlined_call_operand.vmem [shape: f32[9,64,5], index: 3, kind: input, shape index: {}]   ;;  %s18939_s4 = inlined_call_operand.vmem [shape: f32[64,1], index: 4, kind: input, shape index: {}]   ;;  %s18940_s5 = inlined_call_operand.vmem [shape: f32[9,16,64], index: 5, kind: input, shape index: {}]   ;;  %s18941_s6 = inlined_call_operand.vmem [shape: f32[16,1], index: 6, kind: input, shape index: {}]   ;;  %s18942_s7 = inlined_call_operand.vmem [shape: f32[9,64,16], index: 7, kind: input, shape index: {}]   ;;  %s18943_s8 = inlined_call_operand.vmem [shape: f32[64,1], index: 8, kind: input, shape index: {}]   ;;  %s18944_s9 = inlined_call_operand.vmem [shape: f32[9,5,64], index: 9, kind: input, shape index: {}]   ;;  %s18945_s10 = inlined_call_operand.vmem [shape: f32[5,1], index: 10, kind: input, shape index: {}]   ;;  %s18946_s11 = inlined_call_operand.vmem [shape: f32[2,5,400], index: 11, kind: output, shape index: {}]  }
   0x1 LB: > { %s11127_s18 = sadd.s32 4294967295, %s12728_s17   ;;  %p11131_p0 = scmp.ge.s32.totalorder %s12728_s17, 1  ;;  %s12728_s17 = sphi %s12806_s17, %s21_s17  }
   0x2   : > { %p337_p1 = scmp.lt.s32.totalorder %s12728_s17, 3 }
   0x4   : > { %p338_p2 = pnand %p11131_p0, %p337_p1 }
   0x6   : > { %341 = sbr.rel (%p338_p2) target bundleno = 3233 (0xca1), region = 64 }
   0xb   : > { %vm391_vm0 = vcmask 1045336   ;;  %p377_p3 = scmp.lt.s32.totalorder %s11127_s18, 1  ;;  %v18947_v0 = vmov 0.0   ;;  %v11136_v4 = vld [vmem:[%s18938_s3 + $0x40] sm:$0xff]  ;;  %vm435_vm1 = vcmask 39936   ;;  %s12731_s25 = smov 20  }
   0xc   : > { %392 = vst.msk [vmem:[#allocation2] sm:$0x1f] %vm391_vm0, %v18947_v0  ;;  %531 = vmatprep.mubr.f32.mxu0 %v18947_v0  ;;  %12008 = vmatprep.mubr.msk.f32.mxu1 %vm435_vm1, %v11136_v4  ;;  %s12732_s26 = smov 21   ;;  %s12733_s27 = smov 19   ;;  %vm431_vm2 = vcmask 162816   ;;  %vm460_vm3 = vcmask 1044480  }
   0xd   : > { %s19821_s18 = smov (!%p377_p3, %s11127_s18), 1  ;;  %s12734_s28 = smov 1   ;;  %v11137_v16 = vld [vmem:[%s18938_s3 + $0x48] sm:$0xff]  ;;  %v11138_v18 = vld [vmem:[%s18938_s3 + $0x50] sm:$0xff]  ;;  %vm693_vm4 = vcmask 171008   ;;  %v11139_v21 = vld [vmem:[%s18938_s3 + $0x58] sm:$0xff] }
   0xe   : > { %s11662_s19 = sshll.u32 %s19821_s18, 5  ;;  %s12735_s29 = smov 127   ;;  %v11140_v23 = vld [vmem:[%s18938_s3 + $0x60] sm:$0xff]  ;;  %v11141_v26 = vld [vmem:[%s18938_s3 + $0x68] sm:$0xff]  ;;  %v11142_v29 = vld [vmem:[%s18938_s3 + $0x70] sm:$0xff]  ;;  %vm962_vm5 = vcmask 154624  }
   0xf   : > { %s381_s22 = scalar_lea.vmem %s18935_s0, %s11662_s19  ;;  %s12736_s30 = smov 109   ;;  %v11143_v32 = vld [vmem:[%s18938_s3 + $0x78] sm:$0xff]  ;;  %v398_v36 = vld [vmem:[%s18938_s3] sm:$0xff]  ;;  %v399_v38 = vld [vmem:[%s18938_s3 + $0x8] sm:$0xff]  ;;  %vm1255_vm6 = vcmask 7168   ;;  %vm1827_vm7 = vcmask 1039360  }
  0x10   : > { %v387_v1 = vld [vmem:[%s381_s22] sm:$0x1f]  ;;  %v389_v2 = vld [vmem:[%s381_s22 + $0x10] sm:$0x1f]  ;;  %v388_v3 = vld [vmem:[%s381_s22 + $0x8] sm:$0x1f] }
  0x11   : > { %393 = vst [vmem:[#allocation2 + $0x8] sm:$0x1f] %v387_v1  ;;  %395 = vst [vmem:[#allocation2 + $0x18] sm:$0x1f] %v389_v2  ;;  %s12737_s12 = smov 108   ;;  %s12738_s13 = smov 107  }
  0x12   : > { %394 = vst [vmem:[#allocation2 + $0x10] sm:$0x1f] %v388_v3  ;;  %v400_v40 = vld [vmem:[%s18938_s3 + $0x10] sm:$0xff]  ;;  %v401_v42 = vld [vmem:[%s18938_s3 + $0x18] sm:$0xff]  ;;  %v402_v43 = vld [vmem:[%s18938_s3 + $0x20] sm:$0xff]  ;;  %vm2117_vm8 = vcmask 891904  }
  0x13   : > { %v406_v5 = vld [vmem:[#allocation2] sm:$0x1f]  ;;  %v403_v47 = vld [vmem:[%s18938_s3 + $0x28] sm:$0xff]  ;;  %v404_v48 = vld [vmem:[%s18938_s3 + $0x30] sm:$0xff]  ;;  %vm2407_vm9 = vcmask 883712   ;;  %vm3381_vm10 = vcmask 1048408  }
  0x14   : > { %423 = vrot.lane.b32.xlu1 %v406_v5, %s12731_s25  ;;  %v405_v49 = vld [vmem:[%s18938_s3 + $0x38] sm:$0xff]  ;;  %v11182_v50 = vld [vmem:[%s18938_s3 + $0x80] sm:$0xff]  ;;  %v11183_v52 = vld [vmem:[%s18938_s3 + $0x88] sm:$0xff]  ;;  %3389 = vst.msk [vmem:[#allocation3 + $0x118] sm:$0xff] %vm3381_vm10, %v18947_v0  ;;  %vm2697_vm11 = vcmask 875520   ;;  %vm3392_vm12 = vcmask 318464  }
  0x15   : > { %v11184_v53 = vld [vmem:[%s18938_s3 + $0x90] sm:$0xff]  ;;  %v11185_v55 = vld [vmem:[%s18938_s3 + $0x98] sm:$0xff]  ;;  %v11186_v56 = vld [vmem:[%s18938_s3 + $0xa0] sm:$0xff]  ;;  %3382 = vst.msk [vmem:[#allocation3] sm:$0xff] %vm3381_vm10, %v18947_v0  ;;  %vm3415_vm13 = vcmask 1047864   ;;  %vm3614_vm14 = vcmask 523264  }
  0x16   : > { %v11187_v57 = vld [vmem:[%s18938_s3 + $0xa8] sm:$0xff]  ;;  %v11188_v58 = vld [vmem:[%s18938_s3 + $0xb0] sm:$0xff]  ;;  %v11189_v59 = vld [vmem:[%s18938_s3 + $0xb8] sm:$0xff]  ;;  %3383 = vst.msk [vmem:[#allocation3 + $0x28] sm:$0xff] %vm3381_vm10, %v18947_v0  ;;  %vm8690_vm15 = vcmask 1048240   ;;  %vm5907_vm0 = vcmask 146432  }
  0x17   : > { %v11209_v60 = vld [vmem:[%s18938_s3 + $0xc0] sm:$0xff]  ;;  %v11210_v1 = vld [vmem:[%s18938_s3 + $0xc8] sm:$0xff]  ;;  %v11211_v2 = vld [vmem:[%s18938_s3 + $0xd0] sm:$0xff]  ;;  %3384 = vst.msk [vmem:[#allocation3 + $0x50] sm:$0xff] %vm3381_vm10, %v18947_v0  ;;  %s12740_s22 = smov 41   ;;  %s12741_s20 = smov 42  }
  0x18   : > { %v12829_v6 = vld [vmem:[#allocation2 + $0x8] sm:$0x1f]  ;;  %v12831_v7 = vld [vmem:[#allocation2 + $0x18] sm:$0x1f]  ;;  %3385 = vst.msk [vmem:[#allocation3 + $0x78] sm:$0xff] %vm3381_vm10, %v18947_v0  ;;  %3386 = vst.msk [vmem:[#allocation3 + $0xa0] sm:$0xff] %vm3381_vm10, %v18947_v0 }
  0x19   : > { %425 = vrot.lane.b32.xlu0 %v12829_v6, %s12731_s25  ;;  %429 = vrot.lane.b32.xlu1 %v12831_v7, %s12731_s25  ;;  %v12837_v8 = vld [vmem:[#allocation2 + $0x10] sm:$0x1f]  ;;  %v11212_v3 = vld [vmem:[%s18938_s3 + $0xd8] sm:$0xff]  ;;  %3387 = vst.msk [vmem:[#allocation3 + $0xc8] sm:$0xff] %vm3381_vm10, %v18947_v0  ;;  %3388 = vst.msk [vmem:[#allocation3 + $0xf0] sm:$0xff] %vm3381_vm10, %v18947_v0  ;;  %s12742_s21 = smov 40  }
  0x1a   : > { %5903 = vst.msk [vmem:[#allocation4] sm:$0xff] %vm3381_vm10, %v18947_v0  ;;  %5904 = vst.msk [vmem:[#allocation4 + $0x28] sm:$0xff] %vm3381_vm10, %v18947_v0  ;;  %s12743_s15 = smov 22   ;;  %vm9386_vm10 = vcmask 326656  }
  0x1d   : > { %427 = vrot.lane.b32.xlu0 %v12837_v8, %s12731_s25  ;;  %691 = vrot.lane.b32.xlu1 %v12831_v7, %s12732_s26 }
  0x21   : > { %689 = vrot.lane.b32.xlu0 %v12837_v8, %s12732_s26  ;;  %685 = vrot.lane.b32.xlu1 %v406_v5, %s12732_s26 }
  0x25   : > { %687 = vrot.lane.b32.xlu0 %v12829_v6, %s12732_s26  ;;  %958 = vrot.lane.b32.xlu1 %v12837_v8, %s12733_s27 }
  0x29   : > { %960 = vrot.lane.b32.xlu1 %v12831_v7, %s12733_s27  ;;  %956 = vrot.lane.b32.xlu0 %v12829_v6, %s12733_s27 }
  0x2d   : > { %954 = vrot.lane.b32.xlu0 %v406_v5, %s12733_s27  ;;  %1253 = vrot.lane.b32.xlu1 %v12831_v7, %s12734_s28 }
  0x31   : > { %1251 = vrot.lane.b32.xlu0 %v12837_v8, %s12734_s28  ;;  %1247 = vrot.lane.b32.xlu1 %v406_v5, %s12734_s28  ;;  %v11214_v5 = vld [vmem:[%s18938_s3 + $0xe8] sm:$0xff] }
  0x35   : > { %1249 = vrot.lane.b32.xlu0 %v12829_v6, %s12734_s28  ;;  %1823 = vrot.lane.b32.xlu1 %v12837_v8, %s12735_s29 }
  0x39   : > { %1825 = vrot.lane.b32.xlu0 %v12831_v7, %s12735_s29  ;;  %2113 = vrot.lane.b32.xlu1 %v12837_v8, %s12736_s30 }
  0x3d   : > { %1821 = vrot.lane.b32.xlu0 %v12829_v6, %s12735_s29  ;;  %2111 = vrot.lane.b32.xlu1 %v12829_v6, %s12736_s30 }
  0x41   : > { %2115 = vrot.lane.b32.xlu0 %v12831_v7, %s12736_s30  ;;  %2403 = vrot.lane.b32.xlu1 %v12837_v8, %s12737_s12 }
  0x45   : > { %2405 = vrot.lane.b32.xlu0 %v12831_v7, %s12737_s12  ;;  %2693 = vrot.lane.b32.xlu1 %v12837_v8, %s12738_s13 }
  0x49   : > { %2401 = vrot.lane.b32.xlu0 %v12829_v6, %s12737_s12  ;;  %2691 = vrot.lane.b32.xlu1 %v12829_v6, %s12738_s13 }
  0x4d   : > { %2695 = vrot.lane.b32.xlu0 %v12831_v7, %s12738_s13 }
  0x86   : > { %v424_v9 = vpop.permute.xlu1 %423 }
  0x8b   : > { %v426_v10 = vpop.permute.xlu0 %425  ;;  %v430_v11 = vpop.permute.xlu1 %429 }
  0x8c   : > { %v432_v17 = vsel %vm431_vm2, %v424_v9, %v426_v10  ;;  %v11236_v9 = vld [vmem:[%s18938_s3 + $0x100] sm:$0xff] }
  0x8f   : > { %v428_v12 = vpop.permute.xlu0 %427  ;;  %v692_v13 = vpop.permute.xlu1 %691 }
  0x90   : > { %v433_v14 = vsel %vm431_vm2, %v426_v10, %v428_v12  ;;  %v434_v15 = vsel %vm431_vm2, %v428_v12, %v430_v11  ;;  %v11237_v10 = vld [vmem:[%s18938_s3 + $0x108] sm:$0xff]  ;;  %v11238_v12 = vld [vmem:[%s18938_s3 + $0x110] sm:$0xff] }
  0x91   : > { %11144 = vmatprep.subr.msk.mxu0 %vm460_vm3, %v433_v14  ;;  %12006 = vmatprep.subr.msk.mxu1 %vm460_vm3, %v434_v15 }
  0x92   : > { %11145 = vmatpush1.msk.msra.mxu0 %vm460_vm3, %v432_v17  ;;  %12007 = vmatpush3.msk.msra.mxu1 %vm460_vm3, %v434_v15  ;;  %v11240_v17 = vld [vmem:[%s18938_s3 + $0x120] sm:$0xff] }
  0x93   : > { %11146 = vmatmul.mubr.msk.f32.vlgmr.msra.gmra.mxu0 %vm435_vm1, %v11136_v4  ;;  %12009 = vmatmul.mubr.msk.f32.vlgmr.msra.gmra.mxu1 %vm435_vm1, %v11137_v16  ;;  %v690_v19 = vpop.permute.xlu0 %689  ;;  %v686_v20 = vpop.permute.xlu1 %685  ;;  %v11213_v4 = vld [vmem:[%s18938_s3 + $0xe0] sm:$0xff] }
  0x94   : > { %537 = vmatprep.mubr.f32.mxu0 %v18947_v0  ;;  %12011 = vmatprep.mubr.msk.f32.mxu1 %vm435_vm1, %v11138_v18  ;;  %v696_v22 = vsel %vm693_vm4, %v690_v19, %v692_v13 }
  0x95   : > { %12020 = vmatprep.subr.msk.mxu0 %vm460_vm3, %v696_v22 }
  0x96   : > { %12021 = vmatpush3.msk.msra.mxu0 %vm460_vm3, %v696_v22  ;;  %v11243_v22 = vld [vmem:[%s18938_s3 + $0x138] sm:$0xff] }
  0x97   : > { %11147 = vmatmul.mubr.msk.f32.gmra.mxu0 %vm435_vm1, %v11137_v16  ;;  %12012 = vmatmul.mubr.msk.f32.gmra.mxu1 %vm435_vm1, %v11139_v21  ;;  %v688_v24 = vpop.permute.xlu0 %687  ;;  %v959_v25 = vpop.permute.xlu1 %958  ;;  %v11239_v16 = vld [vmem:[%s18938_s3 + $0x118] sm:$0xff] }
  0x98   : > { %543 = vmatprep.mubr.f32.mxu0 %v18947_v0  ;;  %12014 = vmatprep.mubr.msk.f32.mxu1 %vm435_vm1, %v11140_v23  ;;  %v695_v27 = vsel %vm693_vm4, %v688_v24, %v690_v19  ;;  %v694_v28 = vsel %vm693_vm4, %v686_v20, %v688_v24  ;;  %v2978_v19 = vld [vmem:[%s18939_s4 + $0x30] sm:$0xff]  ;;  %v2977_v24 = vld [vmem:[%s18939_s4 + $0x28] sm:$0xff] }
  0x99   : > { %11163 = vmatprep.subr.msk.mxu1 %vm460_vm3, %v695_v27  ;;  %v11242_v20 = vld [vmem:[%s18938_s3 + $0x130] sm:$0xff] }
  0x9a   : > { %11164 = vmatpush1.msk.msra.mxu1 %vm460_vm3, %v694_v28  ;;  %v2975_v28 = vld [vmem:[%s18939_s4 + $0x18] sm:$0xff] }
  0x9b   : > { %11148 = vmatmul.mubr.msk.f32.gmra.mxu0 %vm435_vm1, %v11138_v18  ;;  %12015 = vmatmul.mubr.msk.f32.gmra.mxu1 %vm435_vm1, %v11141_v26  ;;  %v961_v30 = vpop.permute.xlu1 %960  ;;  %v957_v31 = vpop.permute.xlu0 %956  ;;  %v11241_v18 = vld [vmem:[%s18938_s3 + $0x128] sm:$0xff] }
  0x9c   : > { %549 = vmatprep.mubr.f32.mxu0 %v18947_v0  ;;  %12017 = vmatprep.mubr.msk.f32.mxu1 %vm435_vm1, %v11142_v29  ;;  %v965_v33 = vsel %vm962_vm5, %v959_v25, %v961_v30  ;;  %v964_v34 = vsel %vm962_vm5, %v957_v31, %v959_v25  ;;  %v11263_v25 = vld [vmem:[%s18938_s3 + $0x140] sm:$0xff]  ;;  %v11264_v30 = vld [vmem:[%s18938_s3 + $0x148] sm:$0xff] }
  0x9d   : > { %12034 = vmatprep.subr.msk.mxu1 %vm460_vm3, %v965_v33  ;;  %11190 = vmatprep.subr.msk.mxu0 %vm460_vm3, %v964_v34  ;;  %v2979_v34 = vld [vmem:[%s18939_s4 + $0x38] sm:$0xff] }
  0x9f   : > { %11149 = vmatmul.mubr.msk.f32.gmra.mxu0 %vm435_vm1, %v11139_v21  ;;  %12018 = vmatmul.mubr.msk.f32.gmra.mxu1 %vm435_vm1, %v11143_v32  ;;  %v955_v35 = vpop.permute.xlu0 %954  ;;  %v1254_v44 = vpop.permute.xlu1 %1253  ;;  %v12739_v21 = vmov 0  }
  0xa0   : > { %555 = vmatprep.mubr.f32.mxu0 %v18947_v0  ;;  %791 = vmatprep.mubr.f32.mxu1 %v18947_v0  ;;  %v963_v45 = vsel %vm962_vm5, %v955_v35, %v957_v31  ;;  %v2973_v31 = vld [vmem:[%s18939_s4 + $0x8] sm:$0xff]  ;;  %v11267_v35 = vld [vmem:[%s18938_s3 + $0x160] sm:$0xff] }
  0xa1   : > { %12643 = vset.pattern.permute.xlu1 %v12739_v21  ;;  %12642 = vset.pattern.permute.xlu0 %v12739_v21 }
  0xa2   : > { %3012 = vperm.xlu1 %12643, %v2978_v19   ;;  %3017 = vperm.xlu0 %12642, %v2979_v34   ;;  %v11348_v19 = vld [vmem:[%s18938_s3 + $0x220] sm:$0xff] }
  0xa3   : > { %11150 = vmatmul.mubr.msk.f32.gmra.mxu0 %vm435_vm1, %v11140_v23  ;;  %11165 = vmatmul.mubr.msk.f32.vlgmr.msra.gmra.mxu1 %vm435_vm1, %v398_v36  ;;  %v1252_v37 = vpop.permute.xlu0 %1251  ;;  %v1248_v51 = vpop.permute.xlu1 %1247 }
  0xa4   : > { %561 = vmatprep.mubr.f32.mxu0 %v18947_v0  ;;  %797 = vmatprep.mubr.f32.mxu1 %v18947_v0  ;;  %v1258_v46 = vsel %vm1255_vm6, %v1252_v37, %v1254_v44  ;;  %v11290_v44 = vld [vmem:[%s18938_s3 + $0x180] sm:$0xff] }
  0xa5   : > { %12035 = vmatpush3.msk.msra.mxu1 %vm460_vm3, %v965_v33  ;;  %v11266_v33 = vld [vmem:[%s18938_s3 + $0x158] sm:$0xff] }
  0xa6   : > { %3007 = vperm.xlu1 %12643, %v2977_v24  }
  0xa7   : > { %11151 = vmatmul.mubr.msk.f32.gmra.mxu0 %vm435_vm1, %v11141_v26  ;;  %11166 = vmatmul.mubr.msk.f32.gmra.mxu1 %vm435_vm1, %v399_v38  ;;  %v1250_v39 = vpop.permute.xlu0 %1249  ;;  %v1824_v62 = vpop.permute.xlu1 %1823 }
  0xa8   : > { %567 = vmatprep.mubr.f32.mxu0 %v18947_v0  ;;  %803 = vmatprep.mubr.f32.mxu1 %v18947_v0  ;;  %v1257_v41 = vsel %vm1255_vm6, %v1250_v39, %v1252_v37  ;;  %v1256_v54 = vsel %vm1255_vm6, %v1248_v51, %v1250_v39  ;;  %v2974_v39 = vld [vmem:[%s18939_s4 + $0x10] sm:$0xff] }
  0xa9   : > { %11217 = vmatprep.subr.msk.mxu1 %vm460_vm3, %v1257_v41  ;;  %v2972_v41 = vld [vmem:[%s18939_s4] sm:$0xff] }
  0xaa   : > { %2997 = vperm.xlu1 %12643, %v2975_v28   ;;  %v11351_v28 = vld [vmem:[%s18938_s3 + $0x238] sm:$0xff] }
  0xab   : > { %11152 = vmatmul.mubr.msk.f32.gmra.mxu0 %vm435_vm1, %v11142_v29  ;;  %11167 = vmatmul.mubr.msk.f32.gmra.mxu1 %vm435_vm1, %v400_v40  ;;  %v1826_v61 = vpop.permute.xlu0 %1825  ;;  %v13124_v14 = vpop.permute.xlu1 %2113 }
  0xac   : > { %573 = vmatprep.mubr.f32.mxu0 %v18947_v0  ;;  %809 = vmatprep.mubr.f32.mxu1 %v18947_v0  ;;  %v1829_v63 = vsel %vm1827_vm7, %v1824_v62, %v1826_v61 }
  0xae   : > { %2987 = vperm.xlu1 %12643, %v2973_v31  }
  0xaf   : > { %11153 = vmatmul.mubr.msk.f32.gmra.mxu0 %vm435_vm1, %v11143_v32  ;;  %11168 = vmatmul.mubr.msk.f32.gmra.mxu1 %vm435_vm1, %v401_v42  ;;  %v2112_v23 = vpop.permute.xlu1 %2111  ;;  %v11265_v32 = vld [vmem:[%s18938_s3 + $0x150] sm:$0xff] }
  0xb0   : > { %815 = vmatprep.mubr.f32.mxu1 %v18947_v0  ;;  %12022 = vmatprep.mubr.msk.f32.mxu0 %vm435_vm1, %v398_v36  ;;  %v2976_v36 = vld [vmem:[%s18939_s4 + $0x20] sm:$0xff]  ;;  %v2118_v37 = vsel %vm2117_vm8, %v2112_v23, %v13124_v14 }
  0xb1   : > { %3002 = vperm.xlu0 %12642, %v2976_v36  }
  0xb3   : > { %11169 = vmatmul.mubr.msk.f32.gmra.mxu1 %vm435_vm1, %v402_v43  ;;  %12023 = vmatmul.mubr.msk.f32.vlgmr.msra.gmra.mxu0 %vm435_vm1, %v399_v38  ;;  %v13174_v27 = vpop.permute.xlu1 %2403  ;;  %v11268_v38 = vld [vmem:[%s18938_s3 + $0x168] sm:$0xff] }
  0xb4   : > { %821 = vmatprep.mubr.f32.mxu1 %v18947_v0  ;;  %12025 = vmatprep.mubr.msk.f32.mxu0 %vm435_vm1, %v400_v40  ;;  %v11269_v40 = vld [vmem:[%s18938_s3 + $0x170] sm:$0xff] }
  0xb5   : > { %11191 = vmatpush1.msk.msra.mxu0 %vm460_vm3, %v963_v45  ;;  %2992 = vperm.xlu0 %12642, %v2974_v39   ;;  %v13266_v45 = vld [vmem:[#allocation3 + $0x118] sm:$0xff] }
  0xb6   : > { %12048 = vmatprep.subr.msk.mxu0 %vm460_vm3, %v1258_v46  ;;  %3558 = vrot.lane.b32.xlu1 %v13266_v45, %s12731_s25 }
  0xb7   : > { %11170 = vmatmul.mubr.msk.f32.gmra.mxu1 %vm435_vm1, %v403_v47  ;;  %12026 = vmatmul.mubr.msk.f32.gmra.mxu0 %vm435_vm1, %v401_v42  ;;  %v11270_v42 = vld [vmem:[%s18938_s3 + $0x178] sm:$0xff]  ;;  %v13284_v51 = vpop.permute.xlu1 %2693 }
  0xb8   : > { %827 = vmatprep.mubr.f32.mxu1 %v18947_v0  ;;  %12028 = vmatprep.mubr.msk.f32.mxu0 %vm435_vm1, %v402_v43 }
  0xb9   : > { %2982 = vperm.xlu0 %12642, %v2972_v41  }
  0xbb   : > { %11171 = vmatmul.mubr.msk.f32.gmra.mxu1 %vm435_vm1, %v404_v48  ;;  %12029 = vmatmul.mubr.msk.f32.gmra.mxu0 %vm435_vm1, %v403_v47 }
  0xbc   : > { %833 = vmatprep.mubr.f32.mxu1 %v18947_v0  ;;  %12031 = vmatprep.mubr.msk.f32.mxu0 %vm435_vm1, %v404_v48  ;;  %v11292_v48 = vld [vmem:[%s18938_s3 + $0x190] sm:$0xff] }
  0xbf   : > { %11172 = vmatmul.mubr.msk.f32.gmra.mxu1 %vm435_vm1, %v405_v49  ;;  %12032 = vmatmul.mubr.msk.f32.gmra.mxu0 %vm435_vm1, %v405_v49  ;;  %v13280_v49 = vld [vmem:[#allocation3 + $0xc8] sm:$0xff] }
  0xc0   : > { %1060 = vmatprep.mubr.f32.mxu0 %v18947_v0  ;;  %12036 = vmatprep.mubr.msk.f32.mxu1 %vm435_vm1, %v11182_v50 }
  0xc1   : > { %3542 = vrot.lane.b32.xlu1 %v13280_v49, %s12731_s25 }
  0xc3   : > { %11192 = vmatmul.mubr.msk.f32.vlgmr.msra.gmra.mxu0 %vm435_vm1, %v11182_v50  ;;  %12037 = vmatmul.mubr.msk.f32.vlgmr.msra.gmra.mxu1 %vm435_vm1, %v11183_v52 }
  0xc4   : > { %1066 = vmatprep.mubr.f32.mxu0 %v18947_v0  ;;  %12039 = vmatprep.mubr.msk.f32.mxu1 %vm435_vm1, %v11184_v53 }
  0xc5   : > { %12049 = vmatpush3.msk.msra.mxu0 %vm460_vm3, %v1258_v46  ;;  %11218 = vmatpush1.msk.msra.mxu1 %vm460_vm3, %v1256_v54  ;;  %v11291_v46 = vld [vmem:[%s18938_s3 + $0x188] sm:$0xff]  ;;  %v11294_v54 = vld [vmem:[%s18938_s3 + $0x1a0] sm:$0xff] }
  0xc6   : > { %12062 = vmatprep.subr.msk.mxu1 %vm460_vm3, %v12831_v7  ;;  %11244 = vmatprep.subr.msk.mxu0 %vm460_vm3, %v12837_v8  ;;  %v1822_v8 = vpop.permute.xlu0 %1821 }
  0xc7   : > { %11193 = vmatmul.mubr.msk.f32.gmra.mxu0 %vm435_vm1, %v11183_v52  ;;  %12040 = vmatmul.mubr.msk.f32.gmra.mxu1 %vm435_vm1, %v11185_v55  ;;  %v1828_v13 = vsel %vm1827_vm7, %v1822_v8, %v1824_v62  ;;  %v13341_v62 = vld [vmem:[#allocation3 + $0x28] sm:$0xff]  ;;  %v11322_v8 = vld [vmem:[%s18938_s3 + $0x1e8] sm:$0xff] }
  0xc8   : > { %1072 = vmatprep.mubr.f32.mxu0 %v18947_v0  ;;  %12042 = vmatprep.mubr.msk.f32.mxu1 %vm435_vm1, %v11186_v56 }
  0xca   : > { %v2116_v11 = vpop.permute.xlu0 %2115 }
  0xcb   : > { %11194 = vmatmul.mubr.msk.f32.gmra.mxu0 %vm435_vm1, %v11184_v53  ;;  %12043 = vmatmul.mubr.msk.f32.gmra.mxu1 %vm435_vm1, %v11187_v57  ;;  %v2119_v15 = vsel %vm2117_vm8, %v13124_v14, %v2116_v11  ;;  %v11293_v53 = vld [vmem:[%s18938_s3 + $0x198] sm:$0xff] }
  0xcc   : > { %1078 = vmatprep.mubr.f32.mxu0 %v18947_v0  ;;  %12045 = vmatprep.mubr.msk.f32.mxu1 %vm435_vm1, %v11188_v58 }
  0xce   : > { %v13172_v26 = vpop.permute.xlu0 %2405 }
  0xcf   : > { %11195 = vmatmul.mubr.msk.f32.gmra.mxu0 %vm435_vm1, %v11185_v55  ;;  %12046 = vmatmul.mubr.msk.f32.gmra.mxu1 %vm435_vm1, %v11189_v59  ;;  %v2409_v29 = vsel %vm2407_vm9, %v13174_v27, %v13172_v26  ;;  %v13305_v55 = vld [vmem:[#allocation3 + $0xa0] sm:$0xff] }
  0xd0   : > { %1084 = vmatprep.mubr.f32.mxu0 %v18947_v0  ;;  %1353 = vmatprep.mubr.f32.mxu1 %v18947_v0 }
  0xd1   : > { %3534 = vrot.lane.b32.xlu1 %v13305_v55, %s12731_s25 }
  0xd2   : > { %v2402_v43 = vpop.permute.xlu0 %2401 }
  0xd3   : > { %11196 = vmatmul.mubr.msk.f32.gmra.mxu0 %vm435_vm1, %v11186_v56  ;;  %11219 = vmatmul.mubr.msk.f32.vlgmr.msra.gmra.mxu1 %vm435_vm1, %v11209_v60  ;;  %v2408_v50 = vsel %vm2407_vm9, %v2402_v43, %v13174_v27  ;;  %v11295_v56 = vld [vmem:[%s18938_s3 + $0x1a8] sm:$0xff] }
  0xd4   : > { %1090 = vmatprep.mubr.f32.mxu0 %v18947_v0  ;;  %1359 = vmatprep.mubr.f32.mxu1 %v18947_v0 }
  0xd5   : > { %12063 = vmatpush3.msk.msra.mxu1 %vm460_vm3, %v12831_v7  ;;  %v11215_v7 = vld [vmem:[%s18938_s3 + $0xf0] sm:$0xff] }
  0xd6   : > { %11271 = vmatprep.subr.msk.mxu1 %vm460_vm3, %v1829_v63  ;;  %v2696_v47 = vpop.permute.xlu0 %2695  ;;  %v11318_v63 = vld [vmem:[%s18938_s3 + $0x1c8] sm:$0xff] }
  0xd7   : > { %11197 = vmatmul.mubr.msk.f32.gmra.mxu0 %vm435_vm1, %v11187_v57  ;;  %11220 = vmatmul.mubr.msk.f32.gmra.mxu1 %vm435_vm1, %v11210_v1  ;;  %v2699_v52 = vsel %vm2697_vm11, %v13284_v51, %v2696_v47  ;;  %v11296_v57 = vld [vmem:[%s18938_s3 + $0x1b0] sm:$0xff] }
  0xd8   : > { %1096 = vmatprep.mubr.f32.mxu0 %v18947_v0  ;;  %1365 = vmatprep.mubr.f32.mxu1 %v18947_v0 }
  0xdb   : > { %11198 = vmatmul.mubr.msk.f32.gmra.mxu0 %vm435_vm1, %v11188_v58  ;;  %11221 = vmatmul.mubr.msk.f32.gmra.mxu1 %vm435_vm1, %v11211_v2  ;;  %v13319_v58 = vld [vmem:[#allocation3 + $0x78] sm:$0xff] }
  0xdc   : > { %1102 = vmatprep.mubr.f32.mxu0 %v18947_v0  ;;  %1371 = vmatprep.mubr.f32.mxu1 %v18947_v0 }
  0xdd   : > { %3526 = vrot.lane.b32.xlu1 %v13319_v58, %s12731_s25 }
  0xdf   : > { %11199 = vmatmul.mubr.msk.f32.gmra.mxu0 %vm435_vm1, %v11189_v59  ;;  %11222 = vmatmul.mubr.msk.f32.gmra.mxu1 %vm435_vm1, %v11212_v3  ;;  %v11297_v59 = vld [vmem:[%s18938_s3 + $0x1b8] sm:$0xff] }
  0xe0   : > { %1377 = vmatprep.mubr.f32.mxu1 %v18947_v0  ;;  %12050 = vmatprep.mubr.msk.f32.mxu0 %vm435_vm1, %v11209_v60  ;;  %v13330_v60 = vld [vmem:[#allocation3 + $0x50] sm:$0xff] }
  0xe1   : > { %3518 = vrot.lane.b32.xlu1 %v13330_v60, %s12731_s25 }
  0xe3   : > { %11223 = vmatmul.mubr.msk.f32.gmra.mxu1 %vm435_vm1, %v11213_v4  ;;  %12051 = vmatmul.mubr.msk.f32.vlgmr.msra.gmra.mxu0 %vm435_vm1, %v11210_v1  ;;  %v13353_v1 = vld [vmem:[#allocation3] sm:$0xff] }
  0xe4   : > { %1383 = vmatprep.mubr.f32.mxu1 %v18947_v0  ;;  %12053 = vmatprep.mubr.msk.f32.mxu0 %vm435_vm1, %v11211_v2  ;;  %v11319_v2 = vld [vmem:[%s18938_s3 + $0x1d0] sm:$0xff] }
  0xe5   : > { %11245 = vmatpush1.msk.msra.mxu0 %vm460_vm3, %v12829_v6  ;;  %v11216_v6 = vld [vmem:[%s18938_s3 + $0xf8] sm:$0xff]  ;;  %3510 = vrot.lane.b32.xlu1 %v13341_v62, %s12731_s25 }
  0xe6   : > { %12076 = vmatprep.subr.msk.mxu0 %vm460_vm3, %v1826_v61 }
  0xe7   : > { %11224 = vmatmul.mubr.msk.f32.gmra.mxu1 %vm435_vm1, %v11214_v5  ;;  %12054 = vmatmul.mubr.msk.f32.gmra.mxu0 %vm435_vm1, %v11212_v3  ;;  %v11320_v3 = vld [vmem:[%s18938_s3 + $0x1d8] sm:$0xff] }
  0xe8   : > { %1389 = vmatprep.mubr.f32.mxu1 %v18947_v0  ;;  %12056 = vmatprep.mubr.msk.f32.mxu0 %vm435_vm1, %v11213_v4  ;;  %v13373_v4 = vld [vmem:[#allocation3 + $0xf0] sm:$0xff] }
  0xe9   : > { %3502 = vrot.lane.b32.xlu1 %v13353_v1, %s12731_s25  ;;  %3550 = vrot.lane.b32.xlu0 %v13373_v4, %s12731_s25 }
  0xeb   : > { %11225 = vmatmul.mubr.msk.f32.gmra.mxu1 %vm435_vm1, %v11215_v7  ;;  %12057 = vmatmul.mubr.msk.f32.gmra.mxu0 %vm435_vm1, %v11214_v5  ;;  %v2692_v5 = vpop.permute.xlu1 %2691 }
  0xec   : > { %1395 = vmatprep.mubr.f32.mxu1 %v18947_v0  ;;  %12059 = vmatprep.mubr.msk.f32.mxu0 %vm435_vm1, %v11215_v7  ;;  %v11321_v7 = vld [vmem:[%s18938_s3 + $0x1e0] sm:$0xff] }
  0xed   : > { %3829 = vrot.lane.b32.xlu1 %v13266_v45, %s12732_s26 }
  0xef   : > { %11226 = vmatmul.mubr.msk.f32.gmra.mxu1 %vm435_vm1, %v11216_v6  ;;  %12060 = vmatmul.mubr.msk.f32.gmra.mxu0 %vm435_vm1, %v11216_v6  ;;  %v2698_v6 = vsel %vm2697_vm11, %v2692_v5, %v13284_v51 }
  0xf0   : > { %1634 = vmatprep.mubr.f32.mxu0 %v18947_v0  ;;  %12064 = vmatprep.mubr.msk.f32.mxu1 %vm435_vm1, %v11236_v9 }
  0xf1   : > { %3821 = vrot.lane.b32.xlu1 %v13373_v4, %s12732_s26 }
  0xf3   : > { %11246 = vmatmul.mubr.msk.f32.vlgmr.msra.gmra.mxu0 %vm435_vm1, %v11236_v9  ;;  %12065 = vmatmul.mubr.msk.f32.vlgmr.msra.gmra.mxu1 %vm435_vm1, %v11237_v10  ;;  %v11323_v9 = vld [vmem:[%s18938_s3 + $0x1f0] sm:$0xff] }
  0xf4   : > { %1640 = vmatprep.mubr.f32.mxu0 %v18947_v0  ;;  %12067 = vmatprep.mubr.msk.f32.mxu1 %vm435_vm1, %v11238_v12 }
  0xf5   : > { %12077 = vmatpush3.msk.msra.mxu0 %vm460_vm3, %v1826_v61  ;;  %11272 = vmatpush1.msk.msra.mxu1 %vm460_vm3, %v1828_v13  ;;  %v11317_v61 = vld [vmem:[%s18938_s3 + $0x1c0] sm:$0xff]  ;;  %v11346_v13 = vld [vmem:[%s18938_s3 + $0x210] sm:$0xff] }
  0xf6   : > { %12090 = vmatprep.subr.msk.mxu1 %vm460_vm3, %v2116_v11  ;;  %11298 = vmatprep.subr.msk.mxu0 %vm460_vm3, %v2119_v15 }
  0xf7   : > { %11247 = vmatmul.mubr.msk.f32.gmra.mxu0 %vm435_vm1, %v11237_v10  ;;  %12068 = vmatmul.mubr.msk.f32.gmra.mxu1 %vm435_vm1, %v11239_v16  ;;  %v11324_v10 = vld [vmem:[%s18938_s3 + $0x1f8] sm:$0xff] }
  0xf8   : > { %1646 = vmatprep.mubr.f32.mxu0 %v18947_v0  ;;  %12070 = vmatprep.mubr.msk.f32.mxu1 %vm435_vm1, %v11240_v17 }
  0xf9   : > { %3813 = vrot.lane.b32.xlu1 %v13280_v49, %s12732_s26 }
  0xfb   : > { %11248 = vmatmul.mubr.msk.f32.gmra.mxu0 %vm435_vm1, %v11238_v12  ;;  %12071 = vmatmul.mubr.msk.f32.gmra.mxu1 %vm435_vm1, %v11241_v18  ;;  %v11345_v12 = vld [vmem:[%s18938_s3 + $0x208] sm:$0xff] }
  0xfc   : > { %1652 = vmatprep.mubr.f32.mxu0 %v18947_v0  ;;  %12073 = vmatprep.mubr.msk.f32.mxu1 %vm435_vm1, %v11242_v20 }
  0xfd   : > { %3805 = vrot.lane.b32.xlu1 %v13305_v55, %s12732_s26 }
  0xff   : > { %11249 = vmatmul.mubr.msk.f32.gmra.mxu0 %vm435_vm1, %v11239_v16  ;;  %12074 = vmatmul.mubr.msk.f32.gmra.mxu1 %vm435_vm1, %v11243_v22  ;;  %v11347_v16 = vld [vmem:[%s18938_s3 + $0x218] sm:$0xff] }
 0x100   : > { %1658 = vmatprep.mubr.f32.mxu0 %v18947_v0  ;;  %1924 = vmatprep.mubr.f32.mxu1 %v18947_v0 }
 0x101   : > { %3797 = vrot.lane.b32.xlu1 %v13319_v58, %s12732_s26 }
 0x103   : > { %11250 = vmatmul.mubr.msk.f32.gmra.mxu0 %vm435_vm1, %v11240_v17  ;;  %11273 = vmatmul.mubr.msk.f32.vlgmr.msra.gmra.mxu1 %vm435_vm1, %v11263_v25 }
 0x104   : > { %1664 = vmatprep.mubr.f32.mxu0 %v18947_v0  ;;  %1930 = vmatprep.mubr.f32.mxu1 %v18947_v0 }
 0x105   : > { %12091 = vmatpush3.msk.msra.mxu1 %vm460_vm3, %v2116_v11  ;;  %v11344_v11 = vld [vmem:[%s18938_s3 + $0x200] sm:$0xff]  ;;  %3789 = vrot.lane.b32.xlu1 %v13330_v60, %s12732_s26 }
 0x106   : > { %11325 = vmatprep.subr.msk.mxu1 %vm460_vm3, %v2409_v29 }
 0x107   : > { %11251 = vmatmul.mubr.msk.f32.gmra.mxu0 %vm435_vm1, %v11241_v18  ;;  %11274 = vmatmul.mubr.msk.f32.gmra.mxu1 %vm435_vm1, %v11264_v30 }
 0x108   : > { %1670 = vmatprep.mubr.f32.mxu0 %v18947_v0  ;;  %1936 = vmatprep.mubr.f32.mxu1 %v18947_v0 }
 0x109   : > { %3781 = vrot.lane.b32.xlu1 %v13341_v62, %s12732_s26 }
 0x10b   : > { %11252 = vmatmul.mubr.msk.f32.gmra.mxu0 %vm435_vm1, %v11242_v20  ;;  %11275 = vmatmul.mubr.msk.f32.gmra.mxu1 %vm435_vm1, %v11265_v32 }
 0x10c   : > { %1676 = vmatprep.mubr.f32.mxu0 %v18947_v0  ;;  %1942 = vmatprep.mubr.f32.mxu1 %v18947_v0 }
 0x10d   : > { %3773 = vrot.lane.b32.xlu1 %v13353_v1, %s12732_s26 }
 0x10f   : > { %11253 = vmatmul.mubr.msk.f32.gmra.mxu0 %vm435_vm1, %v11243_v22  ;;  %11276 = vmatmul.mubr.msk.f32.gmra.mxu1 %vm435_vm1, %v11266_v33  ;;  %v11349_v22 = vld [vmem:[%s18938_s3 + $0x228] sm:$0xff] }
 0x110   : > { %1948 = vmatprep.mubr.f32.mxu1 %v18947_v0  ;;  %12078 = vmatprep.mubr.msk.f32.mxu0 %vm435_vm1, %v11263_v25  ;;  %v11350_v25 = vld [vmem:[%s18938_s3 + $0x230] sm:$0xff] }
 0x111   : > { %4102 = vrot.lane.b32.xlu1 %v13266_v45, %s12733_s27 }
 0x113   : > { %11277 = vmatmul.mubr.msk.f32.gmra.mxu1 %vm435_vm1, %v11267_v35  ;;  %12079 = vmatmul.mubr.msk.f32.vlgmr.msra.gmra.mxu0 %vm435_vm1, %v11264_v30 }
 0x114   : > { %1954 = vmatprep.mubr.f32.mxu1 %v18947_v0  ;;  %12081 = vmatprep.mubr.msk.f32.mxu0 %vm435_vm1, %v11265_v32 }
 0x115   : > { %11299 = vmatpush1.msk.msra.mxu0 %vm460_vm3, %v2118_v37  ;;  %4094 = vrot.lane.b32.xlu1 %v13373_v4, %s12733_s27 }
 0x116   : > { %12104 = vmatprep.subr.msk.mxu0 %vm460_vm3, %v13172_v26 }
 0x117   : > { %11278 = vmatmul.mubr.msk.f32.gmra.mxu1 %vm435_vm1, %v11268_v38  ;;  %12082 = vmatmul.mubr.msk.f32.gmra.mxu0 %vm435_vm1, %v11266_v33 }
 0x118   : > { %1960 = vmatprep.mubr.f32.mxu1 %v18947_v0  ;;  %12084 = vmatprep.mubr.msk.f32.mxu0 %vm435_vm1, %v11267_v35 }
 0x119   : > { %4086 = vrot.lane.b32.xlu1 %v13280_v49, %s12733_s27 }
 0x11b   : > { %11279 = vmatmul.mubr.msk.f32.gmra.mxu1 %vm435_vm1, %v11269_v40  ;;  %12085 = vmatmul.mubr.msk.f32.gmra.mxu0 %vm435_vm1, %v11268_v38 }
 0x11c   : > { %1966 = vmatprep.mubr.f32.mxu1 %v18947_v0  ;;  %12087 = vmatprep.mubr.msk.f32.mxu0 %vm435_vm1, %v11269_v40 }
 0x11d   : > { %4078 = vrot.lane.b32.xlu1 %v13305_v55, %s12733_s27 }
 0x11f   : > { %11280 = vmatmul.mubr.msk.f32.gmra.mxu1 %vm435_vm1, %v11270_v42  ;;  %12088 = vmatmul.mubr.msk.f32.gmra.mxu0 %vm435_vm1, %v11270_v42 }
 0x120   : > { %2214 = vmatprep.mubr.f32.mxu0 %v18947_v0  ;;  %12092 = vmatprep.mubr.msk.f32.mxu1 %vm435_vm1, %v11290_v44 }
 0x121   : > { %4070 = vrot.lane.b32.xlu1 %v13319_v58, %s12733_s27 }
 0x123   : > { %11300 = vmatmul.mubr.msk.f32.vlgmr.msra.gmra.mxu0 %vm435_vm1, %v11290_v44  ;;  %12093 = vmatmul.mubr.msk.f32.vlgmr.msra.gmra.mxu1 %vm435_vm1, %v11291_v46 }
 0x124   : > { %2220 = vmatprep.mubr.f32.mxu0 %v18947_v0  ;;  %12095 = vmatprep.mubr.msk.f32.mxu1 %vm435_vm1, %v11292_v48 }
 0x125   : > { %12105 = vmatpush3.msk.msra.mxu0 %vm460_vm3, %v13172_v26  ;;  %11326 = vmatpush1.msk.msra.mxu1 %vm460_vm3, %v2408_v50 }
 0x126   : > { %12118 = vmatprep.subr.msk.mxu1 %vm460_vm3, %v2696_v47  ;;  %11352 = vmatprep.subr.msk.mxu0 %vm460_vm3, %v2699_v52 }
 0x127   : > { %11301 = vmatmul.mubr.msk.f32.gmra.mxu0 %vm435_vm1, %v11291_v46  ;;  %12096 = vmatmul.mubr.msk.f32.gmra.mxu1 %vm435_vm1, %v11293_v53 }
 0x128   : > { %2226 = vmatprep.mubr.f32.mxu0 %v18947_v0  ;;  %12098 = vmatprep.mubr.msk.f32.mxu1 %vm435_vm1, %v11294_v54 }
 0x129   : > { %4062 = vrot.lane.b32.xlu1 %v13330_v60, %s12733_s27 }
 0x12b   : > { %11302 = vmatmul.mubr.msk.f32.gmra.mxu0 %vm435_vm1, %v11292_v48  ;;  %12099 = vmatmul.mubr.msk.f32.gmra.mxu1 %vm435_vm1, %v11295_v56 }
 0x12c   : > { %2232 = vmatprep.mubr.f32.mxu0 %v18947_v0  ;;  %12101 = vmatprep.mubr.msk.f32.mxu1 %vm435_vm1, %v11296_v57 }
 0x12d   : > { %4054 = vrot.lane.b32.xlu1 %v13341_v62, %s12733_s27 }
 0x12f   : > { %11303 = vmatmul.mubr.msk.f32.gmra.mxu0 %vm435_vm1, %v11293_v53  ;;  %12102 = vmatmul.mubr.msk.f32.gmra.mxu1 %vm435_vm1, %v11297_v59 }
 0x130   : > { %2238 = vmatprep.mubr.f32.mxu0 %v18947_v0  ;;  %2504 = vmatprep.mubr.f32.mxu1 %v18947_v0 }
 0x131   : > { %4046 = vrot.lane.b32.xlu1 %v13353_v1, %s12733_s27 }
 0x133   : > { %11304 = vmatmul.mubr.msk.f32.gmra.mxu0 %vm435_vm1, %v11294_v54  ;;  %11327 = vmatmul.mubr.msk.f32.vlgmr.msra.gmra.mxu1 %vm435_vm1, %v11317_v61 }
 0x134   : > { %2244 = vmatprep.mubr.f32.mxu0 %v18947_v0  ;;  %2510 = vmatprep.mubr.f32.mxu1 %v18947_v0 }
 0x135   : > { %12119 = vmatpush3.msk.msra.mxu1 %vm460_vm3, %v2696_v47  ;;  %4381 = vrot.lane.b32.xlu1 %v13266_v45, %s12734_s28 }
 0x137   : > { %11305 = vmatmul.mubr.msk.f32.gmra.mxu0 %vm435_vm1, %v11295_v56  ;;  %11328 = vmatmul.mubr.msk.f32.gmra.mxu1 %vm435_vm1, %v11318_v63 }
 0x138   : > { %2250 = vmatprep.mubr.f32.mxu0 %v18947_v0  ;;  %2516 = vmatprep.mubr.f32.mxu1 %v18947_v0 }
 0x139   : > { %4373 = vrot.lane.b32.xlu1 %v13373_v4, %s12734_s28 }
 0x13b   : > { %11306 = vmatmul.mubr.msk.f32.gmra.mxu0 %vm435_vm1, %v11296_v57  ;;  %11329 = vmatmul.mubr.msk.f32.gmra.mxu1 %vm435_vm1, %v11319_v2 }
 0x13c   : > { %2256 = vmatprep.mubr.f32.mxu0 %v18947_v0  ;;  %2522 = vmatprep.mubr.f32.mxu1 %v18947_v0 }
 0x13d   : > { %4365 = vrot.lane.b32.xlu1 %v13280_v49, %s12734_s28 }
 0x13f   : > { %11307 = vmatmul.mubr.msk.f32.gmra.mxu0 %vm435_vm1, %v11297_v59  ;;  %11330 = vmatmul.mubr.msk.f32.gmra.mxu1 %vm435_vm1, %v11320_v3 }
 0x140   : > { %2528 = vmatprep.mubr.f32.mxu1 %v18947_v0  ;;  %12106 = vmatprep.mubr.msk.f32.mxu0 %vm435_vm1, %v11317_v61 }
 0x141   : > { %4357 = vrot.lane.b32.xlu1 %v13305_v55, %s12734_s28 }
 0x143   : > { %11331 = vmatmul.mubr.msk.f32.gmra.mxu1 %vm435_vm1, %v11321_v7  ;;  %12107 = vmatmul.mubr.msk.f32.vlgmr.msra.gmra.mxu0 %vm435_vm1, %v11318_v63 }
 0x144   : > { %2534 = vmatprep.mubr.f32.mxu1 %v18947_v0  ;;  %12109 = vmatprep.mubr.msk.f32.mxu0 %vm435_vm1, %v11319_v2 }
 0x145   : > { %11353 = vmatpush1.msk.msra.mxu0 %vm460_vm3, %v2698_v6  ;;  %4349 = vrot.lane.b32.xlu1 %v13319_v58, %s12734_s28  ;;  %vm3417_vm3 = vcmask 130048  }
 0x147   : > { %11332 = vmatmul.mubr.msk.f32.gmra.mxu1 %vm435_vm1, %v11322_v8  ;;  %12110 = vmatmul.mubr.msk.f32.gmra.mxu0 %vm435_vm1, %v11320_v3 }
 0x148   : > { %2540 = vmatprep.mubr.f32.mxu1 %v18947_v0  ;;  %12112 = vmatprep.mubr.msk.f32.mxu0 %vm435_vm1, %v11321_v7 }
 0x149   : > { %4341 = vrot.lane.b32.xlu1 %v13330_v60, %s12734_s28 }
 0x14b   : > { %11333 = vmatmul.mubr.msk.f32.gmra.mxu1 %vm435_vm1, %v11323_v9  ;;  %12113 = vmatmul.mubr.msk.f32.gmra.mxu0 %vm435_vm1, %v11322_v8 }
 0x14c   : > { %2546 = vmatprep.mubr.f32.mxu1 %v18947_v0  ;;  %12115 = vmatprep.mubr.msk.f32.mxu0 %vm435_vm1, %v11323_v9 }
 0x14d   : > { %4333 = vrot.lane.b32.xlu1 %v13341_v62, %s12734_s28 }
 0x14f   : > { %11334 = vmatmul.mubr.msk.f32.gmra.mxu1 %vm435_vm1, %v11324_v10  ;;  %12116 = vmatmul.mubr.msk.f32.gmra.mxu0 %vm435_vm1, %v11324_v10 }
 0x150   : > { %2794 = vmatprep.mubr.f32.mxu0 %v18947_v0  ;;  %12120 = vmatprep.mubr.msk.f32.mxu1 %vm435_vm1, %v11344_v11 }
 0x151   : > { %4325 = vrot.lane.b32.xlu1 %v13353_v1, %s12734_s28 }
 0x153   : > { %v533_v14 = vpop.f32.mrf.mxu0  ;;  %v13431_v15 = vpop.f32.mrf.mxu1  ;;  %11354 = vmatmul.mubr.msk.f32.vlgmr.msra.gmra.mxu0 %vm435_vm1, %v11344_v11  ;;  %12121 = vmatmul.mubr.msk.f32.vlgmr.msra.gmra.mxu1 %vm435_vm1, %v11345_v12 }
 0x154   : > { %2800 = vmatprep.mubr.f32.mxu0 %v18947_v0  ;;  %12123 = vmatprep.mubr.msk.f32.mxu1 %vm435_vm1, %v11346_v13 }
 0x155   : > { %v13440_v17 = vpop.f32.mrf.mxu0  ;;  %v13442_v18 = vpop.f32.mrf.mxu1 }
 0x157   : > { %v539_v20 = vpop.f32.mrf.mxu0  ;;  %v13449_v21 = vpop.f32.mrf.mxu1  ;;  %11355 = vmatmul.mubr.msk.f32.gmra.mxu0 %vm435_vm1, %v11345_v12  ;;  %12124 = vmatmul.mubr.msk.f32.gmra.mxu1 %vm435_vm1, %v11347_v16 }
 0x158   : > { %2806 = vmatprep.mubr.f32.mxu0 %v18947_v0  ;;  %12126 = vmatprep.mubr.msk.f32.mxu1 %vm435_vm1, %v11348_v19 }
 0x159   : > { %v13458_v23 = vpop.f32.mrf.mxu0  ;;  %v13460_v24 = vpop.f32.mrf.mxu1 }
 0x15b   : > { %v545_v26 = vpop.f32.mrf.mxu0  ;;  %v13467_v27 = vpop.f32.mrf.mxu1  ;;  %11356 = vmatmul.mubr.msk.f32.gmra.mxu0 %vm435_vm1, %v11346_v13  ;;  %12127 = vmatmul.mubr.msk.f32.gmra.mxu1 %vm435_vm1, %v11349_v22 }
 0x15c   : > { %2812 = vmatprep.mubr.f32.mxu0 %v18947_v0  ;;  %12129 = vmatprep.mubr.msk.f32.mxu1 %vm435_vm1, %v11350_v25 }
 0x15d   : > { %v13476_v29 = vpop.f32.mrf.mxu0  ;;  %v13478_v30 = vpop.f32.mrf.mxu1 }
 0x15f   : > { %v551_v31 = vpop.f32.mrf.mxu0  ;;  %v13482_v32 = vpop.f32.mrf.mxu1  ;;  %11357 = vmatmul.mubr.msk.f32.gmra.mxu0 %vm435_vm1, %v11347_v16  ;;  %12130 = vmatmul.mubr.msk.f32.gmra.mxu1 %vm435_vm1, %v11351_v28 }
 0x160   : > { %2818 = vmatprep.mubr.f32.mxu0 %v18947_v0  ;;  %3685 = vmatprep.mubr.f32.mxu1 %v18947_v0 }
 0x161   : > { %v13488_v33 = vpop.f32.mrf.mxu0  ;;  %v13490_v34 = vpop.f32.mrf.mxu1 }
 0x163   : > { %v557_v35 = vpop.f32.mrf.mxu0  ;;  %v793_v36 = vpop.f32.mrf.mxu1  ;;  %11358 = vmatmul.mubr.msk.f32.gmra.mxu0 %vm435_vm1, %v11348_v19 }
 0x164   : > { %v794_v37 = vadd.f32 %v793_v36, %v533_v14  ;;  %2824 = vmatprep.mubr.f32.mxu0 %v18947_v0 }
 0x165   : > { %v13496_v38 = vpop.f32.mrf.mxu0  ;;  %v13498_v39 = vpop.f32.mrf.mxu1 }
 0x166   : > { %19093 = vst [vmem:[#allocation6_spill] sm:$0xff] %v13496_v38 }
 0x167   : > { %v563_v40 = vpop.f32.mrf.mxu0  ;;  %v799_v41 = vpop.f32.mrf.mxu1  ;;  %11359 = vmatmul.mubr.msk.f32.gmra.mxu0 %vm435_vm1, %v11349_v22 }
 0x168   : > { %v800_v42 = vadd.f32 %v799_v41, %v539_v20  ;;  %2830 = vmatprep.mubr.f32.mxu0 %v18947_v0 }
 0x169   : > { %v13504_v43 = vpop.f32.mrf.mxu0  ;;  %v13506_v44 = vpop.f32.mrf.mxu1 }
 0x16a   : > { %19094 = vst [vmem:[#allocation7_spill] sm:$0xff] %v13504_v43 }
 0x16b   : > { %v569_v46 = vpop.f32.mrf.mxu0  ;;  %v805_v47 = vpop.f32.mrf.mxu1  ;;  %11360 = vmatmul.mubr.msk.f32.gmra.mxu0 %vm435_vm1, %v11350_v25 }
 0x16c   : > { %v806_v48 = vadd.f32 %v805_v47, %v545_v26  ;;  %2836 = vmatprep.mubr.f32.mxu0 %v18947_v0 }
 0x16d   : > { %v13512_v50 = vpop.f32.mrf.mxu0  ;;  %v13514_v51 = vpop.f32.mrf.mxu1 }
 0x16e   : > { %19095 = vst [vmem:[#allocation8_spill] sm:$0xff] %v13512_v50 }
 0x16f   : > { %v575_v52 = vpop.f32.mrf.mxu0  ;;  %v811_v53 = vpop.f32.mrf.mxu1  ;;  %11361 = vmatmul.mubr.msk.f32.gmra.mxu0 %vm435_vm1, %v11351_v28  ;;  %vm5912_vm1 = vcmask 1047696  }
 0x170   : > { %v812_v54 = vadd.f32 %v811_v53, %v551_v31 }
 0x171   : > { %v13519_v56 = vpop.f32.mrf.mxu0  ;;  %v13521_v57 = vpop.f32.mrf.mxu1 }
 0x172   : > { %19096 = vst [vmem:[#allocation9_spill] sm:$0xff] %v13519_v56 }
 0x173   : > { %v817_v59 = vpop.f32.mrf.mxu1  ;;  %v12024_v61 = vpop.f32.mrf.mxu0 }
 0x174   : > { %v818_v63 = vadd.f32 %v817_v59, %v557_v35  ;;  %v912_v2 = vadd.f32 %v12024_v61, %v13431_v15 }
 0x175   : > { %v13526_v3 = vpop.f32.mrf.mxu1  ;;  %v13528_v5 = vpop.f32.mrf.mxu0 }
 0x176   : > { %19097 = vst [vmem:[#allocation10_spill] sm:$0xff] %v13526_v3 }
 0x177   : > { %v823_v7 = vpop.f32.mrf.mxu1  ;;  %v12027_v6 = vpop.f32.mrf.mxu0 }
 0x178   : > { %v824_v8 = vadd.f32 %v823_v7, %v563_v40  ;;  %v922_v9 = vadd.f32 %v12027_v6, %v13449_v21 }
 0x179   : > { %v13533_v10 = vpop.f32.mrf.mxu1  ;;  %v13535_v11 = vpop.f32.mrf.mxu0 }
 0x17a   : > { %19098 = vst [vmem:[#allocation11_spill] sm:$0xff] %v13533_v10 }
 0x17b   : > { %v829_v12 = vpop.f32.mrf.mxu1  ;;  %v12030_v13 = vpop.f32.mrf.mxu0 }
 0x17c   : > { %v830_v14 = vadd.f32 %v829_v12, %v569_v46  ;;  %v932_v15 = vadd.f32 %v12030_v13, %v13467_v27 }
 0x17d   : > { %v13540_v16 = vpop.f32.mrf.mxu1  ;;  %v13542_v19 = vpop.f32.mrf.mxu0 }
 0x17e   : > { %19099 = vst [vmem:[#allocation12_spill] sm:$0xff] %v13540_v16 }
 0x17f   : > { %v835_v20 = vpop.f32.mrf.mxu1  ;;  %v12033_v21 = vpop.f32.mrf.mxu0 }
 0x180   : > { %v836_v22 = vadd.f32 %v835_v20, %v575_v52  ;;  %v942_v25 = vadd.f32 %v12033_v21, %v13482_v32 }
 0x181   : > { %v13547_v26 = vpop.f32.mrf.mxu1  ;;  %v13549_v28 = vpop.f32.mrf.mxu0 }
 0x182   : > { %19100 = vst [vmem:[#allocation13_spill] sm:$0xff] %v13547_v26 }
 0x183   : > { %v1062_v27 = vpop.f32.mrf.mxu0  ;;  %v12038_v31 = vpop.f32.mrf.mxu1 }
 0x184   : > { %v1214_v35 = vadd.f32 %v1062_v27, %v794_v37  ;;  %v1219_v36 = vadd.f32 %v12038_v31, %v912_v2 }
 0x185   : > { %v13553_v40 = vpop.f32.mrf.mxu0  ;;  %v13555_v41 = vpop.f32.mrf.mxu1 }
 0x187   : > { %v1068_v45 = vpop.f32.mrf.mxu0  ;;  %v12041_v32 = vpop.f32.mrf.mxu1 }
 0x188   : > { %v1217_v46 = vadd.f32 %v1068_v45, %v800_v42  ;;  %v1225_v47 = vadd.f32 %v12041_v32, %v922_v9 }
 0x189   : > { %v13559_v52 = vpop.f32.mrf.mxu0  ;;  %v13561_v53 = vpop.f32.mrf.mxu1 }
 0x18b   : > { %v1074_v4 = vpop.f32.mrf.mxu0  ;;  %v12044_v37 = vpop.f32.mrf.mxu1 }
 0x18c   : > { %v1220_v59 = vadd.f32 %v1074_v4, %v806_v48  ;;  %v1231_v61 = vadd.f32 %v12044_v37, %v932_v15 }
 0x18d   : > { %v13565_v2 = vpop.f32.mrf.mxu0  ;;  %v13567_v7 = vpop.f32.mrf.mxu1 }
 0x18f   : > { %v1080_v49 = vpop.f32.mrf.mxu0  ;;  %v12047_v42 = vpop.f32.mrf.mxu1 }
 0x190   : > { %v1223_v6 = vadd.f32 %v1080_v49, %v812_v54  ;;  %v1237_v9 = vadd.f32 %v12047_v42, %v942_v25 }
 0x191   : > { %v13571_v12 = vpop.f32.mrf.mxu0  ;;  %v13573_v13 = vpop.f32.mrf.mxu1 }
 0x192   : > { %19101 = vst [vmem:[#allocation14_spill] sm:$0xff] %v13571_v12 }
 0x193   : > { %v1086_v55 = vpop.f32.mrf.mxu0  ;;  %v1355_v48 = vpop.f32.mrf.mxu1 }
 0x194   : > { %v1226_v15 = vadd.f32 %v1086_v55, %v818_v63  ;;  %v1507_v20 = vadd.f32 %v1355_v48, %v1214_v35 }
 0x195   : > { %v13577_v21 = vpop.f32.mrf.mxu0  ;;  %v13579_v27 = vpop.f32.mrf.mxu1 }
 0x196   : > { %19102 = vst [vmem:[#allocation15_spill] sm:$0xff] %v13577_v21 }
 0x197   : > { %v1092_v58 = vpop.f32.mrf.mxu0  ;;  %v1361_v54 = vpop.f32.mrf.mxu1 }
 0x198   : > { %v1229_v25 = vadd.f32 %v1092_v58, %v824_v8  ;;  %v1510_v31 = vadd.f32 %v1361_v54, %v1217_v46 }
 0x199   : > { %v13583_v45 = vpop.f32.mrf.mxu0  ;;  %v13585_v32 = vpop.f32.mrf.mxu1 }
 0x19a   : > { %19103 = vst [vmem:[#allocation16_spill] sm:$0xff] %v13583_v45 }
 0x19b   : > { %v1098_v60 = vpop.f32.mrf.mxu0  ;;  %v1367_v63 = vpop.f32.mrf.mxu1 }
 0x19c   : > { %v1232_v35 = vadd.f32 %v1098_v60, %v830_v14  ;;  %v1513_v4 = vadd.f32 %v1367_v63, %v1220_v59 }
 0x19d   : > { %v13589_v37 = vpop.f32.mrf.mxu0  ;;  %v13591_v49 = vpop.f32.mrf.mxu1 }
 0x19e   : > { %19104 = vst [vmem:[#allocation17_spill] sm:$0xff] %v13589_v37 }
 0x19f   : > { %v1104_v62 = vpop.f32.mrf.mxu0  ;;  %v1373_v42 = vpop.f32.mrf.mxu1 }
 0x1a0   : > { %v1235_v55 = vadd.f32 %v1104_v62, %v836_v22  ;;  %v1516_v8 = vadd.f32 %v1373_v42, %v1223_v6 }
 0x1a1   : > { %v13593_v46 = vpop.f32.mrf.mxu0  ;;  %v13595_v48 = vpop.f32.mrf.mxu1 }
 0x1a2   : > { %19105 = vst [vmem:[#allocation18_spill] sm:$0xff] %v13593_v46  ;;  %19106 = vst [vmem:[#allocation19_spill] sm:$0xff] %v13595_v48 }
 0x1a3   : > { %v1379_v58 = vpop.f32.mrf.mxu1  ;;  %v12052_v54 = vpop.f32.mrf.mxu0 }
 0x1a4   : > { %v1519_v0 = vadd.f32 %v1379_v58, %v1226_v15  ;;  %v1512_v1 = vadd.f32 %v12052_v54, %v1219_v36 }
 0x1a5   : > { %v13597_v26 = vpop.f32.mrf.mxu1  ;;  %v13599_v14 = vpop.f32.mrf.mxu0 }
 0x1a6   : > { %19107 = vst [vmem:[#allocation20_spill] sm:$0xff] %v13597_v26 }
 0x1a7   : > { %v1385_v59 = vpop.f32.mrf.mxu1  ;;  %v12055_v60 = vpop.f32.mrf.mxu0 }
 0x1a8   : > { %v1522_v63 = vadd.f32 %v1385_v59, %v1229_v25  ;;  %v1518_v37 = vadd.f32 %v12055_v60, %v1225_v47 }
 0x1a9   : > { %v13601_v56 = vpop.f32.mrf.mxu1  ;;  %v13603_v22 = vpop.f32.mrf.mxu0 }
 0x1aa   : > { %19108 = vst [vmem:[#allocation21_spill] sm:$0xff] %v13601_v56 }
 0x1ab   : > { %v1391_v6 = vpop.f32.mrf.mxu1  ;;  %v12058_v62 = vpop.f32.mrf.mxu0 }
 0x1ac   : > { %v1525_v42 = vadd.f32 %v1391_v6, %v1232_v35  ;;  %v1524_v46 = vadd.f32 %v12058_v62, %v1231_v61 }
 0x1ad   : > { %v13605_v45 = vpop.f32.mrf.mxu1  ;;  %v13607_v15 = vpop.f32.mrf.mxu0 }
 0x1ae   : > { %19109 = vst [vmem:[#allocation22_spill] sm:$0xff] %v13605_v45 }
 0x1af   : > { %v1397_v36 = vpop.f32.mrf.mxu1  ;;  %v12061_v58 = vpop.f32.mrf.mxu0 }
 0x1b0   : > { %v1528_v54 = vadd.f32 %v1397_v36, %v1235_v55  ;;  %v1530_v26 = vadd.f32 %v12061_v58, %v1237_v9 }
 0x1b1   : > { %v13609_v16 = vpop.f32.mrf.mxu1  ;;  %v13611_v25 = vpop.f32.mrf.mxu0 }
 0x1b2   : > { %19110 = vst [vmem:[#allocation23_spill] sm:$0xff] %v13609_v16  ;;  %19111 = vst [vmem:[#allocation24_spill] sm:$0xff] %v13611_v25 }
 0x1b3   : > { %v1636_v47 = vpop.f32.mrf.mxu0  ;;  %v12066_v59 = vpop.f32.mrf.mxu1 }
 0x1b4   : > { %v1788_v60 = vadd.f32 %v1636_v47, %v1507_v20  ;;  %v13613_v56 = vadd.f32 %v12066_v59, %v1512_v1  ;;  %v13625_v20 = vpop.permute.xlu1 %3012 }
 0x1b5   : > { %v13615_v50 = vpop.f32.mrf.mxu0  ;;  %v13617_v61 = vpop.f32.mrf.mxu1  ;;  %19112 = vst [vmem:[#allocation25_spill] sm:$0xff] %v13625_v20 }
 0x1b7   : > { %v1642_v35 = vpop.f32.mrf.mxu0  ;;  %v12069_v6 = vpop.f32.mrf.mxu1 }
 0x1b8   : > { %v1791_v62 = vadd.f32 %v1642_v35, %v1510_v31  ;;  %v13619_v45 = vadd.f32 %v12069_v6, %v1518_v37  ;;  %v13635_v6 = vpop.permute.xlu1 %3007 }
 0x1b9   : > { %v13621_v55 = vpop.f32.mrf.mxu0  ;;  %v13623_v9 = vpop.f32.mrf.mxu1  ;;  %19117 = vst [vmem:[#allocation30_spill] sm:$0xff] %v13635_v6 }
 0x1bb   : > { %v1648_v36 = vpop.f32.mrf.mxu0  ;;  %v12072_v58 = vpop.f32.mrf.mxu1 }
 0x1bc   : > { %v1794_v16 = vadd.f32 %v1648_v36, %v1513_v4  ;;  %v1805_v48 = vadd.f32 %v12072_v58, %v1524_v46 }
 0x1bd   : > { %v13627_v1 = vpop.f32.mrf.mxu0  ;;  %v13629_v47 = vpop.f32.mrf.mxu1 }
 0x1be   : > { %19113 = vst [vmem:[#allocation26_spill] sm:$0xff] %v13627_v1  ;;  %19114 = vst [vmem:[#allocation27_spill] sm:$0xff] %v13629_v47 }
 0x1bf   : > { %v1654_v59 = vpop.f32.mrf.mxu0  ;;  %v12075_v21 = vpop.f32.mrf.mxu1 }
 0x1c0   : > { %v1797_v10 = vadd.f32 %v1654_v59, %v1516_v8  ;;  %v1811_v31 = vadd.f32 %v12075_v21, %v1530_v26  ;;  %v13645_v26 = vpop.permute.xlu1 %2997 }
 0x1c1   : > { %v13631_v37 = vpop.f32.mrf.mxu0  ;;  %v13633_v35 = vpop.f32.mrf.mxu1  ;;  %19120 = vst [vmem:[#allocation33_spill] sm:$0xff] %v13645_v26 }
 0x1c2   : > { %19115 = vst [vmem:[#allocation28_spill] sm:$0xff] %v13631_v37  ;;  %19116 = vst [vmem:[#allocation29_spill] sm:$0xff] %v13633_v35 }
 0x1c3   : > { %v1660_v43 = vpop.f32.mrf.mxu0  ;;  %v1926_v25 = vpop.f32.mrf.mxu1 }
 0x1c4   : > { %v1800_v4 = vadd.f32 %v1660_v43, %v1519_v0  ;;  %v13637_v46 = vadd.f32 %v1926_v25, %v1788_v60 }
 0x1c5   : > { %v13639_v36 = vpop.f32.mrf.mxu0  ;;  %v13641_v58 = vpop.f32.mrf.mxu1 }
 0x1c6   : > { %19118 = vst [vmem:[#allocation31_spill] sm:$0xff] %v13639_v36  ;;  %v13657_v36 = vpop.permute.xlu1 %2987 }
 0x1c7   : > { %v1666_v20 = vpop.f32.mrf.mxu0  ;;  %v1932_v47 = vpop.f32.mrf.mxu1 }
 0x1c8   : > { %v1803_v1 = vadd.f32 %v1666_v20, %v1522_v63  ;;  %v13643_v8 = vadd.f32 %v1932_v47, %v1791_v62 }
 0x1c9   : > { %v13647_v21 = vpop.f32.mrf.mxu0  ;;  %v13649_v59 = vpop.f32.mrf.mxu1 }
 0x1ca   : > { %19119 = vst [vmem:[#allocation32_spill] sm:$0xff] %v13643_v8  ;;  %19121 = vst [vmem:[#allocation34_spill] sm:$0xff] %v13647_v21  ;;  %v13665_v26 = vpop.permute.xlu1 %3558 }
 0x1cb   : > { %v1672_v6 = vpop.f32.mrf.mxu0  ;;  %v1938_v37 = vpop.f32.mrf.mxu1  ;;  %19128 = vst [vmem:[#allocation41_spill] sm:$0xff] %v13665_v26 }
 0x1cc   : > { %v1806_v0 = vadd.f32 %v1672_v6, %v1525_v42  ;;  %v13651_v43 = vadd.f32 %v1938_v37, %v1794_v16 }
 0x1cd   : > { %v13653_v25 = vpop.f32.mrf.mxu0  ;;  %v13655_v60 = vpop.f32.mrf.mxu1 }
 0x1ce   : > { %19122 = vst [vmem:[#allocation35_spill] sm:$0xff] %v13651_v43  ;;  %19123 = vst [vmem:[#allocation36_spill] sm:$0xff] %v13653_v25 }
 0x1cf   : > { %19124 = vst [vmem:[#allocation37_spill] sm:$0xff] %v13655_v60  ;;  %v1678_v63 = vpop.f32.mrf.mxu0  ;;  %v1944_v62 = vpop.f32.mrf.mxu1 }
 0x1d0   : > { %v1809_v20 = vadd.f32 %v1678_v63, %v1528_v54  ;;  %v13659_v47 = vadd.f32 %v1944_v62, %v1797_v10  ;;  %v13679_v54 = vpop.permute.xlu1 %3542 }
 0x1d1   : > { %v13661_v35 = vpop.f32.mrf.mxu0  ;;  %v13663_v21 = vpop.f32.mrf.mxu1  ;;  %19132 = vst [vmem:[#allocation45_spill] sm:$0xff] %v13679_v54 }
 0x1d2   : > { %19125 = vst [vmem:[#allocation38_spill] sm:$0xff] %v13659_v47  ;;  %19126 = vst [vmem:[#allocation39_spill] sm:$0xff] %v13661_v35 }
 0x1d3   : > { %19127 = vst [vmem:[#allocation40_spill] sm:$0xff] %v13663_v21  ;;  %v1950_v42 = vpop.f32.mrf.mxu1  ;;  %v13667_v16 = vpop.f32.mrf.mxu0 }
 0x1d4   : > { %v13669_v37 = vadd.f32 %v1950_v42, %v1800_v4 }
 0x1d5   : > { %v13671_v6 = vpop.f32.mrf.mxu1  ;;  %v13673_v25 = vpop.f32.mrf.mxu0 }
 0x1d6   : > { %19129 = vst [vmem:[#allocation42_spill] sm:$0xff] %v13669_v37  ;;  %19130 = vst [vmem:[#allocation43_spill] sm:$0xff] %v13671_v6  ;;  %v13693_v6 = vpop.permute.xlu1 %3534 }
 0x1d7   : > { %v1956_v60 = vpop.f32.mrf.mxu1  ;;  %v13675_v43 = vpop.f32.mrf.mxu0  ;;  %19138 = vst [vmem:[#allocation51_spill] sm:$0xff] %v13693_v6 }
 0x1d8   : > { %v13677_v10 = vadd.f32 %v1956_v60, %v1803_v1 }
 0x1d9   : > { %v13681_v63 = vpop.f32.mrf.mxu1  ;;  %v13683_v62 = vpop.f32.mrf.mxu0 }
 0x1da   : > { %19131 = vst [vmem:[#allocation44_spill] sm:$0xff] %v13677_v10  ;;  %19133 = vst [vmem:[#allocation46_spill] sm:$0xff] %v13681_v63 }
 0x1db   : > { %v1962_v26 = vpop.f32.mrf.mxu1  ;;  %v12086_v35 = vpop.f32.mrf.mxu0 }
 0x1dc   : > { %v13685_v47 = vadd.f32 %v1962_v26, %v1806_v0  ;;  %v13687_v4 = vadd.f32 %v12086_v35, %v1805_v48  ;;  %v13707_v35 = vpop.permute.xlu1 %3526 }
 0x1dd   : > { %v13689_v42 = vpop.f32.mrf.mxu1  ;;  %v13691_v37 = vpop.f32.mrf.mxu0  ;;  %19143 = vst [vmem:[#allocation56_spill] sm:$0xff] %v13707_v35 }
 0x1de   : > { %19134 = vst [vmem:[#allocation47_spill] sm:$0xff] %v13685_v47  ;;  %19135 = vst [vmem:[#allocation48_spill] sm:$0xff] %v13687_v4 }
 0x1df   : > { %19136 = vst [vmem:[#allocation49_spill] sm:$0xff] %v13689_v42  ;;  %19137 = vst [vmem:[#allocation50_spill] sm:$0xff] %v13691_v37  ;;  %v1968_v1 = vpop.f32.mrf.mxu1  ;;  %v12089_v60 = vpop.f32.mrf.mxu0 }
 0x1e0   : > { %v13695_v10 = vadd.f32 %v1968_v1, %v1809_v20  ;;  %v13697_v54 = vadd.f32 %v12089_v60, %v1811_v31  ;;  %v13721_v60 = vpop.permute.xlu1 %3518 }
 0x1e1   : > { %v13699_v63 = vpop.f32.mrf.mxu1  ;;  %v13701_v21 = vpop.f32.mrf.mxu0  ;;  %19146 = vst [vmem:[#allocation59_spill] sm:$0xff] %v13721_v60 }
 0x1e2   : > { %19139 = vst [vmem:[#allocation52_spill] sm:$0xff] %v13695_v10  ;;  %19140 = vst [vmem:[#allocation53_spill] sm:$0xff] %v13697_v54 }
 0x1e3   : > { %19141 = vst [vmem:[#allocation54_spill] sm:$0xff] %v13699_v63  ;;  %19142 = vst [vmem:[#allocation55_spill] sm:$0xff] %v13701_v21  ;;  %v13703_v26 = vpop.f32.mrf.mxu0  ;;  %v13705_v48 = vpop.f32.mrf.mxu1 }
 0x1e4   : > { %v13735_v37 = vpop.permute.xlu1 %3510 }
 0x1e5   : > { %v13709_v0 = vpop.f32.mrf.mxu0  ;;  %v13711_v47 = vpop.f32.mrf.mxu1  ;;  %19153 = vst [vmem:[#allocation66_spill] sm:$0xff] %v13735_v37 }
 0x1e7   : > { %v13713_v6 = vpop.f32.mrf.mxu0  ;;  %v13715_v20 = vpop.f32.mrf.mxu1 }
 0x1e8   : > { %19144 = vst [vmem:[#allocation57_spill] sm:$0xff] %v13713_v6 }
 0x1e9   : > { %v13717_v31 = vpop.f32.mrf.mxu0  ;;  %v13719_v1 = vpop.f32.mrf.mxu1 }
 0x1ea   : > { %19145 = vst [vmem:[#allocation58_spill] sm:$0xff] %v13717_v31 }
 0x1eb   : > { %v13723_v10 = vpop.f32.mrf.mxu0  ;;  %v13725_v63 = vpop.f32.mrf.mxu1 }
 0x1ec   : > { %19147 = vst [vmem:[#allocation60_spill] sm:$0xff] %v13723_v10  ;;  %19148 = vst [vmem:[#allocation61_spill] sm:$0xff] %v13725_v63 }
 0x1ed   : > { %v13727_v42 = vpop.f32.mrf.mxu0  ;;  %v13729_v35 = vpop.f32.mrf.mxu1 }
 0x1ee   : > { %19149 = vst [vmem:[#allocation62_spill] sm:$0xff] %v13727_v42  ;;  %19150 = vst [vmem:[#allocation63_spill] sm:$0xff] %v13729_v35  ;;  %v13749_v42 = vpop.permute.xlu1 %3502 }
 0x1ef   : > { %v13731_v54 = vpop.f32.mrf.mxu0  ;;  %v13733_v21 = vpop.f32.mrf.mxu1  ;;  %19158 = vst [vmem:[#allocation71_spill] sm:$0xff] %v13749_v42 }
 0x1f0   : > { %19151 = vst [vmem:[#allocation64_spill] sm:$0xff] %v13731_v54  ;;  %19152 = vst [vmem:[#allocation65_spill] sm:$0xff] %v13733_v21 }
 0x1f1   : > { %v13737_v4 = vpop.f32.mrf.mxu0  ;;  %v13739_v12 = vpop.f32.mrf.mxu1 }
 0x1f2   : > { %19154 = vst [vmem:[#allocation67_spill] sm:$0xff] %v13737_v4  ;;  %19155 = vst [vmem:[#allocation68_spill] sm:$0xff] %v13739_v12 }
 0x1f3   : > { %v13741_v3 = vpop.f32.mrf.mxu0  ;;  %v13743_v60 = vpop.f32.mrf.mxu1 }
 0x1f4   : > { %19156 = vst [vmem:[#allocation69_spill] sm:$0xff] %v13741_v3  ;;  %v13763_v3 = vpop.permute.xlu1 %3829 }
 0x1f5   : > { %v13745_v10 = vpop.f32.mrf.mxu0  ;;  %v13747_v63 = vpop.f32.mrf.mxu1  ;;  %19165 = vst [vmem:[#allocation78_spill] sm:$0xff] %v13763_v3 }
 0x1f6   : > { %19157 = vst [vmem:[#allocation70_spill] sm:$0xff] %v13745_v10 }
 0x1f7   : > { %v13751_v35 = vpop.f32.mrf.mxu0  ;;  %v13753_v54 = vpop.f32.mrf.mxu1 }
 0x1f8   : > { %19159 = vst [vmem:[#allocation72_spill] sm:$0xff] %v13751_v35  ;;  %19160 = vst [vmem:[#allocation73_spill] sm:$0xff] %v13753_v54  ;;  %v13773_v35 = vpop.permute.xlu0 %3017 }
 0x1f9   : > { %v13755_v21 = vpop.f32.mrf.mxu0  ;;  %v13757_v37 = vpop.f32.mrf.mxu1  ;;  %19170 = vst [vmem:[#allocation83_spill] sm:$0xff] %v13773_v35  ;;  %v796_v35 = vadd.f32 %v13498_v39, %v13440_v17 }
 0x1fa   : > { %19161 = vst [vmem:[#allocation74_spill] sm:$0xff] %v13755_v21  ;;  %19162 = vst [vmem:[#allocation75_spill] sm:$0xff] %v13757_v37  ;;  %v13779_v37 = vpop.permute.xlu1 %3821 }
 0x1fb   : > { %v13759_v4 = vpop.f32.mrf.mxu0  ;;  %v13761_v12 = vpop.f32.mrf.mxu1  ;;  %19173 = vst [vmem:[#allocation86_spill] sm:$0xff] %v13779_v37 }
 0x1fc   : > { %19163 = vst [vmem:[#allocation76_spill] sm:$0xff] %v13759_v4  ;;  %19164 = vst [vmem:[#allocation77_spill] sm:$0xff] %v13761_v12  ;;  %v13785_v6 = vpop.permute.xlu0 %3002 }
 0x1fd   : > { %v13765_v38 = vpop.f32.mrf.mxu0  ;;  %v13767_v10 = vpop.f32.mrf.mxu1  ;;  %19176 = vst [vmem:[#allocation89_spill] sm:$0xff] %v13785_v6 }
 0x1fe   : > { %19166 = vst [vmem:[#allocation79_spill] sm:$0xff] %v13765_v38  ;;  %19167 = vst [vmem:[#allocation80_spill] sm:$0xff] %v13767_v10 }
 0x1ff   : > { %v13769_v31 = vpop.f32.mrf.mxu0  ;;  %v13771_v42 = vpop.f32.mrf.mxu1 }
 0x200   : > { %19168 = vst [vmem:[#allocation81_spill] sm:$0xff] %v13769_v31  ;;  %19169 = vst [vmem:[#allocation82_spill] sm:$0xff] %v13771_v42  ;;  %v13807_v39 = vpop.permute.xlu0 %2992 }
 0x201   : > { %v13775_v54 = vpop.f32.mrf.mxu0  ;;  %v13777_v21 = vpop.f32.mrf.mxu1 }
 0x202   : > { %19171 = vst [vmem:[#allocation84_spill] sm:$0xff] %v13775_v54  ;;  %19172 = vst [vmem:[#allocation85_spill] sm:$0xff] %v13777_v21  ;;  %v907_v54 = vadd.f32 %v13528_v5, %v13442_v18  ;;  %v13793_v21 = vpop.permute.xlu1 %3813  ;;  %v802_v18 = vadd.f32 %v13506_v44, %v13458_v23  ;;  %v917_v5 = vadd.f32 %v13535_v11, %v13460_v24 }
 0x203   : > { %v13781_v4 = vpop.f32.mrf.mxu1  ;;  %v12108_v12 = vpop.f32.mrf.mxu0  ;;  %19178 = vst [vmem:[#allocation91_spill] sm:$0xff] %v13793_v21  ;;  %v814_v23 = vadd.f32 %v13521_v57, %v13488_v33  ;;  %v927_v24 = vadd.f32 %v13542_v19, %v13478_v30  ;;  %v937_v44 = vadd.f32 %v13549_v28, %v13490_v34  ;;  %v2089_v19 = vadd.f32 %v13675_v43, %v13619_v45 }
 0x204   : > { %19174 = vst [vmem:[#allocation87_spill] sm:$0xff] %v13781_v4  ;;  %v1216_v42 = vadd.f32 %v13555_v41, %v907_v54  ;;  %v808_v41 = vadd.f32 %v13514_v51, %v13476_v29  ;;  %v1222_v29 = vadd.f32 %v13561_v53, %v917_v5  ;;  %v1218_v30 = vadd.f32 %v13559_v52, %v802_v18 }
 0x205   : > { %v13783_v3 = vpop.f32.mrf.mxu1  ;;  %v2619_v38 = vpop.f32.mrf.mxu0  ;;  %v1228_v52 = vadd.f32 %v13567_v7, %v927_v24  ;;  %v2379_v45 = vadd.f32 %v13715_v20, %v2089_v19 }
 0x206   : > { %19175 = vst [vmem:[#allocation88_spill] sm:$0xff] %v13783_v3  ;;  %v1215_v3 = vadd.f32 %v13553_v40, %v796_v35  ;;  %v1509_v17 = vadd.f32 %v13599_v14, %v1216_v42  ;;  %v13823_v14 = vpop.permute.xlu1 %3805  ;;  %v1221_v57 = vadd.f32 %v13565_v2, %v808_v41  ;;  %v1515_v34 = vadd.f32 %v13603_v22, %v1222_v29 }
 0x207   : > { %v13787_v10 = vpop.f32.mrf.mxu1  ;;  %v12111_v31 = vpop.f32.mrf.mxu0  ;;  %v1511_v2 = vadd.f32 %v13585_v32, %v1218_v30  ;;  %v1521_v41 = vadd.f32 %v13607_v15, %v1228_v52  ;;  %v19183_v30 = vld [vmem:[#allocation10_spill] sm:$0xff] }
 0x208   : > { %19177 = vst [vmem:[#allocation90_spill] sm:$0xff] %v13787_v10  ;;  %v1508_v8 = vadd.f32 %v13579_v27, %v1215_v3  ;;  %v1790_v3 = vadd.f32 %v13617_v61, %v1509_v17  ;;  %v2083_v27 = vadd.f32 %v13667_v16, %v13613_v56  ;;  %v2368_v61 = vadd.f32 %v13703_v26, %v13637_v46  ;;  %v2983_v16 = vpop.permute.xlu0 %2982  ;;  %v19187_v52 = vld [vmem:[#allocation26_spill] sm:$0xff] }
 0x209   : > { %v13795_v37 = vpop.f32.mrf.mxu1  ;;  %v13797_v4 = vpop.f32.mrf.mxu0  ;;  %v1796_v22 = vadd.f32 %v13623_v9, %v1515_v34  ;;  %v2669_v32 = vadd.f32 %v12111_v31, %v2379_v45  ;;  %v19179_v31 = vld [vmem:[#allocation32_spill] sm:$0xff]  ;;  %v19184_v34 = vld [vmem:[#allocation14_spill] sm:$0xff]  ;;  %v19189_v45 = vld [vmem:[#allocation75_spill] sm:$0xff] }
 0x20a   : > { %v1789_v54 = vadd.f32 %v13615_v50, %v1508_v8  ;;  %v2080_v56 = vadd.f32 %v13673_v25, %v1790_v3  ;;  %v2373_v33 = vadd.f32 %v13705_v48, %v2083_v27  ;;  %v2658_v46 = vadd.f32 %v13743_v60, %v2368_v61  ;;  %v19180_v3 = vld [vmem:[#allocation57_spill] sm:$0xff] }
 0x20b   : > { %v13801_v6 = vpop.f32.mrf.mxu1  ;;  %v13803_v10 = vpop.f32.mrf.mxu0  ;;  %v1792_v60 = vadd.f32 %v13621_v55, %v1511_v2  ;;  %v2086_v7 = vadd.f32 %v13683_v62, %v1796_v22  ;;  %v2371_v27 = vadd.f32 %v19180_v3, %v19179_v31  ;;  %v1224_v19 = vadd.f32 %v19184_v34, %v814_v23  ;;  %v19188_v22 = vld [vmem:[#allocation27_spill] sm:$0xff] }
 0x20c   : > { %v2079_v11 = vadd.f32 %v13641_v58, %v1789_v54  ;;  %v2370_v8 = vadd.f32 %v13711_v47, %v2080_v56  ;;  %v2663_v25 = vadd.f32 %v12108_v12, %v2373_v33  ;;  %v13858_v47 = vpop.permute.xlu1 %3797  ;;  %v1234_v12 = vadd.f32 %v13573_v13, %v937_v44  ;;  %v19197_v3 = vld [vmem:[#allocation15_spill] sm:$0xff] }
 0x20d   : > { %v13813_v21 = vpop.f32.mrf.mxu1  ;;  %v13815_v40 = vpop.f32.mrf.mxu0  ;;  %v2082_v13 = vadd.f32 %v13649_v59, %v1792_v60  ;;  %v2376_v55 = vadd.f32 %v13719_v1, %v2086_v7  ;;  %v19182_v1 = vld [vmem:[#allocation6_spill] sm:$0xff]  ;;  %v19192_v7 = vld [vmem:[#allocation33_spill] sm:$0xff] }
 0x20e   : > { %v2369_v58 = vadd.f32 %v13709_v0, %v2079_v11  ;;  %v2660_v48 = vadd.f32 %v2619_v38, %v2370_v8  ;;  %v1514_v38 = vadd.f32 %v13591_v49, %v1221_v57  ;;  %v19181_v11 = vld [vmem:[#allocation58_spill] sm:$0xff]  ;;  %v820_v57 = vadd.f32 %v19183_v30, %v19182_v1 }
 0x20f   : > { %v13832_v51 = vpop.f32.mrf.mxu1  ;;  %v13834_v50 = vpop.f32.mrf.mxu0  ;;  %v2372_v56 = vadd.f32 %v19181_v11, %v2082_v13  ;;  %v2666_v49 = vadd.f32 %v13797_v4, %v2376_v55  ;;  %v19195_v55 = vld [vmem:[#allocation7_spill] sm:$0xff]  ;;  %v19198_v11 = vld [vmem:[#allocation37_spill] sm:$0xff]  ;;  %v19201_v30 = vld [vmem:[#allocation50_spill] sm:$0xff] }
 0x210   : > { %v2659_v26 = vadd.f32 %v13747_v63, %v2369_v58  ;;  %v19185_v58 = vld [vmem:[#allocation24_spill] sm:$0xff]  ;;  %v13890_v4 = vpop.permute.xlu1 %3789  ;;  %v1795_v2 = vadd.f32 %v19187_v52, %v1514_v38 }
 0x211   : > { %v13846_v28 = vpop.f32.mrf.mxu1  ;;  %v13848_v53 = vpop.f32.mrf.mxu0  ;;  %v1527_v8 = vadd.f32 %v19185_v58, %v1234_v12  ;;  %v19202_v58 = vld [vmem:[#allocation77_spill] sm:$0xff] }
 0x213   : > { %v2796_v43 = vpop.f32.mrf.mxu0  ;;  %v12122_v42 = vpop.f32.mrf.mxu1 }
 0x214   : > { %v2948_v35 = vadd.f32 %v2796_v43, %v2658_v46  ;;  %v2953_v0 = vadd.f32 %v12122_v42, %v2663_v25  ;;  %v19186_v46 = vld [vmem:[#allocation73_spill] sm:$0xff]  ;;  %v2662_v43 = vadd.f32 %v19189_v45, %v2372_v56 }
 0x215   : > { %v2798_v17 = vpop.f32.mrf.mxu0  ;;  %v2909_v9 = vpop.f32.mrf.mxu1  ;;  %v2661_v25 = vadd.f32 %v19186_v46, %v2371_v27  ;;  %v1227_v27 = vadd.f32 %v19197_v3, %v820_v57 }
 0x216   : > { %v13864_v20 = vadd.f32 %v13657_v36, %v2953_v0  ;;  %v2949_v18 = vadd.f32 %v2798_v17, %v2659_v26  ;;  %v2950_v5 = vadd.f32 %v2909_v9, %v2660_v48  ;;  %v13866_v63 = vadd.f32 %v2983_v16, %v2948_v35  ;;  %v19190_v48 = vld [vmem:[#allocation48_spill] sm:$0xff]  ;;  %v19191_v35 = vld [vmem:[#allocation61_spill] sm:$0xff]  ;;  %v19193_v17 = vld [vmem:[#allocation35_spill] sm:$0xff] }
 0x217   : > { %v2802_v54 = vpop.f32.mrf.mxu0  ;;  %v12125_v62 = vpop.f32.mrf.mxu1  ;;  %v2385_v0 = vadd.f32 %v19191_v35, %v19190_v48  ;;  %v19194_v9 = vld [vmem:[#allocation60_spill] sm:$0xff] }
 0x218   : > { %v3049_v24 = vmax.f32 %v13864_v20, 0.0  ;;  %v13875_v44 = vadd.f32 %v2983_v16, %v2949_v18  ;;  %v2959_v29 = vadd.f32 %v12125_v62, %v2669_v32  ;;  %v3044_v59 = vmax.f32 %v13866_v63, 0.0  ;;  %v19196_v62 = vld [vmem:[#allocation11_spill] sm:$0xff]  ;;  %v19206_v35 = vld [vmem:[#allocation8_spill] sm:$0xff] }
 0x219   : > { %v2804_v61 = vpop.f32.mrf.mxu0  ;;  %v2919_v15 = vpop.f32.mrf.mxu1  ;;  %v13880_v33 = vadd.f32 %v2983_v16, %v2950_v5  ;;  %v1802_v16 = vadd.f32 %v19188_v22, %v1521_v41  ;;  %v2951_v60 = vadd.f32 %v2802_v54, %v2661_v25  ;;  %v2374_v18 = vadd.f32 %v19194_v9, %v19193_v17  ;;  %v19203_v25 = vld [vmem:[#allocation62_spill] sm:$0xff]  ;;  %v19208_v9 = vld [vmem:[#allocation16_spill] sm:$0xff] }
 0x21a   : > { %3102 = vrot.lane.b32.xlu1 %v3049_v24, %s12735_s29  ;;  %v2956_v42 = vadd.f32 %v2919_v15, %v2666_v49  ;;  %3092 = vrot.lane.b32.xlu0 %v3044_v59, %s12735_s29  ;;  %v3045_v12 = vmax.f32 %v13875_v44, 0.0  ;;  %v13902_v32 = vadd.f32 %v19192_v7, %v2959_v29  ;;  %v2952_v5 = vadd.f32 %v2804_v61, %v2662_v43  ;;  %v19199_v49 = vld [vmem:[#allocation19_spill] sm:$0xff]  ;;  %v19200_v15 = vld [vmem:[#allocation29_spill] sm:$0xff] }
 0x21b   : > { %v2808_v23 = vpop.f32.mrf.mxu0  ;;  %v12128_v26 = vpop.f32.mrf.mxu1  ;;  %v3046_v13 = vmax.f32 %v13880_v33, 0.0  ;;  %v826_v31 = vadd.f32 %v19196_v62, %v19195_v55  ;;  %v2085_v54 = vadd.f32 %v19198_v11, %v1795_v2  ;;  %v2675_v29 = vadd.f32 %v13803_v10, %v2385_v0  ;;  %v19207_v0 = vld [vmem:[#allocation12_spill] sm:$0xff] }
 0x21c   : > { %v13907_v38 = vadd.f32 %v13807_v39, %v2956_v42  ;;  %v1517_v61 = vadd.f32 %v19199_v49, %v1224_v19  ;;  %v1808_v1 = vadd.f32 %v19200_v15, %v1527_v8  ;;  %v2092_v34 = vadd.f32 %v19201_v30, %v1802_v16  ;;  %v13930_v19 = vpop.permute.xlu1 %3781  ;;  %v19205_v8 = vld [vmem:[#allocation63_spill] sm:$0xff]  ;;  %v19214_v49 = vld [vmem:[#allocation65_spill] sm:$0xff] }
 0x21d   : > { %v2810_v41 = vpop.f32.mrf.mxu0  ;;  %v2929_v56 = vpop.f32.mrf.mxu1  ;;  %v2664_v46 = vadd.f32 %v19202_v58, %v2374_v18  ;;  %v2375_v10 = vadd.f32 %v19203_v25, %v2085_v54  ;;  %v13927_v52 = vadd.f32 %v13657_v36, %v2951_v60  ;;  %v3055_v2 = vmax.f32 %v13902_v32, 0.0  ;;  %19204 = vst [vmem:[#allocation32_spill] sm:$0xff] %v13930_v19  ;;  %v19209_v18 = vld [vmem:[#allocation80_spill] sm:$0xff] }
 0x21e   : > { %3094 = vrot.lane.b32.xlu1 %v3045_v12, %s12735_s29  ;;  %3096 = vrot.lane.b32.xlu0 %v3046_v13, %s12735_s29  ;;  %v2965_v22 = vadd.f32 %v12128_v26, %v2675_v29  ;;  %v2382_v45 = vadd.f32 %v19205_v8, %v2092_v34  ;;  %v13934_v16 = vadd.f32 %v13657_v36, %v2952_v5  ;;  %v3052_v48 = vmax.f32 %v13907_v38, 0.0  ;;  %v19210_v26 = vld [vmem:[#allocation20_spill] sm:$0xff]  ;;  %v19213_v29 = vld [vmem:[#allocation53_spill] sm:$0xff]  ;;  %v19215_v34 = vld [vmem:[#allocation30_spill] sm:$0xff] }
 0x21f   : > { %v2814_v57 = vpop.f32.mrf.mxu0  ;;  %v2954_v43 = vadd.f32 %v2808_v23, %v2664_v46  ;;  %v832_v17 = vadd.f32 %v19207_v0, %v19206_v35  ;;  %v1230_v60 = vadd.f32 %v19208_v9, %v826_v31  ;;  %v2665_v55 = vadd.f32 %v19209_v18, %v2375_v10  ;;  %v12131_v62 = vpop.f32.mrf.mxu1  ;;  %v19211_v36 = vld [vmem:[#allocation28_spill] sm:$0xff]  ;;  %v19212_v23 = vld [vmem:[#allocation55_spill] sm:$0xff]  ;;  %v19217_v8 = vld [vmem:[#allocation9_spill] sm:$0xff] }
 0x220   : > { %v1520_v3 = vadd.f32 %v19210_v26, %v1227_v27  ;;  %v1798_v5 = vadd.f32 %v19211_v36, %v1517_v61  ;;  %v2098_v11 = vadd.f32 %v19212_v23, %v1808_v1  ;;  %v2672_v54 = vadd.f32 %v13815_v40, %v2382_v45  ;;  %v19216_v46 = vld [vmem:[#allocation68_spill] sm:$0xff]  ;;  %v19218_v45 = vld [vmem:[#allocation13_spill] sm:$0xff] }
 0x221   : > { %v2816_v42 = vpop.f32.mrf.mxu0  ;;  %v2391_v15 = vadd.f32 %v19214_v49, %v19213_v29  ;;  %v18959_v30 = vmax.f32 %v13927_v52, 0.0  ;;  %v13955_v58 = vadd.f32 %v19215_v34, %v2965_v22  ;;  %v2955_v27 = vadd.f32 %v2810_v41, %v2665_v55  ;;  %v19219_v0 = vld [vmem:[#allocation17_spill] sm:$0xff]  ;;  %v2939_v26 = vpop.f32.mrf.mxu1  ;;  %v19223_v36 = vld [vmem:[#allocation40_spill] sm:$0xff] }
 0x222   : > { %3114 = vrot.lane.b32.xlu1 %v3055_v2, %s12735_s29  ;;  %3108 = vrot.lane.b32.xlu0 %v3052_v48, %s12735_s29  ;;  %v2388_v61 = vadd.f32 %v19216_v46, %v2098_v11  ;;  %v13959_v1 = vadd.f32 %v13807_v39, %v2954_v43  ;;  %v2962_v40 = vadd.f32 %v2929_v56, %v2672_v54  ;;  %v18955_v10 = vmax.f32 %v13934_v16, 0.0  ;;  %v13969_v41 = vpop.permute.xlu1 %3773  ;;  %v19221_v22 = vld [vmem:[#allocation21_spill] sm:$0xff]  ;;  %v19222_v56 = vld [vmem:[#allocation31_spill] sm:$0xff]  ;;  %v19225_v54 = vld [vmem:[#allocation64_spill] sm:$0xff] }
 0x223   : > { %v2820_v31 = vpop.f32.mrf.mxu0  ;;  %v838_v35 = vadd.f32 %v19218_v45, %v19217_v8  ;;  %v1233_v9 = vadd.f32 %v19219_v0, %v832_v17  ;;  %v2681_v18 = vadd.f32 %v13834_v50, %v2391_v15  ;;  %19220 = vst [vmem:[#allocation57_spill] sm:$0xff] %v13969_v41  ;;  %v1523_v43 = vadd.f32 %v19221_v22, %v1230_v60  ;;  %v19224_v17 = vld [vmem:[#allocation38_spill] sm:$0xff]  ;;  %v19226_v46 = vld [vmem:[#allocation67_spill] sm:$0xff]  ;;  %v19227_v8 = vld [vmem:[#allocation89_spill] sm:$0xff] }
 0x224   : > { %v1801_v55 = vadd.f32 %v19222_v56, %v1520_v3  ;;  %v2088_v23 = vadd.f32 %v19223_v36, %v1798_v5  ;;  %v2678_v11 = vadd.f32 %v13848_v53, %v2388_v61  ;;  %v2377_v29 = vadd.f32 %v19225_v54, %v19224_v17  ;;  %v19228_v45 = vld [vmem:[#allocation43_spill] sm:$0xff]  ;;  %v19229_v22 = vld [vmem:[#allocation82_spill] sm:$0xff]  ;;  %v19233_v54 = vld [vmem:[#allocation85_spill] sm:$0xff] }
 0x225   : > { %v2822_v25 = vpop.f32.mrf.mxu0  ;;  %v18956_v49 = vmax.f32 %v13955_v58, 0.0  ;;  %v13982_v15 = vadd.f32 %v13807_v39, %v2955_v27  ;;  %v2971_v60 = vadd.f32 %v12131_v62, %v2681_v18  ;;  %v18954_v5 = vmax.f32 %v13959_v1, 0.0  ;;  %v19230_v39 = vld [vmem:[#allocation18_spill] sm:$0xff] }
 0x226   : > { %3098 = vrot.lane.b32.xlu1 %v18959_v30, %s12735_s29  ;;  %3100 = vrot.lane.b32.xlu0 %v18955_v10, %s12735_s29  ;;  %v2378_v3 = vadd.f32 %v19226_v46, %v2088_v23  ;;  %v13987_v53 = vadd.f32 %v19227_v8, %v2962_v40  ;;  %v2968_v61 = vadd.f32 %v2939_v26, %v2678_v11  ;;  %v19231_v62 = vld [vmem:[#allocation22_spill] sm:$0xff]  ;;  %v19273_v63 = vmax.f32 %v13927_v52, 0.0 }
 0x227   : > { %v2826_v50 = vpop.f32.mrf.mxu0  ;;  %v2091_v0 = vadd.f32 %v19228_v45, %v1801_v55  ;;  %v2667_v56 = vadd.f32 %v19229_v22, %v2377_v29  ;;  %v1236_v27 = vadd.f32 %v19230_v39, %v838_v35  ;;  %v1526_v18 = vadd.f32 %v19231_v62, %v1233_v9  ;;  %v19232_v23 = vld [vmem:[#allocation34_spill] sm:$0xff]  ;;  %v19235_v29 = vld [vmem:[#allocation83_spill] sm:$0xff]  ;;  %v14006_v22 = vpop.permute.xlu1 %4102  ;;  %v19238_v9 = vld [vmem:[#allocation69_spill] sm:$0xff] }
 0x228   : > { %v1804_v17 = vadd.f32 %v19232_v23, %v1523_v43  ;;  %v2668_v46 = vadd.f32 %v19233_v54, %v2378_v3  ;;  %v19234_v40 = vld [vmem:[#allocation70_spill] sm:$0xff]  ;;  %v18957_v55 = vmax.f32 %v13982_v15, 0.0  ;;  %v14004_v45 = vadd.f32 %v19235_v29, %v2971_v60  ;;  %19236 = vst [vmem:[#allocation58_spill] sm:$0xff] %v14006_v22  ;;  %v19239_v62 = vld [vmem:[#allocation25_spill] sm:$0xff]  ;;  %v19240_v54 = vld [vmem:[#allocation88_spill] sm:$0xff] }
 0x229   : > { %v2828_v36 = vpop.f32.mrf.mxu0  ;;  %v2381_v26 = vadd.f32 %v19234_v40, %v2091_v0  ;;  %v2957_v11 = vadd.f32 %v2814_v57, %v2667_v56  ;;  %v19237_v35 = vld [vmem:[#allocation42_spill] sm:$0xff]  ;;  %v14011_v3 = vadd.f32 %v19239_v62, %v2968_v61  ;;  %v18958_v23 = vmax.f32 %v13987_v53, 0.0  ;;  %v19241_v57 = vld [vmem:[#allocation23_spill] sm:$0xff]  ;;  %v19242_v56 = vld [vmem:[#allocation36_spill] sm:$0xff] }
 0x22a   : > { %3126 = vrot.lane.b32.xlu1 %v18956_v49, %s12735_s29  ;;  %3104 = vrot.lane.b32.xlu0 %v18954_v5, %s12735_s29  ;;  %v2380_v39 = vadd.f32 %v19238_v9, %v19237_v35  ;;  %v2958_v43 = vadd.f32 %v2816_v42, %v2668_v46  ;;  %v1529_v60 = vadd.f32 %v19241_v57, %v1236_v27  ;;  %v19243_v10 = vld [vmem:[#allocation46_spill] sm:$0xff]  ;;  %v19244_v35 = vld [vmem:[#allocation87_spill] sm:$0xff]  ;;  %v19245_v61 = vld [vmem:[#allocation44_spill] sm:$0xff] }
 0x22b   : > { %v2671_v5 = vadd.f32 %v19240_v54, %v2381_v26  ;;  %v2832_v0 = vpop.f32.mrf.mxu0  ;;  %v1807_v40 = vadd.f32 %v19242_v56, %v1526_v18  ;;  %v2094_v49 = vadd.f32 %v19243_v10, %v1804_v17  ;;  %v19246_v46 = vld [vmem:[#allocation72_spill] sm:$0xff]  ;;  %v14028_v9 = vadd.f32 %v19192_v7, %v2957_v11  ;;  %v19247_v27 = vld [vmem:[#allocation74_spill] sm:$0xff]  ;;  %v14041_v11 = vpop.permute.xlu1 %4094 }
 0x22c   : > { %v2670_v42 = vadd.f32 %v19244_v35, %v2380_v39  ;;  %v2383_v26 = vadd.f32 %v19246_v46, %v19245_v61  ;;  %v3067_v54 = vmax.f32 %v14004_v45, 0.0  ;;  %v14033_v18 = vadd.f32 %v19192_v7, %v2958_v43  ;;  %v19248_v39 = vld [vmem:[#allocation49_spill] sm:$0xff]  ;;  %v19249_v35 = vld [vmem:[#allocation90_spill] sm:$0xff]  ;;  %19250 = vst [vmem:[#allocation6_spill] sm:$0xff] %v14041_v11  ;;  %v19252_v7 = vld [vmem:[#allocation79_spill] sm:$0xff] }
 0x22d   : > { %v2384_v57 = vadd.f32 %v19247_v27, %v2094_v49  ;;  %v3064_v17 = vmax.f32 %v14011_v3, 0.0  ;;  %v2097_v56 = vadd.f32 %v19248_v39, %v1807_v40  ;;  %v2834_v30 = vpop.f32.mrf.mxu0  ;;  %v3053_v43 = vmax.f32 %v14028_v9, 0.0  ;;  %v19253_v61 = vld [vmem:[#allocation47_spill] sm:$0xff]  ;;  %v19254_v46 = vld [vmem:[#allocation76_spill] sm:$0xff] }
 0x22e   : > { %3106 = vrot.lane.b32.xlu1 %v18957_v55, %s12735_s29  ;;  %3120 = vrot.lane.b32.xlu0 %v18958_v23, %s12735_s29  ;;  %v2961_v55 = vadd.f32 %v2822_v25, %v2671_v5  ;;  %v2960_v10 = vadd.f32 %v2820_v31, %v2670_v42  ;;  %v2673_v23 = vadd.f32 %v19249_v35, %v2383_v26  ;;  %v19251_v25 = vld [vmem:[#allocation39_spill] sm:$0xff] }
 0x22f   : > { %v1810_v5 = vadd.f32 %v19251_v25, %v1529_v60  ;;  %v2674_v49 = vadd.f32 %v13795_v37, %v2384_v57  ;;  %v2387_v31 = vadd.f32 %v19252_v7, %v2097_v56  ;;  %v2386_v26 = vadd.f32 %v19254_v46, %v19253_v61  ;;  %v2838_v39 = vpop.f32.mrf.mxu0  ;;  %v19255_v56 = vld [vmem:[#allocation54_spill] sm:$0xff]  ;;  %v14074_v25 = vpop.permute.xlu1 %4086 }
 0x230   : > { %v14051_v40 = vadd.f32 %v19227_v8, %v2961_v55  ;;  %v2963_v42 = vadd.f32 %v2826_v50, %v2673_v23  ;;  %v14056_v27 = vadd.f32 %v19227_v8, %v2960_v10  ;;  %v18967_v37 = vmax.f32 %v14033_v18, 0.0  ;;  %v19256_v8 = vld [vmem:[#allocation52_spill] sm:$0xff]  ;;  %v19257_v23 = vld [vmem:[#allocation81_spill] sm:$0xff]  ;;  %19258 = vst [vmem:[#allocation10_spill] sm:$0xff] %v14074_v25 }
 0x231   : > { %v2964_v60 = vadd.f32 %v2828_v36, %v2674_v49  ;;  %v2677_v57 = vadd.f32 %v13813_v21, %v2387_v31  ;;  %v2100_v55 = vadd.f32 %v19255_v56, %v1810_v5  ;;  %v2676_v50 = vadd.f32 %v13801_v6, %v2386_v26  ;;  %v19259_v49 = vld [vmem:[#allocation84_spill] sm:$0xff]  ;;  %v2840_v46 = vpop.f32.mrf.mxu0 }
 0x232   : > { %3138 = vrot.lane.b32.xlu1 %v3067_v54, %s12735_s29  ;;  %3132 = vrot.lane.b32.xlu0 %v3064_v17, %s12735_s29  ;;  %v2389_v36 = vadd.f32 %v19257_v23, %v19256_v8  ;;  %v18968_v10 = vmax.f32 %v14051_v40, 0.0  ;;  %v14072_v21 = vadd.f32 %v19215_v34, %v2963_v42  ;;  %v18966_v5 = vmax.f32 %v14056_v27, 0.0 }
 0x233   : > { %v2967_v35 = vadd.f32 %v2834_v30, %v2677_v57  ;;  %v2390_v7 = vadd.f32 %v19259_v49, %v2100_v55  ;;  %v14079_v6 = vadd.f32 %v19215_v34, %v2964_v60  ;;  %v2966_v31 = vadd.f32 %v2832_v0, %v2676_v50 }
 0x234   : > { %v2679_v61 = vadd.f32 %v13832_v51, %v2389_v36  ;;  %v18965_v30 = vmax.f32 %v14072_v21, 0.0 }
 0x235   : > { %v2680_v42 = vadd.f32 %v13846_v28, %v2390_v7  ;;  %v14091_v26 = vadd.f32 %v19239_v62, %v2967_v35  ;;  %v14094_v0 = vadd.f32 %v19239_v62, %v2966_v31  ;;  %v18963_v60 = vmax.f32 %v14079_v6, 0.0  ;;  %v14100_v28 = vpop.permute.xlu1 %4078 }
 0x236   : > { %3110 = vrot.lane.b32.xlu1 %v3053_v43, %s12735_s29  ;;  %3112 = vrot.lane.b32.xlu0 %v18967_v37, %s12735_s29  ;;  %v2969_v34 = vadd.f32 %v2838_v39, %v2679_v61  ;;  %19260 = vst [vmem:[#allocation14_spill] sm:$0xff] %v14100_v28 }
 0x237   : > { %v2970_v51 = vadd.f32 %v2840_v46, %v2680_v42  ;;  %v18964_v57 = vmax.f32 %v14091_v26, 0.0  ;;  %v18962_v62 = vmax.f32 %v14094_v0, 0.0 }
 0x238   : > { %v14107_v39 = vadd.f32 %v19235_v29, %v2969_v34 }
 0x239   : > { %v14111_v56 = vadd.f32 %v19235_v29, %v2970_v51  ;;  %v14120_v50 = vpop.permute.xlu1 %4070  ;;  %v14151_v51 = vpop.permute.xlu0 %3550 }
 0x23a   : > { %3118 = vrot.lane.b32.xlu1 %v18968_v10, %s12735_s29  ;;  %3116 = vrot.lane.b32.xlu0 %v18966_v5, %s12735_s29  ;;  %v18961_v55 = vmax.f32 %v14107_v39, 0.0  ;;  %19261 = vst [vmem:[#allocation24_spill] sm:$0xff] %v14120_v50 }
 0x23b   : > { %v18960_v8 = vmax.f32 %v14111_v56, 0.0 }
 0x23d   : > { %v14129_v29 = vpop.permute.xlu1 %4062 }
 0x23e   : > { %3122 = vrot.lane.b32.xlu1 %v18965_v30, %s12735_s29  ;;  %3124 = vrot.lane.b32.xlu0 %v18963_v60, %s12735_s29  ;;  %19262 = vst [vmem:[#allocation73_spill] sm:$0xff] %v14129_v29 }
 0x241   : > { %v14131_v23 = vpop.permute.xlu1 %4054 }
 0x242   : > { %3130 = vrot.lane.b32.xlu1 %v18964_v57, %s12735_s29  ;;  %3128 = vrot.lane.b32.xlu0 %v18962_v62, %s12735_s29  ;;  %19263 = vst [vmem:[#allocation26_spill] sm:$0xff] %v14131_v23 }
 0x245   : > { %v14133_v36 = vpop.permute.xlu1 %4046 }
 0x246   : > { %3134 = vrot.lane.b32.xlu1 %v18961_v55, %s12735_s29  ;;  %3136 = vrot.lane.b32.xlu0 %v18960_v8, %s12735_s29  ;;  %19264 = vst [vmem:[#allocation27_spill] sm:$0xff] %v14133_v36 }
 0x249   : > { %v14135_v35 = vpop.permute.xlu1 %4381 }
 0x24a   : > { %19265 = vst [vmem:[#allocation75_spill] sm:$0xff] %v14135_v35 }
 0x24d   : > { %v14137_v49 = vpop.permute.xlu1 %4373 }
 0x24e   : > { %19266 = vst [vmem:[#allocation48_spill] sm:$0xff] %v14137_v49 }
 0x251   : > { %v14139_v7 = vpop.permute.xlu1 %4365 }
 0x252   : > { %19267 = vst [vmem:[#allocation61_spill] sm:$0xff] %v14139_v7 }
 0x255   : > { %v14141_v31 = vpop.permute.xlu1 %4357 }
 0x256   : > { %19268 = vst [vmem:[#allocation33_spill] sm:$0xff] %v14141_v31 }
 0x259   : > { %v14143_v61 = vpop.permute.xlu1 %4349 }
 0x25a   : > { %19269 = vst [vmem:[#allocation35_spill] sm:$0xff] %v14143_v61 }
 0x25d   : > { %v14145_v46 = vpop.permute.xlu1 %4341 }
 0x25e   : > { %19270 = vst [vmem:[#allocation60_spill] sm:$0xff] %v14145_v46 }
 0x261   : > { %v14147_v42 = vpop.permute.xlu1 %4333 }
 0x262   : > { %19271 = vst [vmem:[#allocation7_spill] sm:$0xff] %v14147_v42 }
 0x265   : > { %v14149_v34 = vpop.permute.xlu1 %4325 }
 0x266   : > { %19272 = vst [vmem:[#allocation11_spill] sm:$0xff] %v14149_v34 }
 0x28c   : > { %v3103_v8 = vpop.permute.xlu1 %3102  ;;  %v3093_v62 = vpop.permute.xlu0 %3092 }
 0x28d   : > { %v14155_v55 = vmax.f32 %v3049_v24, %v3103_v8 }
 0x28f   : > { %3238 = vrot.lane.b32.xlu1 %v14155_v55, %s12737_s12 }
 0x290   : > { %v3095_v60 = vpop.permute.xlu1 %3094  ;;  %v3097_v57 = vpop.permute.xlu0 %3096 }
 0x291   : > { %v3141_v30 = vsel %vm1827_vm7, %v3095_v60, %v3097_v57  ;;  %v14162_v5 = vmax.f32 %v3046_v13, %v3097_v57  ;;  %v3140_v37 = vsel %vm1827_vm7, %v3093_v62, %v3095_v60  ;;  %v19274_v60 = vmax.f32 %v13955_v58, 0.0 }
 0x292   : > { %v14167_v10 = vmax.f32 %v3045_v12, %v3141_v30  ;;  %v14179_v13 = vmax.f32 %v3044_v59, %v3140_v37 }
 0x293   : > { %3232 = vrot.lane.b32.xlu0 %v14162_v5, %s12737_s12 }
 0x294   : > { %v3115_v20 = vpop.permute.xlu1 %3114  ;;  %3230 = vrot.lane.b32.xlu1 %v14167_v10, %s12737_s12  ;;  %v3109_v33 = vpop.permute.xlu0 %3108 }
 0x295   : > { %v14173_v24 = vmax.f32 %v3055_v2, %v3115_v20  ;;  %v14187_v32 = vmax.f32 %v3052_v48, %v3109_v33  ;;  %v19275_v48 = vmax.f32 %v13934_v16, 0.0 }
 0x297   : > { %3228 = vrot.lane.b32.xlu0 %v14179_v13, %s12737_s12 }
 0x298   : > { %v3099_v44 = vpop.permute.xlu1 %3098  ;;  %3250 = vrot.lane.b32.xlu1 %v14173_v24, %s12737_s12  ;;  %v3101_v12 = vpop.permute.xlu0 %3100 }
 0x299   : > { %v3142_v2 = vsel %vm1827_vm7, %v3099_v44, %v3101_v12  ;;  %v3143_v30 = vsel %vm1827_vm7, %v3101_v12, %v3103_v8  ;;  %v19276_v44 = vmax.f32 %v13982_v15, 0.0 }
 0x29a   : > { %v14193_v59 = vmax.f32 %v19273_v63, %v3142_v2  ;;  %v14205_v62 = vmax.f32 %v19275_v48, %v3143_v30  ;;  %v19277_v2 = vmax.f32 %v13987_v53, 0.0 }
 0x29b   : > { %3244 = vrot.lane.b32.xlu0 %v14187_v32, %s12737_s12 }
 0x29c   : > { %v3127_v37 = vpop.permute.xlu1 %3126  ;;  %3234 = vrot.lane.b32.xlu1 %v14193_v59, %s12737_s12  ;;  %v3105_v38 = vpop.permute.xlu0 %3104 }
 0x29d   : > { %v14199_v57 = vmax.f32 %v19274_v60, %v3127_v37  ;;  %v19278_v60 = vmax.f32 %v13959_v1, 0.0 }
 0x29f   : > { %3236 = vrot.lane.b32.xlu0 %v14205_v62, %s12737_s12 }
 0x2a0   : > { %v3107_v52 = vpop.permute.xlu1 %3106  ;;  %3262 = vrot.lane.b32.xlu1 %v14199_v57, %s12737_s12  ;;  %v3121_v58 = vpop.permute.xlu0 %3120 }
 0x2a1   : > { %v3145_v8 = vsel %vm1827_vm7, %v3107_v52, %v3109_v33  ;;  %v14218_v63 = vmax.f32 %v19277_v2, %v3121_v58  ;;  %v3144_v16 = vsel %vm1827_vm7, %v3105_v38, %v3107_v52 }
 0x2a2   : > { %v14214_v12 = vmax.f32 %v19276_v44, %v3145_v8  ;;  %v14231_v48 = vmax.f32 %v19278_v60, %v3144_v16  ;;  %v19281_v60 = vmax.f32 %v14056_v27, 0.0 }
 0x2a3   : > { %3256 = vrot.lane.b32.xlu0 %v14218_v63, %s12737_s12 }
 0x2a4   : > { %v3139_v30 = vpop.permute.xlu1 %3138  ;;  %3242 = vrot.lane.b32.xlu1 %v14214_v12, %s12737_s12  ;;  %v3133_v15 = vpop.permute.xlu0 %3132 }
 0x2a5   : > { %v14225_v33 = vmax.f32 %v3067_v54, %v3139_v30  ;;  %v14239_v45 = vmax.f32 %v3064_v17, %v3133_v15  ;;  %v19279_v17 = vmax.f32 %v14051_v40, 0.0 }
 0x2a7   : > { %3240 = vrot.lane.b32.xlu0 %v14231_v48, %s12737_s12 }
 0x2a8   : > { %v3111_v53 = vpop.permute.xlu1 %3110  ;;  %3274 = vrot.lane.b32.xlu1 %v14225_v33, %s12737_s12  ;;  %v3113_v38 = vpop.permute.xlu0 %3112 }
 0x2a9   : > { %v3146_v54 = vsel %vm1827_vm7, %v3111_v53, %v3113_v38  ;;  %v3147_v52 = vsel %vm1827_vm7, %v3113_v38, %v3115_v20  ;;  %v19280_v20 = vmax.f32 %v14033_v18, 0.0  ;;  %v19282_v38 = vmax.f32 %v14072_v21, 0.0 }
 0x2aa   : > { %v14245_v1 = vmax.f32 %v3053_v43, %v3146_v54 }
 0x2ab   : > { %3268 = vrot.lane.b32.xlu0 %v14239_v45, %s12737_s12  ;;  %v14258_v16 = vmax.f32 %v19280_v20, %v3147_v52 }
 0x2ac   : > { %v3119_v8 = vpop.permute.xlu1 %3118  ;;  %3246 = vrot.lane.b32.xlu1 %v14245_v1, %s12737_s12  ;;  %v3117_v3 = vpop.permute.xlu0 %3116 }
 0x2ad   : > { %v3149_v44 = vsel %vm1827_vm7, %v3119_v8, %v3121_v58  ;;  %v3148_v9 = vsel %vm1827_vm7, %v3117_v3, %v3119_v8 }
 0x2ae   : > { %v14254_v2 = vmax.f32 %v19279_v17, %v3149_v44  ;;  %v14267_v53 = vmax.f32 %v19281_v60, %v3148_v9  ;;  %v19283_v44 = vmax.f32 %v14091_v26, 0.0  ;;  %v19285_v9 = vmax.f32 %v14094_v0, 0.0 }
 0x2af   : > { %3248 = vrot.lane.b32.xlu0 %v14258_v16, %s12737_s12  ;;  %v3342_v0 = vlaneseq }
 0x2b0   : > { %v3123_v43 = vpop.permute.xlu1 %3122  ;;  %3254 = vrot.lane.b32.xlu1 %v14254_v2, %s12737_s12  ;;  %v3125_v58 = vpop.permute.xlu0 %3124 }
 0x2b1   : > { %v3150_v40 = vsel %vm1827_vm7, %v3123_v43, %v3125_v58  ;;  %v3151_v18 = vsel %vm1827_vm7, %v3125_v58, %v3127_v37  ;;  %v19284_v37 = vmax.f32 %v14079_v6, 0.0  ;;  %v19286_v58 = vmax.f32 %v14107_v39, 0.0  ;;  %v3340_v39 = vld [vmem:[%s18936_s1] sm:$0x7] }
 0x2b2   : > { %v14273_v54 = vmax.f32 %v19282_v38, %v3150_v40  ;;  %v19287_v40 = vmax.f32 %v14111_v56, 0.0  ;;  %v3343_v38 = vshrl.u32 %v3342_v0, 7 }
 0x2b3   : > { %3252 = vrot.lane.b32.xlu0 %v14267_v53, %s12737_s12  ;;  %v14286_v17 = vmax.f32 %v19284_v37, %v3151_v18 }
 0x2b4   : > { %v3131_v52 = vpop.permute.xlu1 %3130  ;;  %3258 = vrot.lane.b32.xlu1 %v14273_v54, %s12737_s12  ;;  %v3129_v27 = vpop.permute.xlu0 %3128  ;;  %v14322_v56 = vsub.s32 1, %v3343_v38 }
 0x2b5   : > { %v3153_v8 = vsel %vm1827_vm7, %v3131_v52, %v3133_v15  ;;  %v3152_v21 = vsel %vm1827_vm7, %v3129_v27, %v3131_v52 }
 0x2b6   : > { %v14282_v3 = vmax.f32 %v19283_v44, %v3153_v8  ;;  %v14295_v43 = vmax.f32 %v19285_v9, %v3152_v21  ;;  %19289 = vst [vmem:[#allocation37_spill] sm:$0xff] %v14322_v56  ;;  %v14326_v21 = vsub.s32 0, %v3343_v38  ;;  %v14332_v9 = vrot.slane %v3340_v39, %v14322_v56 }
 0x2b7   : > { %3260 = vrot.lane.b32.xlu0 %v14286_v17, %s12737_s12 }
 0x2b8   : > { %v3135_v20 = vpop.permute.xlu1 %3134  ;;  %3266 = vrot.lane.b32.xlu1 %v14282_v3, %s12737_s12  ;;  %v3137_v15 = vpop.permute.xlu0 %3136  ;;  %19290 = vst [vmem:[#allocation19_spill] sm:$0xff] %v14326_v21 }
 0x2b9   : > { %v3154_v26 = vsel %vm1827_vm7, %v3135_v20, %v3137_v15  ;;  %v3155_v6 = vsel %vm1827_vm7, %v3137_v15, %v3139_v30  ;;  %v14313_v30 = vsub.s32 2, %v3343_v38  ;;  %v19291_v20 = vmov 0.0  }
 0x2ba   : > { %v14301_v60 = vmax.f32 %v19286_v58, %v3154_v26  ;;  %v14309_v18 = vmax.f32 %v19287_v40, %v3155_v6  ;;  %v14338_v40 = vrot.slane %v3340_v39, %v14326_v21  ;;  %8691 = vst.msk [vmem:[#allocation5] sm:$0xff] %vm8690_vm15, %v19291_v20  ;;  %8692 = vst.msk [vmem:[#allocation5 + $0x28] sm:$0xff] %vm8690_vm15, %v19291_v20 }
 0x2bb   : > { %3264 = vrot.lane.b32.xlu0 %v14295_v43, %s12737_s12  ;;  %19288 = vst [vmem:[#allocation15_spill] sm:$0xff] %v14313_v30  ;;  %v14319_v52 = vrot.slane %v3340_v39, %v14313_v30  ;;  %8693 = vst.msk [vmem:[#allocation5 + $0x50] sm:$0xff] %vm8690_vm15, %v19291_v20 }
 0x2bc   : > { %3270 = vrot.lane.b32.xlu1 %v14301_v60, %s12737_s12  ;;  %8694 = vst.msk [vmem:[#allocation5 + $0x78] sm:$0xff] %vm8690_vm15, %v19291_v20  ;;  %8695 = vst.msk [vmem:[#allocation5 + $0xa0] sm:$0xff] %vm8690_vm15, %v19291_v20 }
 0x2bd   : > { %8696 = vst.msk [vmem:[#allocation5 + $0xc8] sm:$0xff] %vm8690_vm15, %v19291_v20  ;;  %8697 = vst.msk [vmem:[#allocation5 + $0xf0] sm:$0xff] %vm8690_vm15, %v19291_v20 }
 0x2be   : > { %8698 = vst.msk [vmem:[#allocation5 + $0x118] sm:$0xff] %vm8690_vm15, %v19291_v20 }
 0x2bf   : > { %3272 = vrot.lane.b32.xlu0 %v14309_v18, %s12737_s12 }
 0x301   : > { %v3239_v8 = vpop.permute.xlu1 %3238 }
 0x302   : > { %v3321_v27 = vmax.f32 %v14155_v55, %v3239_v8 }
 0x304   : > { %v3362_v44 = vmul.f32 %v14319_v52, %v3321_v27 }
 0x305   : > { %v3233_v37 = vpop.permute.xlu0 %3232 }
 0x306   : > { %3396 = vst.msk [vmem:[#allocation3 + $0x40] sm:$0xff] %vm3392_vm12, %v3362_v44  ;;  %v3318_v15 = vmax.f32 %v14162_v5, %v3233_v37  ;;  %v3231_v55 = vpop.permute.xlu1 %3230 }
 0x307   : > { %3419 = vst.msk [vmem:[#allocation3 + $0x40] sm:$0xff] %vm3415_vm13, %v19291_v20  ;;  %v3277_v26 = vsel %vm2407_vm9, %v3231_v55, %v3233_v37 }
 0x308   : > { %v3359_v6 = vmul.f32 %v14319_v52, %v3318_v15  ;;  %v3317_v58 = vmax.f32 %v14167_v10, %v3277_v26 }
 0x309   : > { %v3229_v0 = vpop.permute.xlu0 %3228 }
 0x30a   : > { %3393 = vst.msk [vmem:[#allocation3 + $0x18] sm:$0xff] %vm3392_vm12, %v3359_v6  ;;  %v14342_v38 = vmul.f32 %v14332_v9, %v3317_v58  ;;  %v3276_v5 = vsel %vm2407_vm9, %v3229_v0, %v3231_v55  ;;  %v14345_v27 = vpop.permute.xlu1 %3250 }
 0x30b   : > { %3416 = vst.msk [vmem:[#allocation3 + $0x18] sm:$0xff] %vm3415_vm13, %v19291_v20  ;;  %v3316_v44 = vmax.f32 %v14179_v13, %v3276_v5  ;;  %v3327_v10 = vmax.f32 %v14173_v24, %v14345_v27 }
 0x30c   : > { %3391 = vst [vmem:[#allocation3 + $0x10] sm:$0xff] %v14342_v38 }
 0x30d   : > { %v14354_v39 = vmul.f32 %v14338_v40, %v3316_v44  ;;  %v3368_v37 = vmul.f32 %v14319_v52, %v3327_v10  ;;  %v3245_v15 = vpop.permute.xlu0 %3244 }
 0x30e   : > { %v14357_v26 = vld [vmem:[#allocation3 + $0x40] sm:$0xff]  ;;  %v3324_v55 = vmax.f32 %v14187_v32, %v3245_v15  ;;  %v3235_v6 = vpop.permute.xlu1 %3234 }
 0x30f   : > { %3516 = vrot.lane.b32.xlu0 %v14357_v26, %s12731_s25  ;;  %4339 = vrot.lane.b32.xlu1 %v14357_v26, %s12734_s28  ;;  %3390 = vst [vmem:[#allocation3 + $0x8] sm:$0xff] %v14354_v39  ;;  %3402 = vst.msk [vmem:[#allocation3 + $0x90] sm:$0xff] %vm3392_vm12, %v3368_v37 }
 0x310   : > { %3423 = vst.msk [vmem:[#allocation3 + $0x90] sm:$0xff] %vm3415_vm13, %v19291_v20  ;;  %v3365_v24 = vmul.f32 %v14319_v52, %v3324_v55 }
 0x311   : > { %v3237_v13 = vpop.permute.xlu0 %3236 }
 0x312   : > { %3399 = vst.msk [vmem:[#allocation3 + $0x68] sm:$0xff] %vm3392_vm12, %v3365_v24  ;;  %v3278_v32 = vsel %vm2407_vm9, %v3235_v6, %v3237_v13  ;;  %v3279_v58 = vsel %vm2407_vm9, %v3237_v13, %v3239_v8  ;;  %v14372_v0 = vpop.permute.xlu1 %3262  ;;  %v14376_v5 = vld [vmem:[#allocation3 + $0x18] sm:$0xff] }
 0x313   : > { %3787 = vrot.lane.b32.xlu0 %v14357_v26, %s12732_s26  ;;  %3421 = vst.msk [vmem:[#allocation3 + $0x68] sm:$0xff] %vm3415_vm13, %v19291_v20  ;;  %v3319_v44 = vmax.f32 %v14193_v59, %v3278_v32  ;;  %v3320_v10 = vmax.f32 %v14205_v62, %v3279_v58  ;;  %v3333_v37 = vmax.f32 %v14199_v57, %v14372_v0 }
 0x314   : > { %4775 = vrot.lane.b32.xlu1 %v14376_v5, %s12735_s29 }
 0x315   : > { %v14387_v8 = vmul.f32 %v14338_v40, %v3319_v44  ;;  %v14390_v55 = vmul.f32 %v14332_v9, %v3320_v10  ;;  %v3374_v6 = vmul.f32 %v14319_v52, %v3333_v37  ;;  %v3257_v24 = vpop.permute.xlu0 %3256 }
 0x316   : > { %v3330_v13 = vmax.f32 %v14218_v63, %v3257_v24  ;;  %v3243_v59 = vpop.permute.xlu1 %3242 }
 0x317   : > { %4060 = vrot.lane.b32.xlu0 %v14357_v26, %s12733_s27  ;;  %3394 = vst [vmem:[#allocation3 + $0x30] sm:$0xff] %v14387_v8  ;;  %3395 = vst [vmem:[#allocation3 + $0x38] sm:$0xff] %v14390_v55  ;;  %v3281_v57 = vsel %vm2407_vm9, %v3243_v59, %v3245_v15 }
 0x318   : > { %3408 = vst.msk [vmem:[#allocation3 + $0xe0] sm:$0xff] %vm3392_vm12, %v3374_v6  ;;  %3506 = vrot.lane.b32.xlu1 %v14342_v38, %s12731_s25  ;;  %v3371_v62 = vmul.f32 %v14319_v52, %v3330_v13  ;;  %v3323_v63 = vmax.f32 %v14214_v12, %v3281_v57 }
 0x319   : > { %3427 = vst.msk [vmem:[#allocation3 + $0xe0] sm:$0xff] %vm3415_vm13, %v19291_v20  ;;  %v3241_v32 = vpop.permute.xlu0 %3240 }
 0x31a   : > { %3405 = vst.msk [vmem:[#allocation3 + $0xb8] sm:$0xff] %vm3392_vm12, %v3371_v62  ;;  %v14408_v58 = vmul.f32 %v14332_v9, %v3323_v63  ;;  %v3280_v44 = vsel %vm2407_vm9, %v3241_v32, %v3243_v59  ;;  %v14411_v10 = vpop.permute.xlu1 %3274 }
 0x31b   : > { %4781 = vrot.lane.b32.xlu0 %v14357_v26, %s12735_s29  ;;  %3425 = vst.msk [vmem:[#allocation3 + $0xb8] sm:$0xff] %vm3415_vm13, %v19291_v20  ;;  %v3322_v15 = vmax.f32 %v14231_v48, %v3280_v44  ;;  %v3339_v12 = vmax.f32 %v14225_v33, %v14411_v10 }
 0x31c   : > { %3777 = vrot.lane.b32.xlu1 %v14342_v38, %s12732_s26  ;;  %3398 = vst [vmem:[#allocation3 + $0x60] sm:$0xff] %v14408_v58 }
 0x31d   : > { %v14424_v37 = vmul.f32 %v14338_v40, %v3322_v15  ;;  %v3380_v6 = vmul.f32 %v14319_v52, %v3339_v12  ;;  %v3269_v13 = vpop.permute.xlu0 %3268  ;;  %v14451_v12 = vld [vmem:[#allocation3 + $0x68] sm:$0xff] }
 0x31e   : > { %v3336_v59 = vmax.f32 %v14239_v45, %v3269_v13  ;;  %v3247_v57 = vpop.permute.xlu1 %3246 }
 0x31f   : > { %3508 = vrot.lane.b32.xlu0 %v14376_v5, %s12731_s25  ;;  %3397 = vst [vmem:[#allocation3 + $0x58] sm:$0xff] %v14424_v37  ;;  %3414 = vst.msk [vmem:[#allocation3 + $0x130] sm:$0xff] %vm3392_vm12, %v3380_v6 }
 0x320   : > { %4050 = vrot.lane.b32.xlu1 %v14342_v38, %s12733_s27  ;;  %3431 = vst.msk [vmem:[#allocation3 + $0x130] sm:$0xff] %vm3415_vm13, %v19291_v20  ;;  %v3377_v33 = vmul.f32 %v14319_v52, %v3336_v59 }
 0x321   : > { %v3249_v48 = vpop.permute.xlu0 %3248 }
 0x322   : > { %3411 = vst.msk [vmem:[#allocation3 + $0x108] sm:$0xff] %vm3392_vm12, %v3377_v33  ;;  %v3282_v45 = vsel %vm2407_vm9, %v3247_v57, %v3249_v48  ;;  %v3283_v62 = vsel %vm2407_vm9, %v3249_v48, %v14345_v27  ;;  %v3255_v63 = vpop.permute.xlu1 %3254 }
 0x323   : > { %3779 = vrot.lane.b32.xlu0 %v14376_v5, %s12732_s26  ;;  %3429 = vst.msk [vmem:[#allocation3 + $0x108] sm:$0xff] %vm3415_vm13, %v19291_v20  ;;  %v3325_v32 = vmax.f32 %v14245_v1, %v3282_v45  ;;  %v3326_v44 = vmax.f32 %v14258_v16, %v3283_v62  ;;  %v3285_v52 = vsel %vm2407_vm9, %v3255_v63, %v3257_v24 }
 0x324   : > { %4329 = vrot.lane.b32.xlu1 %v14342_v38, %s12734_s28  ;;  %v3329_v15 = vmax.f32 %v14254_v2, %v3285_v52 }
 0x325   : > { %v14454_v27 = vmul.f32 %v14338_v40, %v3325_v32  ;;  %v14457_v6 = vmul.f32 %v14332_v9, %v3326_v44  ;;  %v3253_v59 = vpop.permute.xlu0 %3252 }
 0x326   : > { %v14460_v1 = vmul.f32 %v14332_v9, %v3329_v15  ;;  %v3284_v16 = vsel %vm2407_vm9, %v3253_v59, %v3255_v63  ;;  %v3259_v24 = vpop.permute.xlu1 %3258 }
 0x327   : > { %4052 = vrot.lane.b32.xlu0 %v14376_v5, %s12733_s27  ;;  %3400 = vst [vmem:[#allocation3 + $0x80] sm:$0xff] %v14454_v27  ;;  %3401 = vst [vmem:[#allocation3 + $0x88] sm:$0xff] %v14457_v6  ;;  %v3328_v2 = vmax.f32 %v14267_v53, %v3284_v16  ;;  %v14709_v42 = vld [vmem:[#allocation3 + $0x130] sm:$0xff] }
 0x328   : > { %4787 = vrot.lane.b32.xlu1 %v14451_v12, %s12735_s29  ;;  %3404 = vst [vmem:[#allocation3 + $0xb0] sm:$0xff] %v14460_v1  ;;  %19311 = vst [vmem:[#allocation21_spill] sm:$0xff] %v14709_v42 }
 0x329   : > { %v14472_v57 = vmul.f32 %v14338_v40, %v3328_v2  ;;  %v3261_v33 = vpop.permute.xlu0 %3260 }
 0x32a   : > { %v3286_v48 = vsel %vm2407_vm9, %v3259_v24, %v3261_v33  ;;  %v3287_v45 = vsel %vm2407_vm9, %v3261_v33, %v14372_v0  ;;  %v3267_v62 = vpop.permute.xlu1 %3266 }
 0x32b   : > { %4331 = vrot.lane.b32.xlu0 %v14376_v5, %s12734_s28  ;;  %3403 = vst [vmem:[#allocation3 + $0xa8] sm:$0xff] %v14472_v57  ;;  %v3331_v53 = vmax.f32 %v14273_v54, %v3286_v48  ;;  %v3332_v63 = vmax.f32 %v14286_v17, %v3287_v45  ;;  %v3289_v32 = vsel %vm2407_vm9, %v3267_v62, %v3269_v13 }
 0x32c   : > { %3514 = vrot.lane.b32.xlu1 %v14390_v55, %s12731_s25  ;;  %v3335_v44 = vmax.f32 %v14282_v3, %v3289_v32 }
 0x32d   : > { %v14487_v52 = vmul.f32 %v14338_v40, %v3331_v53  ;;  %v14490_v0 = vmul.f32 %v14332_v9, %v3332_v63  ;;  %v3265_v15 = vpop.permute.xlu0 %3264 }
 0x32e   : > { %v14493_v59 = vmul.f32 %v14332_v9, %v3335_v44  ;;  %v3288_v54 = vsel %vm2407_vm9, %v3265_v15, %v3267_v62  ;;  %v3271_v13 = vpop.permute.xlu1 %3270 }
 0x32f   : > { %3504 = vrot.lane.b32.xlu0 %v14354_v39, %s12731_s25  ;;  %3406 = vst [vmem:[#allocation3 + $0xd0] sm:$0xff] %v14487_v52  ;;  %3407 = vst [vmem:[#allocation3 + $0xd8] sm:$0xff] %v14490_v0  ;;  %v3334_v3 = vmax.f32 %v14295_v43, %v3288_v54 }
 0x330   : > { %3785 = vrot.lane.b32.xlu1 %v14390_v55, %s12732_s26  ;;  %3410 = vst [vmem:[#allocation3 + $0x100] sm:$0xff] %v14493_v59 }
 0x331   : > { %v14505_v17 = vmul.f32 %v14338_v40, %v3334_v3  ;;  %v3273_v16 = vpop.permute.xlu0 %3272 }
 0x332   : > { %v3290_v24 = vsel %vm2407_vm9, %v3271_v13, %v3273_v16  ;;  %v3291_v2 = vsel %vm2407_vm9, %v3273_v16, %v14411_v10 }
 0x333   : > { %3775 = vrot.lane.b32.xlu0 %v14354_v39, %s12732_s26  ;;  %3409 = vst [vmem:[#allocation3 + $0xf8] sm:$0xff] %v14505_v17  ;;  %v3337_v43 = vmax.f32 %v14301_v60, %v3290_v24  ;;  %v3338_v33 = vmax.f32 %v14309_v18, %v3291_v2  ;;  %v14537_v60 = vld [vmem:[#allocation3 + $0xb8] sm:$0xff]  ;;  %v14543_v18 = vld [vmem:[#allocation3 + $0x90] sm:$0xff] }
 0x334   : > { %4058 = vrot.lane.b32.xlu1 %v14390_v55, %s12733_s27 }
 0x335   : > { %v14518_v48 = vmul.f32 %v14338_v40, %v3337_v43  ;;  %v14521_v45 = vmul.f32 %v14332_v9, %v3338_v33  ;;  %v14561_v9 = vld [vmem:[#allocation3 + $0x108] sm:$0xff]  ;;  %v14599_v40 = vld [vmem:[#allocation3 + $0xe0] sm:$0xff] }
 0x337   : > { %4048 = vrot.lane.b32.xlu0 %v14354_v39, %s12733_s27  ;;  %3412 = vst [vmem:[#allocation3 + $0x120] sm:$0xff] %v14518_v48  ;;  %3413 = vst [vmem:[#allocation3 + $0x128] sm:$0xff] %v14521_v45 }
 0x338   : > { %4337 = vrot.lane.b32.xlu1 %v14390_v55, %s12734_s28 }
 0x33b   : > { %4327 = vrot.lane.b32.xlu0 %v14354_v39, %s12734_s28 }
 0x33c   : > { %4779 = vrot.lane.b32.xlu1 %v14390_v55, %s12735_s29 }
 0x33f   : > { %4773 = vrot.lane.b32.xlu0 %v14342_v38, %s12735_s29 }
 0x340   : > { %4777 = vrot.lane.b32.xlu1 %v14387_v8, %s12735_s29 }
 0x343   : > { %4771 = vrot.lane.b32.xlu0 %v14354_v39, %s12735_s29 }
 0x344   : > { %4799 = vrot.lane.b32.xlu1 %v14537_v60, %s12735_s29 }
 0x347   : > { %3532 = vrot.lane.b32.xlu0 %v14543_v18, %s12731_s25 }
 0x348   : > { %3522 = vrot.lane.b32.xlu1 %v14408_v58, %s12731_s25 }
 0x34b   : > { %3803 = vrot.lane.b32.xlu0 %v14543_v18, %s12732_s26 }
 0x34c   : > { %3793 = vrot.lane.b32.xlu1 %v14408_v58, %s12732_s26 }
 0x34f   : > { %4076 = vrot.lane.b32.xlu0 %v14543_v18, %s12733_s27 }
 0x350   : > { %4066 = vrot.lane.b32.xlu1 %v14408_v58, %s12733_s27 }
 0x353   : > { %4355 = vrot.lane.b32.xlu0 %v14543_v18, %s12734_s28 }
 0x354   : > { %4345 = vrot.lane.b32.xlu1 %v14408_v58, %s12734_s28 }
 0x357   : > { %4793 = vrot.lane.b32.xlu0 %v14543_v18, %s12735_s29 }
 0x358   : > { %4811 = vrot.lane.b32.xlu1 %v14561_v9, %s12735_s29 }
 0x35b   : > { %3524 = vrot.lane.b32.xlu0 %v14451_v12, %s12731_s25 }
 0x35c   : > { %5066 = vrot.lane.b32.xlu1 %v14561_v9, %s12736_s30 }
 0x35f   : > { %3795 = vrot.lane.b32.xlu0 %v14451_v12, %s12732_s26 }
 0x360   : > { %3530 = vrot.lane.b32.xlu1 %v14457_v6, %s12731_s25 }
 0x363   : > { %4068 = vrot.lane.b32.xlu0 %v14451_v12, %s12733_s27 }
 0x364   : > { %3801 = vrot.lane.b32.xlu1 %v14457_v6, %s12732_s26 }
 0x367   : > { %4347 = vrot.lane.b32.xlu0 %v14451_v12, %s12734_s28 }
 0x368   : > { %4074 = vrot.lane.b32.xlu1 %v14457_v6, %s12733_s27 }
 0x36b   : > { %3512 = vrot.lane.b32.xlu0 %v14387_v8, %s12731_s25 }
 0x36c   : > { %4353 = vrot.lane.b32.xlu1 %v14457_v6, %s12734_s28 }
 0x36f   : > { %3783 = vrot.lane.b32.xlu0 %v14387_v8, %s12732_s26 }
 0x370   : > { %4791 = vrot.lane.b32.xlu1 %v14457_v6, %s12735_s29 }
 0x373   : > { %4056 = vrot.lane.b32.xlu0 %v14387_v8, %s12733_s27 }
 0x374   : > { %4789 = vrot.lane.b32.xlu1 %v14454_v27, %s12735_s29 }
 0x377   : > { %4335 = vrot.lane.b32.xlu0 %v14387_v8, %s12734_s28 }
 0x378   : > { %3538 = vrot.lane.b32.xlu1 %v14460_v1, %s12731_s25 }
 0x37b   : > { %3548 = vrot.lane.b32.xlu0 %v14599_v40, %s12731_s25 }
 0x37c   : > { %3809 = vrot.lane.b32.xlu1 %v14460_v1, %s12732_s26 }
 0x37f   : > { %3819 = vrot.lane.b32.xlu0 %v14599_v40, %s12732_s26 }
 0x380   : > { %4082 = vrot.lane.b32.xlu1 %v14460_v1, %s12733_s27 }
 0x381   : > { %v14609_v10 = vpop.permute.xlu1 %4339  ;;  %v14611_v62 = vpop.permute.xlu0 %3516 }
 0x382   : > { %19292 = vst [vmem:[#allocation29_spill] sm:$0xff] %v14609_v10 }
 0x383   : > { %4092 = vrot.lane.b32.xlu0 %v14599_v40, %s12733_s27 }
 0x384   : > { %4361 = vrot.lane.b32.xlu1 %v14460_v1, %s12734_s28 }
 0x385   : > { %v14617_v53 = vpop.permute.xlu0 %3787 }
 0x386   : > { %19293 = vst [vmem:[#allocation50_spill] sm:$0xff] %v14617_v53  ;;  %v14619_v63 = vpop.permute.xlu1 %4775 }
 0x387   : > { %19294 = vst [vmem:[#allocation77_spill] sm:$0xff] %v14619_v63  ;;  %4371 = vrot.lane.b32.xlu0 %v14599_v40, %s12734_s28 }
 0x388   : > { %3544 = vrot.lane.b32.xlu1 %v14487_v52, %s12731_s25 }
 0x389   : > { %v14625_v32 = vpop.permute.xlu0 %4060 }
 0x38a   : > { %19295 = vst [vmem:[#allocation62_spill] sm:$0xff] %v14625_v32  ;;  %v14627_v44 = vpop.permute.xlu1 %3506 }
 0x38b   : > { %4805 = vrot.lane.b32.xlu0 %v14599_v40, %s12735_s29 }
 0x38c   : > { %3815 = vrot.lane.b32.xlu1 %v14487_v52, %s12732_s26 }
 0x38d   : > { %v14633_v15 = vpop.permute.xlu0 %4781 }
 0x38e   : > { %19296 = vst [vmem:[#allocation63_spill] sm:$0xff] %v14633_v15  ;;  %v14635_v54 = vpop.permute.xlu1 %3777 }
 0x38f   : > { %19297 = vst [vmem:[#allocation8_spill] sm:$0xff] %v14635_v54  ;;  %3540 = vrot.lane.b32.xlu0 %v14537_v60, %s12731_s25 }
 0x390   : > { %4088 = vrot.lane.b32.xlu1 %v14487_v52, %s12733_s27 }
 0x391   : > { %v14641_v3 = vpop.permute.xlu0 %3508 }
 0x392   : > { %v14643_v13 = vpop.permute.xlu1 %4050 }
 0x393   : > { %19298 = vst [vmem:[#allocation12_spill] sm:$0xff] %v14643_v13  ;;  %3811 = vrot.lane.b32.xlu0 %v14537_v60, %s12732_s26 }
 0x394   : > { %4367 = vrot.lane.b32.xlu1 %v14487_v52, %s12734_s28 }
 0x395   : > { %v14649_v16 = vpop.permute.xlu0 %3779 }
 0x396   : > { %19299 = vst [vmem:[#allocation16_spill] sm:$0xff] %v14649_v16  ;;  %v14651_v24 = vpop.permute.xlu1 %4329 }
 0x397   : > { %19300 = vst [vmem:[#allocation80_spill] sm:$0xff] %v14651_v24  ;;  %4084 = vrot.lane.b32.xlu0 %v14537_v60, %s12733_s27 }
 0x398   : > { %4803 = vrot.lane.b32.xlu1 %v14490_v0, %s12735_s29 }
 0x399   : > { %v14657_v2 = vpop.permute.xlu0 %4052 }
 0x39a   : > { %19301 = vst [vmem:[#allocation20_spill] sm:$0xff] %v14657_v2  ;;  %v14659_v43 = vpop.permute.xlu1 %4787 }
 0x39b   : > { %19302 = vst [vmem:[#allocation28_spill] sm:$0xff] %v14659_v43  ;;  %4363 = vrot.lane.b32.xlu0 %v14537_v60, %s12734_s28 }
 0x39c   : > { %4801 = vrot.lane.b32.xlu1 %v14487_v52, %s12735_s29 }
 0x39d   : > { %v14665_v33 = vpop.permute.xlu0 %4331 }
 0x39e   : > { %19303 = vst [vmem:[#allocation55_spill] sm:$0xff] %v14665_v33  ;;  %v14667_v56 = vpop.permute.xlu1 %3514 }
 0x39f   : > { %3520 = vrot.lane.b32.xlu0 %v14424_v37, %s12731_s25 }
 0x3a0   : > { %5058 = vrot.lane.b32.xlu1 %v14490_v0, %s12736_s30 }
 0x3a1   : > { %v14673_v21 = vpop.permute.xlu0 %3504 }
 0x3a2   : > { %v14677_v30 = vpop.permute.xlu1 %3785 }
 0x3a3   : > { %3791 = vrot.lane.b32.xlu0 %v14424_v37, %s12732_s26  ;;  %19304 = vst [vmem:[#allocation53_spill] sm:$0xff] %v14677_v30 }
 0x3a4   : > { %3554 = vrot.lane.b32.xlu1 %v14493_v59, %s12731_s25 }
 0x3a5   : > { %v14681_v63 = vpop.permute.xlu0 %3775 }
 0x3a6   : > { %19305 = vst [vmem:[#allocation65_spill] sm:$0xff] %v14681_v63  ;;  %v14689_v43 = vpop.permute.xlu1 %4058 }
 0x3a7   : > { %4064 = vrot.lane.b32.xlu0 %v14424_v37, %s12733_s27  ;;  %19307 = vst [vmem:[#allocation68_spill] sm:$0xff] %v14689_v43 }
 0x3a8   : > { %3823 = vrot.lane.b32.xlu1 %v14505_v17, %s12732_s26 }
 0x3a9   : > { %v14687_v15 = vpop.permute.xlu0 %4048 }
 0x3aa   : > { %19306 = vst [vmem:[#allocation30_spill] sm:$0xff] %v14687_v15  ;;  %v14699_v33 = vpop.permute.xlu1 %4337 }
 0x3ab   : > { %4343 = vrot.lane.b32.xlu0 %v14424_v37, %s12734_s28  ;;  %19309 = vst [vmem:[#allocation13_spill] sm:$0xff] %v14699_v33 }
 0x3ac   : > { %4096 = vrot.lane.b32.xlu1 %v14505_v17, %s12733_s27 }
 0x3ad   : > { %v14695_v34 = vpop.permute.xlu0 %4327 }
 0x3ae   : > { %19308 = vst [vmem:[#allocation9_spill] sm:$0xff] %v14695_v34  ;;  %v14713_v34 = vpop.permute.xlu1 %4779 }
 0x3af   : > { %4785 = vrot.lane.b32.xlu0 %v14408_v58, %s12735_s29  ;;  %19313 = vst [vmem:[#allocation40_spill] sm:$0xff] %v14713_v34 }
 0x3b0   : > { %4375 = vrot.lane.b32.xlu1 %v14505_v17, %s12734_s28 }
 0x3b1   : > { %v14703_v24 = vpop.permute.xlu0 %4773 }
 0x3b2   : > { %19310 = vst [vmem:[#allocation17_spill] sm:$0xff] %v14703_v24  ;;  %v14723_v24 = vpop.permute.xlu1 %4777 }
 0x3b3   : > { %4783 = vrot.lane.b32.xlu0 %v14424_v37, %s12735_s29  ;;  %19314 = vst [vmem:[#allocation38_spill] sm:$0xff] %v14723_v24 }
 0x3b4   : > { %3560 = vrot.lane.b32.xlu1 %v14518_v48, %s12731_s25 }
 0x3b5   : > { %v14711_v10 = vpop.permute.xlu0 %4771 }
 0x3b6   : > { %19312 = vst [vmem:[#allocation31_spill] sm:$0xff] %v14711_v10  ;;  %v14735_v34 = vpop.permute.xlu1 %4799 }
 0x3b7   : > { %3564 = vrot.lane.b32.xlu0 %v14709_v42, %s12731_s25  ;;  %19316 = vst [vmem:[#allocation67_spill] sm:$0xff] %v14735_v34 }
 0x3b8   : > { %5056 = vrot.lane.b32.xlu1 %v14487_v52, %s12736_s30 }
 0x3b9   : > { %v14719_v33 = vpop.permute.xlu0 %3532 }
 0x3ba   : > { %v14745_v61 = vpop.permute.xlu1 %3522 }
 0x3bb   : > { %3835 = vrot.lane.b32.xlu0 %v14709_v42, %s12732_s26 }
 0x3bc   : > { %5054 = vrot.lane.b32.xlu1 %v14537_v60, %s12736_s30 }
 0x3bd   : > { %v14727_v46 = vpop.permute.xlu0 %3803 }
 0x3be   : > { %v14757_v7 = vpop.permute.xlu1 %3793 }
 0x3bf   : > { %4108 = vrot.lane.b32.xlu0 %v14709_v42, %s12733_s27 }
 0x3c0   : > { %5046 = vrot.lane.b32.xlu1 %v14457_v6, %s12736_s30 }
 0x3c1   : > { %v14733_v10 = vpop.permute.xlu0 %4076 }
 0x3c2   : > { %19315 = vst [vmem:[#allocation64_spill] sm:$0xff] %v14733_v10 }
 0x3c3   : > { %4387 = vrot.lane.b32.xlu0 %v14709_v42, %s12734_s28 }
 0x3c4   : > { %3831 = vrot.lane.b32.xlu1 %v14518_v48, %s12732_s26 }
 0x3c5   : > { %v14741_v24 = vpop.permute.xlu0 %4355 }
 0x3c6   : > { %19317 = vst [vmem:[#allocation89_spill] sm:$0xff] %v14741_v24 }
 0x3c7   : > { %4817 = vrot.lane.b32.xlu0 %v14709_v42, %s12735_s29 }
 0x3c8   : > { %5044 = vrot.lane.b32.xlu1 %v14454_v27, %s12736_s30 }
 0x3c9   : > { %v14749_v31 = vpop.permute.xlu0 %4793 }
 0x3ca   : > { %19318 = vst [vmem:[#allocation43_spill] sm:$0xff] %v14749_v31  ;;  %v14767_v31 = vpop.permute.xlu1 %4066 }
 0x3cb   : > { %5072 = vrot.lane.b32.xlu0 %v14709_v42, %s12736_s30  ;;  %19319 = vst [vmem:[#allocation82_spill] sm:$0xff] %v14767_v31 }
 0x3cc   : > { %5042 = vrot.lane.b32.xlu1 %v14451_v12, %s12736_s30 }
 0x3cd   : > { %v14755_v34 = vpop.permute.xlu0 %3524 }
 0x3ce   : > { %v14779_v36 = vpop.permute.xlu1 %4345 }
 0x3cf   : > { %3556 = vrot.lane.b32.xlu0 %v14561_v9, %s12731_s25  ;;  %19322 = vst [vmem:[#allocation34_spill] sm:$0xff] %v14779_v36 }
 0x3d0   : > { %5034 = vrot.lane.b32.xlu1 %v14390_v55, %s12736_s30 }
 0x3d1   : > { %v14763_v24 = vpop.permute.xlu0 %3795 }
 0x3d2   : > { %v14789_v15 = vpop.permute.xlu1 %4811 }
 0x3d3   : > { %3827 = vrot.lane.b32.xlu0 %v14561_v9, %s12732_s26  ;;  %19323 = vst [vmem:[#allocation85_spill] sm:$0xff] %v14789_v15 }
 0x3d4   : > { %4104 = vrot.lane.b32.xlu1 %v14518_v48, %s12733_s27 }
 0x3d5   : > { %v14771_v49 = vpop.permute.xlu0 %4068 }
 0x3d6   : > { %19320 = vst [vmem:[#allocation18_spill] sm:$0xff] %v14771_v49  ;;  %v14801_v36 = vpop.permute.xlu1 %5066 }
 0x3d7   : > { %4100 = vrot.lane.b32.xlu0 %v14561_v9, %s12733_s27  ;;  %19326 = vst [vmem:[#allocation42_spill] sm:$0xff] %v14801_v36 }
 0x3d8   : > { %5032 = vrot.lane.b32.xlu1 %v14387_v8, %s12736_s30 }
 0x3d9   : > { %v14777_v35 = vpop.permute.xlu0 %4347 }
 0x3da   : > { %19321 = vst [vmem:[#allocation22_spill] sm:$0xff] %v14777_v35  ;;  %v14811_v23 = vpop.permute.xlu1 %3530 }
 0x3db   : > { %4379 = vrot.lane.b32.xlu0 %v14561_v9, %s12734_s28 }
 0x3dc   : > { %5030 = vrot.lane.b32.xlu1 %v14376_v5, %s12736_s30 }
 0x3dd   : > { %v14785_v2 = vpop.permute.xlu0 %3512 }
 0x3df   : > { %3528 = vrot.lane.b32.xlu0 %v14454_v27, %s12731_s25 }
 0x3e0   : > { %4383 = vrot.lane.b32.xlu1 %v14518_v48, %s12734_s28 }
 0x3e1   : > { %v14793_v13 = vpop.permute.xlu0 %3783 }
 0x3e2   : > { %19324 = vst [vmem:[#allocation70_spill] sm:$0xff] %v14793_v13 }
 0x3e3   : > { %3799 = vrot.lane.b32.xlu0 %v14454_v27, %s12732_s26 }
 0x3e4   : > { %5321 = vrot.lane.b32.xlu1 %v14561_v9, %s12737_s12 }
 0x3e5   : > { %v14799_v35 = vpop.permute.xlu0 %4056 }
 0x3e6   : > { %19325 = vst [vmem:[#allocation83_spill] sm:$0xff] %v14799_v35  ;;  %v14823_v35 = vpop.permute.xlu1 %3801 }
 0x3e7   : > { %4072 = vrot.lane.b32.xlu0 %v14454_v27, %s12733_s27 }
 0x3e8   : > { %5313 = vrot.lane.b32.xlu1 %v14490_v0, %s12737_s12 }
 0x3e9   : > { %v14807_v15 = vpop.permute.xlu0 %4335 }
 0x3ea   : > { %19327 = vst [vmem:[#allocation69_spill] sm:$0xff] %v14807_v15  ;;  %v14833_v43 = vpop.permute.xlu1 %4074 }
 0x3eb   : > { %4351 = vrot.lane.b32.xlu0 %v14454_v27, %s12734_s28  ;;  %19329 = vst [vmem:[#allocation88_spill] sm:$0xff] %v14833_v43 }
 0x3ec   : > { %5311 = vrot.lane.b32.xlu1 %v14487_v52, %s12737_s12 }
 0x3ed   : > { %v14815_v32 = vpop.permute.xlu0 %3548 }
 0x3ee   : > { %v14845_v31 = vpop.permute.xlu1 %4353 }
 0x3ef   : > { %3536 = vrot.lane.b32.xlu0 %v14472_v57, %s12731_s25  ;;  %19332 = vst [vmem:[#allocation46_spill] sm:$0xff] %v14845_v31 }
 0x3f0   : > { %5309 = vrot.lane.b32.xlu1 %v14537_v60, %s12737_s12 }
 0x3f1   : > { %v14821_v36 = vpop.permute.xlu0 %3819 }
 0x3f3   : > { %3807 = vrot.lane.b32.xlu0 %v14472_v57, %s12732_s26 }
 0x3f4   : > { %5301 = vrot.lane.b32.xlu1 %v14457_v6, %s12737_s12 }
 0x3f5   : > { %v14829_v15 = vpop.permute.xlu0 %4092 }
 0x3f6   : > { %19328 = vst [vmem:[#allocation25_spill] sm:$0xff] %v14829_v15 }
 0x3f7   : > { %4080 = vrot.lane.b32.xlu0 %v14472_v57, %s12733_s27 }
 0x3f8   : > { %5299 = vrot.lane.b32.xlu1 %v14454_v27, %s12737_s12 }
 0x3f9   : > { %v14837_v29 = vpop.permute.xlu0 %4371 }
 0x3fa   : > { %19330 = vst [vmem:[#allocation23_spill] sm:$0xff] %v14837_v29  ;;  %v14855_v29 = vpop.permute.xlu1 %4791 }
 0x3fb   : > { %4359 = vrot.lane.b32.xlu0 %v14472_v57, %s12734_s28  ;;  %19333 = vst [vmem:[#allocation87_spill] sm:$0xff] %v14855_v29 }
 0x3fc   : > { %5297 = vrot.lane.b32.xlu1 %v14451_v12, %s12737_s12 }
 0x3fd   : > { %v14843_v49 = vpop.permute.xlu0 %4805 }
 0x3fe   : > { %19331 = vst [vmem:[#allocation36_spill] sm:$0xff] %v14843_v49  ;;  %v14867_v31 = vpop.permute.xlu1 %4789 }
 0x3ff   : > { %4797 = vrot.lane.b32.xlu0 %v14460_v1, %s12735_s29  ;;  %19335 = vst [vmem:[#allocation72_spill] sm:$0xff] %v14867_v31 }
 0x400   : > { %5289 = vrot.lane.b32.xlu1 %v14390_v55, %s12737_s12 }
 0x401   : > { %v14851_v50 = vpop.permute.xlu0 %3540 }
 0x402   : > { %v14877_v43 = vpop.permute.xlu1 %3538 }
 0x403   : > { %4795 = vrot.lane.b32.xlu0 %v14472_v57, %s12735_s29 }
 0x404   : > { %5287 = vrot.lane.b32.xlu1 %v14387_v8, %s12737_s12 }
 0x405   : > { %v14859_v10 = vpop.permute.xlu0 %3811 }
 0x407   : > { %3546 = vrot.lane.b32.xlu0 %v14490_v0, %s12731_s25 }
 0x408   : > { %5285 = vrot.lane.b32.xlu1 %v14376_v5, %s12737_s12 }
 0x409   : > { %v14865_v49 = vpop.permute.xlu0 %4084 }
 0x40a   : > { %19334 = vst [vmem:[#allocation44_spill] sm:$0xff] %v14865_v49  ;;  %v14889_v49 = vpop.permute.xlu1 %3809 }
 0x40b   : > { %3817 = vrot.lane.b32.xlu0 %v14490_v0, %s12732_s26 }
 0x40c   : > { %4815 = vrot.lane.b32.xlu1 %v14521_v45, %s12735_s29 }
 0x40d   : > { %v14873_v29 = vpop.permute.xlu0 %4363 }
 0x40e   : > { %19336 = vst [vmem:[#allocation74_spill] sm:$0xff] %v14873_v29  ;;  %v14899_v25 = vpop.permute.xlu1 %4082 }
 0x40f   : > { %4090 = vrot.lane.b32.xlu0 %v14490_v0, %s12733_s27  ;;  %19338 = vst [vmem:[#allocation90_spill] sm:$0xff] %v14899_v25 }
 0x410   : > { %4813 = vrot.lane.b32.xlu1 %v14518_v48, %s12735_s29 }
 0x411   : > { %v14881_v28 = vpop.permute.xlu0 %3520 }
 0x413   : > { %4369 = vrot.lane.b32.xlu0 %v14490_v0, %s12734_s28 }
 0x414   : > { %5576 = vrot.lane.b32.xlu1 %v14561_v9, %s12738_s13 }
 0x415   : > { %v14887_v31 = vpop.permute.xlu0 %3791 }
 0x417   : > { %3552 = vrot.lane.b32.xlu0 %v14505_v17, %s12731_s25 }
 0x418   : > { %5568 = vrot.lane.b32.xlu1 %v14490_v0, %s12738_s13  ;;  %v14911_v0 = vpop.permute.xlu1 %4361 }
 0x419   : > { %v14895_v29 = vpop.permute.xlu0 %4064  ;;  %19341 = vst [vmem:[#allocation47_spill] sm:$0xff] %v14911_v0 }
 0x41a   : > { %19337 = vst [vmem:[#allocation49_spill] sm:$0xff] %v14895_v29 }
 0x41b   : > { %3825 = vrot.lane.b32.xlu0 %v14493_v59, %s12732_s26 }
 0x41c   : > { %5070 = vrot.lane.b32.xlu1 %v14521_v45, %s12736_s30 }
 0x41d   : > { %v14903_v9 = vpop.permute.xlu0 %4343 }
 0x41e   : > { %19339 = vst [vmem:[#allocation39_spill] sm:$0xff] %v14903_v9  ;;  %v14921_v9 = vpop.permute.xlu1 %3544 }
 0x41f   : > { %4098 = vrot.lane.b32.xlu0 %v14493_v59, %s12733_s27 }
 0x420   : > { %5068 = vrot.lane.b32.xlu1 %v14518_v48, %s12736_s30 }
 0x421   : > { %v14909_v15 = vpop.permute.xlu0 %4785 }
 0x422   : > { %19340 = vst [vmem:[#allocation79_spill] sm:$0xff] %v14909_v15 }
 0x423   : > { %4377 = vrot.lane.b32.xlu0 %v14493_v59, %s12734_s28 }
 0x424   : > { %5566 = vrot.lane.b32.xlu1 %v14487_v52, %s12738_s13  ;;  %v14933_v52 = vpop.permute.xlu1 %3815 }
 0x425   : > { %v14917_v29 = vpop.permute.xlu0 %4783 }
 0x426   : > { %19342 = vst [vmem:[#allocation76_spill] sm:$0xff] %v14917_v29 }
 0x427   : > { %4809 = vrot.lane.b32.xlu0 %v14493_v59, %s12735_s29 }
 0x428   : > { %5564 = vrot.lane.b32.xlu1 %v14537_v60, %s12738_s13  ;;  %v14943_v60 = vpop.permute.xlu1 %4088 }
 0x429   : > { %v14925_v25 = vpop.permute.xlu0 %3564  ;;  %19344 = vst [vmem:[#allocation52_spill] sm:$0xff] %v14943_v60  ;;  %v14962_v60 = vld [vmem:[%s18940_s5 + $0x10] sm:$0xff] }
 0x42a   : > { %12148 = vmatprep.mubr.msk.f32.mxu0 %vm3614_vm14, %v14962_v60 }
 0x42b   : > { %4807 = vrot.lane.b32.xlu0 %v14505_v17, %s12735_s29 }
 0x42c   : > { %5325 = vrot.lane.b32.xlu1 %v14521_v45, %s12737_s12  ;;  %v14955_v22 = vpop.permute.xlu1 %4367 }
 0x42d   : > { %v14931_v15 = vpop.permute.xlu0 %3835  ;;  %19347 = vst [vmem:[#allocation92_spill] sm:$0xff] %v14955_v22 }
 0x42f   : > { %5064 = vrot.lane.b32.xlu0 %v14493_v59, %s12736_s30 }
 0x430   : > { %5323 = vrot.lane.b32.xlu1 %v14518_v48, %s12737_s12 }
 0x431   : > { %v14939_v29 = vpop.permute.xlu0 %4108 }
 0x432   : > { %19343 = vst [vmem:[#allocation54_spill] sm:$0xff] %v14939_v29 }
 0x433   : > { %5062 = vrot.lane.b32.xlu0 %v14505_v17, %s12736_s30 }
 0x434   : > { %5556 = vrot.lane.b32.xlu1 %v14457_v6, %s12738_s13  ;;  %v14972_v6 = vpop.permute.xlu1 %4803 }
 0x435   : > { %v14947_v0 = vpop.permute.xlu0 %4387  ;;  %19349 = vst [vmem:[#allocation94_spill] sm:$0xff] %v14972_v6 }
 0x436   : > { %19345 = vst [vmem:[#allocation81_spill] sm:$0xff] %v14947_v0 }
 0x437   : > { %3562 = vrot.lane.b32.xlu0 %v14521_v45, %s12731_s25 }
 0x438   : > { %5554 = vrot.lane.b32.xlu1 %v14454_v27, %s12738_s13  ;;  %v14984_v0 = vpop.permute.xlu1 %4801 }
 0x439   : > { %v14953_v11 = vpop.permute.xlu0 %4817  ;;  %19350 = vst [vmem:[#allocation95_spill] sm:$0xff] %v14984_v0 }
 0x43a   : > { %19346 = vst [vmem:[#allocation84_spill] sm:$0xff] %v14953_v11 }
 0x43b   : > { %5060 = vrot.lane.b32.xlu0 %v14599_v40, %s12736_s30 }
 0x43c   : > { %5580 = vrot.lane.b32.xlu1 %v14521_v45, %s12738_s13 }
 0x43d   : > { %v14968_v27 = vpop.permute.xlu0 %5072 }
 0x43e   : > { %19348 = vst [vmem:[#allocation93_spill] sm:$0xff] %v14968_v27 }
 0x43f   : > { %5052 = vrot.lane.b32.xlu0 %v14460_v1, %s12736_s30 }
 0x440   : > { %5578 = vrot.lane.b32.xlu1 %v14518_v48, %s12738_s13  ;;  %v14994_v48 = vpop.permute.xlu1 %5058 }
 0x441   : > { %v14976_v11 = vpop.permute.xlu0 %3556  ;;  %19352 = vst [vmem:[#allocation97_spill] sm:$0xff] %v14994_v48 }
 0x443   : > { %5050 = vrot.lane.b32.xlu0 %v14472_v57, %s12736_s30 }
 0x444   : > { %5552 = vrot.lane.b32.xlu1 %v14451_v12, %s12738_s13  ;;  %v15009_v6 = vpop.permute.xlu1 %3554 }
 0x445   : > { %v14982_v22 = vpop.permute.xlu0 %3827 }
 0x447   : > { %3833 = vrot.lane.b32.xlu0 %v14521_v45, %s12732_s26 }
 0x448   : > { %5544 = vrot.lane.b32.xlu1 %v14390_v55, %s12738_s13  ;;  %v5789_v55 = vld [vmem:[%s18941_s6 + $0x8] sm:$0xff]  ;;  %v15017_v48 = vpop.permute.xlu1 %3823 }
 0x449   : > { %v14990_v27 = vpop.permute.xlu0 %4100 }
 0x44a   : > { %19351 = vst [vmem:[#allocation96_spill] sm:$0xff] %v14990_v27 }
 0x44b   : > { %5048 = vrot.lane.b32.xlu0 %v14543_v18, %s12736_s30 }
 0x44c   : > { %5542 = vrot.lane.b32.xlu1 %v14387_v8, %s12738_s13  ;;  %v15025_v27 = vpop.permute.xlu1 %4096 }
 0x44d   : > { %v14998_v12 = vpop.permute.xlu0 %4379  ;;  %19356 = vst [vmem:[#allocation101_spill] sm:$0xff] %v15025_v27 }
 0x44e   : > { %19353 = vst [vmem:[#allocation98_spill] sm:$0xff] %v14998_v12 }
 0x44f   : > { %5040 = vrot.lane.b32.xlu0 %v14408_v58, %s12736_s30 }
 0x450   : > { %5540 = vrot.lane.b32.xlu1 %v14376_v5, %s12738_s13  ;;  %v15033_v29 = vpop.permute.xlu1 %4375 }
 0x451   : > { %v15004_v0 = vpop.permute.xlu0 %3528  ;;  %19357 = vst [vmem:[#allocation102_spill] sm:$0xff] %v15033_v29 }
 0x453   : > { %5038 = vrot.lane.b32.xlu0 %v14424_v37, %s12736_s30 }
 0x454   : > { %5797 = vperm.xlu1 %12643, %v5789_v55  }
 0x455   : > { %v15013_v8 = vpop.permute.xlu0 %3799 }
 0x457   : > { %4106 = vrot.lane.b32.xlu0 %v14521_v45, %s12733_s27 }
 0x459   : > { %v15019_v5 = vpop.permute.xlu0 %4072 }
 0x45a   : > { %19354 = vst [vmem:[#allocation99_spill] sm:$0xff] %v15019_v5 }
 0x45b   : > { %5036 = vrot.lane.b32.xlu0 %v14357_v26, %s12736_s30 }
 0x45d   : > { %v15023_v12 = vpop.permute.xlu0 %4351 }
 0x45e   : > { %19355 = vst [vmem:[#allocation100_spill] sm:$0xff] %v15023_v12  ;;  %v3561_v12 = vpop.permute.xlu1 %3560 }
 0x45f   : > { %5028 = vrot.lane.b32.xlu0 %v14342_v38, %s12736_s30 }
 0x461   : > { %v15029_v55 = vpop.permute.xlu0 %3536 }
 0x462   : > { %v15047_v16 = vpop.permute.xlu1 %5056 }
 0x463   : > { %5026 = vrot.lane.b32.xlu0 %v14354_v39, %s12736_s30  ;;  %19360 = vst [vmem:[#allocation105_spill] sm:$0xff] %v15047_v16 }
 0x465   : > { %v15035_v41 = vpop.permute.xlu0 %3807 }
 0x467   : > { %4385 = vrot.lane.b32.xlu0 %v14521_v45, %s12734_s28  ;;  %v15055_v45 = vpop.permute.xlu1 %5054 }
 0x468   : > { %19363 = vst [vmem:[#allocation108_spill] sm:$0xff] %v15055_v45 }
 0x469   : > { %v15039_v5 = vpop.permute.xlu0 %4080 }
 0x46a   : > { %19358 = vst [vmem:[#allocation103_spill] sm:$0xff] %v15039_v5 }
 0x46b   : > { %5327 = vrot.lane.b32.xlu0 %v14709_v42, %s12737_s12 }
 0x46d   : > { %v15043_v27 = vpop.permute.xlu0 %4359 }
 0x46e   : > { %19359 = vst [vmem:[#allocation104_spill] sm:$0xff] %v15043_v27  ;;  %v15061_v27 = vpop.permute.xlu1 %5046 }
 0x46f   : > { %5319 = vrot.lane.b32.xlu0 %v14493_v59, %s12737_s12  ;;  %19364 = vst [vmem:[#allocation109_spill] sm:$0xff] %v15061_v27 }
 0x471   : > { %v15049_v63 = vpop.permute.xlu0 %4797 }
 0x472   : > { %19361 = vst [vmem:[#allocation106_spill] sm:$0xff] %v15049_v63  ;;  %v15069_v63 = vpop.permute.xlu1 %3831 }
 0x473   : > { %5317 = vrot.lane.b32.xlu0 %v14505_v17, %s12737_s12 }
 0x475   : > { %v15053_v29 = vpop.permute.xlu0 %4795 }
 0x476   : > { %19362 = vst [vmem:[#allocation107_spill] sm:$0xff] %v15053_v29  ;;  %v15077_v29 = vpop.permute.xlu1 %5044 }
 0x477   : > { %5315 = vrot.lane.b32.xlu0 %v14599_v40, %s12737_s12  ;;  %19367 = vst [vmem:[#allocation112_spill] sm:$0xff] %v15077_v29 }
 0x479   : > { %v3547_v5 = vpop.permute.xlu0 %3546 }
 0x47a   : > { %v15083_v53 = vpop.permute.xlu1 %5042 }
 0x47b   : > { %5307 = vrot.lane.b32.xlu0 %v14460_v1, %s12737_s12  ;;  %19368 = vst [vmem:[#allocation113_spill] sm:$0xff] %v15083_v53 }
 0x47d   : > { %v15063_v54 = vpop.permute.xlu0 %3817 }
 0x47f   : > { %5305 = vrot.lane.b32.xlu0 %v14472_v57, %s12737_s12 }
 0x481   : > { %v15067_v16 = vpop.permute.xlu0 %4090 }
 0x482   : > { %19365 = vst [vmem:[#allocation110_spill] sm:$0xff] %v15067_v16 }
 0x483   : > { %5303 = vrot.lane.b32.xlu0 %v14543_v18, %s12737_s12 }
 0x485   : > { %v15073_v45 = vpop.permute.xlu0 %4369 }
 0x486   : > { %19366 = vst [vmem:[#allocation111_spill] sm:$0xff] %v15073_v45  ;;  %v15091_v45 = vpop.permute.xlu1 %5034 }
 0x487   : > { %5295 = vrot.lane.b32.xlu0 %v14408_v58, %s12737_s12  ;;  %19369 = vst [vmem:[#allocation114_spill] sm:$0xff] %v15091_v45 }
 0x489   : > { %v3553_v27 = vpop.permute.xlu0 %3552 }
 0x48a   : > { %v15099_v30 = vpop.permute.xlu1 %4104 }
 0x48b   : > { %5293 = vrot.lane.b32.xlu0 %v14424_v37, %s12737_s12 }
 0x48d   : > { %v15081_v19 = vpop.permute.xlu0 %3825 }
 0x48f   : > { %5291 = vrot.lane.b32.xlu0 %v14357_v26, %s12737_s12 }
 0x491   : > { %v15087_v16 = vpop.permute.xlu0 %4098 }
 0x493   : > { %5283 = vrot.lane.b32.xlu0 %v14342_v38, %s12737_s12  ;;  %v15107_v38 = vpop.permute.xlu1 %5032 }
 0x494   : > { %19372 = vst [vmem:[#allocation117_spill] sm:$0xff] %v15107_v38  ;;  %v19374_v38 = vld [vmem:[#allocation41_spill] sm:$0xff] }
 0x495   : > { %v15093_v13 = vpop.permute.xlu0 %4377 }
 0x497   : > { %5281 = vrot.lane.b32.xlu0 %v14354_v39, %s12737_s12 }
 0x499   : > { %v15097_v29 = vpop.permute.xlu0 %4809 }
 0x49a   : > { %19370 = vst [vmem:[#allocation115_spill] sm:$0xff] %v15097_v29  ;;  %v15115_v29 = vpop.permute.xlu1 %5030 }
 0x49b   : > { %5582 = vrot.lane.b32.xlu0 %v14709_v42, %s12738_s13 }
 0x49d   : > { %v15103_v53 = vpop.permute.xlu0 %4807 }
 0x49e   : > { %19371 = vst [vmem:[#allocation116_spill] sm:$0xff] %v15103_v53 }
 0x49f   : > { %5574 = vrot.lane.b32.xlu0 %v14493_v59, %s12738_s13 }
 0x4a1   : > { %v15109_v45 = vpop.permute.xlu0 %5064 }
 0x4a2   : > { %19373 = vst [vmem:[#allocation118_spill] sm:$0xff] %v15109_v45  ;;  %v15126_v45 = vpop.permute.xlu1 %4383 }
 0x4a3   : > { %5572 = vrot.lane.b32.xlu0 %v14505_v17, %s12738_s13  ;;  %v3587_v17 = vsel %vm431_vm2, %v19374_v38, %v3561_v12 }
 0x4a5   : > { %v15113_v39 = vpop.permute.xlu0 %5062 }
 0x4a6   : > { %v15154_v38 = vpop.permute.xlu1 %5321 }
 0x4a7   : > { %5570 = vrot.lane.b32.xlu0 %v14599_v40, %s12738_s13  ;;  %v3585_v40 = vsel %vm431_vm2, %v3553_v27, %v15009_v6 }
 0x4a9   : > { %v3563_v42 = vpop.permute.xlu0 %3562 }
 0x4aa   : > { %v3588_v53 = vsel %vm431_vm2, %v3561_v12, %v3563_v42  ;;  %v3589_v59 = vsel %vm431_vm2, %v3563_v42, %v14925_v25  ;;  %v3586_v25 = vsel %vm431_vm2, %v15009_v6, %v14976_v11  ;;  %v3583_v12 = vsel %vm431_vm2, %v3547_v5, %v14815_v32  ;;  %v19375_v11 = vld [vmem:[#allocation45_spill] sm:$0xff]  ;;  %v19376_v32 = vld [vmem:[#allocation51_spill] sm:$0xff] }
 0x4ab   : > { %5562 = vrot.lane.b32.xlu0 %v14460_v1, %s12738_s13  ;;  %3637 = vmatprep.subr.mxu1 %v3588_v53  ;;  %v3584_v1 = vsel %vm431_vm2, %v14151_v51, %v3553_v27  ;;  %v3582_v53 = vsel %vm431_vm2, %v14921_v9, %v3547_v5  ;;  %v3581_v6 = vsel %vm431_vm2, %v19375_v11, %v14921_v9 }
 0x4ac   : > { %12132 = vmatprep.subr.mxu0 %v3589_v59  ;;  %3638 = vmatpush1.msra.mxu1 %v3587_v17  ;;  %v3579_v51 = vsel %vm431_vm2, %v15029_v55, %v14877_v43  ;;  %v3578_v9 = vsel %vm431_vm2, %v19376_v32, %v15029_v55  ;;  %v3576_v5 = vsel %vm431_vm2, %v15004_v0, %v14811_v23 }
 0x4ad   : > { %12133 = vmatpush3.msra.mxu0 %v3589_v59  ;;  %3639 = vmatprep.subr.mxu1 %v3585_v40  ;;  %v15133_v42 = vpop.permute.xlu0 %5060  ;;  %v3573_v55 = vsel %vm431_vm2, %v14881_v28, %v14745_v61  ;;  %v3570_v40 = vsel %vm431_vm2, %v14785_v2, %v14667_v56  ;;  %v3857_v11 = vsel %vm693_vm4, %v15081_v19, %v14982_v22  ;;  %v19383_v22 = vld [vmem:[#allocation91_spill] sm:$0xff] }
 0x4ae   : > { %12134 = vmatprep.subr.mxu0 %v3586_v25  ;;  %3640 = vmatpush1.msra.mxu1 %v3584_v1  ;;  %v3568_v1 = vsel %vm431_vm2, %v14627_v44, %v14641_v3  ;;  %v3851_v32 = vsel %vm693_vm4, %v14889_v49, %v14859_v10  ;;  %v3845_v10 = vsel %vm693_vm4, %v14757_v7, %v14763_v24 }
 0x4af   : > { %12135 = vmatpush3.msra.mxu0 %v3586_v25  ;;  %5560 = vrot.lane.b32.xlu0 %v14472_v57, %s12738_s13  ;;  %v3580_v57 = vsel %vm431_vm2, %v14877_v43, %v14851_v50  ;;  %v3577_v50 = vsel %vm431_vm2, %v14811_v23, %v14719_v33  ;;  %v19377_v43 = vld [vmem:[#allocation56_spill] sm:$0xff]  ;;  %v19378_v23 = vld [vmem:[#allocation59_spill] sm:$0xff] }
 0x4b0   : > { %3641 = vmatprep.subr.mxu1 %v3582_v53  ;;  %12136 = vmatprep.subr.mxu0 %v3583_v12  ;;  %v3575_v59 = vsel %vm431_vm2, %v19377_v43, %v15004_v0  ;;  %v3572_v33 = vsel %vm431_vm2, %v19378_v23, %v14881_v28  ;;  %v15181_v0 = vpop.permute.xlu1 %5313  ;;  %v19379_v28 = vld [vmem:[#allocation66_spill] sm:$0xff] }
 0x4b1   : > { %3642 = vmatpush1.msra.mxu1 %v3581_v6  ;;  %12137 = vmatpush3.msra.mxu0 %v3583_v12  ;;  %v15152_v27 = vpop.permute.xlu0 %5052  ;;  %v11372_v12 = vld [vmem:[%s18940_s5 + $0x18] sm:$0xff] }
 0x4b2   : > { %3643 = vmatprep.subr.mxu1 %v3579_v51  ;;  %12138 = vmatprep.subr.mxu0 %v3580_v57  ;;  %v19382_v6 = vld [vmem:[#allocation86_spill] sm:$0xff]  ;;  %v3853_v51 = vsel %vm693_vm4, %v14933_v52, %v15063_v54 }
 0x4b3   : > { %3644 = vmatpush1.msra.mxu1 %v3578_v9  ;;  %12139 = vmatpush3.msra.mxu0 %v3580_v57  ;;  %v15260_v9 = vld [vmem:[#allocation3 + $0x10] sm:$0xff] }
 0x4b4   : > { %5558 = vrot.lane.b32.xlu0 %v14543_v18, %s12738_s13  ;;  %3645 = vmatprep.subr.mxu1 %v3576_v5  ;;  %v3574_v18 = vsel %vm431_vm2, %v14745_v61, %v14755_v34  ;;  %v3571_v61 = vsel %vm431_vm2, %v14667_v56, %v14611_v62  ;;  %v3569_v34 = vsel %vm431_vm2, %v19379_v28, %v14785_v2  ;;  %v19380_v62 = vld [vmem:[#allocation71_spill] sm:$0xff]  ;;  %v15214_v3 = vpop.permute.xlu1 %5311  ;;  %v19391_v28 = vld [vmem:[#allocation57_spill] sm:$0xff] }
 0x4b5   : > { %12140 = vmatprep.subr.mxu0 %v3577_v50  ;;  %3646 = vmatpush1.msra.mxu1 %v3575_v59  ;;  %v15173_v17 = vpop.permute.xlu0 %5050  ;;  %v3566_v2 = vsel %vm431_vm2, %v19380_v62, %v14673_v21  ;;  %v19392_v62 = vld [vmem:[#allocation54_spill] sm:$0xff] }
 0x4b6   : > { %12141 = vmatpush3.msra.mxu0 %v3577_v50  ;;  %3647 = vmatprep.subr.mxu1 %v3573_v55  ;;  %v19388_v55 = vld [vmem:[#allocation8_spill] sm:$0xff] }
 0x4b7   : > { %12142 = vmatprep.subr.mxu0 %v3574_v18  ;;  %3648 = vmatpush1.msra.mxu1 %v3572_v33  ;;  %v19390_v33 = vld [vmem:[#allocation16_spill] sm:$0xff] }
 0x4b8   : > { %12143 = vmatpush3.msra.mxu0 %v3574_v18  ;;  %5550 = vrot.lane.b32.xlu0 %v14408_v58, %s12738_s13  ;;  %v3567_v58 = vsel %vm431_vm2, %v14673_v21, %v14627_v44  ;;  %v19381_v21 = vld [vmem:[#allocation78_spill] sm:$0xff]  ;;  %v15244_v57 = vpop.permute.xlu1 %5309  ;;  %v19389_v18 = vld [vmem:[#allocation65_spill] sm:$0xff] }
 0x4b9   : > { %3649 = vmatprep.subr.mxu1 %v3570_v40  ;;  %12144 = vmatprep.subr.mxu0 %v3571_v61  ;;  %v3834_v25 = vpop.permute.xlu0 %3833  ;;  %v3838_v23 = vsel %vm693_vm4, %v19389_v18, %v19388_v55  ;;  %v3839_v40 = vsel %vm693_vm4, %v19388_v55, %v19390_v33  ;;  %v19409_v33 = vld [vmem:[#allocation82_spill] sm:$0xff] }
 0x4ba   : > { %3650 = vmatpush1.msra.mxu1 %v3569_v34  ;;  %12145 = vmatpush3.msra.mxu0 %v3571_v61  ;;  %v3859_v56 = vsel %vm693_vm4, %v15069_v63, %v3834_v25  ;;  %v3860_v53 = vsel %vm693_vm4, %v3834_v25, %v14931_v15  ;;  %v3858_v15 = vsel %vm693_vm4, %v19381_v21, %v15069_v63  ;;  %v3433_v61 = vld [vmem:[%s18940_s5] sm:$0xff] }
 0x4bb   : > { %3651 = vmatprep.subr.mxu1 %v3567_v58  ;;  %12146 = vmatprep.subr.mxu0 %v3568_v1  ;;  %v3837_v34 = vsel %vm693_vm4, %v19391_v28, %v19389_v18  ;;  %v5788_v25 = vld [vmem:[%s18941_s6] sm:$0xff]  ;;  %v19408_v18 = vld [vmem:[#allocation24_spill] sm:$0xff] }
 0x4bc   : > { %3652 = vmatpush1.msra.mxu1 %v3566_v2  ;;  %12147 = vmatpush3.msra.mxu0 %v3568_v1  ;;  %v15276_v50 = vpop.permute.xlu1 %5301  ;;  %v3434_v1 = vld [vmem:[%s18940_s5 + $0x8] sm:$0xff] }
 0x4bd   : > { %5548 = vrot.lane.b32.xlu0 %v14424_v37, %s12738_s13  ;;  %3907 = vmatprep.subr.mxu1 %v3859_v56  ;;  %v15212_v44 = vpop.permute.xlu0 %5048  ;;  %v3856_v37 = vsel %vm693_vm4, %v15017_v48, %v15081_v19  ;;  %v3854_v19 = vsel %vm693_vm4, %v15063_v54, %v14821_v36  ;;  %v3849_v36 = vsel %vm693_vm4, %v13823_v14, %v15035_v41 }
 0x4be   : > { %12151 = vmatprep.subr.mxu0 %v3860_v53  ;;  %11373 = vmatmul.mubr.msk.f32.vlgmr.msra.gmra.mxu1 %vm3614_vm14, %v14962_v60  ;;  %v3855_v60 = vsel %vm693_vm4, %v19382_v6, %v15017_v48  ;;  %v3852_v48 = vsel %vm693_vm4, %v19383_v22, %v14933_v52  ;;  %v3847_v52 = vsel %vm693_vm4, %v15013_v8, %v14823_v35  ;;  %v19397_v22 = vld [vmem:[#allocation110_spill] sm:$0xff] }
 0x4bf   : > { %12149 = vmatmul.mubr.msk.f32.vlgmr.msra.gmra.mxu0 %vm3614_vm14, %v11372_v12  ;;  %3908 = vmatpush1.msra.mxu1 %v3858_v15  ;;  %v3846_v14 = vsel %vm693_vm4, %v13858_v47, %v15013_v8  ;;  %v3843_v47 = vsel %vm693_vm4, %v13890_v4, %v14887_v31  ;;  %v19386_v8 = vld [vmem:[#allocation50_spill] sm:$0xff]  ;;  %v19387_v4 = vld [vmem:[#allocation32_spill] sm:$0xff]  ;;  %v19394_v15 = vld [vmem:[#allocation101_spill] sm:$0xff] }
 0x4c0   : > { %12152 = vmatpush3.msra.mxu0 %v3860_v53  ;;  %3909 = vmatprep.subr.mxu1 %v3856_v37  ;;  %v15313_v58 = vpop.permute.xlu1 %5299  ;;  %v4129_v37 = vsel %vm962_vm5, %v19394_v15, %v15087_v16 }
 0x4c1   : > { %12153 = vmatprep.subr.mxu0 %v3857_v11  ;;  %3910 = vmatpush1.msra.mxu1 %v3855_v60  ;;  %v15231_v63 = vpop.permute.xlu0 %5040 }
 0x4c2   : > { %12154 = vmatpush3.msra.mxu0 %v3857_v11  ;;  %5546 = vrot.lane.b32.xlu0 %v14357_v26, %s12738_s13  ;;  %v3850_v26 = vsel %vm693_vm4, %v15035_v41, %v14889_v49  ;;  %v3848_v49 = vsel %vm693_vm4, %v14823_v35, %v14727_v46  ;;  %v3844_v41 = vsel %vm693_vm4, %v14887_v31, %v14757_v7  ;;  %v15282_v35 = vld [vmem:[#allocation3 + $0x8] sm:$0xff]  ;;  %v19385_v46 = vld [vmem:[#allocation70_spill] sm:$0xff]  ;;  %v19395_v11 = vld [vmem:[#allocation96_spill] sm:$0xff] }
 0x4c3   : > { %3911 = vmatprep.subr.mxu1 %v3853_v51  ;;  %12155 = vmatprep.subr.mxu0 %v3854_v19  ;;  %v19384_v7 = vld [vmem:[#allocation53_spill] sm:$0xff]  ;;  %v3840_v31 = vsel %vm693_vm4, %v19387_v4, %v19385_v46  ;;  %v4130_v6 = vsel %vm962_vm5, %v15087_v16, %v19395_v11 }
 0x4c4   : > { %3912 = vmatpush1.msra.mxu1 %v3852_v48  ;;  %12156 = vmatpush3.msra.mxu0 %v3854_v19  ;;  %v3841_v24 = vsel %vm693_vm4, %v19385_v46, %v19384_v7  ;;  %v3842_v43 = vsel %vm693_vm4, %v19384_v7, %v19386_v8  ;;  %v15339_v51 = vpop.permute.xlu1 %5297  ;;  %v19398_v48 = vld [vmem:[#allocation52_spill] sm:$0xff]  ;;  %v19399_v16 = vld [vmem:[#allocation25_spill] sm:$0xff]  ;;  %v19404_v7 = vld [vmem:[#allocation14_spill] sm:$0xff] }
 0x4c5   : > { %3913 = vmatprep.subr.mxu1 %v3850_v26  ;;  %12157 = vmatprep.subr.mxu0 %v3851_v32  ;;  %v15255_v54 = vpop.permute.xlu0 %5038  ;;  %v4126_v26 = vsel %vm962_vm5, %v19398_v48, %v19397_v22  ;;  %v19406_v8 = vld [vmem:[#allocation99_spill] sm:$0xff] }
 0x4c6   : > { %3914 = vmatpush1.msra.mxu1 %v3849_v36  ;;  %12158 = vmatpush3.msra.mxu0 %v3851_v32  ;;  %v4127_v32 = vsel %vm962_vm5, %v19397_v22, %v19399_v16  ;;  %v19400_v36 = vld [vmem:[#allocation10_spill] sm:$0xff] }
 0x4c7   : > { %5538 = vrot.lane.b32.xlu0 %v15260_v9, %s12738_s13  ;;  %3915 = vmatprep.subr.mxu1 %v3847_v52  ;;  %v4125_v52 = vsel %vm962_vm5, %v19400_v36, %v19398_v48 }
 0x4c8   : > { %12159 = vmatprep.subr.mxu0 %v3848_v49  ;;  %3916 = vmatpush1.msra.mxu1 %v3846_v14  ;;  %v19402_v14 = vld [vmem:[#allocation103_spill] sm:$0xff]  ;;  %v15367_v4 = vpop.permute.xlu1 %5289 }
 0x4c9   : > { %12160 = vmatpush3.msra.mxu0 %v3848_v49  ;;  %3917 = vmatprep.subr.mxu1 %v3844_v41  ;;  %v4107_v5 = vpop.permute.xlu0 %4106  ;;  %v19401_v49 = vld [vmem:[#allocation90_spill] sm:$0xff]  ;;  %v4122_v46 = vsel %vm962_vm5, %v19404_v7, %v19402_v14  ;;  %v19422_v7 = vld [vmem:[#allocation75_spill] sm:$0xff] }
 0x4ca   : > { %12161 = vmatprep.subr.mxu0 %v3845_v10  ;;  %3691 = vmatprep.mubr.f32.mxu1 %v19291_v20  ;;  %v4132_v56 = vsel %vm962_vm5, %v15099_v30, %v4107_v5  ;;  %v4133_v2 = vsel %vm962_vm5, %v4107_v5, %v19392_v62  ;;  %v4123_v41 = vsel %vm962_vm5, %v19402_v14, %v19401_v49  ;;  %v19403_v5 = vld [vmem:[#allocation44_spill] sm:$0xff] }
 0x4cb   : > { %3918 = vmatpush1.msra.mxu1 %v3843_v47  ;;  %12162 = vmatpush3.msra.mxu0 %v3845_v10  ;;  %v4124_v47 = vsel %vm962_vm5, %v19401_v49, %v19403_v5  ;;  %v19413_v62 = vld [vmem:[#allocation68_spill] sm:$0xff] }
 0x4cc   : > { %5536 = vrot.lane.b32.xlu0 %v15282_v35, %s12738_s13  ;;  %11374 = vmatmul.mubr.msk.f32.gmra.mxu1 %vm3614_vm14, %v11372_v12  ;;  %v19393_v12 = vld [vmem:[#allocation58_spill] sm:$0xff]  ;;  %v15400_v48 = vpop.permute.xlu1 %5287  ;;  %v11382_v49 = vld [vmem:[%s18940_s5 + $0x28] sm:$0xff] }
 0x4cd   : > { %3919 = vmatprep.subr.mxu1 %v3841_v24  ;;  %12163 = vmatprep.subr.mxu0 %v3842_v43  ;;  %v15296_v59 = vpop.permute.xlu0 %5036  ;;  %v4131_v21 = vsel %vm962_vm5, %v19393_v12, %v15099_v30  ;;  %v19396_v30 = vld [vmem:[#allocation6_spill] sm:$0xff]  ;;  %v19405_v24 = vld [vmem:[#allocation88_spill] sm:$0xff] }
 0x4ce   : > { %3920 = vmatpush1.msra.mxu1 %v3840_v31  ;;  %12164 = vmatpush3.msra.mxu0 %v3842_v43  ;;  %v4128_v19 = vsel %vm962_vm5, %v19396_v30, %v19394_v15  ;;  %v4120_v43 = vsel %vm962_vm5, %v19406_v8, %v19405_v24  ;;  %v19407_v31 = vld [vmem:[#allocation64_spill] sm:$0xff]  ;;  %v19418_v30 = vld [vmem:[#allocation30_spill] sm:$0xff] }
 0x4cf   : > { %3921 = vmatprep.subr.mxu1 %v3838_v23  ;;  %12165 = vmatprep.subr.mxu0 %v3839_v40  ;;  %v4121_v55 = vsel %vm962_vm5, %v19405_v24, %v19407_v31  ;;  %v4119_v23 = vsel %vm962_vm5, %v19408_v18, %v19406_v8  ;;  %v19423_v24 = vld [vmem:[#allocation102_spill] sm:$0xff] }
 0x4d0   : > { %3922 = vmatpush1.msra.mxu1 %v3837_v34  ;;  %3955 = vmatprep.mubr.f32.mxu1 %v19291_v20  ;;  %v19411_v34 = vld [vmem:[#allocation18_spill] sm:$0xff]  ;;  %v4408_v8 = vsel %vm1255_vm6, %v19423_v24, %v15093_v13 }
 0x4d1   : > { %12166 = vmatpush3.msra.mxu0 %v3839_v40  ;;  %12167 = vmatprep.mubr.msk.f32.mxu0 %vm3614_vm14, %v3433_v61  ;;  %v15324_v53 = vpop.permute.xlu0 %5028  ;;  %v19410_v40 = vld [vmem:[#allocation49_spill] sm:$0xff] }
 0x4d2   : > { %5792 = vperm.xlu0 %12642, %v5788_v25   ;;  %11377 = vmatmul.mubr.msk.f32.vlgmr.msra.gmra.mxu1 %vm3614_vm14, %v3433_v61  ;;  %v4117_v61 = vsel %vm962_vm5, %v19410_v40, %v19409_v33  ;;  %v4118_v25 = vsel %vm962_vm5, %v19409_v33, %v19411_v34  ;;  %v19427_v33 = vld [vmem:[#allocation92_spill] sm:$0xff]  ;;  %v19429_v34 = vld [vmem:[#allocation61_spill] sm:$0xff] }
 0x4d3   : > { %12168 = vmatmul.mubr.msk.f32.vlgmr.msra.gmra.mxu0 %vm3614_vm14, %v3434_v1  ;;  %4180 = vmatprep.subr.mxu1 %v4132_v56 }
 0x4d4   : > { %12170 = vmatprep.subr.mxu0 %v4133_v2  ;;  %4181 = vmatpush1.msra.mxu1 %v4131_v21  ;;  %v19415_v21 = vld [vmem:[#allocation62_spill] sm:$0xff] }
 0x4d5   : > { %12171 = vmatpush3.msra.mxu0 %v4133_v2  ;;  %4182 = vmatprep.subr.mxu1 %v4129_v37  ;;  %v15337_v60 = vpop.permute.xlu0 %5026  ;;  %v19414_v2 = vld [vmem:[#allocation83_spill] sm:$0xff]  ;;  %v4115_v15 = vsel %vm962_vm5, %v19413_v62, %v19415_v21  ;;  %v19416_v37 = vld [vmem:[#allocation26_spill] sm:$0xff]  ;;  %v19433_v21 = vld [vmem:[#allocation33_spill] sm:$0xff] }
 0x4d6   : > { %12172 = vmatprep.subr.mxu0 %v4130_v6  ;;  %3961 = vmatprep.mubr.f32.mxu1 %v19291_v20  ;;  %v4114_v12 = vsel %vm962_vm5, %v19414_v2, %v19413_v62  ;;  %v4113_v11 = vsel %vm962_vm5, %v19416_v37, %v19414_v2  ;;  %v19432_v2 = vld [vmem:[#allocation74_spill] sm:$0xff] }
 0x4d7   : > { %4183 = vmatpush1.msra.mxu1 %v4128_v19  ;;  %12173 = vmatpush3.msra.mxu0 %v4130_v6  ;;  %v19417_v6 = vld [vmem:[#allocation12_spill] sm:$0xff] }
 0x4d8   : > { %11378 = vmatmul.mubr.msk.f32.gmra.mxu1 %vm3614_vm14, %v3434_v1  ;;  %4184 = vmatprep.subr.mxu1 %v4126_v26  ;;  %v19412_v1 = vld [vmem:[#allocation73_spill] sm:$0xff]  ;;  %v4111_v19 = vsel %vm962_vm5, %v19418_v30, %v19417_v6  ;;  %v19419_v26 = vld [vmem:[#allocation20_spill] sm:$0xff] }
 0x4d9   : > { %12174 = vmatprep.subr.mxu0 %v4127_v32  ;;  %4185 = vmatpush1.msra.mxu1 %v4125_v52  ;;  %v4386_v10 = vpop.permute.xlu0 %4385  ;;  %v4116_v56 = vsel %vm962_vm5, %v19412_v1, %v19410_v40  ;;  %v4112_v16 = vsel %vm962_vm5, %v19417_v6, %v19419_v26  ;;  %v11381_v52 = vld [vmem:[%s18940_s5 + $0x20] sm:$0xff]  ;;  %v19434_v6 = vld [vmem:[#allocation46_spill] sm:$0xff]  ;;  %v19436_v26 = vld [vmem:[#allocation89_spill] sm:$0xff] }
 0x4da   : > { %12175 = vmatpush3.msra.mxu0 %v4127_v32  ;;  %4186 = vmatprep.subr.mxu1 %v4123_v41  ;;  %v19420_v32 = vld [vmem:[#allocation27_spill] sm:$0xff]  ;;  %v4411_v14 = vsel %vm1255_vm6, %v15126_v45, %v4386_v10  ;;  %v19421_v41 = vld [vmem:[#allocation81_spill] sm:$0xff] }
 0x4db   : > { %12176 = vmatprep.subr.mxu0 %v4124_v47  ;;  %4187 = vmatpush1.msra.mxu1 %v4122_v46  ;;  %v4110_v36 = vsel %vm962_vm5, %v19420_v32, %v19418_v30  ;;  %v4412_v5 = vsel %vm1255_vm6, %v4386_v10, %v19421_v41  ;;  %v4410_v46 = vsel %vm1255_vm6, %v19422_v7, %v15126_v45  ;;  %v15430_v10 = vpop.permute.xlu1 %5285  ;;  %v19430_v1 = vld [vmem:[#allocation47_spill] sm:$0xff]  ;;  %v19435_v30 = vld [vmem:[#allocation100_spill] sm:$0xff]  ;;  %v19440_v41 = vld [vmem:[#allocation22_spill] sm:$0xff] }
 0x4dc   : > { %12177 = vmatpush3.msra.mxu0 %v4124_v47  ;;  %4188 = vmatprep.subr.mxu1 %v4120_v43  ;;  %v19424_v43 = vld [vmem:[#allocation98_spill] sm:$0xff]  ;;  %v19437_v32 = vld [vmem:[#allocation35_spill] sm:$0xff]  ;;  %v19441_v7 = vld [vmem:[#allocation60_spill] sm:$0xff] }
 0x4dd   : > { %12178 = vmatprep.subr.mxu0 %v4121_v55  ;;  %4189 = vmatpush1.msra.mxu1 %v4119_v23  ;;  %v15378_v28 = vpop.permute.xlu0 %5327  ;;  %v4409_v31 = vsel %vm1255_vm6, %v15093_v13, %v19424_v43  ;;  %v19426_v23 = vld [vmem:[#allocation111_spill] sm:$0xff]  ;;  %v19443_v43 = vld [vmem:[#allocation69_spill] sm:$0xff] }
 0x4de   : > { %12179 = vmatpush3.msra.mxu0 %v4121_v55  ;;  %4190 = vmatprep.subr.mxu1 %v4117_v61  ;;  %v19425_v55 = vld [vmem:[#allocation48_spill] sm:$0xff]  ;;  %v4405_v40 = vsel %vm1255_vm6, %v19427_v33, %v19426_v23  ;;  %v19428_v61 = vld [vmem:[#allocation23_spill] sm:$0xff] }
 0x4df   : > { %12180 = vmatprep.subr.mxu0 %v4118_v25  ;;  %4191 = vmatpush1.msra.mxu1 %v4116_v56  ;;  %v4407_v45 = vsel %vm1255_vm6, %v19425_v55, %v19423_v24  ;;  %v4406_v13 = vsel %vm1255_vm6, %v19426_v23, %v19428_v61  ;;  %v19431_v56 = vld [vmem:[#allocation104_spill] sm:$0xff]  ;;  %v19444_v55 = vld [vmem:[#allocation29_spill] sm:$0xff]  ;;  %v19445_v23 = vld [vmem:[#allocation7_spill] sm:$0xff] }
 0x4e0   : > { %12181 = vmatpush3.msra.mxu0 %v4118_v25  ;;  %4192 = vmatprep.subr.mxu1 %v4114_v12  ;;  %v4404_v25 = vsel %vm1255_vm6, %v19429_v34, %v19427_v33  ;;  %v4402_v62 = vsel %vm1255_vm6, %v19431_v56, %v19430_v1  ;;  %v4403_v12 = vsel %vm1255_vm6, %v19430_v1, %v19432_v2  ;;  %v19446_v61 = vld [vmem:[#allocation80_spill] sm:$0xff]  ;;  %v11387_v2 = vld [vmem:[%s18940_s5 + $0x30] sm:$0xff] }
 0x4e1   : > { %12182 = vmatprep.subr.mxu0 %v4115_v15  ;;  %4193 = vmatpush1.msra.mxu1 %v4113_v11  ;;  %v15398_v22 = vpop.permute.xlu0 %5319  ;;  %v15462_v11 = vpop.permute.xlu1 %4815  ;;  %v4392_v33 = vsel %vm1255_vm6, %v19445_v23, %v19443_v43  ;;  %v12672_v23 = vld [vmem:[#allocation3 + $0x60] sm:$0xff] }
 0x4e2   : > { %12183 = vmatpush3.msra.mxu0 %v4115_v15  ;;  %4194 = vmatprep.subr.mxu1 %v4111_v19  ;;  %v4401_v15 = vsel %vm1255_vm6, %v19433_v21, %v19431_v56  ;;  %v4399_v19 = vsel %vm1255_vm6, %v19435_v30, %v19434_v6  ;;  %v19449_v56 = vld [vmem:[#allocation11_spill] sm:$0xff]  ;;  %v11388_v21 = vld [vmem:[%s18940_s5 + $0x38] sm:$0xff] }
 0x4e3   : > { %12184 = vmatprep.subr.mxu0 %v4112_v16  ;;  %4195 = vmatpush1.msra.mxu1 %v4110_v36  ;;  %v4398_v36 = vsel %vm1255_vm6, %v19437_v32, %v19435_v30  ;;  %v12661_v32 = vld [vmem:[#allocation3 + $0x108] sm:$0xff] }
 0x4e4   : > { %4228 = vmatprep.mubr.f32.mxu1 %v19291_v20  ;;  %12185 = vmatpush3.msra.mxu0 %v4112_v16  ;;  %v4400_v16 = vsel %vm1255_vm6, %v19434_v6, %v19436_v26  ;;  %v12659_v26 = vld [vmem:[#allocation3 + $0x120] sm:$0xff] }
 0x4e5   : > { %12186 = vmatprep.mubr.msk.f32.mxu0 %vm3614_vm14, %v11381_v52  ;;  %11383 = vmatmul.mubr.msk.f32.vlgmr.msra.gmra.mxu1 %vm3614_vm14, %v11381_v52  ;;  %v15421_v47 = vpop.permute.xlu0 %5317  ;;  %v19438_v52 = vld [vmem:[#allocation34_spill] sm:$0xff] }
 0x4e6   : > { %12187 = vmatmul.mubr.msk.f32.vlgmr.msra.gmra.mxu0 %vm3614_vm14, %v11382_v49  ;;  %4459 = vmatprep.subr.mxu1 %v4411_v14 }
 0x4e7   : > { %12189 = vmatprep.subr.mxu0 %v4412_v5  ;;  %4460 = vmatpush1.msra.mxu1 %v4410_v46 }
 0x4e8   : > { %12190 = vmatpush3.msra.mxu0 %v4412_v5  ;;  %4461 = vmatprep.subr.mxu1 %v4408_v8  ;;  %v4397_v5 = vsel %vm1255_vm6, %v19438_v52, %v19440_v41  ;;  %v19442_v8 = vld [vmem:[#allocation13_spill] sm:$0xff]  ;;  %v12665_v41 = vld [vmem:[#allocation3 + $0xd0] sm:$0xff] }
 0x4e9   : > { %12191 = vmatprep.subr.mxu0 %v4409_v31  ;;  %4234 = vmatprep.mubr.f32.mxu1 %v19291_v20  ;;  %v15439_v18 = vpop.permute.xlu0 %5315 }
 0x4ea   : > { %4462 = vmatpush1.msra.mxu1 %v4407_v45  ;;  %12192 = vmatpush3.msra.mxu0 %v4409_v31  ;;  %v4393_v31 = vsel %vm1255_vm6, %v19443_v43, %v19442_v8  ;;  %v4394_v45 = vsel %vm1255_vm6, %v19442_v8, %v19444_v55  ;;  %v12668_v8 = vld [vmem:[#allocation3 + $0xa8] sm:$0xff]  ;;  %v12670_v55 = vld [vmem:[#allocation3 + $0x90] sm:$0xff] }
 0x4eb   : > { %11384 = vmatmul.mubr.msk.f32.gmra.mxu1 %vm3614_vm14, %v11382_v49  ;;  %4463 = vmatprep.subr.mxu1 %v4405_v40  ;;  %v19439_v49 = vld [vmem:[#allocation39_spill] sm:$0xff]  ;;  %v15493_v40 = vpop.permute.xlu1 %4813 }
 0x4ec   : > { %12193 = vmatprep.subr.mxu0 %v4406_v13  ;;  %4464 = vmatpush1.msra.mxu1 %v4404_v25  ;;  %v4396_v14 = vsel %vm1255_vm6, %v19439_v49, %v19438_v52  ;;  %v4395_v46 = vsel %vm1255_vm6, %v19441_v7, %v19439_v49  ;;  %v19448_v25 = vld [vmem:[#allocation55_spill] sm:$0xff]  ;;  %v12666_v7 = vld [vmem:[#allocation3 + $0xb0] sm:$0xff] }
 0x4ed   : > { %12194 = vmatpush3.msra.mxu0 %v4406_v13  ;;  %4465 = vmatprep.subr.mxu1 %v4402_v62  ;;  %v15460_v37 = vpop.permute.xlu0 %5307  ;;  %v19447_v13 = vld [vmem:[#allocation9_spill] sm:$0xff]  ;;  %v4391_v1 = vsel %vm1255_vm6, %v19446_v61, %v19448_v25  ;;  %v12663_v49 = vld [vmem:[#allocation3 + $0xd8] sm:$0xff] }
 0x4ee   : > { %12195 = vmatprep.subr.mxu0 %v4403_v12  ;;  %4466 = vmatpush1.msra.mxu1 %v4401_v15  ;;  %v4390_v34 = vsel %vm1255_vm6, %v19447_v13, %v19446_v61  ;;  %v4389_v62 = vsel %vm1255_vm6, %v19449_v56, %v19447_v13  ;;  %v12658_v15 = vld [vmem:[#allocation3 + $0x128] sm:$0xff]  ;;  %v12674_v61 = vld [vmem:[#allocation3 + $0x58] sm:$0xff]  ;;  %v12677_v56 = vld [vmem:[#allocation3 + $0x30] sm:$0xff] }
 0x4ef   : > { %12196 = vmatpush3.msra.mxu0 %v4403_v12  ;;  %4467 = vmatprep.subr.mxu1 %v4399_v19  ;;  %v15518_v30 = vpop.permute.xlu1 %5576  ;;  %v19450_v19 = vld [vmem:[#allocation21_spill] sm:$0xff]  ;;  %v12675_v25 = vld [vmem:[#allocation3 + $0x38] sm:$0xff] }
 0x4f0   : > { %12197 = vmatprep.subr.mxu0 %v4400_v16  ;;  %4468 = vmatpush1.msra.mxu1 %v4398_v36  ;;  %v12662_v36 = vld [vmem:[#allocation3 + $0xf8] sm:$0xff] }
 0x4f1   : > { %12198 = vmatpush3.msra.mxu0 %v4400_v16  ;;  %4469 = vmatprep.subr.mxu1 %v4396_v14  ;;  %v15482_v24 = vpop.permute.xlu0 %5305  ;;  %v12660_v16 = vld [vmem:[#allocation3 + $0x100] sm:$0xff] }
 0x4f2   : > { %12199 = vmatprep.subr.mxu0 %v4397_v5  ;;  %4470 = vmatpush1.msra.mxu1 %v4395_v46  ;;  %v12664_v14 = vld [vmem:[#allocation3 + $0xe0] sm:$0xff]  ;;  %v12667_v46 = vld [vmem:[#allocation3 + $0xb8] sm:$0xff] }
 0x4f3   : > { %12200 = vmatpush3.msra.mxu0 %v4397_v5  ;;  %4471 = vmatprep.subr.mxu1 %v4393_v31  ;;  %v15526_v5 = vpop.permute.xlu1 %5568  ;;  %v12669_v31 = vld [vmem:[#allocation3 + $0x88] sm:$0xff] }
 0x4f4   : > { %12201 = vmatprep.subr.mxu0 %v4394_v45  ;;  %4472 = vmatpush1.msra.mxu1 %v4392_v33  ;;  %v12673_v33 = vld [vmem:[#allocation3 + $0x68] sm:$0xff] }
 0x4f5   : > { %12202 = vmatpush3.msra.mxu0 %v4394_v45  ;;  %4473 = vmatprep.subr.mxu1 %v4390_v34  ;;  %v15507_v12 = vpop.permute.xlu0 %5303  ;;  %v12671_v45 = vld [vmem:[#allocation3 + $0x80] sm:$0xff] }
 0x4f6   : > { %12203 = vmatprep.subr.mxu0 %v4391_v1  ;;  %4474 = vmatpush1.msra.mxu1 %v4389_v62  ;;  %v11393_v62 = vld [vmem:[%s18940_s5 + $0x40] sm:$0xff] }
 0x4f7   : > { %4507 = vmatprep.mubr.f32.mxu1 %v19291_v20  ;;  %12204 = vmatpush3.msra.mxu0 %v4391_v1  ;;  %v15532_v34 = vpop.permute.xlu1 %5070  ;;  %v12676_v1 = vld [vmem:[#allocation3 + $0x40] sm:$0xff] }
 0x4f8   : > { %12205 = vmatprep.mubr.msk.f32.mxu0 %vm3614_vm14, %v11387_v2  ;;  %11389 = vmatmul.mubr.msk.f32.vlgmr.msra.gmra.mxu1 %vm3614_vm14, %v11387_v2  ;;  %v12678_v2 = vld [vmem:[#allocation3 + $0x18] sm:$0xff] }
 0x4f9   : > { %12206 = vmatmul.mubr.msk.f32.vlgmr.msra.gmra.mxu0 %vm3614_vm14, %v11388_v21  ;;  %4626 = vmatprep.subr.mxu1 %v12658_v15  ;;  %v15516_v6 = vpop.permute.xlu0 %5295 }
 0x4fa   : > { %12208 = vmatprep.subr.mxu0 %v19450_v19  ;;  %4627 = vmatpush1.msra.mxu1 %v12659_v26 }
 0x4fb   : > { %12209 = vmatpush3.msra.mxu0 %v19450_v19  ;;  %4628 = vmatprep.subr.mxu1 %v12660_v16  ;;  %v15553_v26 = vpop.permute.xlu1 %5068  ;;  %v19452_v16 = vld [vmem:[#allocation85_spill] sm:$0xff] }
 0x4fc   : > { %12210 = vmatprep.subr.mxu0 %v12661_v32  ;;  %4513 = vmatprep.mubr.f32.mxu1 %v19291_v20 }
 0x4fd   : > { %4629 = vmatpush1.msra.mxu1 %v12662_v36  ;;  %12211 = vmatpush3.msra.mxu0 %v12661_v32  ;;  %v15523_v52 = vpop.permute.xlu0 %5293  ;;  %v19453_v32 = vld [vmem:[#allocation115_spill] sm:$0xff] }
 0x4fe   : > { %11390 = vmatmul.mubr.msk.f32.gmra.mxu1 %vm3614_vm14, %v11388_v21  ;;  %4630 = vmatprep.subr.mxu1 %v12663_v49  ;;  %v11394_v21 = vld [vmem:[%s18940_s5 + $0x48] sm:$0xff]  ;;  %v4832_v36 = vsel %vm1827_vm7, %v19453_v32, %v19452_v16 }
 0x4ff   : > { %12212 = vmatprep.subr.mxu0 %v12664_v14  ;;  %4631 = vmatpush1.msra.mxu1 %v12665_v41  ;;  %v19456_v41 = vld [vmem:[#allocation94_spill] sm:$0xff] }
 0x500   : > { %12213 = vmatpush3.msra.mxu0 %v12664_v14  ;;  %4632 = vmatprep.subr.mxu1 %v12666_v7  ;;  %v19454_v14 = vld [vmem:[#allocation116_spill] sm:$0xff] }
 0x501   : > { %12214 = vmatprep.subr.mxu0 %v12667_v46  ;;  %4633 = vmatpush1.msra.mxu1 %v12668_v8  ;;  %v15528_v43 = vpop.permute.xlu0 %5291 }
 0x502   : > { %12215 = vmatpush3.msra.mxu0 %v12667_v46  ;;  %4634 = vmatprep.subr.mxu1 %v12669_v31  ;;  %v19457_v46 = vld [vmem:[#allocation95_spill] sm:$0xff]  ;;  %v15576_v31 = vpop.permute.xlu1 %5566 }
 0x503   : > { %12216 = vmatprep.subr.mxu0 %v12670_v55  ;;  %4635 = vmatpush1.msra.mxu1 %v12671_v45  ;;  %v4829_v8 = vsel %vm1827_vm7, %v19457_v46, %v19456_v41  ;;  %v19459_v45 = vld [vmem:[#allocation106_spill] sm:$0xff]  ;;  %v19470_v46 = vld [vmem:[#allocation77_spill] sm:$0xff] }
 0x504   : > { %12217 = vmatpush3.msra.mxu0 %v12670_v55  ;;  %4636 = vmatprep.subr.mxu1 %v12672_v23  ;;  %v19458_v55 = vld [vmem:[#allocation67_spill] sm:$0xff] }
 0x505   : > { %12218 = vmatprep.subr.mxu0 %v12673_v33  ;;  %4637 = vmatpush1.msra.mxu1 %v12674_v61  ;;  %v15530_v13 = vpop.permute.xlu0 %5283  ;;  %v4828_v23 = vsel %vm1827_vm7, %v19459_v45, %v19458_v55 }
 0x506   : > { %12219 = vmatpush3.msra.mxu0 %v12673_v33  ;;  %4638 = vmatprep.subr.mxu1 %v12675_v25  ;;  %v19460_v33 = vld [vmem:[#allocation107_spill] sm:$0xff] }
 0x507   : > { %12220 = vmatprep.subr.mxu0 %v12676_v1  ;;  %4639 = vmatpush1.msra.mxu1 %v12677_v56  ;;  %v4827_v61 = vsel %vm1827_vm7, %v19460_v33, %v19459_v45  ;;  %v19461_v25 = vld [vmem:[#allocation43_spill] sm:$0xff] }
 0x508   : > { %12221 = vmatpush3.msra.mxu0 %v12676_v1  ;;  %4640 = vmatprep.subr.mxu1 %v15260_v9  ;;  %v19451_v9 = vld [vmem:[#allocation84_spill] sm:$0xff]  ;;  %v19462_v1 = vld [vmem:[#allocation87_spill] sm:$0xff] }
 0x509   : > { %12222 = vmatprep.subr.mxu0 %v12678_v2  ;;  %4641 = vmatpush1.msra.mxu1 %v15282_v35  ;;  %v15542_v15 = vpop.permute.xlu0 %5281  ;;  %v4834_v19 = vsel %vm1827_vm7, %v15462_v11, %v19451_v9  ;;  %v4833_v35 = vsel %vm1827_vm7, %v15493_v40, %v15462_v11  ;;  %v4831_v11 = vsel %vm1827_vm7, %v19454_v14, %v19453_v32  ;;  %v19455_v40 = vld [vmem:[#allocation36_spill] sm:$0xff]  ;;  %v19467_v14 = vld [vmem:[#allocation63_spill] sm:$0xff] }
 0x50a   : > { %4674 = vmatprep.mubr.f32.mxu1 %v19291_v20  ;;  %12223 = vmatpush3.msra.mxu0 %v12678_v2  ;;  %v4830_v7 = vsel %vm1827_vm7, %v19456_v41, %v19455_v40  ;;  %v4826_v56 = vsel %vm1827_vm7, %v19462_v1, %v19461_v25  ;;  %v19463_v2 = vld [vmem:[#allocation72_spill] sm:$0xff]  ;;  %v19469_v41 = vld [vmem:[#allocation38_spill] sm:$0xff] }
 0x50b   : > { %12224 = vmatprep.mubr.msk.f32.mxu0 %vm3614_vm14, %v11393_v62  ;;  %11395 = vmatmul.mubr.msk.f32.vlgmr.msra.gmra.mxu1 %vm3614_vm14, %v11393_v62 }
 0x50c   : > { %12225 = vmatmul.mubr.msk.f32.vlgmr.msra.gmra.mxu0 %vm3614_vm14, %v11394_v21  ;;  %4881 = vmatprep.subr.mxu1 %v4834_v19  ;;  %v19465_v19 = vld [vmem:[#allocation79_spill] sm:$0xff] }
 0x50d   : > { %12227 = vmatprep.subr.mxu0 %v19451_v9  ;;  %4882 = vmatpush1.msra.mxu1 %v4833_v35  ;;  %v15561_v49 = vpop.permute.xlu0 %5582 }
 0x50e   : > { %12228 = vmatpush3.msra.mxu0 %v19451_v9  ;;  %4883 = vmatprep.subr.mxu1 %v4832_v36  ;;  %v19464_v9 = vld [vmem:[#allocation28_spill] sm:$0xff]  ;;  %v15604_v36 = vpop.permute.xlu1 %5564 }
 0x50f   : > { %12229 = vmatprep.subr.mxu0 %v19452_v16  ;;  %4680 = vmatprep.mubr.f32.mxu1 %v19291_v20  ;;  %v4824_v35 = vsel %vm1827_vm7, %v19465_v19, %v19464_v9 }
 0x510   : > { %4884 = vmatpush1.msra.mxu1 %v4831_v11  ;;  %12230 = vmatpush3.msra.mxu0 %v19452_v16  ;;  %v19466_v16 = vld [vmem:[#allocation76_spill] sm:$0xff] }
 0x511   : > { %11396 = vmatmul.mubr.msk.f32.gmra.mxu1 %vm3614_vm14, %v11394_v21  ;;  %4885 = vmatprep.subr.mxu1 %v4830_v7  ;;  %v15590_v62 = vpop.permute.xlu0 %5574  ;;  %v4825_v21 = vsel %vm1827_vm7, %v19463_v2, %v19462_v1  ;;  %v4823_v32 = vsel %vm1827_vm7, %v19466_v16, %v19465_v19  ;;  %v19468_v11 = vld [vmem:[#allocation40_spill] sm:$0xff]  ;;  %v19475_v19 = vld [vmem:[#allocation118_spill] sm:$0xff] }
 0x512   : > { %12231 = vmatprep.subr.mxu0 %v19455_v40  ;;  %4886 = vmatpush1.msra.mxu1 %v4829_v8  ;;  %v4821_v7 = vsel %vm1827_vm7, %v19469_v41, %v19468_v11  ;;  %v19471_v8 = vld [vmem:[#allocation17_spill] sm:$0xff]  ;;  %v15633_v1 = vpop.permute.xlu1 %5325 }
 0x513   : > { %12232 = vmatpush3.msra.mxu0 %v19455_v40  ;;  %4887 = vmatprep.subr.mxu1 %v4828_v23  ;;  %v4822_v40 = vsel %vm1827_vm7, %v19468_v11, %v19467_v14  ;;  %v19472_v23 = vld [vmem:[#allocation31_spill] sm:$0xff] }
 0x514   : > { %12233 = vmatprep.subr.mxu0 %v19458_v55  ;;  %4888 = vmatpush1.msra.mxu1 %v4827_v61  ;;  %v4819_v33 = vsel %vm1827_vm7, %v19472_v23, %v19471_v8  ;;  %v11399_v61 = vld [vmem:[%s18940_s5 + $0x50] sm:$0xff]  ;;  %v19480_v23 = vld [vmem:[#allocation112_spill] sm:$0xff] }
 0x515   : > { %12234 = vmatpush3.msra.mxu0 %v19458_v55  ;;  %4889 = vmatprep.subr.mxu1 %v4826_v56  ;;  %v4820_v55 = vsel %vm1827_vm7, %v19471_v8, %v19470_v46  ;;  %v15618_v45 = vpop.permute.xlu0 %5572  ;;  %v19473_v56 = vld [vmem:[#allocation93_spill] sm:$0xff] }
 0x516   : > { %12235 = vmatprep.subr.mxu0 %v19461_v25  ;;  %4890 = vmatpush1.msra.mxu1 %v4825_v21  ;;  %v5089_v2 = vsel %vm2117_vm8, %v15532_v34, %v19473_v56  ;;  %v5088_v21 = vsel %vm2117_vm8, %v15553_v26, %v15532_v34  ;;  %v19476_v34 = vld [vmem:[#allocation97_spill] sm:$0xff] }
 0x517   : > { %12236 = vmatpush3.msra.mxu0 %v19461_v25  ;;  %4891 = vmatprep.subr.mxu1 %v4824_v35  ;;  %v11400_v25 = vld [vmem:[%s18940_s5 + $0x58] sm:$0xff]  ;;  %v5085_v26 = vsel %vm2117_vm8, %v19476_v34, %v15133_v42  ;;  %v19479_v8 = vld [vmem:[#allocation109_spill] sm:$0xff] }
 0x518   : > { %12237 = vmatprep.subr.mxu0 %v19464_v9  ;;  %4892 = vmatpush1.msra.mxu1 %v4823_v32  ;;  %v5086_v32 = vsel %vm2117_vm8, %v15113_v39, %v19475_v19  ;;  %v19478_v39 = vld [vmem:[#allocation108_spill] sm:$0xff] }
 0x519   : > { %12238 = vmatpush3.msra.mxu0 %v19464_v9  ;;  %4893 = vmatprep.subr.mxu1 %v4822_v40  ;;  %v19474_v9 = vld [vmem:[#allocation42_spill] sm:$0xff]  ;;  %v15648_v16 = vpop.permute.xlu0 %5570  ;;  %v5324_v40 = vpop.permute.xlu1 %5323  ;;  %v5083_v41 = vsel %vm2117_vm8, %v15152_v27, %v19478_v39 }
 0x51a   : > { %12239 = vmatprep.subr.mxu0 %v19467_v14  ;;  %4894 = vmatpush1.msra.mxu1 %v4821_v7  ;;  %v5087_v35 = vsel %vm2117_vm8, %v19475_v19, %v19474_v9  ;;  %v5082_v7 = vsel %vm2117_vm8, %v15173_v17, %v15152_v27  ;;  %v11406_v19 = vld [vmem:[%s18940_s5 + $0x68] sm:$0xff] }
 0x51b   : > { %12240 = vmatpush3.msra.mxu0 %v19467_v14  ;;  %4895 = vmatprep.subr.mxu1 %v4820_v55  ;;  %v19477_v14 = vld [vmem:[#allocation105_spill] sm:$0xff]  ;;  %v5081_v55 = vsel %vm2117_vm8, %v19479_v8, %v15212_v44 }
 0x51c   : > { %12241 = vmatprep.subr.mxu0 %v19470_v46  ;;  %4896 = vmatpush1.msra.mxu1 %v4819_v33  ;;  %v5084_v11 = vsel %vm2117_vm8, %v19477_v14, %v19476_v34  ;;  %v5080_v33 = vsel %vm2117_vm8, %v19480_v23, %v19479_v8  ;;  %v5340_v34 = vsel %vm2407_vm9, %v15181_v0, %v15439_v18  ;;  %v11418_v23 = vld [vmem:[%s18940_s5 + $0x88] sm:$0xff] }
 0x51d   : > { %4929 = vmatprep.mubr.f32.mxu1 %v19291_v20  ;;  %12242 = vmatpush3.msra.mxu0 %v19470_v46  ;;  %v15672_v46 = vpop.permute.xlu0 %5562  ;;  %v15686_v17 = vpop.permute.xlu1 %5556  ;;  %v5595_v14 = vsel %vm2697_vm11, %v15526_v5, %v15648_v16 }
 0x51e   : > { %12243 = vmatprep.mubr.msk.f32.mxu0 %vm3614_vm14, %v11399_v61  ;;  %11401 = vmatmul.mubr.msk.f32.vlgmr.msra.gmra.mxu1 %vm3614_vm14, %v11399_v61  ;;  %v5078_v61 = vsel %vm2117_vm8, %v15255_v54, %v15231_v63  ;;  %v11405_v54 = vld [vmem:[%s18940_s5 + $0x60] sm:$0xff] }
 0x51f   : > { %12244 = vmatmul.mubr.msk.f32.vlgmr.msra.gmra.mxu0 %vm3614_vm14, %v11400_v25  ;;  %5136 = vmatprep.subr.mxu1 %v5089_v2  ;;  %v19483_v2 = vld [vmem:[#allocation117_spill] sm:$0xff] }
 0x520   : > { %12246 = vmatprep.subr.mxu0 %v19473_v56  ;;  %5137 = vmatpush1.msra.mxu1 %v5088_v21 }
 0x521   : > { %12247 = vmatpush3.msra.mxu0 %v19473_v56  ;;  %5138 = vmatprep.subr.mxu1 %v5087_v35  ;;  %v15717_v35 = vpop.permute.xlu1 %5554 }
 0x522   : > { %12248 = vmatprep.subr.mxu0 %v19474_v9  ;;  %4935 = vmatprep.mubr.f32.mxu1 %v19291_v20 }
 0x523   : > { %5139 = vmatpush1.msra.mxu1 %v5086_v32  ;;  %12249 = vmatpush3.msra.mxu0 %v19474_v9  ;;  %v15700_v9 = vpop.permute.xlu0 %5560  ;;  %v5341_v32 = vsel %vm2407_vm9, %v15421_v47, %v15398_v22 }
 0x524   : > { %11402 = vmatmul.mubr.msk.f32.gmra.mxu1 %vm3614_vm14, %v11400_v25  ;;  %5140 = vmatprep.subr.mxu1 %v5085_v26  ;;  %v19482_v25 = vld [vmem:[#allocation114_spill] sm:$0xff] }
 0x525   : > { %12250 = vmatprep.subr.mxu0 %v15133_v42  ;;  %5141 = vmatpush1.msra.mxu1 %v5084_v11  ;;  %v5077_v56 = vsel %vm2117_vm8, %v19482_v25, %v15296_v59  ;;  %v5076_v21 = vsel %vm2117_vm8, %v19483_v2, %v19482_v25 }
 0x526   : > { %12251 = vmatpush3.msra.mxu0 %v15133_v42  ;;  %5142 = vmatprep.subr.mxu1 %v5083_v41  ;;  %v19481_v42 = vld [vmem:[#allocation113_spill] sm:$0xff] }
 0x527   : > { %12252 = vmatprep.subr.mxu0 %v19478_v39  ;;  %5143 = vmatpush1.msra.mxu1 %v5082_v7  ;;  %v5079_v27 = vsel %vm2117_vm8, %v15231_v63, %v19481_v42  ;;  %v5074_v63 = vsel %vm2117_vm8, %v15337_v60, %v15324_v53  ;;  %v15729_v60 = vpop.permute.xlu0 %5558 }
 0x528   : > { %12253 = vmatpush3.msra.mxu0 %v19478_v39  ;;  %5144 = vmatprep.subr.mxu1 %v5081_v55 }
 0x529   : > { %12254 = vmatprep.subr.mxu0 %v15212_v44  ;;  %5145 = vmatpush1.msra.mxu1 %v5080_v33 }
 0x52a   : > { %12255 = vmatpush3.msra.mxu0 %v15212_v44  ;;  %5146 = vmatprep.subr.mxu1 %v5079_v27  ;;  %v5075_v44 = vsel %vm2117_vm8, %v15324_v53, %v15115_v29  ;;  %v5343_v53 = vsel %vm2407_vm9, %v5324_v40, %v15633_v1 }
 0x52b   : > { %12256 = vmatprep.subr.mxu0 %v19481_v42  ;;  %5147 = vmatpush1.msra.mxu1 %v5078_v61  ;;  %v15753_v47 = vpop.permute.xlu0 %5550 }
 0x52c   : > { %12257 = vmatpush3.msra.mxu0 %v19481_v42  ;;  %5148 = vmatprep.subr.mxu1 %v5077_v56 }
 0x52d   : > { %12258 = vmatprep.subr.mxu0 %v15296_v59  ;;  %5149 = vmatpush1.msra.mxu1 %v5076_v21 }
 0x52e   : > { %12259 = vmatpush3.msra.mxu0 %v15296_v59  ;;  %5150 = vmatprep.subr.mxu1 %v5075_v44  ;;  %v5344_v59 = vsel %vm2407_vm9, %v15633_v1, %v15378_v28  ;;  %v5581_v1 = vpop.permute.xlu1 %5580 }
 0x52f   : > { %12260 = vmatprep.subr.mxu0 %v15115_v29  ;;  %5151 = vmatpush1.msra.mxu1 %v5074_v63 }
 0x530   : > { %5184 = vmatprep.mubr.f32.mxu1 %v19291_v20  ;;  %12261 = vmatpush3.msra.mxu0 %v15115_v29  ;;  %v5342_v29 = vsel %vm2407_vm9, %v15398_v22, %v15154_v38  ;;  %v5338_v22 = vsel %vm2407_vm9, %v15460_v37, %v15244_v57 }
 0x531   : > { %12262 = vmatprep.mubr.msk.f32.mxu0 %vm3614_vm14, %v11405_v54  ;;  %11407 = vmatmul.mubr.msk.f32.vlgmr.msra.gmra.mxu1 %vm3614_vm14, %v11405_v54 }
 0x532   : > { %12263 = vmatmul.mubr.msk.f32.vlgmr.msra.gmra.mxu0 %vm3614_vm14, %v11406_v19  ;;  %5391 = vmatprep.subr.mxu1 %v5344_v59  ;;  %v5579_v26 = vpop.permute.xlu1 %5578 }
 0x533   : > { %12265 = vmatprep.subr.mxu0 %v15378_v28  ;;  %5392 = vmatpush1.msra.mxu1 %v5343_v53 }
 0x534   : > { %12266 = vmatpush3.msra.mxu0 %v15378_v28  ;;  %5393 = vmatprep.subr.mxu1 %v5342_v29  ;;  %v5339_v28 = vsel %vm2407_vm9, %v15214_v3, %v15181_v0  ;;  %v5336_v0 = vsel %vm2407_vm9, %v15276_v50, %v15507_v12  ;;  %v5335_v3 = vsel %vm2407_vm9, %v15313_v58, %v15276_v50  ;;  %v5549_v50 = vpop.permute.xlu0 %5548 }
 0x535   : > { %12267 = vmatprep.subr.mxu0 %v15154_v38  ;;  %5190 = vmatprep.mubr.f32.mxu1 %v19291_v20  ;;  %v5331_v58 = vsel %vm2407_vm9, %v15400_v48, %v15367_v4  ;;  %v11412_v48 = vld [vmem:[%s18940_s5 + $0x78] sm:$0xff]  ;;  %v5588_v40 = vsel %vm2697_vm11, %v5549_v50, %v15753_v47 }
 0x536   : > { %5394 = vmatpush1.msra.mxu1 %v5341_v32  ;;  %12268 = vmatpush3.msra.mxu0 %v15154_v38  ;;  %v5337_v38 = vsel %vm2407_vm9, %v15482_v24, %v15460_v37  ;;  %v5333_v37 = vsel %vm2407_vm9, %v15523_v52, %v15516_v6  ;;  %v5330_v24 = vsel %vm2407_vm9, %v15530_v13, %v15430_v10 }
 0x537   : > { %11408 = vmatmul.mubr.msk.f32.gmra.mxu1 %vm3614_vm14, %v11406_v19  ;;  %5395 = vmatprep.subr.mxu1 %v5340_v34 }
 0x538   : > { %12269 = vmatprep.subr.mxu0 %v15439_v18  ;;  %5396 = vmatpush1.msra.mxu1 %v5339_v28  ;;  %v5547_v52 = vpop.permute.xlu0 %5546 }
 0x539   : > { %12270 = vmatpush3.msra.mxu0 %v15439_v18  ;;  %5397 = vmatprep.subr.mxu1 %v5338_v22  ;;  %v5334_v18 = vsel %vm2407_vm9, %v15516_v6, %v15339_v51  ;;  %v5599_v6 = vsel %vm2697_vm11, %v5581_v1, %v15561_v49 }
 0x53a   : > { %12271 = vmatprep.subr.mxu0 %v15244_v57  ;;  %5398 = vmatpush1.msra.mxu1 %v5337_v38 }
 0x53b   : > { %12272 = vmatpush3.msra.mxu0 %v15244_v57  ;;  %5399 = vmatprep.subr.mxu1 %v5336_v0  ;;  %v5332_v57 = vsel %vm2407_vm9, %v15367_v4, %v15528_v43  ;;  %v11411_v4 = vld [vmem:[%s18940_s5 + $0x70] sm:$0xff] }
 0x53c   : > { %12273 = vmatprep.subr.mxu0 %v15507_v12  ;;  %5400 = vmatpush1.msra.mxu1 %v5335_v3  ;;  %v5539_v11 = vpop.permute.xlu0 %5538 }
 0x53d   : > { %12274 = vmatpush3.msra.mxu0 %v15507_v12  ;;  %5401 = vmatprep.subr.mxu1 %v5334_v18  ;;  %v5329_v12 = vsel %vm2407_vm9, %v15542_v15, %v15530_v13  ;;  %v5596_v15 = vsel %vm2697_vm11, %v15618_v45, %v15590_v62 }
 0x53e   : > { %12275 = vmatprep.subr.mxu0 %v15339_v51  ;;  %5402 = vmatpush1.msra.mxu1 %v5333_v37 }
 0x53f   : > { %12276 = vmatpush3.msra.mxu0 %v15339_v51  ;;  %5403 = vmatprep.subr.mxu1 %v5332_v57  ;;  %v5553_v51 = vpop.permute.xlu1 %5552 }
 0x540   : > { %12277 = vmatprep.subr.mxu0 %v15528_v43  ;;  %5404 = vmatpush1.msra.mxu1 %v5331_v58  ;;  %v5537_v39 = vpop.permute.xlu0 %5536 }
 0x541   : > { %12278 = vmatpush3.msra.mxu0 %v15528_v43  ;;  %5405 = vmatprep.subr.mxu1 %v5330_v24  ;;  %v5598_v43 = vsel %vm2697_vm11, %v5579_v26, %v5581_v1  ;;  %v5584_v55 = vsel %vm2697_vm11, %v5537_v39, %v5539_v11 }
 0x542   : > { %12279 = vmatprep.subr.mxu0 %v15430_v10  ;;  %5406 = vmatpush1.msra.mxu1 %v5329_v12 }
 0x543   : > { %5439 = vmatprep.mubr.f32.mxu1 %v19291_v20  ;;  %12280 = vmatpush3.msra.mxu0 %v15430_v10  ;;  %v5597_v10 = vsel %vm2697_vm11, %v15590_v62, %v15518_v30  ;;  %v5545_v13 = vpop.permute.xlu1 %5544  ;;  %v5593_v62 = vsel %vm2697_vm11, %v15672_v46, %v15604_v36 }
 0x544   : > { %12281 = vmatprep.mubr.msk.f32.mxu0 %vm3614_vm14, %v11411_v4  ;;  %11413 = vmatmul.mubr.msk.f32.vlgmr.msra.gmra.mxu1 %vm3614_vm14, %v11411_v4  ;;  %v5587_v41 = vsel %vm2697_vm11, %v5545_v13, %v5547_v52 }
 0x545   : > { %12282 = vmatmul.mubr.msk.f32.vlgmr.msra.gmra.mxu0 %vm3614_vm14, %v11412_v48  ;;  %5646 = vmatprep.subr.mxu1 %v5599_v6 }
 0x546   : > { %12284 = vmatprep.subr.mxu0 %v15561_v49  ;;  %5647 = vmatpush1.msra.mxu1 %v5598_v43 }
 0x547   : > { %12285 = vmatpush3.msra.mxu0 %v15561_v49  ;;  %5648 = vmatprep.subr.mxu1 %v5597_v10  ;;  %v5594_v49 = vsel %vm2697_vm11, %v15576_v31, %v15526_v5  ;;  %v5591_v5 = vsel %vm2697_vm11, %v15686_v17, %v15729_v60  ;;  %v5590_v31 = vsel %vm2697_vm11, %v15717_v35, %v15686_v17  ;;  %v5543_v45 = vpop.permute.xlu1 %5542 }
 0x548   : > { %12286 = vmatprep.subr.mxu0 %v15518_v30  ;;  %5445 = vmatprep.mubr.f32.mxu1 %v19291_v20 }
 0x549   : > { %5649 = vmatpush1.msra.mxu1 %v5596_v15  ;;  %12287 = vmatpush3.msra.mxu0 %v15518_v30  ;;  %v5592_v30 = vsel %vm2697_vm11, %v15700_v9, %v15672_v46  ;;  %v11417_v46 = vld [vmem:[%s18940_s5 + $0x80] sm:$0xff] }
 0x54a   : > { %11414 = vmatmul.mubr.msk.f32.gmra.mxu1 %vm3614_vm14, %v11412_v48  ;;  %5650 = vmatprep.subr.mxu1 %v5595_v14 }
 0x54b   : > { %12288 = vmatprep.subr.mxu0 %v15648_v16  ;;  %5651 = vmatpush1.msra.mxu1 %v5594_v49  ;;  %v5541_v7 = vpop.permute.xlu1 %5540 }
 0x54c   : > { %12289 = vmatpush3.msra.mxu0 %v15648_v16  ;;  %5652 = vmatprep.subr.mxu1 %v5593_v62  ;;  %v5589_v16 = vsel %vm2697_vm11, %v15753_v47, %v5553_v51  ;;  %v5585_v8 = vsel %vm2697_vm11, %v5539_v11, %v5541_v7 }
 0x54d   : > { %12290 = vmatprep.subr.mxu0 %v15604_v36  ;;  %5653 = vmatpush1.msra.mxu1 %v5592_v30 }
 0x54e   : > { %12291 = vmatpush3.msra.mxu0 %v15604_v36  ;;  %5654 = vmatprep.subr.mxu1 %v5591_v5  ;;  %v5586_v36 = vsel %vm2697_vm11, %v5543_v45, %v5545_v13 }
 0x54f   : > { %12292 = vmatprep.subr.mxu0 %v15729_v60  ;;  %5655 = vmatpush1.msra.mxu1 %v5590_v31 }
 0x550   : > { %12293 = vmatpush3.msra.mxu0 %v15729_v60  ;;  %5656 = vmatprep.subr.mxu1 %v5589_v16 }
 0x551   : > { %12294 = vmatprep.subr.mxu0 %v5553_v51  ;;  %5657 = vmatpush1.msra.mxu1 %v5588_v40 }
 0x552   : > { %12295 = vmatpush3.msra.mxu0 %v5553_v51  ;;  %5658 = vmatprep.subr.mxu1 %v5587_v41 }
 0x553   : > { %12296 = vmatprep.subr.mxu0 %v5547_v52  ;;  %5659 = vmatpush1.msra.mxu1 %v5586_v36 }
 0x554   : > { %12297 = vmatpush3.msra.mxu0 %v5547_v52  ;;  %5660 = vmatprep.subr.mxu1 %v5585_v8 }
 0x555   : > { %12298 = vmatprep.subr.mxu0 %v5541_v7  ;;  %12300 = vmatprep.mubr.msk.f32.mxu0 %vm3614_vm14, %v11417_v46 }
 0x556   : > { %12299 = vmatpush3.msra.mxu0 %v5541_v7  ;;  %5661 = vmatpush1.msra.mxu1 %v5584_v55 }
 0x557   : > { %5694 = vmatprep.mubr.f32.mxu1 %v19291_v20  ;;  %12301 = vmatmul.mubr.msk.f32.vlgmr.msra.gmra.mxu0 %vm3614_vm14, %v11418_v23 }
 0x558   : > { %11419 = vmatmul.mubr.msk.f32.vlgmr.msra.gmra.mxu1 %vm3614_vm14, %v11417_v46 }
 0x559   : > { %5700 = vmatprep.mubr.f32.mxu1 %v19291_v20 }
 0x55c   : > { %11420 = vmatmul.mubr.msk.f32.gmra.mxu1 %vm3614_vm14, %v11418_v23 }
 0x55d   : > { %6056 = vmatprep.mubr.f32.mxu1 %v19291_v20 }
 0x57e   : > { %v3687_v33 = vpop.f32.mrf.mxu1 }
 0x57f   : > { %v12150_v29 = vpop.f32.mrf.mxu0 }
 0x580   : > { %v3689_v42 = vpop.f32.mrf.mxu1 }
 0x581   : > { %v3764_v1 = vpop.f32.mrf.mxu0 }
 0x58c   : > { %v3693_v27 = vpop.f32.mrf.mxu1 }
 0x58e   : > { %v3695_v17 = vpop.f32.mrf.mxu1 }
 0x592   : > { %v3957_v61 = vpop.f32.mrf.mxu1 }
 0x593   : > { %v12169_v28 = vpop.f32.mrf.mxu0  ;;  %v3958_v10 = vadd.f32 %v3957_v61, %v3687_v33 }
 0x594   : > { %v3959_v25 = vpop.f32.mrf.mxu1  ;;  %v4040_v52 = vadd.f32 %v12169_v28, %v12150_v29 }
 0x595   : > { %v4034_v47 = vpop.f32.mrf.mxu0  ;;  %v3960_v62 = vadd.f32 %v3959_v25, %v3689_v42 }
 0x596   : > { %v4035_v45 = vadd.f32 %v4034_v47, %v3764_v1 }
 0x598   : > { %v3963_v56 = vpop.f32.mrf.mxu1 }
 0x599   : > { %v3964_v30 = vadd.f32 %v3963_v56, %v3693_v27 }
 0x59a   : > { %v3965_v2 = vpop.f32.mrf.mxu1 }
 0x59b   : > { %v3966_v40 = vadd.f32 %v3965_v2, %v3695_v17 }
 0x5a5   : > { %v4230_v21 = vpop.f32.mrf.mxu1 }
 0x5a6   : > { %v12188_v0 = vpop.f32.mrf.mxu0  ;;  %v4316_v14 = vadd.f32 %v4230_v21, %v3958_v10 }
 0x5a7   : > { %v4232_v9 = vpop.f32.mrf.mxu1  ;;  %v4321_v15 = vadd.f32 %v12188_v0, %v4040_v52 }
 0x5a8   : > { %v4307_v26 = vpop.f32.mrf.mxu0  ;;  %v4317_v39 = vadd.f32 %v4232_v9, %v3960_v62 }
 0x5a9   : > { %v4318_v46 = vadd.f32 %v4307_v26, %v4035_v45 }
 0x5ab   : > { %v4236_v44 = vpop.f32.mrf.mxu1 }
 0x5ac   : > { %v4319_v41 = vadd.f32 %v4236_v44, %v3964_v30 }
 0x5ad   : > { %v4238_v63 = vpop.f32.mrf.mxu1 }
 0x5ae   : > { %v4320_v23 = vadd.f32 %v4238_v63, %v3966_v40 }
 0x5b8   : > { %v4509_v54 = vpop.f32.mrf.mxu1 }
 0x5b9   : > { %v12207_v18 = vpop.f32.mrf.mxu0  ;;  %v4595_v5 = vadd.f32 %v4509_v54, %v4316_v14 }
 0x5ba   : > { %v4511_v19 = vpop.f32.mrf.mxu1  ;;  %v4600_v49 = vadd.f32 %v12207_v18, %v4321_v15 }
 0x5bb   : > { %v4586_v50 = vpop.f32.mrf.mxu0  ;;  %v4596_v33 = vadd.f32 %v4511_v19, %v4317_v39 }
 0x5bc   : > { %v4597_v29 = vadd.f32 %v4586_v50, %v4318_v46 }
 0x5be   : > { %v4515_v35 = vpop.f32.mrf.mxu1 }
 0x5bf   : > { %v4598_v61 = vadd.f32 %v4515_v35, %v4319_v41  ;;  %v5798_v35 = vpop.permute.xlu1 %5797 }
 0x5c0   : > { %v4517_v59 = vpop.f32.mrf.mxu1 }
 0x5c1   : > { %v4599_v42 = vadd.f32 %v4517_v59, %v4320_v23 }
 0x5cb   : > { %v4676_v53 = vpop.f32.mrf.mxu1 }
 0x5cc   : > { %v12226_v58 = vpop.f32.mrf.mxu0  ;;  %v4762_v36 = vadd.f32 %v4676_v53, %v4595_v5 }
 0x5cd   : > { %v4678_v60 = vpop.f32.mrf.mxu1  ;;  %v4767_v16 = vadd.f32 %v12226_v58, %v4600_v49 }
 0x5ce   : > { %v4753_v12 = vpop.f32.mrf.mxu0  ;;  %v4763_v27 = vadd.f32 %v4678_v60, %v4596_v33  ;;  %v5793_v60 = vpop.permute.xlu0 %5792 }
 0x5cf   : > { %v4764_v1 = vadd.f32 %v4753_v12, %v4597_v29 }
 0x5d1   : > { %v4682_v32 = vpop.f32.mrf.mxu1 }
 0x5d2   : > { %v4765_v25 = vadd.f32 %v4682_v32, %v4598_v61 }
 0x5d3   : > { %v4684_v34 = vpop.f32.mrf.mxu1 }
 0x5d4   : > { %v4766_v9 = vadd.f32 %v4684_v34, %v4599_v42  ;;  %v15877_v42 = vld [vmem:[#allocation4 + $0x28] sm:$0xff] }
 0x5de   : > { %v4931_v22 = vpop.f32.mrf.mxu1 }
 0x5df   : > { %v12245_v51 = vpop.f32.mrf.mxu0  ;;  %v5017_v21 = vadd.f32 %v4931_v22, %v4762_v36 }
 0x5e0   : > { %v4933_v38 = vpop.f32.mrf.mxu1  ;;  %v5022_v8 = vadd.f32 %v12245_v51, %v4767_v16 }
 0x5e1   : > { %v5008_v6 = vpop.f32.mrf.mxu0  ;;  %v5018_v44 = vadd.f32 %v4933_v38, %v4763_v27 }
 0x5e2   : > { %v5019_v26 = vadd.f32 %v5008_v6, %v4764_v1 }
 0x5e4   : > { %v4937_v3 = vpop.f32.mrf.mxu1 }
 0x5e5   : > { %v5020_v53 = vadd.f32 %v4937_v3, %v4765_v25  ;;  %v5880_v25 = vld [vmem:[%s18937_s2] sm:$0x7] }
 0x5e6   : > { %v4939_v37 = vpop.f32.mrf.mxu1 }
 0x5e7   : > { %v5021_v22 = vadd.f32 %v4939_v37, %v4766_v9 }
 0x5f1   : > { %v5186_v57 = vpop.f32.mrf.mxu1 }
 0x5f2   : > { %v12264_v13 = vpop.f32.mrf.mxu0  ;;  %v5272_v56 = vadd.f32 %v5186_v57, %v5017_v21 }
 0x5f3   : > { %v5188_v24 = vpop.f32.mrf.mxu1  ;;  %v5277_v28 = vadd.f32 %v12264_v13, %v5022_v8 }
 0x5f4   : > { %v5263_v31 = vpop.f32.mrf.mxu0  ;;  %v5273_v18 = vadd.f32 %v5188_v24, %v5018_v44 }
 0x5f5   : > { %v5274_v32 = vadd.f32 %v5263_v31, %v5019_v26 }
 0x5f7   : > { %v5192_v4 = vpop.f32.mrf.mxu1 }
 0x5f8   : > { %v5275_v50 = vadd.f32 %v5192_v4, %v5020_v53  ;;  %v19485_v53 = vld [vmem:[#allocation19_spill] sm:$0xff] }
 0x5f9   : > { %v5194_v48 = vpop.f32.mrf.mxu1 }
 0x5fa   : > { %v5276_v12 = vadd.f32 %v5194_v48, %v5021_v22 }
 0x604   : > { %v5441_v43 = vpop.f32.mrf.mxu1 }
 0x605   : > { %v12283_v7 = vpop.f32.mrf.mxu0  ;;  %v5527_v47 = vadd.f32 %v5441_v43, %v5272_v56  ;;  %v19484_v56 = vld [vmem:[#allocation15_spill] sm:$0xff] }
 0x606   : > { %v5443_v11 = vpop.f32.mrf.mxu1  ;;  %v5532_v17 = vadd.f32 %v12283_v7, %v5277_v28 }
 0x607   : > { %v5518_v54 = vpop.f32.mrf.mxu0  ;;  %v5528_v51 = vadd.f32 %v5443_v11, %v5273_v18  ;;  %v15904_v18 = vld [vmem:[%s18942_s7 + $0x40] sm:$0xff] }
 0x608   : > { %v5529_v38 = vadd.f32 %v5518_v54, %v5274_v32  ;;  %v5893_v54 = vrot.slane %v5880_v25, %v19484_v56  ;;  %12307 = vmatprep.mubr.msk.f32.mxu0 %vm3417_vm3, %v15904_v18 }
 0x60a   : > { %v5447_v55 = vpop.f32.mrf.mxu1 }
 0x60b   : > { %v5530_v52 = vadd.f32 %v5447_v55, %v5275_v50 }
 0x60c   : > { %v5449_v2 = vpop.f32.mrf.mxu1 }
 0x60d   : > { %v5531_v6 = vadd.f32 %v5449_v2, %v5276_v12 }
 0x617   : > { %v12302_v0 = vpop.f32.mrf.mxu0 }
 0x618   : > { %v5787_v63 = vadd.f32 %v12302_v0, %v5532_v17  ;;  %v5696_v19 = vpop.f32.mrf.mxu1 }
 0x619   : > { %v5782_v59 = vadd.f32 %v5696_v19, %v5527_v47  ;;  %v5773_v43 = vpop.f32.mrf.mxu0  ;;  %v5885_v47 = vrot.slane %v5880_v25, %v19485_v53  ;;  %v19486_v19 = vld [vmem:[#allocation37_spill] sm:$0xff] }
 0x61a   : > { %v5805_v57 = vadd.f32 %v5798_v35, %v5787_v63  ;;  %v5698_v58 = vpop.f32.mrf.mxu1  ;;  %v5784_v24 = vadd.f32 %v5773_v43, %v5529_v38 }
 0x61b   : > { %v5800_v34 = vadd.f32 %v5793_v60, %v5782_v59  ;;  %v5783_v15 = vadd.f32 %v5698_v58, %v5528_v51 }
 0x61c   : > { %v5811_v3 = vmax.f32 %v5805_v57, 0.0  ;;  %v5702_v10 = vpop.f32.mrf.mxu1  ;;  %v5802_v30 = vadd.f32 %v5793_v60, %v5784_v24  ;;  %v8559_v24 = vld [vmem:[%s18943_s8 + $0x30] sm:$0xff] }
 0x61d   : > { %v5806_v13 = vmax.f32 %v5800_v34, 0.0  ;;  %v5785_v14 = vadd.f32 %v5702_v10, %v5530_v52  ;;  %v5801_v48 = vadd.f32 %v5793_v60, %v5783_v15  ;;  %v5925_v10 = vld [vmem:[#allocation4] sm:$0xff]  ;;  %v8553_v15 = vld [vmem:[%s18943_s8] sm:$0xff] }
 0x61e   : > { %5828 = vrot.lane.b32.xlu1 %v5811_v3, %s12735_s29  ;;  %v5704_v37 = vpop.f32.mrf.mxu1  ;;  %v5808_v45 = vmax.f32 %v5802_v30, 0.0  ;;  %v8558_v30 = vld [vmem:[%s18943_s8 + $0x28] sm:$0xff] }
 0x61f   : > { %v5803_v4 = vadd.f32 %v5798_v35, %v5785_v14  ;;  %v5786_v49 = vadd.f32 %v5704_v37, %v5531_v6  ;;  %5818 = vrot.lane.b32.xlu0 %v5806_v13, %s12735_s29  ;;  %v5807_v31 = vmax.f32 %v5801_v48, 0.0  ;;  %v8555_v14 = vld [vmem:[%s18943_s8 + $0x10] sm:$0xff]  ;;  %v8557_v37 = vld [vmem:[%s18943_s8 + $0x20] sm:$0xff] }
 0x620   : > { %v16023_v48 = vld [vmem:[#allocation5 + $0x28] sm:$0xff] }
 0x621   : > { %v5809_v11 = vmax.f32 %v5803_v4, 0.0  ;;  %v5804_v62 = vadd.f32 %v5798_v35, %v5786_v49  ;;  %v5889_v35 = vrot.slane %v5880_v25, %v19486_v19  ;;  %v16014_v4 = vld [vmem:[#allocation5] sm:$0xff]  ;;  %v8554_v49 = vld [vmem:[%s18943_s8 + $0x8] sm:$0xff] }
 0x623   : > { %v5810_v5 = vmax.f32 %v5804_v62, 0.0  ;;  %5824 = vrot.lane.b32.xlu1 %v5809_v11, %s12735_s29  ;;  %v16030_v62 = vld [vmem:[#allocation5 + $0x50] sm:$0xff] }
 0x625   : > { %5826 = vrot.lane.b32.xlu0 %v5810_v5, %s12735_s29 }
 0x627   : > { %5820 = vrot.lane.b32.xlu1 %v5807_v31, %s12735_s29 }
 0x629   : > { %5822 = vrot.lane.b32.xlu0 %v5808_v45, %s12735_s29 }
 0x690   : > { %v5829_v16 = vpop.permute.xlu1 %5828 }
 0x691   : > { %v5845_v40 = vmax.f32 %v5811_v3, %v5829_v16  ;;  %v5819_v39 = vpop.permute.xlu0 %5818 }
 0x693   : > { %5862 = vrot.lane.b32.xlu1 %v5845_v40, %s12737_s12 }
 0x695   : > { %v5825_v41 = vpop.permute.xlu1 %5824 }
 0x697   : > { %v5827_v36 = vpop.permute.xlu0 %5826 }
 0x698   : > { %v5832_v7 = vsel %vm1827_vm7, %v5825_v41, %v5827_v36  ;;  %v5833_v61 = vsel %vm1827_vm7, %v5827_v36, %v5829_v16  ;;  %v16048_v16 = vld [vmem:[#allocation5 + $0xc8] sm:$0xff]  ;;  %v16056_v41 = vld [vmem:[#allocation5 + $0xf0] sm:$0xff] }
 0x699   : > { %v5843_v46 = vmax.f32 %v5809_v11, %v5832_v7  ;;  %v5821_v8 = vpop.permute.xlu1 %5820  ;;  %v5844_v28 = vmax.f32 %v5810_v5, %v5833_v61  ;;  %v8556_v11 = vld [vmem:[%s18943_s8 + $0x18] sm:$0xff]  ;;  %v16037_v5 = vld [vmem:[#allocation5 + $0x78] sm:$0xff] }
 0x69a   : > { %v5830_v55 = vsel %vm1827_vm7, %v5819_v39, %v5821_v8 }
 0x69b   : > { %v5840_v23 = vmax.f32 %v5806_v13, %v5830_v55  ;;  %5858 = vrot.lane.b32.xlu1 %v5843_v46, %s12737_s12  ;;  %v5823_v33 = vpop.permute.xlu0 %5822 }
 0x69c   : > { %v5831_v21 = vsel %vm1827_vm7, %v5821_v8, %v5823_v33  ;;  %v5842_v27 = vmax.f32 %v5808_v45, %v5823_v33  ;;  %v16044_v45 = vld [vmem:[#allocation5 + $0xa0] sm:$0xff] }
 0x69d   : > { %v5841_v29 = vmax.f32 %v5807_v31, %v5831_v21  ;;  %5852 = vrot.lane.b32.xlu0 %v5840_v23, %s12737_s12  ;;  %v8560_v31 = vld [vmem:[%s18943_s8 + $0x38] sm:$0xff] }
 0x69f   : > { %5854 = vrot.lane.b32.xlu1 %v5841_v29, %s12737_s12 }
 0x6a1   : > { %5860 = vrot.lane.b32.xlu0 %v5844_v28, %s12737_s12 }
 0x6a3   : > { %5952 = vrot.lane.b32.xlu1 %v15877_v42, %s12731_s25 }
 0x6a5   : > { %5856 = vrot.lane.b32.xlu0 %v5842_v27, %s12737_s12 }
 0x705   : > { %v5863_v1 = vpop.permute.xlu1 %5862 }
 0x706   : > { %v5879_v17 = vmax.f32 %v5845_v40, %v5863_v1  ;;  %v16052_v40 = vld [vmem:[#allocation5 + $0x118] sm:$0xff] }
 0x708   : > { %v5902_v2 = vmul.f32 %v5893_v54, %v5879_v17  ;;  %v11427_v17 = vld [vmem:[%s18942_s7 + $0x60] sm:$0xff] }
 0x70a   : > { %5911 = vst.msk [vmem:[#allocation4 + $0x40] sm:$0xff] %vm5907_vm0, %v5902_v2  ;;  %v11428_v2 = vld [vmem:[%s18942_s7 + $0x68] sm:$0xff] }
 0x70b   : > { %5915 = vst.msk [vmem:[#allocation4 + $0x40] sm:$0xff] %vm5912_vm1, %v19291_v20 }
 0x70d   : > { %v5859_v9 = vpop.permute.xlu1 %5858 }
 0x70f   : > { %v5853_v44 = vpop.permute.xlu0 %5852 }
 0x711   : > { %v5855_v0 = vpop.permute.xlu1 %5854 }
 0x712   : > { %v5864_v26 = vsel %vm2407_vm9, %v5853_v44, %v5855_v0  ;;  %v15949_v6 = vld [vmem:[#allocation4 + $0x40] sm:$0xff]  ;;  %v11429_v44 = vld [vmem:[%s18942_s7 + $0x70] sm:$0xff] }
 0x713   : > { %v5874_v63 = vmax.f32 %v5840_v23, %v5864_v26  ;;  %v5861_v22 = vpop.permute.xlu0 %5860 }
 0x714   : > { %v5866_v50 = vsel %vm2407_vm9, %v5859_v9, %v5861_v22  ;;  %v5867_v59 = vsel %vm2407_vm9, %v5861_v22, %v5863_v1 }
 0x715   : > { %v15910_v60 = vmul.f32 %v5885_v47, %v5874_v63  ;;  %v5877_v32 = vmax.f32 %v5843_v46, %v5866_v50  ;;  %v5878_v57 = vmax.f32 %v5844_v28, %v5867_v59  ;;  %v5953_v39 = vpop.permute.xlu1 %5952  ;;  %v11424_v28 = vld [vmem:[%s18942_s7 + $0x48] sm:$0xff] }
 0x717   : > { %v15912_v58 = vmul.f32 %v5885_v47, %v5877_v32  ;;  %v15914_v12 = vmul.f32 %v5889_v35, %v5878_v57  ;;  %v5857_v51 = vpop.permute.xlu0 %5856  ;;  %5948 = vrot.lane.b32.xlu0 %v15910_v60, %s12731_s25 }
 0x718   : > { %v5865_v52 = vsel %vm2407_vm9, %v5855_v0, %v5857_v51  ;;  %v5876_v34 = vmax.f32 %v5842_v27, %v5857_v51  ;;  %v11425_v27 = vld [vmem:[%s18942_s7 + $0x50] sm:$0xff]  ;;  %v11430_v0 = vld [vmem:[%s18942_s7 + $0x78] sm:$0xff] }
 0x719   : > { %v5875_v38 = vmax.f32 %v5841_v29, %v5865_v52  ;;  %5954 = vrot.lane.b32.xlu1 %v15912_v58, %s12731_s25 }
 0x71a   : > { %v5899_v3 = vmul.f32 %v5893_v54, %v5876_v34  ;;  %v11426_v54 = vld [vmem:[%s18942_s7 + $0x58] sm:$0xff]  ;;  %v5917_v34 = vld [vmem:[%s18942_s7] sm:$0xff] }
 0x71b   : > { %v15921_v43 = vmul.f32 %v5889_v35, %v5875_v38  ;;  %5956 = vrot.lane.b32.xlu0 %v15914_v12, %s12731_s25 }
 0x71c   : > { %5908 = vst.msk [vmem:[#allocation4 + $0x18] sm:$0xff] %vm5907_vm0, %v5899_v3 }
 0x71d   : > { %5913 = vst.msk [vmem:[#allocation4 + $0x18] sm:$0xff] %vm5912_vm1, %v19291_v20  ;;  %5950 = vrot.lane.b32.xlu1 %v15921_v43, %s12731_s25 }
 0x71f   : > { %5946 = vrot.lane.b32.xlu0 %v5925_v10, %s12731_s25 }
 0x721   : > { %6212 = vrot.lane.b32.xlu1 %v15910_v60, %s12732_s26 }
 0x723   : > { %6214 = vrot.lane.b32.xlu0 %v15921_v43, %s12732_s26 }
 0x724   : > { %v15955_v13 = vld [vmem:[#allocation4 + $0x18] sm:$0xff] }
 0x725   : > { %6489 = vrot.lane.b32.xlu1 %v15877_v42, %s12733_s27 }
 0x727   : > { %6216 = vrot.lane.b32.xlu0 %v15877_v42, %s12732_s26 }
 0x729   : > { %6487 = vrot.lane.b32.xlu1 %v15921_v43, %s12733_s27 }
 0x72b   : > { %6210 = vrot.lane.b32.xlu0 %v5925_v10, %s12732_s26 }
 0x72d   : > { %6800 = vrot.lane.b32.xlu1 %v15921_v43, %s12734_s28 }
 0x72f   : > { %6485 = vrot.lane.b32.xlu0 %v15910_v60, %s12733_s27 }
 0x731   : > { %6798 = vrot.lane.b32.xlu1 %v15910_v60, %s12734_s28 }
 0x733   : > { %6483 = vrot.lane.b32.xlu0 %v5925_v10, %s12733_s27 }
 0x735   : > { %6220 = vrot.lane.b32.xlu1 %v15914_v12, %s12732_s26 }
 0x737   : > { %6810 = vrot.lane.b32.xlu0 %v15949_v6, %s12734_s28 }
 0x739   : > { %6218 = vrot.lane.b32.xlu1 %v15912_v58, %s12732_s26 }
 0x73b   : > { %6802 = vrot.lane.b32.xlu0 %v15955_v13, %s12734_s28 }
 0x73d   : > { %7384 = vrot.lane.b32.xlu1 %v15949_v6, %s12735_s29 }
 0x73f   : > { %6804 = vrot.lane.b32.xlu0 %v15877_v42, %s12734_s28 }
 0x741   : > { %7376 = vrot.lane.b32.xlu1 %v15921_v43, %s12735_s29 }
 0x743   : > { %6796 = vrot.lane.b32.xlu0 %v5925_v10, %s12734_s28 }
 0x745   : > { %6491 = vrot.lane.b32.xlu1 %v15912_v58, %s12733_s27 }
 0x747   : > { %7378 = vrot.lane.b32.xlu0 %v15955_v13, %s12735_s29 }
 0x749   : > { %7675 = vrot.lane.b32.xlu1 %v15955_v13, %s12736_s30 }
 0x74b   : > { %6493 = vrot.lane.b32.xlu0 %v15914_v12, %s12733_s27 }
 0x74d   : > { %7978 = vrot.lane.b32.xlu1 %v15949_v6, %s12737_s12 }
 0x74f   : > { %7374 = vrot.lane.b32.xlu0 %v15910_v60, %s12735_s29 }
 0x751   : > { %7970 = vrot.lane.b32.xlu1 %v15921_v43, %s12737_s12 }
 0x753   : > { %7681 = vrot.lane.b32.xlu0 %v15949_v6, %s12736_s30 }
 0x755   : > { %8269 = vrot.lane.b32.xlu1 %v15955_v13, %s12738_s13 }
 0x757   : > { %7673 = vrot.lane.b32.xlu0 %v15921_v43, %s12736_s30 }
 0x759   : > { %8563 = vperm.xlu1 %12643, %v8553_v15   ;;  %v5918_v15 = vld [vmem:[%s18942_s7 + $0x8] sm:$0xff] }
 0x75b   : > { %7671 = vrot.lane.b32.xlu0 %v15910_v60, %s12736_s30 }
 0x75d   : > { %8573 = vperm.xlu1 %12643, %v8555_v14  }
 0x75f   : > { %7972 = vrot.lane.b32.xlu0 %v15955_v13, %s12737_s12 }
 0x761   : > { %8583 = vperm.xlu1 %12643, %v8557_v37   ;;  %v5919_v37 = vld [vmem:[%s18942_s7 + $0x10] sm:$0xff] }
 0x763   : > { %7968 = vrot.lane.b32.xlu0 %v15910_v60, %s12737_s12 }
 0x765   : > { %6808 = vrot.lane.b32.xlu1 %v15914_v12, %s12734_s28 }
 0x767   : > { %8275 = vrot.lane.b32.xlu0 %v15949_v6, %s12738_s13 }
 0x769   : > { %6806 = vrot.lane.b32.xlu1 %v15912_v58, %s12734_s28 }
 0x76b   : > { %8267 = vrot.lane.b32.xlu0 %v15921_v43, %s12738_s13 }
 0x76d   : > { %8593 = vperm.xlu1 %12643, %v8559_v24  }
 0x76f   : > { %8265 = vrot.lane.b32.xlu0 %v15910_v60, %s12738_s13 }
 0x771   : > { %8806 = vrot.lane.b32.xlu1 %v16014_v4, %s12740_s22 }
 0x773   : > { %8568 = vperm.xlu0 %12642, %v8554_v49   ;;  %v5920_v49 = vld [vmem:[%s18942_s7 + $0x18] sm:$0xff] }
 0x775   : > { %8814 = vrot.lane.b32.xlu1 %v16023_v48, %s12740_s22 }
 0x777   : > { %8578 = vperm.xlu0 %12642, %v8556_v11   ;;  %v5921_v11 = vld [vmem:[%s18942_s7 + $0x20] sm:$0xff] }
 0x779   : > { %8822 = vrot.lane.b32.xlu1 %v16030_v62, %s12740_s22 }
 0x77b   : > { %8588 = vperm.xlu0 %12642, %v8558_v30  }
 0x77d   : > { %8830 = vrot.lane.b32.xlu1 %v16037_v5, %s12740_s22 }
 0x77f   : > { %8598 = vperm.xlu0 %12642, %v8560_v31  }
 0x781   : > { %8838 = vrot.lane.b32.xlu1 %v16044_v45, %s12740_s22 }
 0x783   : > { %7380 = vrot.lane.b32.xlu0 %v15912_v58, %s12735_s29 }
 0x785   : > { %8846 = vrot.lane.b32.xlu1 %v16048_v16, %s12740_s22 }
 0x787   : > { %9119 = vrot.lane.b32.xlu0 %v16052_v40, %s12741_s20 }
 0x789   : > { %8854 = vrot.lane.b32.xlu1 %v16056_v41, %s12740_s22  ;;  %v5949_v36 = vpop.permute.xlu0 %5948 }
 0x78b   : > { %v5955_v7 = vpop.permute.xlu1 %5954  ;;  %9111 = vrot.lane.b32.xlu0 %v16056_v41, %s12741_s20 }
 0x78c   : > { %v5960_v23 = vsel %vm431_vm2, %v5953_v39, %v5955_v7  ;;  %v5922_v39 = vld [vmem:[%s18942_s7 + $0x28] sm:$0xff] }
 0x78d   : > { %8862 = vrot.lane.b32.xlu1 %v16052_v40, %s12740_s22  ;;  %v5957_v46 = vpop.permute.xlu0 %5956 }
 0x78e   : > { %12303 = vmatprep.subr.mxu0 %v5957_v46  ;;  %v5961_v8 = vsel %vm431_vm2, %v5955_v7, %v5957_v46 }
 0x78f   : > { %9103 = vrot.lane.b32.xlu0 %v16048_v16, %s12741_s20  ;;  %v5951_v55 = vpop.permute.xlu1 %5950  ;;  %6020 = vmatprep.subr.mxu1 %v5961_v8 }
 0x790   : > { %12304 = vmatpush3.msra.mxu0 %v5957_v46  ;;  %6021 = vmatpush1.msra.mxu1 %v5960_v23  ;;  %v5959_v33 = vsel %vm431_vm2, %v5949_v36, %v5951_v55  ;;  %v5924_v46 = vld [vmem:[%s18942_s7 + $0x38] sm:$0xff] }
 0x791   : > { %12305 = vmatprep.subr.mxu0 %v5951_v55  ;;  %9063 = vrot.lane.b32.xlu1 %v16014_v4, %s12741_s20  ;;  %v5947_v61 = vpop.permute.xlu0 %5946 }
 0x792   : > { %6022 = vmatprep.subr.mxu1 %v5959_v33  ;;  %12306 = vmatpush3.msra.mxu0 %v5951_v55  ;;  %v5958_v21 = vsel %vm431_vm2, %v5947_v61, %v5949_v36  ;;  %v5923_v36 = vld [vmem:[%s18942_s7 + $0x30] sm:$0xff]  ;;  %v11463_v61 = vld [vmem:[%s18942_s7 + $0x80] sm:$0xff] }
 0x793   : > { %7974 = vrot.lane.b32.xlu0 %v15912_v58, %s12737_s12  ;;  %v6213_v29 = vpop.permute.xlu1 %6212  ;;  %6023 = vmatpush1.msra.mxu1 %v5958_v21 }
 0x794   : > { %11431 = vmatmul.mubr.msk.f32.vlgmr.msra.gmra.mxu1 %vm3417_vm3, %v15904_v18  ;;  %12308 = vmatmul.mubr.msk.f32.vlgmr.msra.gmra.mxu0 %vm3417_vm3, %v11424_v28 }
 0x795   : > { %9071 = vrot.lane.b32.xlu1 %v16023_v48, %s12741_s20  ;;  %v6215_v42 = vpop.permute.xlu0 %6214  ;;  %6062 = vmatprep.mubr.f32.mxu1 %v19291_v20 }
 0x796   : > { %12310 = vmatprep.mubr.msk.f32.mxu0 %vm3417_vm3, %v11425_v27  ;;  %v6223_v52 = vsel %vm693_vm4, %v6213_v29, %v6215_v42 }
 0x797   : > { %v16089_v25 = vpop.permute.xlu1 %6489 }
 0x798   : > { %11432 = vmatmul.mubr.msk.f32.gmra.mxu1 %vm3417_vm3, %v11424_v28  ;;  %12311 = vmatmul.mubr.msk.f32.gmra.mxu0 %vm3417_vm3, %v11426_v54  ;;  %v11464_v28 = vld [vmem:[%s18942_s7 + $0x88] sm:$0xff] }
 0x799   : > { %7382 = vrot.lane.b32.xlu1 %v15914_v12, %s12735_s29  ;;  %v6217_v1 = vpop.permute.xlu0 %6216  ;;  %6068 = vmatprep.mubr.f32.mxu1 %v19291_v20 }
 0x79a   : > { %12313 = vmatprep.mubr.msk.f32.mxu0 %vm3417_vm3, %v11427_v17 }
 0x79b   : > { %v16106_v9 = vpop.permute.xlu1 %6487 }
 0x79c   : > { %11433 = vmatmul.mubr.msk.f32.gmra.mxu1 %vm3417_vm3, %v11425_v27  ;;  %12314 = vmatmul.mubr.msk.f32.gmra.mxu0 %vm3417_vm3, %v11428_v2 }
 0x79d   : > { %9079 = vrot.lane.b32.xlu1 %v16030_v62, %s12741_s20  ;;  %v6211_v47 = vpop.permute.xlu0 %6210  ;;  %6074 = vmatprep.mubr.f32.mxu1 %v19291_v20 }
 0x79e   : > { %12316 = vmatprep.mubr.msk.f32.mxu0 %vm3417_vm3, %v11429_v44  ;;  %v6222_v38 = vsel %vm693_vm4, %v6211_v47, %v6213_v29  ;;  %v11469_v47 = vld [vmem:[%s18942_s7 + $0xb0] sm:$0xff] }
 0x79f   : > { %v16120_v26 = vpop.permute.xlu1 %6800 }
 0x7a0   : > { %11434 = vmatmul.mubr.msk.f32.gmra.mxu1 %vm3417_vm3, %v11426_v54  ;;  %12317 = vmatmul.mubr.msk.f32.gmra.mxu0 %vm3417_vm3, %v11430_v0 }
 0x7a1   : > { %9087 = vrot.lane.b32.xlu1 %v16037_v5, %s12741_s20  ;;  %v16126_v63 = vpop.permute.xlu0 %6485  ;;  %6080 = vmatprep.mubr.f32.mxu1 %v19291_v20 }
 0x7a2   : > { %6320 = vmatprep.mubr.f32.mxu0 %v19291_v20  ;;  %v6496_v33 = vsel %vm962_vm5, %v16126_v63, %v16106_v9 }
 0x7a3   : > { %v16130_v35 = vpop.permute.xlu1 %6798 }
 0x7a4   : > { %11435 = vmatmul.mubr.msk.f32.gmra.mxu1 %vm3417_vm3, %v11427_v17 }
 0x7a5   : > { %7679 = vrot.lane.b32.xlu1 %v15914_v12, %s12736_s30  ;;  %v16135_v22 = vpop.permute.xlu0 %6483  ;;  %6086 = vmatprep.mubr.f32.mxu1 %v19291_v20 }
 0x7a6   : > { %v6495_v21 = vsel %vm962_vm5, %v16135_v22, %v16126_v63  ;;  %v11470_v63 = vld [vmem:[%s18942_s7 + $0xb8] sm:$0xff] }
 0x7a7   : > { %v6221_v18 = vpop.permute.xlu1 %6220 }
 0x7a8   : > { %11436 = vmatmul.mubr.msk.f32.gmra.mxu1 %vm3417_vm3, %v11428_v2  ;;  %12319 = vmatprep.subr.mxu1 %v6221_v18 }
 0x7a9   : > { %7677 = vrot.lane.b32.xlu1 %v15912_v58, %s12736_s30  ;;  %12320 = vmatpush3.msra.mxu1 %v6221_v18  ;;  %v16141_v50 = vpop.permute.xlu0 %6810 }
 0x7aa   : > { %12321 = vmatprep.subr.mxu1 %v6215_v42  ;;  %6092 = vmatprep.mubr.f32.mxu1 %v19291_v20 }
 0x7ab   : > { %v6219_v59 = vpop.permute.xlu1 %6218  ;;  %12322 = vmatpush3.msra.mxu1 %v6215_v42 }
 0x7ac   : > { %11437 = vmatmul.mubr.msk.f32.gmra.mxu1 %vm3417_vm3, %v11429_v44  ;;  %v6225_v32 = vsel %vm693_vm4, %v6219_v59, %v6221_v18  ;;  %v6224_v57 = vsel %vm693_vm4, %v6217_v1, %v6219_v59  ;;  %v11466_v1 = vld [vmem:[%s18942_s7 + $0x98] sm:$0xff]  ;;  %v11487_v18 = vld [vmem:[%s18942_s7 + $0xc0] sm:$0xff] }
 0x7ad   : > { %9095 = vrot.lane.b32.xlu1 %v16044_v45, %s12741_s20  ;;  %6284 = vmatprep.subr.mxu0 %v6225_v32  ;;  %v16149_v51 = vpop.permute.xlu0 %6802 }
 0x7ae   : > { %6285 = vmatpush1.msra.mxu0 %v6224_v57  ;;  %6098 = vmatprep.mubr.f32.mxu1 %v19291_v20 }
 0x7af   : > { %v16157_v3 = vpop.permute.xlu1 %7384  ;;  %6286 = vmatprep.subr.mxu0 %v6223_v52  ;;  %v6814_v52 = vsel %vm1255_vm6, %v16120_v26, %v16149_v51  ;;  %v6813_v51 = vsel %vm1255_vm6, %v16130_v35, %v16120_v26  ;;  %v11491_v26 = vld [vmem:[%s18942_s7 + $0xe0] sm:$0xff] }
 0x7b0   : > { %11438 = vmatmul.mubr.msk.f32.gmra.mxu1 %vm3417_vm3, %v11430_v0  ;;  %6287 = vmatpush1.msra.mxu0 %v6222_v38 }
 0x7b1   : > { %9378 = vrot.lane.b32.xlu1 %v16052_v40, %s12742_s21  ;;  %11447 = vmatmul.mubr.msk.f32.vlgmr.msra.gmra.mxu0 %vm3417_vm3, %v5917_v34  ;;  %v16163_v10 = vpop.permute.xlu0 %6804 }
 0x7b2   : > { %12323 = vmatprep.mubr.msk.f32.mxu1 %vm3417_vm3, %v5917_v34  ;;  %6326 = vmatprep.mubr.f32.mxu0 %v19291_v20  ;;  %v11488_v34 = vld [vmem:[%s18942_s7 + $0xc8] sm:$0xff] }
 0x7b3   : > { %v16170_v14 = vpop.permute.xlu1 %7376 }
 0x7b4   : > { %12324 = vmatmul.mubr.msk.f32.vlgmr.msra.gmra.mxu1 %vm3417_vm3, %v5918_v15 }
 0x7b5   : > { %9370 = vrot.lane.b32.xlu1 %v16056_v41, %s12742_s21  ;;  %11448 = vmatmul.mubr.msk.f32.gmra.mxu0 %vm3417_vm3, %v5918_v15  ;;  %v16179_v24 = vpop.permute.xlu0 %6796 }
 0x7b6   : > { %12326 = vmatprep.mubr.msk.f32.mxu1 %vm3417_vm3, %v5919_v37  ;;  %6332 = vmatprep.mubr.f32.mxu0 %v19291_v20 }
 0x7b7   : > { %v6492_v30 = vpop.permute.xlu1 %6491 }
 0x7b8   : > { %12327 = vmatmul.mubr.msk.f32.gmra.mxu1 %vm3417_vm3, %v5920_v49  ;;  %v6497_v23 = vsel %vm962_vm5, %v16089_v25, %v6492_v30  ;;  %v11465_v25 = vld [vmem:[%s18942_s7 + $0x90] sm:$0xff] }
 0x7b9   : > { %9362 = vrot.lane.b32.xlu1 %v16048_v16, %s12742_s21  ;;  %11449 = vmatmul.mubr.msk.f32.gmra.mxu0 %vm3417_vm3, %v5919_v37  ;;  %v16193_v31 = vpop.permute.xlu0 %7378 }
 0x7ba   : > { %12329 = vmatprep.mubr.msk.f32.mxu1 %vm3417_vm3, %v5921_v11  ;;  %6338 = vmatprep.mubr.f32.mxu0 %v19291_v20 }
 0x7bb   : > { %v16210_v8 = vpop.permute.xlu1 %7675 }
 0x7bc   : > { %12330 = vmatmul.mubr.msk.f32.gmra.mxu1 %vm3417_vm3, %v5922_v39 }
 0x7bd   : > { %9354 = vrot.lane.b32.xlu1 %v16044_v45, %s12742_s21  ;;  %11450 = vmatmul.mubr.msk.f32.gmra.mxu0 %vm3417_vm3, %v5920_v49  ;;  %v6494_v7 = vpop.permute.xlu0 %6493  ;;  %v11489_v49 = vld [vmem:[%s18942_s7 + $0xd0] sm:$0xff] }
 0x7be   : > { %12335 = vmatprep.subr.mxu0 %v6494_v7  ;;  %12332 = vmatprep.mubr.msk.f32.mxu1 %vm3417_vm3, %v5923_v36  ;;  %v6498_v55 = vsel %vm962_vm5, %v6492_v30, %v6494_v7  ;;  %v11494_v30 = vld [vmem:[%s18942_s7 + $0xf8] sm:$0xff]  ;;  %vm12745_vm5 = vmmov 0  }
 0x7bf   : > { %6557 = vmatprep.subr.mxu1 %v6498_v55  ;;  %12336 = vmatpush3.msra.mxu0 %v6494_v7  ;;  %v16232_v29 = vpop.permute.xlu1 %7978 }
 0x7c0   : > { %6344 = vmatprep.mubr.f32.mxu0 %v19291_v20  ;;  %12333 = vmatmul.mubr.msk.f32.gmra.mxu1 %vm3417_vm3, %v5924_v46 }
 0x7c1   : > { %6558 = vmatpush1.msra.mxu1 %v6497_v23  ;;  %12337 = vmatprep.subr.mxu0 %v16106_v9  ;;  %v16245_v42 = vpop.permute.xlu0 %7374 }
 0x7c2   : > { %9346 = vrot.lane.b32.xlu1 %v16037_v5, %s12742_s21  ;;  %11451 = vmatmul.mubr.msk.f32.gmra.mxu0 %vm3417_vm3, %v5921_v11 }
 0x7c3   : > { %6559 = vmatprep.subr.mxu1 %v6496_v33  ;;  %12338 = vmatpush3.msra.mxu0 %v16106_v9  ;;  %v16248_v27 = vpop.permute.xlu1 %7970  ;;  %v11513_v33 = vld [vmem:[%s18942_s7 + $0x110] sm:$0xff] }
 0x7c4   : > { %6560 = vmatpush1.msra.mxu1 %v6495_v21  ;;  %6593 = vmatprep.mubr.f32.mxu1 %v19291_v20  ;;  %v11514_v21 = vld [vmem:[%s18942_s7 + $0x118] sm:$0xff] }
 0x7c5   : > { %6350 = vmatprep.mubr.f32.mxu0 %v19291_v20  ;;  %11471 = vmatmul.mubr.msk.f32.vlgmr.msra.gmra.mxu1 %vm3417_vm3, %v11463_v61  ;;  %v16259_v54 = vpop.permute.xlu0 %7681 }
 0x7c6   : > { %9338 = vrot.lane.b32.xlu1 %v16030_v62, %s12742_s21  ;;  %11452 = vmatmul.mubr.msk.f32.gmra.mxu0 %vm3417_vm3, %v5922_v39 }
 0x7c7   : > { %6599 = vmatprep.mubr.f32.mxu1 %v19291_v20  ;;  %6356 = vmatprep.mubr.f32.mxu0 %v19291_v20  ;;  %v16269_v17 = vpop.permute.xlu1 %8269 }
 0x7c9   : > { %11472 = vmatmul.mubr.msk.f32.gmra.mxu1 %vm3417_vm3, %v11464_v28  ;;  %v16280_v2 = vpop.permute.xlu0 %7673 }
 0x7ca   : > { %7976 = vrot.lane.b32.xlu1 %v15914_v12, %s12737_s12  ;;  %11453 = vmatmul.mubr.msk.f32.gmra.mxu0 %vm3417_vm3, %v5923_v36  ;;  %v11511_v36 = vld [vmem:[%s18942_s7 + $0x100] sm:$0xff] }
 0x7cb   : > { %6605 = vmatprep.mubr.f32.mxu1 %v19291_v20  ;;  %6362 = vmatprep.mubr.f32.mxu0 %v19291_v20 }
 0x7cd   : > { %11473 = vmatmul.mubr.msk.f32.gmra.mxu1 %vm3417_vm3, %v11465_v25  ;;  %v16299_v0 = vpop.permute.xlu0 %7671 }
 0x7ce   : > { %9330 = vrot.lane.b32.xlu1 %v16023_v48, %s12742_s21  ;;  %11454 = vmatmul.mubr.msk.f32.gmra.mxu0 %vm3417_vm3, %v5924_v46  ;;  %v11467_v48 = vld [vmem:[%s18942_s7 + $0xa0] sm:$0xff]  ;;  %v11512_v46 = vld [vmem:[%s18942_s7 + $0x108] sm:$0xff] }
 0x7cf   : > { %6611 = vmatprep.mubr.f32.mxu1 %v19291_v20  ;;  %12339 = vmatprep.mubr.msk.f32.mxu0 %vm3417_vm3, %v11463_v61 }
 0x7d1   : > { %11474 = vmatmul.mubr.msk.f32.gmra.mxu1 %vm3417_vm3, %v11466_v1  ;;  %v16318_v59 = vpop.permute.xlu0 %7972 }
 0x7d2   : > { %9322 = vrot.lane.b32.xlu1 %v16014_v4, %s12742_s21  ;;  %12340 = vmatmul.mubr.msk.f32.vlgmr.msra.gmra.mxu0 %vm3417_vm3, %v11464_v28  ;;  %v11468_v4 = vld [vmem:[%s18942_s7 + $0xa8] sm:$0xff] }
 0x7d3   : > { %6617 = vmatprep.mubr.f32.mxu1 %v19291_v20  ;;  %12342 = vmatprep.mubr.msk.f32.mxu0 %vm3417_vm3, %v11465_v25 }
 0x7d4   : > { %v16282_v9 = vpop.permute.xlu1 %8563 }
 0x7d5   : > { %11475 = vmatmul.mubr.msk.f32.gmra.mxu1 %vm3417_vm3, %v11467_v48  ;;  %v16333_v37 = vpop.permute.xlu0 %7968 }
 0x7d6   : > { %8273 = vrot.lane.b32.xlu1 %v15914_v12, %s12738_s13  ;;  %12343 = vmatmul.mubr.msk.f32.gmra.mxu0 %vm3417_vm3, %v11466_v1  ;;  %v11515_v1 = vld [vmem:[%s18942_s7 + $0x120] sm:$0xff] }
 0x7d7   : > { %6623 = vmatprep.mubr.f32.mxu1 %v19291_v20  ;;  %12345 = vmatprep.mubr.msk.f32.mxu0 %vm3417_vm3, %v11467_v48 }
 0x7d8   : > { %v16293_v44 = vpop.permute.xlu1 %8573 }
 0x7d9   : > { %19487 = vst [vmem:[#allocation41_spill] sm:$0xff] %v16293_v44  ;;  %11476 = vmatmul.mubr.msk.f32.gmra.mxu1 %vm3417_vm3, %v11468_v4 }
 0x7da   : > { %8271 = vrot.lane.b32.xlu1 %v15912_v58, %s12738_s13  ;;  %12346 = vmatmul.mubr.msk.f32.gmra.mxu0 %vm3417_vm3, %v11468_v4  ;;  %s12744_s13 = smov 2  }
 0x7db   : > { %6629 = vmatprep.mubr.f32.mxu1 %v19291_v20  ;;  %12348 = vmatprep.mubr.msk.f32.mxu0 %vm3417_vm3, %v11469_v47 }
 0x7dc   : > { %v16309_v22 = vpop.permute.xlu1 %8583 }
 0x7dd   : > { %19488 = vst [vmem:[#allocation45_spill] sm:$0xff] %v16309_v22  ;;  %11477 = vmatmul.mubr.msk.f32.gmra.mxu1 %vm3417_vm3, %v11469_v47  ;;  %v11516_v47 = vld [vmem:[%s18942_s7 + $0x128] sm:$0xff] }
 0x7de   : > { %12349 = vmatmul.mubr.msk.f32.gmra.mxu0 %vm3417_vm3, %v11470_v63  ;;  %6635 = vmatprep.mubr.f32.mxu1 %v19291_v20 }
 0x7df   : > { %6912 = vmatprep.mubr.f32.mxu0 %v19291_v20  ;;  %9640 = vrot.lane.b32.xlu1 %v16052_v40, %s12743_s15  ;;  %v11588_v40 = vld [vmem:[%s18942_s7 + $0x1e8] sm:$0xff] }
 0x7e0   : > { %v6809_v32 = vpop.permute.xlu1 %6808 }
 0x7e1   : > { %11478 = vmatmul.mubr.msk.f32.gmra.mxu1 %vm3417_vm3, %v11470_v63  ;;  %v6817_v57 = vsel %vm1255_vm6, %v6809_v32, %v16141_v50 }
 0x7e2   : > { %12351 = vmatprep.subr.mxu1 %v6817_v57  ;;  %12355 = vmatprep.mubr.msk.f32.mxu1 %vm3417_vm3, %v11487_v18 }
 0x7e3   : > { %12352 = vmatpush3.msra.mxu1 %v6817_v57  ;;  %9632 = vrot.lane.b32.xlu1 %v16056_v41, %s12743_s15 }
 0x7e4   : > { %v6807_v38 = vpop.permute.xlu1 %6806  ;;  %12353 = vmatprep.subr.mxu1 %v6814_v52 }
 0x7e5   : > { %12354 = vmatpush3.msra.mxu1 %v6814_v52  ;;  %v6816_v15 = vsel %vm1255_vm6, %v6807_v38, %v6809_v32  ;;  %v6815_v50 = vsel %vm1255_vm6, %v16163_v10, %v6807_v38  ;;  %v6812_v10 = vsel %vm1255_vm6, %v16179_v24, %v16130_v35  ;;  %v11518_v52 = vld [vmem:[%s18942_s7 + $0x138] sm:$0xff] }
 0x7e6   : > { %6876 = vmatprep.subr.mxu0 %v6816_v15  ;;  %12356 = vmatmul.mubr.msk.f32.vlgmr.msra.gmra.mxu1 %vm3417_vm3, %v11488_v34 }
 0x7e7   : > { %7151 = vmatprep.subr.mxu1 %v15914_v12  ;;  %6877 = vmatpush1.msra.mxu0 %v6815_v50  ;;  %v11490_v12 = vld [vmem:[%s18942_s7 + $0xd8] sm:$0xff]  ;;  %v11536_v50 = vld [vmem:[%s18942_s7 + $0x148] sm:$0xff] }
 0x7e8   : > { %7152 = vmatpush1.msra.mxu1 %v15912_v58  ;;  %v16347_v11 = vpop.permute.xlu1 %8593  ;;  %6878 = vmatprep.subr.mxu0 %v6813_v51  ;;  %v16360_v58 = vpop.permute.xlu0 %8275 }
 0x7e9   : > { %19489 = vst [vmem:[#allocation51_spill] sm:$0xff] %v16347_v11  ;;  %7153 = vmatprep.subr.mxu1 %v15921_v43  ;;  %6879 = vmatpush1.msra.mxu0 %v6812_v10  ;;  %v11493_v43 = vld [vmem:[%s18942_s7 + $0xf0] sm:$0xff] }
 0x7ea   : > { %12358 = vmatprep.mubr.msk.f32.mxu1 %vm3417_vm3, %v11489_v49  ;;  %7154 = vmatpush1.msra.mxu1 %v15910_v60  ;;  %v11492_v60 = vld [vmem:[%s18942_s7 + $0xe8] sm:$0xff]  ;;  %v11537_v10 = vld [vmem:[%s18942_s7 + $0x150] sm:$0xff] }
 0x7eb   : > { %11495 = vmatmul.mubr.msk.f32.vlgmr.msra.gmra.mxu0 %vm3417_vm3, %v11487_v18  ;;  %12359 = vmatmul.mubr.msk.f32.gmra.mxu1 %vm3417_vm3, %v11490_v12  ;;  %v11517_v18 = vld [vmem:[%s18942_s7 + $0x130] sm:$0xff] }
 0x7ec   : > { %12383 = vmatprep.subr.mxu1 %v16157_v3  ;;  %v16363_v35 = vpop.permute.xlu1 %8806  ;;  %6918 = vmatprep.mubr.f32.mxu0 %v19291_v20  ;;  %v16385_v39 = vpop.permute.xlu0 %8267 }
 0x7ed   : > { %19490 = vst [vmem:[#allocation56_spill] sm:$0xff] %v16363_v35  ;;  %12361 = vmatprep.mubr.msk.f32.mxu1 %vm3417_vm3, %v11491_v26  ;;  %12367 = vmatprep.subr.mxu0 %v15949_v6 }
 0x7ee   : > { %12368 = vmatpush3.msra.mxu0 %v15949_v6  ;;  %9624 = vrot.lane.b32.xlu1 %v16048_v16, %s12743_s15  ;;  %v11607_v16 = vld [vmem:[%s18942_s7 + $0x200] sm:$0xff] }
 0x7ef   : > { %11496 = vmatmul.mubr.msk.f32.gmra.mxu0 %vm3417_vm3, %v11488_v34  ;;  %12362 = vmatmul.mubr.msk.f32.gmra.mxu1 %vm3417_vm3, %v11492_v60  ;;  %v11535_v34 = vld [vmem:[%s18942_s7 + $0x140] sm:$0xff] }
 0x7f0   : > { %v16377_v24 = vpop.permute.xlu1 %8814  ;;  %6924 = vmatprep.mubr.f32.mxu0 %v19291_v20  ;;  %12364 = vmatprep.mubr.msk.f32.mxu1 %vm3417_vm3, %v11493_v43  ;;  %v16399_v7 = vpop.permute.xlu0 %8265 }
 0x7f1   : > { %19491 = vst [vmem:[#allocation59_spill] sm:$0xff] %v16377_v24  ;;  %12369 = vmatprep.subr.mxu0 %v15955_v13 }
 0x7f2   : > { %12370 = vmatpush3.msra.mxu0 %v15955_v13  ;;  %9616 = vrot.lane.b32.xlu1 %v16044_v45, %s12743_s15  ;;  %v11609_v45 = vld [vmem:[%s18942_s7 + $0x210] sm:$0xff] }
 0x7f3   : > { %11497 = vmatmul.mubr.msk.f32.gmra.mxu0 %vm3417_vm3, %v11489_v49  ;;  %12365 = vmatmul.mubr.msk.f32.gmra.mxu1 %vm3417_vm3, %v11494_v30 }
 0x7f4   : > { %v16390_v6 = vpop.permute.xlu1 %8822  ;;  %6930 = vmatprep.mubr.f32.mxu0 %v19291_v20  ;;  %7187 = vmatprep.mubr.f32.mxu1 %v19291_v20  ;;  %v16413_v55 = vpop.permute.xlu0 %8568 }
 0x7f5   : > { %19492 = vst [vmem:[#allocation66_spill] sm:$0xff] %v16390_v6  ;;  %19494 = vst [vmem:[#allocation78_spill] sm:$0xff] %v16413_v55  ;;  %v16854_v6 = vld [vmem:[#allocation5 + $0x50] sm:$0xff] }
 0x7f6   : > { %9608 = vrot.lane.b32.xlu1 %v16037_v5, %s12743_s15  ;;  %v11610_v5 = vld [vmem:[%s18942_s7 + $0x218] sm:$0xff] }
 0x7f7   : > { %11498 = vmatmul.mubr.msk.f32.gmra.mxu0 %vm3417_vm3, %v11490_v12  ;;  %11519 = vmatmul.mubr.msk.f32.vlgmr.msra.gmra.mxu1 %vm3417_vm3, %v11511_v36 }
 0x7f8   : > { %12384 = vmatpush3.msra.mxu1 %v16157_v3  ;;  %v16402_v13 = vpop.permute.xlu1 %8830  ;;  %6936 = vmatprep.mubr.f32.mxu0 %v19291_v20  ;;  %v16431_v28 = vpop.permute.xlu0 %8578 }
 0x7f9   : > { %19493 = vst [vmem:[#allocation71_spill] sm:$0xff] %v16402_v13  ;;  %12385 = vmatprep.subr.mxu1 %v16193_v31  ;;  %7193 = vmatprep.mubr.f32.mxu1 %v19291_v20  ;;  %19497 = vst [vmem:[#allocation53_spill] sm:$0xff] %v16431_v28 }
 0x7fa   : > { %12386 = vmatpush3.msra.mxu1 %v16193_v31  ;;  %9600 = vrot.lane.b32.xlu1 %v16030_v62, %s12743_s15  ;;  %v11611_v62 = vld [vmem:[%s18942_s7 + $0x220] sm:$0xff] }
 0x7fb   : > { %11499 = vmatmul.mubr.msk.f32.gmra.mxu0 %vm3417_vm3, %v11491_v26  ;;  %11520 = vmatmul.mubr.msk.f32.gmra.mxu1 %vm3417_vm3, %v11512_v46  ;;  %v7387_v26 = vsel %vm1827_vm7, %v16170_v14, %v16193_v31 }
 0x7fc   : > { %v16415_v23 = vpop.permute.xlu1 %8838  ;;  %6942 = vmatprep.mubr.f32.mxu0 %v19291_v20  ;;  %7199 = vmatprep.mubr.f32.mxu1 %v19291_v20  ;;  %v16444_v48 = vpop.permute.xlu0 %8588 }
 0x7fd   : > { %19495 = vst [vmem:[#allocation86_spill] sm:$0xff] %v16415_v23  ;;  %19499 = vst [vmem:[#allocation50_spill] sm:$0xff] %v16444_v48 }
 0x7ff   : > { %11500 = vmatmul.mubr.msk.f32.gmra.mxu0 %vm3417_vm3, %v11492_v60  ;;  %11521 = vmatmul.mubr.msk.f32.gmra.mxu1 %vm3417_vm3, %v11513_v33  ;;  %v7386_v60 = vsel %vm1827_vm7, %v16245_v42, %v16170_v14  ;;  %v11540_v14 = vld [vmem:[%s18942_s7 + $0x168] sm:$0xff]  ;;  %v11541_v42 = vld [vmem:[%s18942_s7 + $0x170] sm:$0xff] }
 0x800   : > { %v16424_v61 = vpop.permute.xlu1 %8846  ;;  %6948 = vmatprep.mubr.f32.mxu0 %v19291_v20  ;;  %7205 = vmatprep.mubr.f32.mxu1 %v19291_v20  ;;  %v16462_v32 = vpop.permute.xlu0 %8598 }
 0x801   : > { %19496 = vst [vmem:[#allocation91_spill] sm:$0xff] %v16424_v61  ;;  %19502 = vst [vmem:[#allocation65_spill] sm:$0xff] %v16462_v32 }
 0x803   : > { %11501 = vmatmul.mubr.msk.f32.gmra.mxu0 %vm3417_vm3, %v11493_v43  ;;  %11522 = vmatmul.mubr.msk.f32.gmra.mxu1 %vm3417_vm3, %v11514_v21  ;;  %v11539_v43 = vld [vmem:[%s18942_s7 + $0x160] sm:$0xff] }
 0x804   : > { %v16435_v25 = vpop.permute.xlu1 %8854  ;;  %6954 = vmatprep.mubr.f32.mxu0 %v19291_v20  ;;  %7211 = vmatprep.mubr.f32.mxu1 %v19291_v20  ;;  %v7381_v38 = vpop.permute.xlu0 %7380 }
 0x805   : > { %19498 = vst [vmem:[#allocation70_spill] sm:$0xff] %v16435_v25 }
 0x807   : > { %11502 = vmatmul.mubr.msk.f32.gmra.mxu0 %vm3417_vm3, %v11494_v30  ;;  %11523 = vmatmul.mubr.msk.f32.gmra.mxu1 %vm3417_vm3, %v11515_v1 }
 0x808   : > { %v16446_v4 = vpop.permute.xlu1 %8862  ;;  %7217 = vmatprep.mubr.f32.mxu1 %v19291_v20  ;;  %12371 = vmatprep.mubr.msk.f32.mxu0 %vm3417_vm3, %v11511_v36  ;;  %v11542_v36 = vld [vmem:[%s18942_s7 + $0x178] sm:$0xff] }
 0x809   : > { %19500 = vst [vmem:[#allocation32_spill] sm:$0xff] %v16446_v4 }
 0x80b   : > { %11524 = vmatmul.mubr.msk.f32.gmra.mxu1 %vm3417_vm3, %v11516_v47  ;;  %12372 = vmatmul.mubr.msk.f32.vlgmr.msra.gmra.mxu0 %vm3417_vm3, %v11512_v46 }
 0x80c   : > { %v16455_v63 = vpop.permute.xlu1 %9063  ;;  %7223 = vmatprep.mubr.f32.mxu1 %v19291_v20  ;;  %12374 = vmatprep.mubr.msk.f32.mxu0 %vm3417_vm3, %v11513_v33 }
 0x80d   : > { %19501 = vst [vmem:[#allocation8_spill] sm:$0xff] %v16455_v63 }
 0x80f   : > { %11525 = vmatmul.mubr.msk.f32.gmra.mxu1 %vm3417_vm3, %v11517_v18  ;;  %12375 = vmatmul.mubr.msk.f32.gmra.mxu0 %vm3417_vm3, %v11514_v21 }
 0x810   : > { %v16466_v57 = vpop.permute.xlu1 %9071  ;;  %7229 = vmatprep.mubr.f32.mxu1 %v19291_v20  ;;  %12377 = vmatprep.mubr.msk.f32.mxu0 %vm3417_vm3, %v11515_v1  ;;  %v7684_v1 = vsel %vm2117_vm8, %v16280_v2, %v16210_v8 }
 0x811   : > { %19503 = vst [vmem:[#allocation16_spill] sm:$0xff] %v16466_v57  ;;  %v16828_v57 = vld [vmem:[#allocation5 + $0xc8] sm:$0xff] }
 0x813   : > { %11526 = vmatmul.mubr.msk.f32.gmra.mxu1 %vm3417_vm3, %v11518_v52  ;;  %12378 = vmatmul.mubr.msk.f32.gmra.mxu0 %vm3417_vm3, %v11516_v47  ;;  %v7683_v47 = vsel %vm2117_vm8, %v16299_v0, %v16280_v2  ;;  %v11561_v0 = vld [vmem:[%s18942_s7 + $0x190] sm:$0xff] }
 0x814   : > { %v7383_v15 = vpop.permute.xlu1 %7382  ;;  %12380 = vmatprep.mubr.msk.f32.mxu0 %vm3417_vm3, %v11517_v18  ;;  %12387 = vmatprep.mubr.msk.f32.mxu1 %vm3417_vm3, %v11535_v34 }
 0x815   : > { %v7389_v51 = vsel %vm1827_vm7, %v7383_v15, %v16157_v3  ;;  %v7388_v49 = vsel %vm1827_vm7, %v7381_v38, %v7383_v15  ;;  %v11538_v3 = vld [vmem:[%s18942_s7 + $0x158] sm:$0xff]  ;;  %vm8870_vm7 = vcmask 334848  }
 0x816   : > { %7448 = vmatprep.subr.mxu0 %v7389_v51  ;;  %v11562_v38 = vld [vmem:[%s18942_s7 + $0x198] sm:$0xff] }
 0x817   : > { %12381 = vmatmul.mubr.msk.f32.gmra.mxu0 %vm3417_vm3, %v11518_v52  ;;  %12388 = vmatmul.mubr.msk.f32.vlgmr.msra.gmra.mxu1 %vm3417_vm3, %v11536_v50 }
 0x818   : > { %7449 = vmatpush1.msra.mxu0 %v7388_v49  ;;  %v16491_v12 = vpop.permute.xlu1 %9079  ;;  %7484 = vmatprep.mubr.f32.mxu0 %v19291_v20 }
 0x819   : > { %19504 = vst [vmem:[#allocation57_spill] sm:$0xff] %v16491_v12  ;;  %7450 = vmatprep.subr.mxu0 %v7387_v26  ;;  %12390 = vmatprep.mubr.msk.f32.mxu1 %vm3417_vm3, %v11537_v10 }
 0x81a   : > { %7451 = vmatpush1.msra.mxu0 %v7386_v60  ;;  %v11565_v60 = vld [vmem:[%s18942_s7 + $0x1b0] sm:$0xff] }
 0x81b   : > { %11543 = vmatmul.mubr.msk.f32.vlgmr.msra.gmra.mxu0 %vm3417_vm3, %v11535_v34  ;;  %12391 = vmatmul.mubr.msk.f32.gmra.mxu1 %vm3417_vm3, %v11538_v3  ;;  %v16572_v34 = vpop.permute.xlu0 %9119 }
 0x81c   : > { %12399 = vmatprep.subr.mxu0 %v16259_v54  ;;  %v16510_v31 = vpop.permute.xlu1 %9087  ;;  %7490 = vmatprep.mubr.f32.mxu0 %v19291_v20  ;;  %19509 = vst [vmem:[#allocation6_spill] sm:$0xff] %v16572_v34 }
 0x81d   : > { %19505 = vst [vmem:[#allocation54_spill] sm:$0xff] %v16510_v31  ;;  %12400 = vmatpush3.msra.mxu0 %v16259_v54  ;;  %12393 = vmatprep.mubr.msk.f32.mxu1 %vm3417_vm3, %v11539_v43 }
 0x81e   : > { %12401 = vmatprep.subr.mxu0 %v16210_v8 }
 0x81f   : > { %12402 = vmatpush3.msra.mxu0 %v16210_v8  ;;  %12394 = vmatmul.mubr.msk.f32.gmra.mxu1 %vm3417_vm3, %v11540_v14  ;;  %v11560_v8 = vld [vmem:[%s18942_s7 + $0x188] sm:$0xff]  ;;  %v16588_v51 = vpop.permute.xlu0 %9111 }
 0x820   : > { %11544 = vmatmul.mubr.msk.f32.gmra.mxu0 %vm3417_vm3, %v11536_v50  ;;  %v7680_v30 = vpop.permute.xlu1 %7679  ;;  %12396 = vmatprep.mubr.msk.f32.mxu1 %vm3417_vm3, %v11541_v42  ;;  %v11563_v50 = vld [vmem:[%s18942_s7 + $0x1a0] sm:$0xff]  ;;  %19511 = vst [vmem:[#allocation52_spill] sm:$0xff] %v16588_v51  ;;  %v16846_v51 = vld [vmem:[#allocation5 + $0x78] sm:$0xff] }
 0x821   : > { %7496 = vmatprep.mubr.f32.mxu0 %v19291_v20  ;;  %v7686_v46 = vsel %vm2117_vm8, %v7680_v30, %v16259_v54  ;;  %v11559_v54 = vld [vmem:[%s18942_s7 + $0x180] sm:$0xff] }
 0x822   : > { %7745 = vmatprep.subr.mxu1 %v7686_v46 }
 0x823   : > { %12397 = vmatmul.mubr.msk.f32.gmra.mxu1 %vm3417_vm3, %v11542_v36 }
 0x824   : > { %11545 = vmatmul.mubr.msk.f32.gmra.mxu0 %vm3417_vm3, %v11537_v10  ;;  %v7678_v33 = vpop.permute.xlu1 %7677  ;;  %7781 = vmatprep.mubr.f32.mxu1 %v19291_v20  ;;  %v11564_v10 = vld [vmem:[%s18942_s7 + $0x1a8] sm:$0xff] }
 0x825   : > { %v7685_v21 = vsel %vm2117_vm8, %v7678_v33, %v7680_v30  ;;  %7502 = vmatprep.mubr.f32.mxu0 %v19291_v20  ;;  %vm9127_vm8 = vcmask 343040  }
 0x826   : > { %7746 = vmatpush1.msra.mxu1 %v7685_v21  ;;  %v7981_v21 = vsel %vm2407_vm9, %v16248_v27, %v16318_v59 }
 0x827   : > { %7747 = vmatprep.subr.mxu1 %v7684_v1  ;;  %v11584_v1 = vld [vmem:[%s18942_s7 + $0x1c8] sm:$0xff] }
 0x828   : > { %11546 = vmatmul.mubr.msk.f32.gmra.mxu0 %vm3417_vm3, %v11538_v3  ;;  %v16547_v18 = vpop.permute.xlu1 %9095  ;;  %7748 = vmatpush1.msra.mxu1 %v7683_v47  ;;  %v16603_v3 = vpop.permute.xlu0 %9103  ;;  %v11585_v47 = vld [vmem:[%s18942_s7 + $0x1d0] sm:$0xff] }
 0x829   : > { %19506 = vst [vmem:[#allocation58_spill] sm:$0xff] %v16547_v18  ;;  %7508 = vmatprep.mubr.f32.mxu0 %v19291_v20  ;;  %11567 = vmatmul.mubr.msk.f32.vlgmr.msra.gmra.mxu1 %vm3417_vm3, %v11559_v54  ;;  %19514 = vst [vmem:[#allocation90_spill] sm:$0xff] %v16603_v3 }
 0x82a   : > { %12415 = vmatprep.subr.mxu1 %v16232_v29  ;;  %7787 = vmatprep.mubr.f32.mxu1 %v19291_v20 }
 0x82b   : > { %12416 = vmatpush3.msra.mxu1 %v16232_v29 }
 0x82c   : > { %11547 = vmatmul.mubr.msk.f32.gmra.mxu0 %vm3417_vm3, %v11539_v43  ;;  %12417 = vmatprep.subr.mxu1 %v16318_v59  ;;  %v16559_v2 = vpop.permute.xlu1 %9378 }
 0x82d   : > { %19507 = vst [vmem:[#allocation101_spill] sm:$0xff] %v16559_v2  ;;  %12418 = vmatpush3.msra.mxu1 %v16318_v59  ;;  %7514 = vmatprep.mubr.f32.mxu0 %v19291_v20 }
 0x82e   : > { %11568 = vmatmul.mubr.msk.f32.gmra.mxu1 %vm3417_vm3, %v11560_v8 }
 0x82f   : > { %7793 = vmatprep.mubr.f32.mxu1 %v19291_v20 }
 0x830   : > { %11548 = vmatmul.mubr.msk.f32.gmra.mxu0 %vm3417_vm3, %v11540_v14  ;;  %v16569_v52 = vpop.permute.xlu1 %9370  ;;  %v11566_v14 = vld [vmem:[%s18942_s7 + $0x1b8] sm:$0xff] }
 0x831   : > { %19508 = vst [vmem:[#allocation96_spill] sm:$0xff] %v16569_v52  ;;  %7520 = vmatprep.mubr.f32.mxu0 %v19291_v20 }
 0x832   : > { %11569 = vmatmul.mubr.msk.f32.gmra.mxu1 %vm3417_vm3, %v11561_v0 }
 0x833   : > { %7799 = vmatprep.mubr.f32.mxu1 %v19291_v20 }
 0x834   : > { %11549 = vmatmul.mubr.msk.f32.gmra.mxu0 %vm3417_vm3, %v11541_v42  ;;  %v16580_v15 = vpop.permute.xlu1 %9362  ;;  %v7975_v42 = vpop.permute.xlu0 %7974 }
 0x835   : > { %19510 = vst [vmem:[#allocation110_spill] sm:$0xff] %v16580_v15  ;;  %7526 = vmatprep.mubr.f32.mxu0 %v19291_v20  ;;  %v16809_v15 = vld [vmem:[#allocation5 + $0xf0] sm:$0xff] }
 0x836   : > { %11570 = vmatmul.mubr.msk.f32.gmra.mxu1 %vm3417_vm3, %v11562_v38 }
 0x837   : > { %7805 = vmatprep.mubr.f32.mxu1 %v19291_v20 }
 0x838   : > { %11550 = vmatmul.mubr.msk.f32.gmra.mxu0 %vm3417_vm3, %v11542_v36  ;;  %v16591_v49 = vpop.permute.xlu1 %9354  ;;  %v11583_v36 = vld [vmem:[%s18942_s7 + $0x1c0] sm:$0xff] }
 0x839   : > { %19512 = vst [vmem:[#allocation25_spill] sm:$0xff] %v16591_v49  ;;  %12403 = vmatprep.mubr.msk.f32.mxu0 %vm3417_vm3, %v11559_v54 }
 0x83a   : > { %11571 = vmatmul.mubr.msk.f32.gmra.mxu1 %vm3417_vm3, %v11563_v50 }
 0x83b   : > { %7811 = vmatprep.mubr.f32.mxu1 %v19291_v20 }
 0x83c   : > { %12404 = vmatmul.mubr.msk.f32.vlgmr.msra.gmra.mxu0 %vm3417_vm3, %v11560_v8  ;;  %v16600_v26 = vpop.permute.xlu1 %9346 }
 0x83d   : > { %19513 = vst [vmem:[#allocation10_spill] sm:$0xff] %v16600_v26  ;;  %12406 = vmatprep.mubr.msk.f32.mxu0 %vm3417_vm3, %v11561_v0  ;;  %v11589_v0 = vld [vmem:[%s18942_s7 + $0x1f0] sm:$0xff] }
 0x83e   : > { %11572 = vmatmul.mubr.msk.f32.gmra.mxu1 %vm3417_vm3, %v11564_v10 }
 0x83f   : > { %7817 = vmatprep.mubr.f32.mxu1 %v19291_v20 }
 0x840   : > { %12407 = vmatmul.mubr.msk.f32.gmra.mxu0 %vm3417_vm3, %v11562_v38  ;;  %v16611_v43 = vpop.permute.xlu1 %9338 }
 0x841   : > { %19515 = vst [vmem:[#allocation103_spill] sm:$0xff] %v16611_v43  ;;  %12409 = vmatprep.mubr.msk.f32.mxu0 %vm3417_vm3, %v11563_v50  ;;  %v11590_v50 = vld [vmem:[%s18942_s7 + $0x1f8] sm:$0xff] }
 0x842   : > { %11573 = vmatmul.mubr.msk.f32.gmra.mxu1 %vm3417_vm3, %v11565_v60 }
 0x843   : > { %7823 = vmatprep.mubr.f32.mxu1 %v19291_v20 }
 0x844   : > { %12410 = vmatmul.mubr.msk.f32.gmra.mxu0 %vm3417_vm3, %v11564_v10  ;;  %v7977_v30 = vpop.permute.xlu1 %7976 }
 0x845   : > { %12412 = vmatprep.mubr.msk.f32.mxu0 %vm3417_vm3, %v11565_v60  ;;  %v7983_v46 = vsel %vm2407_vm9, %v7977_v30, %v16232_v29  ;;  %v7982_v33 = vsel %vm2407_vm9, %v7975_v42, %v7977_v30  ;;  %v7980_v29 = vsel %vm2407_vm9, %v16333_v37, %v16248_v27  ;;  %v11586_v27 = vld [vmem:[%s18942_s7 + $0x1d8] sm:$0xff]  ;;  %v11587_v37 = vld [vmem:[%s18942_s7 + $0x1e0] sm:$0xff]  ;;  %v8278_v42 = vsel %vm2697_vm11, %v16385_v39, %v16269_v17 }
 0x846   : > { %11574 = vmatmul.mubr.msk.f32.gmra.mxu1 %vm3417_vm3, %v11566_v14  ;;  %8042 = vmatprep.subr.mxu0 %v7983_v46  ;;  %vm10432_vm9 = vcmask 15360  }
 0x847   : > { %8043 = vmatpush1.msra.mxu0 %v7982_v33  ;;  %12419 = vmatprep.mubr.msk.f32.mxu1 %vm3417_vm3, %v11583_v36 }
 0x848   : > { %12413 = vmatmul.mubr.msk.f32.gmra.mxu0 %vm3417_vm3, %v11566_v14  ;;  %v16639_v54 = vpop.permute.xlu1 %9330  ;;  %8044 = vmatprep.subr.mxu0 %v7981_v21 }
 0x849   : > { %19516 = vst [vmem:[#allocation44_spill] sm:$0xff] %v16639_v54  ;;  %8045 = vmatpush1.msra.mxu0 %v7980_v29  ;;  %8078 = vmatprep.mubr.f32.mxu0 %v19291_v20  ;;  %v16793_v54 = vld [vmem:[#allocation5 + $0x118] sm:$0xff] }
 0x84a   : > { %12420 = vmatmul.mubr.msk.f32.vlgmr.msra.gmra.mxu1 %vm3417_vm3, %v11584_v1  ;;  %12431 = vmatprep.subr.mxu0 %v16360_v58 }
 0x84b   : > { %12422 = vmatprep.mubr.msk.f32.mxu1 %vm3417_vm3, %v11585_v47 }
 0x84c   : > { %11591 = vmatmul.mubr.msk.f32.vlgmr.msra.gmra.mxu0 %vm3417_vm3, %v11583_v36  ;;  %v16654_v59 = vpop.permute.xlu1 %9322  ;;  %v8277_v36 = vsel %vm2697_vm11, %v16399_v7, %v16385_v39  ;;  %v11608_v39 = vld [vmem:[%s18942_s7 + $0x208] sm:$0xff] }
 0x84d   : > { %19517 = vst [vmem:[#allocation14_spill] sm:$0xff] %v16654_v59  ;;  %12432 = vmatpush3.msra.mxu0 %v16360_v58  ;;  %8084 = vmatprep.mubr.f32.mxu0 %v19291_v20 }
 0x84e   : > { %12433 = vmatprep.subr.mxu0 %v16269_v17  ;;  %12423 = vmatmul.mubr.msk.f32.gmra.mxu1 %vm3417_vm3, %v11586_v27 }
 0x84f   : > { %12434 = vmatpush3.msra.mxu0 %v16269_v17  ;;  %12425 = vmatprep.mubr.msk.f32.mxu1 %vm3417_vm3, %v11587_v37 }
 0x850   : > { %11592 = vmatmul.mubr.msk.f32.gmra.mxu0 %vm3417_vm3, %v11584_v1  ;;  %v8274_v8 = vpop.permute.xlu1 %8273 }
 0x851   : > { %8090 = vmatprep.mubr.f32.mxu0 %v19291_v20  ;;  %v8280_v38 = vsel %vm2697_vm11, %v8274_v8, %v16360_v58 }
 0x852   : > { %12426 = vmatmul.mubr.msk.f32.gmra.mxu1 %vm3417_vm3, %v11588_v40  ;;  %8339 = vmatprep.subr.mxu1 %v8280_v38  ;;  %v16761_v38 = vld [vmem:[#allocation5 + $0x28] sm:$0xff] }
 0x853   : > { %12428 = vmatprep.mubr.msk.f32.mxu1 %vm3417_vm3, %v11589_v0  ;;  %9592 = vrot.lane.b32.xlu1 %v16761_v38, %s12743_s15 }
 0x854   : > { %11593 = vmatmul.mubr.msk.f32.gmra.mxu0 %vm3417_vm3, %v11585_v47  ;;  %v8272_v10 = vpop.permute.xlu1 %8271  ;;  %v16683_v60 = vpop.f32.mrf.mxu1 }
 0x855   : > { %v8279_v41 = vsel %vm2697_vm11, %v8272_v10, %v8274_v8  ;;  %8096 = vmatprep.mubr.f32.mxu0 %v19291_v20  ;;  %v16689_v58 = vpop.f32.mrf.mxu0  ;;  %vm9648_vm11 = vcmask 179200  }
 0x856   : > { %12429 = vmatmul.mubr.msk.f32.gmra.mxu1 %vm3417_vm3, %v11590_v50  ;;  %v16692_v14 = vpop.f32.mrf.mxu1 }
 0x857   : > { %8340 = vmatpush1.msra.mxu1 %v8279_v41  ;;  %8375 = vmatprep.mubr.f32.mxu1 %v19291_v20  ;;  %v16701_v30 = vpop.f32.mrf.mxu0 }
 0x858   : > { %11594 = vmatmul.mubr.msk.f32.gmra.mxu0 %vm3417_vm3, %v11586_v27  ;;  %8341 = vmatprep.subr.mxu1 %v8278_v42  ;;  %v16707_v46 = vpop.f32.mrf.mxu1  ;;  %v16776_v42 = vld [vmem:[#allocation5] sm:$0xff] }
 0x859   : > { %8342 = vmatpush1.msra.mxu1 %v8277_v36  ;;  %8102 = vmatprep.mubr.f32.mxu0 %v19291_v20  ;;  %v16710_v17 = vpop.f32.mrf.mxu0 }
 0x85a   : > { %11615 = vmatmul.mubr.msk.f32.vlgmr.msra.gmra.mxu1 %vm3417_vm3, %v11607_v16  ;;  %v16713_v33 = vpop.f32.mrf.mxu1  ;;  %12447 = vmatprep.subr.mxu1 %v19291_v20 }
 0x85b   : > { %8381 = vmatprep.mubr.f32.mxu1 %v19291_v20  ;;  %v16726_v21 = vpop.f32.mrf.mxu0  ;;  %9584 = vrot.lane.b32.xlu1 %v16776_v42, %s12743_s15 }
 0x85c   : > { %11595 = vmatmul.mubr.msk.f32.gmra.mxu0 %vm3417_vm3, %v11587_v37  ;;  %v16723_v7 = vpop.f32.mrf.mxu1 }
 0x85d   : > { %8108 = vmatprep.mubr.f32.mxu0 %v19291_v20  ;;  %v16741_v47 = vpop.f32.mrf.mxu0 }
 0x85e   : > { %11616 = vmatmul.mubr.msk.f32.gmra.mxu1 %vm3417_vm3, %v11608_v39  ;;  %v16729_v1 = vpop.f32.mrf.mxu1 }
 0x85f   : > { %8387 = vmatprep.mubr.f32.mxu1 %v19291_v20  ;;  %9902 = vrot.lane.b32.xlu1 %v16793_v54, %s12732_s26 }
 0x860   : > { %11596 = vmatmul.mubr.msk.f32.gmra.mxu0 %vm3417_vm3, %v11588_v40  ;;  %v16738_v29 = vpop.f32.mrf.mxu1  ;;  %v16756_v40 = vpop.f32.mrf.mxu0 }
 0x861   : > { %8114 = vmatprep.mubr.f32.mxu0 %v19291_v20 }
 0x862   : > { %11617 = vmatmul.mubr.msk.f32.gmra.mxu1 %vm3417_vm3, %v11609_v45  ;;  %v16744_v27 = vpop.f32.mrf.mxu1  ;;  %v12318_v10 = vpop.f32.mrf.mxu0 }
 0x863   : > { %8393 = vmatprep.mubr.f32.mxu1 %v19291_v20  ;;  %9894 = vrot.lane.b32.xlu1 %v16809_v15, %s12732_s26 }
 0x864   : > { %11597 = vmatmul.mubr.msk.f32.gmra.mxu0 %vm3417_vm3, %v11589_v0  ;;  %v16753_v37 = vpop.f32.mrf.mxu1 }
 0x865   : > { %8120 = vmatprep.mubr.f32.mxu0 %v19291_v20 }
 0x866   : > { %11618 = vmatmul.mubr.msk.f32.gmra.mxu1 %vm3417_vm3, %v11610_v5  ;;  %v16759_v8 = vpop.f32.mrf.mxu1 }
 0x867   : > { %8399 = vmatprep.mubr.f32.mxu1 %v19291_v20  ;;  %9886 = vrot.lane.b32.xlu1 %v16828_v57, %s12732_s26 }
 0x868   : > { %11598 = vmatmul.mubr.msk.f32.gmra.mxu0 %vm3417_vm3, %v11590_v50  ;;  %v16770_v0 = vpop.f32.mrf.mxu1  ;;  %v11612_v50 = vld [vmem:[%s18942_s7 + $0x228] sm:$0xff] }
 0x869   : > { %12435 = vmatprep.mubr.msk.f32.mxu0 %vm3417_vm3, %v11607_v16  ;;  %v16788_v16 = vpop.f32.mrf.mxu0 }
 0x86a   : > { %11619 = vmatmul.mubr.msk.f32.gmra.mxu1 %vm3417_vm3, %v11611_v62  ;;  %v16774_v41 = vpop.f32.mrf.mxu1 }
 0x86b   : > { %8405 = vmatprep.mubr.f32.mxu1 %v19291_v20 }
 0x86c   : > { %12436 = vmatmul.mubr.msk.f32.vlgmr.msra.gmra.mxu0 %vm3417_vm3, %v11608_v39  ;;  %v16785_v36 = vpop.f32.mrf.mxu1  ;;  %v11613_v39 = vld [vmem:[%s18942_s7 + $0x230] sm:$0xff] }
 0x86d   : > { %12438 = vmatprep.mubr.msk.f32.mxu0 %vm3417_vm3, %v11609_v45 }
 0x86e   : > { %11620 = vmatmul.mubr.msk.f32.gmra.mxu1 %vm3417_vm3, %v11612_v50  ;;  %v16791_v59 = vpop.f32.mrf.mxu1 }
 0x86f   : > { %8411 = vmatprep.mubr.f32.mxu1 %v19291_v20 }
 0x870   : > { %12439 = vmatmul.mubr.msk.f32.gmra.mxu0 %vm3417_vm3, %v11610_v5  ;;  %v16802_v45 = vpop.f32.mrf.mxu1  ;;  %v11614_v5 = vld [vmem:[%s18942_s7 + $0x238] sm:$0xff] }
 0x871   : > { %v6322_v43 = vpop.f32.mrf.mxu0  ;;  %12441 = vmatprep.mubr.msk.f32.mxu0 %vm3417_vm3, %v11611_v62 }
 0x872   : > { %v6323_v26 = vadd.f32 %v6322_v43, %v16683_v60  ;;  %11621 = vmatmul.mubr.msk.f32.gmra.mxu1 %vm3417_vm3, %v11613_v39  ;;  %v16807_v49 = vpop.f32.mrf.mxu1 }
 0x873   : > { %v16813_v52 = vpop.f32.mrf.mxu0  ;;  %8417 = vmatprep.mubr.f32.mxu1 %v19291_v20 }
 0x874   : > { %12442 = vmatmul.mubr.msk.f32.gmra.mxu0 %vm3417_vm3, %v11612_v50  ;;  %v12325_v43 = vpop.f32.mrf.mxu1 }
 0x875   : > { %v16821_v60 = vadd.f32 %v12325_v43, %v16689_v58  ;;  %v6328_v62 = vpop.f32.mrf.mxu0  ;;  %12444 = vmatprep.mubr.msk.f32.mxu0 %vm3417_vm3, %v11613_v39 }
 0x876   : > { %v6329_v2 = vadd.f32 %v6328_v62, %v16707_v46  ;;  %11622 = vmatmul.mubr.msk.f32.gmra.mxu1 %vm3417_vm3, %v11614_v5  ;;  %v16826_v63 = vpop.f32.mrf.mxu1  ;;  %v16838_v62 = vld [vmem:[#allocation5 + $0xa0] sm:$0xff] }
 0x877   : > { %v6330_v12 = vpop.f32.mrf.mxu0  ;;  %9878 = vrot.lane.b32.xlu1 %v16838_v62, %s12732_s26 }
 0x878   : > { %12445 = vmatmul.mubr.msk.f32.gmra.mxu0 %vm3417_vm3, %v11614_v5  ;;  %v12328_v50 = vpop.f32.mrf.mxu1  ;;  %v6331_v25 = vadd.f32 %v6330_v12, %v16713_v33 }
 0x879   : > { %v16834_v58 = vadd.f32 %v12328_v50, %v16710_v17  ;;  %v6334_v43 = vpop.f32.mrf.mxu0  ;;  %8986 = vmatprep.mubr.f32.mxu0 %v19291_v20 }
 0x87a   : > { %v6335_v46 = vadd.f32 %v6334_v43, %v16723_v7  ;;  %v6445_v39 = vpop.f32.mrf.mxu1 }
 0x87b   : > { %v6336_v31 = vpop.f32.mrf.mxu0  ;;  %9870 = vrot.lane.b32.xlu1 %v16846_v51, %s12732_s26 }
 0x87c   : > { %v12331_v18 = vpop.f32.mrf.mxu1 }
 0x87d   : > { %v16843_v3 = vadd.f32 %v12331_v18, %v16741_v47  ;;  %v6340_v5 = vpop.f32.mrf.mxu0 }
 0x87e   : > { %v6341_v17 = vadd.f32 %v6340_v5, %v16738_v29  ;;  %v6455_v50 = vpop.f32.mrf.mxu1 }
 0x87f   : > { %v6342_v7 = vpop.f32.mrf.mxu0  ;;  %9862 = vrot.lane.b32.xlu1 %v16854_v6, %s12732_s26 }
 0x880   : > { %v12334_v43 = vpop.f32.mrf.mxu1 }
 0x881   : > { %v16850_v34 = vadd.f32 %v12334_v43, %v12318_v10 }
 0x882   : > { %v6346_v35 = vpop.f32.mrf.mxu0  ;;  %v16852_v24 = vpop.f32.mrf.mxu1 }
 0x883   : > { %v6347_v18 = vadd.f32 %v6346_v35, %v16753_v37  ;;  %9854 = vrot.lane.b32.xlu1 %v16761_v38, %s12732_s26 }
 0x884   : > { %v6348_v29 = vpop.f32.mrf.mxu0 }
 0x885   : > { %v6595_v47 = vpop.f32.mrf.mxu1 }
 0x886   : > { %v16859_v5 = vadd.f32 %v6595_v47, %v6323_v26  ;;  %v6352_v13 = vpop.f32.mrf.mxu0 }
 0x887   : > { %v6353_v10 = vadd.f32 %v6352_v13, %v16770_v0  ;;  %v16864_v43 = vpop.f32.mrf.mxu1  ;;  %9846 = vrot.lane.b32.xlu1 %v16776_v42, %s12732_s26  ;;  %v6337_v13 = vadd.f32 %v6336_v31, %v16729_v1 }
 0x888   : > { %v6354_v23 = vpop.f32.mrf.mxu0 }
 0x889   : > { %v6601_v61 = vpop.f32.mrf.mxu1 }
 0x88a   : > { %v16867_v4 = vadd.f32 %v6601_v61, %v6329_v2  ;;  %v6358_v32 = vpop.f32.mrf.mxu0 }
 0x88b   : > { %v6359_v35 = vadd.f32 %v6358_v32, %v16785_v36  ;;  %v6603_v26 = vpop.f32.mrf.mxu1  ;;  %10163 = vrot.lane.b32.xlu1 %v16793_v54, %s12731_s25 }
 0x88c   : > { %v16872_v37 = vadd.f32 %v6603_v26, %v6331_v25  ;;  %v6360_v47 = vpop.f32.mrf.mxu0  ;;  %v6343_v25 = vadd.f32 %v6342_v7, %v16744_v27  ;;  %v6446_v27 = vadd.f32 %v6445_v39, %v16726_v21 }
 0x88d   : > { %v6607_v11 = vpop.f32.mrf.mxu1 }
 0x88e   : > { %v16875_v0 = vadd.f32 %v6607_v11, %v6335_v46  ;;  %v6364_v20 = vpop.f32.mrf.mxu0 }
 0x88f   : > { %v6365_v61 = vadd.f32 %v6364_v20, %v16802_v45  ;;  %v6609_v12 = vpop.f32.mrf.mxu1  ;;  %10155 = vrot.lane.b32.xlu1 %v16809_v15, %s12731_s25  ;;  %v6349_v45 = vadd.f32 %v6348_v29, %v16759_v8 }
 0x890   : > { %v16880_v2 = vadd.f32 %v6609_v12, %v6337_v13  ;;  %v6366_v33 = vpop.f32.mrf.mxu0 }
 0x891   : > { %v6613_v32 = vpop.f32.mrf.mxu1 }
 0x892   : > { %v16883_v36 = vadd.f32 %v6613_v32, %v6341_v17  ;;  %v12341_v26 = vpop.f32.mrf.mxu0 }
 0x893   : > { %v6752_v11 = vadd.f32 %v12341_v26, %v16821_v60  ;;  %v6615_v31 = vpop.f32.mrf.mxu1  ;;  %10147 = vrot.lane.b32.xlu1 %v16828_v57, %s12731_s25  ;;  %v6456_v57 = vadd.f32 %v6455_v50, %v16756_v40 }
 0x894   : > { %v16888_v1 = vadd.f32 %v6615_v31, %v6343_v25  ;;  %v6708_v54 = vpop.f32.mrf.mxu0  ;;  %v6355_v25 = vadd.f32 %v6354_v23, %v16774_v41  ;;  %v6466_v41 = vadd.f32 %v16852_v24, %v16788_v16  ;;  %v6436_v24 = vadd.f32 %v16826_v63, %v16701_v30 }
 0x895   : > { %v6619_v20 = vpop.f32.mrf.mxu1 }
 0x896   : > { %v16891_v46 = vadd.f32 %v6619_v20, %v6347_v18  ;;  %v12344_v13 = vpop.f32.mrf.mxu0  ;;  %v6361_v20 = vadd.f32 %v6360_v47, %v16791_v59  ;;  %v6749_v16 = vadd.f32 %v6708_v54, %v6436_v24 }
 0x897   : > { %v6758_v17 = vadd.f32 %v12344_v13, %v16834_v58  ;;  %v6621_v15 = vpop.f32.mrf.mxu1  ;;  %10139 = vrot.lane.b32.xlu1 %v16838_v62, %s12731_s25 }
 0x898   : > { %v16897_v7 = vadd.f32 %v6621_v15, %v6349_v45  ;;  %v6718_v60 = vpop.f32.mrf.mxu0 }
 0x899   : > { %v6755_v12 = vadd.f32 %v6718_v60, %v6446_v27  ;;  %v6625_v32 = vpop.f32.mrf.mxu1  ;;  %v6367_v27 = vadd.f32 %v6366_v33, %v16807_v49 }
 0x89a   : > { %v16900_v26 = vadd.f32 %v6625_v32, %v6353_v10  ;;  %v12347_v8 = vpop.f32.mrf.mxu0 }
 0x89b   : > { %v6764_v21 = vadd.f32 %v12347_v8, %v16843_v3  ;;  %v6627_v39 = vpop.f32.mrf.mxu1  ;;  %10131 = vrot.lane.b32.xlu1 %v16846_v51, %s12731_s25 }
 0x89c   : > { %v16906_v58 = vadd.f32 %v6627_v39, %v6355_v25  ;;  %v6728_v18 = vpop.f32.mrf.mxu0 }
 0x89d   : > { %v6761_v29 = vadd.f32 %v6728_v18, %v6456_v57  ;;  %v6631_v31 = vpop.f32.mrf.mxu1 }
 0x89e   : > { %v16909_v45 = vadd.f32 %v6631_v31, %v6359_v35  ;;  %v12350_v23 = vpop.f32.mrf.mxu0 }
 0x89f   : > { %v6770_v40 = vadd.f32 %v12350_v23, %v16850_v34  ;;  %v6633_v3 = vpop.f32.mrf.mxu1  ;;  %10123 = vrot.lane.b32.xlu1 %v16854_v6, %s12731_s25 }
 0x8a0   : > { %v16916_v62 = vadd.f32 %v6633_v3, %v6361_v20  ;;  %v6738_v50 = vpop.f32.mrf.mxu0 }
 0x8a1   : > { %v6767_v10 = vadd.f32 %v6738_v50, %v6466_v41  ;;  %v6637_v13 = vpop.f32.mrf.mxu1 }
 0x8a2   : > { %v16919_v59 = vadd.f32 %v6637_v13, %v6365_v61  ;;  %v6325_v61 = vadd.f32 %v16813_v52, %v16692_v14 }
 0x8a3   : > { %v6639_v35 = vpop.f32.mrf.mxu1  ;;  %10115 = vrot.lane.b32.xlu1 %v16761_v38, %s12731_s25 }
 0x8a4   : > { %v16923_v51 = vadd.f32 %v6639_v35, %v6367_v27  ;;  %v6748_v63 = vadd.f32 %v16864_v43, %v6325_v61 }
 0x8a6   : > { %v12357_v34 = vpop.f32.mrf.mxu1 }
 0x8a7   : > { %v16929_v47 = vadd.f32 %v12357_v34, %v6752_v11  ;;  %10107 = vrot.lane.b32.xlu1 %v16776_v42, %s12731_s25 }
 0x8a8   : > { %v7027_v15 = vpop.f32.mrf.mxu1 }
 0x8a9   : > { %v16931_v49 = vadd.f32 %v7027_v15, %v6749_v16 }
 0x8ab   : > { %v6914_v6 = vpop.f32.mrf.mxu0  ;;  %v12360_v33 = vpop.f32.mrf.mxu1 }
 0x8ac   : > { %v7066_v30 = vadd.f32 %v6914_v6, %v16859_v5  ;;  %v16939_v60 = vadd.f32 %v12360_v33, %v6758_v17 }
 0x8ad   : > { %v6916_v38 = vpop.f32.mrf.mxu0  ;;  %v7037_v11 = vpop.f32.mrf.mxu1 }
 0x8ae   : > { %v7067_v54 = vadd.f32 %v6916_v38, %v6748_v63  ;;  %v16941_v32 = vadd.f32 %v7037_v11, %v6755_v12 }
 0x8af   : > { %v6920_v25 = vpop.f32.mrf.mxu0  ;;  %v12363_v8 = vpop.f32.mrf.mxu1 }
 0x8b0   : > { %v7069_v52 = vadd.f32 %v6920_v25, %v16867_v4  ;;  %v16944_v14 = vadd.f32 %v12363_v8, %v6764_v21 }
 0x8b1   : > { %v6922_v42 = vpop.f32.mrf.mxu0  ;;  %v7047_v57 = vpop.f32.mrf.mxu1 }
 0x8b2   : > { %v7070_v39 = vadd.f32 %v6922_v42, %v16872_v37  ;;  %v16947_v43 = vadd.f32 %v7047_v57, %v6761_v29 }
 0x8b3   : > { %v6926_v5 = vpop.f32.mrf.mxu0  ;;  %v12366_v17 = vpop.f32.mrf.mxu1 }
 0x8b4   : > { %v7072_v18 = vadd.f32 %v6926_v5, %v16875_v0  ;;  %v16950_v31 = vadd.f32 %v12366_v17, %v6770_v40 }
 0x8b5   : > { %v6928_v12 = vpop.f32.mrf.mxu0  ;;  %v7057_v20 = vpop.f32.mrf.mxu1 }
 0x8b6   : > { %v7073_v23 = vadd.f32 %v6928_v12, %v16880_v2  ;;  %v16953_v41 = vadd.f32 %v7057_v20, %v6767_v10 }
 0x8b7   : > { %v6932_v4 = vpop.f32.mrf.mxu0  ;;  %v7189_v21 = vpop.f32.mrf.mxu1 }
 0x8b8   : > { %v7075_v3 = vadd.f32 %v6932_v4, %v16883_v36  ;;  %v16956_v50 = vadd.f32 %v7189_v21, %v7066_v30 }
 0x8b9   : > { %v6934_v37 = vpop.f32.mrf.mxu0  ;;  %v7191_v29 = vpop.f32.mrf.mxu1 }
 0x8ba   : > { %v7076_v13 = vadd.f32 %v6934_v37, %v16888_v1  ;;  %v16959_v27 = vadd.f32 %v7191_v29, %v7067_v54 }
 0x8bb   : > { %v6938_v0 = vpop.f32.mrf.mxu0  ;;  %v7195_v40 = vpop.f32.mrf.mxu1 }
 0x8bc   : > { %v7078_v35 = vadd.f32 %v6938_v0, %v16891_v46  ;;  %v16962_v24 = vadd.f32 %v7195_v40, %v7069_v52 }
 0x8bd   : > { %v6940_v2 = vpop.f32.mrf.mxu0  ;;  %v7197_v10 = vpop.f32.mrf.mxu1 }
 0x8be   : > { %v7079_v34 = vadd.f32 %v6940_v2, %v16897_v7  ;;  %v16965_v16 = vadd.f32 %v7197_v10, %v7070_v39 }
 0x8bf   : > { %v6944_v36 = vpop.f32.mrf.mxu0  ;;  %v7201_v15 = vpop.f32.mrf.mxu1 }
 0x8c0   : > { %v7081_v61 = vadd.f32 %v6944_v36, %v16900_v26  ;;  %v16968_v6 = vadd.f32 %v7201_v15, %v7072_v18 }
 0x8c1   : > { %v6946_v1 = vpop.f32.mrf.mxu0  ;;  %v7203_v33 = vpop.f32.mrf.mxu1 }
 0x8c2   : > { %v7082_v63 = vadd.f32 %v6946_v1, %v16906_v58  ;;  %v16971_v30 = vadd.f32 %v7203_v33, %v7073_v23 }
 0x8c3   : > { %v6950_v46 = vpop.f32.mrf.mxu0  ;;  %v7207_v38 = vpop.f32.mrf.mxu1 }
 0x8c4   : > { %v7084_v11 = vadd.f32 %v6950_v46, %v16909_v45  ;;  %v16974_v54 = vadd.f32 %v7207_v38, %v7075_v3 }
 0x8c5   : > { %v6952_v7 = vpop.f32.mrf.mxu0  ;;  %v7209_v25 = vpop.f32.mrf.mxu1 }
 0x8c6   : > { %v7085_v8 = vadd.f32 %v6952_v7, %v16916_v62  ;;  %v16977_v52 = vadd.f32 %v7209_v25, %v7076_v13 }
 0x8c7   : > { %v6956_v26 = vpop.f32.mrf.mxu0  ;;  %v7213_v42 = vpop.f32.mrf.mxu1 }
 0x8c8   : > { %v7087_v57 = vadd.f32 %v6956_v26, %v16919_v59  ;;  %v16980_v39 = vadd.f32 %v7213_v42, %v7078_v35 }
 0x8c9   : > { %v6958_v58 = vpop.f32.mrf.mxu0  ;;  %v7215_v5 = vpop.f32.mrf.mxu1 }
 0x8ca   : > { %v7088_v17 = vadd.f32 %v6958_v58, %v16923_v51  ;;  %v16983_v18 = vadd.f32 %v7215_v5, %v7079_v34 }
 0x8cb   : > { %v7219_v45 = vpop.f32.mrf.mxu1  ;;  %v12373_v12 = vpop.f32.mrf.mxu0 }
 0x8cc   : > { %v16985_v20 = vadd.f32 %v7219_v45, %v7081_v61  ;;  %v7346_v62 = vadd.f32 %v12373_v12, %v16929_v47 }
 0x8cd   : > { %v7221_v23 = vpop.f32.mrf.mxu1  ;;  %v7302_v4 = vpop.f32.mrf.mxu0 }
 0x8ce   : > { %v16988_v21 = vadd.f32 %v7221_v23, %v7082_v63  ;;  %v7343_v59 = vadd.f32 %v7302_v4, %v16931_v49 }
 0x8cf   : > { %v7225_v3 = vpop.f32.mrf.mxu1  ;;  %v12376_v37 = vpop.f32.mrf.mxu0 }
 0x8d0   : > { %v16991_v29 = vadd.f32 %v7225_v3, %v7084_v11  ;;  %v7352_v51 = vadd.f32 %v12376_v37, %v16939_v60 }
 0x8d1   : > { %v7227_v13 = vpop.f32.mrf.mxu1  ;;  %v7312_v0 = vpop.f32.mrf.mxu0 }
 0x8d2   : > { %v16994_v40 = vadd.f32 %v7227_v13, %v7085_v8  ;;  %v7349_v35 = vadd.f32 %v7312_v0, %v16941_v32 }
 0x8d3   : > { %v7231_v2 = vpop.f32.mrf.mxu1  ;;  %v12379_v47 = vpop.f32.mrf.mxu0 }
 0x8d4   : > { %v16997_v10 = vadd.f32 %v7231_v2, %v7087_v57  ;;  %v7358_v34 = vadd.f32 %v12379_v47, %v16944_v14 }
 0x8d5   : > { %v7233_v36 = vpop.f32.mrf.mxu1  ;;  %v7322_v49 = vpop.f32.mrf.mxu0 }
 0x8d6   : > { %v17000_v15 = vadd.f32 %v7233_v36, %v7088_v17  ;;  %v7355_v61 = vadd.f32 %v7322_v49, %v16947_v43 }
 0x8d7   : > { %v12382_v1 = vpop.f32.mrf.mxu0  ;;  %v12389_v60 = vpop.f32.mrf.mxu1 }
 0x8d8   : > { %v7364_v33 = vadd.f32 %v12382_v1, %v16950_v31  ;;  %v17004_v63 = vadd.f32 %v12389_v60, %v7346_v62 }
 0x8d9   : > { %v7332_v46 = vpop.f32.mrf.mxu0  ;;  %v7599_v32 = vpop.f32.mrf.mxu1 }
 0x8da   : > { %v7361_v38 = vadd.f32 %v7332_v46, %v16953_v41  ;;  %v17007_v11 = vadd.f32 %v7599_v32, %v7343_v59 }
 0x8db   : > { %v17009_v7 = vpop.f32.mrf.mxu0  ;;  %v12392_v14 = vpop.f32.mrf.mxu1 }
 0x8dc   : > { %v17011_v25 = vadd.f32 %v12392_v14, %v7352_v51 }
 0x8dd   : > { %v17013_v8 = vpop.f32.mrf.mxu0  ;;  %v7609_v43 = vpop.f32.mrf.mxu1 }
 0x8de   : > { %19518 = vst [vmem:[#allocation88_spill] sm:$0xff] %v17011_v25  ;;  %v17015_v26 = vadd.f32 %v7609_v43, %v7349_v35 }
 0x8df   : > { %v12395_v42 = vpop.f32.mrf.mxu1 }
 0x8e0   : > { %19519 = vst [vmem:[#allocation99_spill] sm:$0xff] %v17015_v26  ;;  %v17017_v31 = vpop.f32.mrf.mxu0  ;;  %v17019_v57 = vadd.f32 %v12395_v42, %v7358_v34 }
 0x8e1   : > { %v7619_v58 = vpop.f32.mrf.mxu1 }
 0x8e2   : > { %19520 = vst [vmem:[#allocation64_spill] sm:$0xff] %v17019_v57  ;;  %v17021_v5 = vpop.f32.mrf.mxu0  ;;  %v17023_v41 = vadd.f32 %v7619_v58, %v7355_v61 }
 0x8e3   : > { %v12398_v17 = vpop.f32.mrf.mxu1 }
 0x8e4   : > { %19521 = vst [vmem:[#allocation24_spill] sm:$0xff] %v17023_v41  ;;  %v17025_v45 = vpop.f32.mrf.mxu0  ;;  %v17027_v12 = vadd.f32 %v12398_v17, %v7364_v33  ;;  %v17085_v41 = vpop.permute.xlu1 %9640 }
 0x8e5   : > { %v7629_v62 = vpop.f32.mrf.mxu1  ;;  %19534 = vst [vmem:[#allocation81_spill] sm:$0xff] %v17085_v41 }
 0x8e6   : > { %19522 = vst [vmem:[#allocation82_spill] sm:$0xff] %v17027_v12  ;;  %v7500_v23 = vpop.f32.mrf.mxu0  ;;  %v17029_v4 = vadd.f32 %v7629_v62, %v7361_v38 }
 0x8e8   : > { %19523 = vst [vmem:[#allocation49_spill] sm:$0xff] %v17029_v4  ;;  %v7504_v59 = vpop.f32.mrf.mxu0 }
 0x8e9   : > { %v7783_v3 = vpop.f32.mrf.mxu1 }
 0x8ea   : > { %v7506_v37 = vpop.f32.mrf.mxu0 }
 0x8eb   : > { %v17031_v51 = vpop.f32.mrf.mxu1 }
 0x8ec   : > { %v7510_v13 = vpop.f32.mrf.mxu0 }
 0x8ee   : > { %v17033_v0 = vpop.f32.mrf.mxu0  ;;  %v17035_v35 = vpop.f32.mrf.mxu1 }
 0x8f0   : > { %v17037_v2 = vpop.f32.mrf.mxu0  ;;  %v17039_v47 = vpop.f32.mrf.mxu1 }
 0x8f2   : > { %v17041_v34 = vpop.f32.mrf.mxu0  ;;  %v17043_v36 = vpop.f32.mrf.mxu1 }
 0x8f4   : > { %v17045_v49 = vpop.f32.mrf.mxu0  ;;  %v17047_v61 = vpop.f32.mrf.mxu1 }
 0x8f6   : > { %v17049_v1 = vpop.f32.mrf.mxu0  ;;  %v17051_v60 = vpop.f32.mrf.mxu1 }
 0x8f8   : > { %v17053_v33 = vpop.f32.mrf.mxu0  ;;  %v17055_v46 = vpop.f32.mrf.mxu1 }
 0x8fa   : > { %v17057_v32 = vpop.f32.mrf.mxu0  ;;  %v17059_v38 = vpop.f32.mrf.mxu1 }
 0x8fc   : > { %v17061_v14 = vpop.f32.mrf.mxu0  ;;  %v17063_v43 = vpop.f32.mrf.mxu1 }
 0x8fe   : > { %v17065_v42 = vpop.f32.mrf.mxu0  ;;  %v17067_v58 = vpop.f32.mrf.mxu1 }
 0x8ff   : > { %19524 = vst [vmem:[#allocation18_spill] sm:$0xff] %v17065_v42  ;;  %19525 = vst [vmem:[#allocation73_spill] sm:$0xff] %v17067_v58  ;;  %v7639_v58 = vadd.f32 %v17013_v8, %v16959_v27 }
 0x900   : > { %v17069_v17 = vpop.f32.mrf.mxu0  ;;  %v17071_v62 = vpop.f32.mrf.mxu1 }
 0x901   : > { %19526 = vst [vmem:[#allocation68_spill] sm:$0xff] %v17069_v17  ;;  %19527 = vst [vmem:[#allocation83_spill] sm:$0xff] %v17071_v62 }
 0x902   : > { %v17073_v48 = vpop.f32.mrf.mxu0  ;;  %v17075_v22 = vpop.f32.mrf.mxu1 }
 0x903   : > { %19528 = vst [vmem:[#allocation62_spill] sm:$0xff] %v17073_v48  ;;  %19529 = vst [vmem:[#allocation26_spill] sm:$0xff] %v17075_v22 }
 0x904   : > { %v17077_v28 = vpop.f32.mrf.mxu0  ;;  %v17079_v4 = vpop.f32.mrf.mxu1 }
 0x905   : > { %19530 = vst [vmem:[#allocation12_spill] sm:$0xff] %v17077_v28  ;;  %19531 = vst [vmem:[#allocation30_spill] sm:$0xff] %v17079_v4  ;;  %v17097_v28 = vpop.permute.xlu1 %9632 }
 0x906   : > { %v17081_v12 = vpop.f32.mrf.mxu0  ;;  %v17083_v44 = vpop.f32.mrf.mxu1  ;;  %19540 = vst [vmem:[#allocation92_spill] sm:$0xff] %v17097_v28  ;;  %v7638_v28 = vadd.f32 %v17009_v7, %v16956_v50  ;;  %v7642_v50 = vadd.f32 %v17021_v5, %v16965_v16  ;;  %v7645_v7 = vadd.f32 %v7500_v23, %v16971_v30  ;;  %v7651_v16 = vadd.f32 %v17033_v0, %v16983_v18 }
 0x907   : > { %19532 = vst [vmem:[#allocation20_spill] sm:$0xff] %v17081_v12  ;;  %19533 = vst [vmem:[#allocation27_spill] sm:$0xff] %v17083_v44  ;;  %v7653_v30 = vadd.f32 %v17037_v2, %v16985_v20  ;;  %v7656_v18 = vadd.f32 %v17045_v49, %v16991_v29  ;;  %v7657_v20 = vadd.f32 %v17049_v1, %v16994_v40  ;;  %v19550_v49 = vld [vmem:[#allocation73_spill] sm:$0xff]  ;;  %v19551_v1 = vld [vmem:[#allocation88_spill] sm:$0xff] }
 0x908   : > { %v17087_v57 = vpop.f32.mrf.mxu0  ;;  %v17089_v26 = vpop.f32.mrf.mxu1  ;;  %v7660_v29 = vadd.f32 %v17057_v32, %v17000_v15  ;;  %v7940_v40 = vadd.f32 %v17061_v14, %v17004_v63  ;;  %v17177_v2 = vadd.f32 %v17063_v43, %v7651_v16  ;;  %v19552_v63 = vld [vmem:[#allocation68_spill] sm:$0xff] }
 0x909   : > { %19535 = vst [vmem:[#allocation75_spill] sm:$0xff] %v17087_v57  ;;  %19536 = vst [vmem:[#allocation102_spill] sm:$0xff] %v17089_v26  ;;  %v17108_v26 = vpop.permute.xlu1 %9624 }
 0x90a   : > { %v17091_v55 = vpop.f32.mrf.mxu0  ;;  %v17093_v62 = vpop.f32.mrf.mxu1  ;;  %19544 = vst [vmem:[#allocation104_spill] sm:$0xff] %v17108_v26  ;;  %v7641_v26 = vadd.f32 %v17017_v31, %v16962_v24  ;;  %v7648_v24 = vadd.f32 %v7506_v37, %v16977_v52 }
 0x90b   : > { %19537 = vst [vmem:[#allocation98_spill] sm:$0xff] %v17091_v55  ;;  %19538 = vst [vmem:[#allocation48_spill] sm:$0xff] %v17093_v62  ;;  %v8649_v55 = vld [vmem:[%s18937_s2] sm:$0x7] }
 0x90c   : > { %v8080_v48 = vpop.f32.mrf.mxu0  ;;  %v17095_v22 = vpop.f32.mrf.mxu1  ;;  %v17129_v42 = vrot.slane %v8649_v55, %v19484_v56  ;;  %v7936_v56 = vadd.f32 %v17031_v51, %v7639_v58  ;;  %v7945_v51 = vadd.f32 %v17055_v46, %v7648_v24  ;;  %v19553_v58 = vld [vmem:[#allocation78_spill] sm:$0xff] }
 0x90d   : > { %19539 = vst [vmem:[#allocation111_spill] sm:$0xff] %v17095_v22  ;;  %v17144_v8 = vpop.permute.xlu1 %9616 }
 0x90e   : > { %v8082_v4 = vpop.f32.mrf.mxu0  ;;  %v17099_v17 = vpop.f32.mrf.mxu1  ;;  %19547 = vst [vmem:[#allocation46_spill] sm:$0xff] %v17144_v8 }
 0x90f   : > { %19541 = vst [vmem:[#allocation23_spill] sm:$0xff] %v17099_v17 }
 0x910   : > { %v8086_v12 = vpop.f32.mrf.mxu0  ;;  %v17101_v44 = vpop.f32.mrf.mxu1 }
 0x911   : > { %19542 = vst [vmem:[#allocation61_spill] sm:$0xff] %v17101_v44  ;;  %v17119_v44 = vrot.slane %v8649_v55, %v19485_v53  ;;  %v7644_v53 = vadd.f32 %v17025_v45, %v16968_v6  ;;  %v7938_v6 = vadd.f32 %v17035_v35, %v7641_v26  ;;  %v7942_v26 = vadd.f32 %v17047_v61, %v7645_v7 }
 0x912   : > { %v8088_v41 = vpop.f32.mrf.mxu0  ;;  %v17103_v25 = vpop.f32.mrf.mxu1  ;;  %v17185_v61 = vadd.f32 %v19550_v49, %v7653_v30 }
 0x913   : > { %19543 = vst [vmem:[#allocation47_spill] sm:$0xff] %v17103_v25  ;;  %v17122_v25 = vrot.slane %v8649_v55, %v19486_v19  ;;  %v7647_v19 = vadd.f32 %v7504_v59, %v16974_v54  ;;  %v7939_v54 = vadd.f32 %v17039_v47, %v7642_v50 }
 0x914   : > { %v8092_v62 = vpop.f32.mrf.mxu0  ;;  %v17110_v57 = vpop.f32.mrf.mxu1 }
 0x915   : > { %19545 = vst [vmem:[#allocation74_spill] sm:$0xff] %v17110_v57  ;;  %v7935_v57 = vadd.f32 %v7783_v3, %v7638_v28  ;;  %v7650_v28 = vadd.f32 %v7510_v13, %v16980_v39  ;;  %v7654_v39 = vadd.f32 %v17041_v34, %v16988_v21  ;;  %v7944_v45 = vadd.f32 %v17051_v60, %v7647_v19  ;;  %v17180_v34 = vpop.permute.xlu1 %9608  ;;  %v19556_v19 = vld [vmem:[#allocation62_spill] sm:$0xff] }
 0x916   : > { %v17114_v22 = vpop.f32.mrf.mxu0  ;;  %v17116_v17 = vpop.f32.mrf.mxu1  ;;  %v7659_v21 = vadd.f32 %v17053_v33, %v16997_v10  ;;  %v8235_v3 = vadd.f32 %v8086_v12, %v7938_v6  ;;  %19548 = vst [vmem:[#allocation100_spill] sm:$0xff] %v17180_v34  ;;  %v7946_v60 = vadd.f32 %v19552_v63, %v19551_v1  ;;  %v8236_v33 = vadd.f32 %v8088_v41, %v7939_v54  ;;  %v19566_v1 = vld [vmem:[#allocation82_spill] sm:$0xff]  ;;  %v19567_v63 = vld [vmem:[#allocation75_spill] sm:$0xff] }
 0x917   : > { %19546 = vst [vmem:[#allocation33_spill] sm:$0xff] %v17116_v17  ;;  %v8232_v55 = vadd.f32 %v8080_v48, %v7935_v57  ;;  %v7941_v48 = vadd.f32 %v17043_v36, %v7644_v53  ;;  %v8233_v57 = vadd.f32 %v8082_v4, %v7936_v56  ;;  %v7947_v13 = vadd.f32 %v17059_v38, %v7650_v28  ;;  %v19549_v36 = vld [vmem:[#allocation18_spill] sm:$0xff]  ;;  %v19554_v53 = vld [vmem:[#allocation83_spill] sm:$0xff] }
 0x918   : > { %v17137_v17 = vpop.f32.mrf.mxu0  ;;  %v17139_v27 = vpop.f32.mrf.mxu1  ;;  %v7937_v15 = vadd.f32 %v19549_v36, %v17007_v11  ;;  %v17196_v7 = vadd.f32 %v19554_v53, %v7654_v39  ;;  %v19555_v11 = vld [vmem:[#allocation99_spill] sm:$0xff]  ;;  %v19557_v28 = vld [vmem:[#allocation26_spill] sm:$0xff]  ;;  %v19559_v39 = vld [vmem:[#allocation12_spill] sm:$0xff] }
 0x919   : > { %v8238_v38 = vadd.f32 %v8092_v62, %v7941_v48  ;;  %v7943_v24 = vadd.f32 %v19556_v19, %v19555_v11  ;;  %v17201_v56 = vadd.f32 %v19557_v28, %v7656_v18  ;;  %v8239_v62 = vadd.f32 %v17114_v22, %v7942_v26  ;;  %v19561_v18 = vld [vmem:[#allocation24_spill] sm:$0xff]  ;;  %v19565_v36 = vld [vmem:[#allocation27_spill] sm:$0xff]  ;;  %v19570_v53 = vld [vmem:[#allocation98_spill] sm:$0xff] }
 0x91a   : > { %v17152_v31 = vpop.f32.mrf.mxu0  ;;  %v8377_v52 = vpop.f32.mrf.mxu1  ;;  %v7956_v49 = vadd.f32 %v19565_v36, %v7659_v21 }
 0x91b   : > { %v8529_v5 = vadd.f32 %v8377_v52, %v8232_v55  ;;  %v19558_v52 = vld [vmem:[#allocation64_spill] sm:$0xff] }
 0x91c   : > { %v17163_v23 = vpop.f32.mrf.mxu0  ;;  %v8379_v59 = vpop.f32.mrf.mxu1  ;;  %v7952_v48 = vadd.f32 %v19559_v39, %v19558_v52 }
 0x91d   : > { %v8601_v4 = vadd.f32 %v16282_v9, %v8529_v5  ;;  %v8530_v37 = vadd.f32 %v8379_v59, %v8233_v57  ;;  %v19560_v57 = vld [vmem:[#allocation30_spill] sm:$0xff]  ;;  %v19562_v59 = vld [vmem:[#allocation20_spill] sm:$0xff] }
 0x91e   : > { %v17174_v0 = vpop.f32.mrf.mxu0  ;;  %v8383_v35 = vpop.f32.mrf.mxu1  ;;  %v17215_v5 = vadd.f32 %v19560_v57, %v7657_v20  ;;  %v8244_v57 = vadd.f32 %v17163_v23, %v7947_v13 }
 0x91f   : > { %v8625_v10 = vmax.f32 %v8601_v4, 0.0  ;;  %v8602_v12 = vadd.f32 %v16282_v9, %v8530_v37  ;;  %v8532_v47 = vadd.f32 %v8383_v35, %v8235_v3  ;;  %v7949_v3 = vadd.f32 %v19562_v59, %v19561_v18  ;;  %v17228_v20 = vpop.permute.xlu1 %9600 }
 0x920   : > { %v17189_v46 = vpop.f32.mrf.mxu0  ;;  %v8385_v32 = vpop.f32.mrf.mxu1  ;;  %v8241_v37 = vadd.f32 %v17137_v17, %v7944_v45  ;;  %19564 = vst [vmem:[#allocation89_spill] sm:$0xff] %v17228_v20  ;;  %v8245_v36 = vadd.f32 %v17174_v0, %v17177_v2 }
 0x921   : > { %v17192_v14 = vmul.f32 %v17119_v44, %v8625_v10  ;;  %v8626_v43 = vmax.f32 %v8602_v12, 0.0  ;;  %v8604_v50 = vadd.f32 %v19553_v58, %v8532_v47  ;;  %v8533_v41 = vadd.f32 %v8385_v32, %v8236_v33  ;;  %v19563_v10 = vld [vmem:[#allocation41_spill] sm:$0xff]  ;;  %v19568_v32 = vld [vmem:[#allocation102_spill] sm:$0xff] }
 0x922   : > { %v17203_v55 = vpop.f32.mrf.mxu0  ;;  %v8389_v16 = vpop.f32.mrf.mxu1  ;;  %v7958_v33 = vadd.f32 %v19567_v63, %v19566_v1  ;;  %v17234_v17 = vadd.f32 %v19568_v32, %v7660_v29 }
 0x923   : > { %8699 = vst [vmem:[#allocation5 + $0x8] sm:$0xff] %v17192_v14  ;;  %v17208_v6 = vmul.f32 %v17122_v25, %v8626_v43  ;;  %v8628_v30 = vmax.f32 %v8604_v50, 0.0  ;;  %v8535_v54 = vadd.f32 %v8389_v16, %v8238_v38  ;;  %8808 = vrot.lane.b32.xlu0 %v17192_v14, %s12740_s22  ;;  %v8605_v22 = vadd.f32 %v19553_v58, %v8533_v41  ;;  %v19569_v50 = vld [vmem:[#allocation49_spill] sm:$0xff]  ;;  %v19571_v16 = vld [vmem:[#allocation48_spill] sm:$0xff]  ;;  %v17265_v32 = vpop.permute.xlu1 %9592 }
 0x924   : > { %v8116_v26 = vpop.f32.mrf.mxu0  ;;  %v8391_v4 = vpop.f32.mrf.mxu1  ;;  %v7955_v11 = vadd.f32 %v19570_v53, %v19569_v50  ;;  %v8237_v21 = vadd.f32 %v19571_v16, %v7940_v40  ;;  %v19574_v40 = vld [vmem:[#allocation23_spill] sm:$0xff]  ;;  %19577 = vst [vmem:[#allocation35_spill] sm:$0xff] %v17265_v32 }
 0x925   : > { %8700 = vst [vmem:[#allocation5 + $0x10] sm:$0xff] %v17208_v6  ;;  %v17223_v35 = vmul.f32 %v17119_v44, %v8628_v30  ;;  %v8607_v12 = vadd.f32 %v19563_v10, %v8535_v54  ;;  %v8536_v47 = vadd.f32 %v8391_v4, %v8239_v62  ;;  %8810 = vrot.lane.b32.xlu1 %v17208_v6, %s12740_s22  ;;  %v8629_v45 = vmax.f32 %v8605_v22, 0.0  ;;  %v19572_v62 = vld [vmem:[#allocation111_spill] sm:$0xff]  ;;  %v19573_v22 = vld [vmem:[#allocation53_spill] sm:$0xff] }
 0x926   : > { %v8118_v38 = vpop.f32.mrf.mxu0  ;;  %v8395_v43 = vpop.f32.mrf.mxu1  ;;  %v8234_v30 = vadd.f32 %v19572_v62, %v7937_v15  ;;  %v8242_v54 = vadd.f32 %v17152_v31, %v7945_v51  ;;  %v8243_v15 = vadd.f32 %v19574_v40, %v7946_v60  ;;  %v19576_v51 = vld [vmem:[#allocation47_spill] sm:$0xff]  ;;  %v17274_v50 = vadd.f32 %v17139_v27, %v7955_v11 }
 0x927   : > { %8702 = vst [vmem:[#allocation5 + $0x30] sm:$0xff] %v17223_v35  ;;  %v8631_v19 = vmax.f32 %v8607_v12, 0.0  ;;  %v8608_v28 = vadd.f32 %v19563_v10, %v8536_v47  ;;  %v8538_v41 = vadd.f32 %v8395_v43, %v8241_v37  ;;  %v17244_v29 = vmul.f32 %v17122_v25, %v8629_v45  ;;  %v19575_v37 = vld [vmem:[#allocation61_spill] sm:$0xff]  ;;  %v17741_v32 = vld [vmem:[#allocation5 + $0xc8] sm:$0xff] }
 0x928   : > { %v8122_v52 = vpop.f32.mrf.mxu0  ;;  %v8397_v39 = vpop.f32.mrf.mxu1  ;;  %v8240_v31 = vadd.f32 %v19575_v37, %v7943_v24  ;;  %v17256_v12 = vadd.f32 %v19576_v51, %v7952_v48  ;;  %v19578_v24 = vld [vmem:[#allocation74_spill] sm:$0xff]  ;;  %v19579_v45 = vld [vmem:[#allocation33_spill] sm:$0xff]  ;;  %v8247_v27 = vadd.f32 %v17189_v46, %v17185_v61  ;;  %v8250_v11 = vadd.f32 %v8116_v26, %v17201_v56 }
 0x929   : > { %v17248_v18 = vmul.f32 %v17119_v44, %v8631_v19  ;;  %v8632_v59 = vmax.f32 %v8608_v28, 0.0  ;;  %v8610_v4 = vadd.f32 %v19573_v22, %v8538_v41  ;;  %9067 = vrot.lane.b32.xlu1 %v17208_v6, %s12741_s20  ;;  %8703 = vst [vmem:[#allocation5 + $0x38] sm:$0xff] %v17244_v29  ;;  %v8539_v47 = vadd.f32 %v8397_v39, %v8242_v54  ;;  %v19580_v28 = vld [vmem:[#allocation45_spill] sm:$0xff] }
 0x92a   : > { %v8124_v23 = vpop.f32.mrf.mxu0  ;;  %v8401_v13 = vpop.f32.mrf.mxu1  ;;  %v17268_v48 = vadd.f32 %v19578_v24, %v7949_v3  ;;  %v17271_v43 = vadd.f32 %v19579_v45, %v7958_v33  ;;  %v8248_v33 = vadd.f32 %v17203_v55, %v17196_v7  ;;  %v8251_v40 = vadd.f32 %v8118_v38, %v17215_v5 }
 0x92b   : > { %8705 = vst [vmem:[#allocation5 + $0x58] sm:$0xff] %v17248_v18  ;;  %v17263_v1 = vmul.f32 %v17122_v25, %v8632_v59  ;;  %v8634_v63 = vmax.f32 %v8610_v4, 0.0  ;;  %v8541_v60 = vadd.f32 %v8401_v13, %v8244_v57  ;;  %v8611_v0 = vadd.f32 %v19573_v22, %v8539_v47 }
 0x92c   : > { %v12437_v2 = vpop.f32.mrf.mxu0  ;;  %v8403_v53 = vpop.f32.mrf.mxu1  ;;  %v8253_v37 = vadd.f32 %v8122_v52, %v7956_v49  ;;  %v8254_v5 = vadd.f32 %v8124_v23, %v17234_v17  ;;  %v19582_v49 = vld [vmem:[#allocation50_spill] sm:$0xff] }
 0x92d   : > { %8706 = vst [vmem:[#allocation5 + $0x60] sm:$0xff] %v17263_v1  ;;  %v17279_v19 = vmul.f32 %v17119_v44, %v8634_v63  ;;  %v8613_v41 = vadd.f32 %v19580_v28, %v8541_v60  ;;  %v8534_v16 = vadd.f32 %v12437_v2, %v8237_v21  ;;  %v8542_v3 = vadd.f32 %v8403_v53, %v8245_v36 }
 0x92e   : > { %9326 = vrot.lane.b32.xlu1 %v17208_v6, %s12742_s21  ;;  %v8635_v62 = vmax.f32 %v8611_v0, 0.0  ;;  %v8490_v54 = vpop.f32.mrf.mxu0  ;;  %v8407_v39 = vpop.f32.mrf.mxu1 }
 0x92f   : > { %8708 = vst [vmem:[#allocation5 + $0x80] sm:$0xff] %v17279_v19  ;;  %v8637_v57 = vmax.f32 %v8613_v41, 0.0  ;;  %v8606_v21 = vadd.f32 %v19553_v58, %v8534_v16  ;;  %v8614_v59 = vadd.f32 %v19580_v28, %v8542_v3  ;;  %v8531_v4 = vadd.f32 %v8490_v54, %v8234_v30  ;;  %v17302_v58 = vpop.permute.xlu1 %9584 }
 0x930   : > { %v17294_v61 = vmul.f32 %v17122_v25, %v8635_v62  ;;  %v8544_v46 = vadd.f32 %v8407_v39, %v8247_v27  ;;  %v12440_v7 = vpop.f32.mrf.mxu0  ;;  %v8409_v56 = vpop.f32.mrf.mxu1  ;;  %19581 = vst [vmem:[#allocation34_spill] sm:$0xff] %v17302_v58 }
 0x931   : > { %v17297_v55 = vmul.f32 %v17119_v44, %v8637_v57  ;;  %v8630_v26 = vmax.f32 %v8606_v21, 0.0  ;;  %v8638_v51 = vmax.f32 %v8614_v59, 0.0  ;;  %v8603_v47 = vadd.f32 %v16282_v9, %v8531_v4 }
 0x932   : > { %9588 = vrot.lane.b32.xlu1 %v17208_v6, %s12743_s15  ;;  %8709 = vst [vmem:[#allocation5 + $0x88] sm:$0xff] %v17294_v61  ;;  %v8616_v38 = vadd.f32 %v19582_v49, %v8544_v46  ;;  %v8540_v30 = vadd.f32 %v12440_v7, %v8243_v15  ;;  %v8545_v52 = vadd.f32 %v8409_v56, %v8248_v33  ;;  %v8500_v13 = vpop.f32.mrf.mxu0  ;;  %v8413_v36 = vpop.f32.mrf.mxu1 }
 0x933   : > { %8711 = vst [vmem:[#allocation5 + $0xa8] sm:$0xff] %v17297_v55  ;;  %v8671_v63 = vmul.f32 %v17129_v42, %v8630_v26  ;;  %v17310_v9 = vmul.f32 %v17122_v25, %v8638_v51  ;;  %v8627_v60 = vmax.f32 %v8603_v47, 0.0  ;;  %v8537_v24 = vadd.f32 %v8500_v13, %v8240_v31  ;;  %v17331_v59 = vpop.permute.xlu1 %9902 }
 0x934   : > { %v8640_v45 = vmax.f32 %v8616_v38, 0.0  ;;  %v8612_v0 = vadd.f32 %v19573_v22, %v8540_v30  ;;  %v8617_v17 = vadd.f32 %v19582_v49, %v8545_v52  ;;  %v8547_v23 = vadd.f32 %v8413_v36, %v8250_v11  ;;  %v12443_v2 = vpop.f32.mrf.mxu0  ;;  %v8415_v15 = vpop.f32.mrf.mxu1  ;;  %v19584_v11 = vld [vmem:[#allocation51_spill] sm:$0xff]  ;;  %19585 = vst [vmem:[#allocation39_spill] sm:$0xff] %v17331_v59  ;;  %v19586_v30 = vld [vmem:[#allocation65_spill] sm:$0xff] }
 0x935   : > { %8704 = vst.msk [vmem:[#allocation5 + $0x40] sm:$0xff] %vm5907_vm0, %v8671_v63  ;;  %8712 = vst [vmem:[#allocation5 + $0xb0] sm:$0xff] %v17310_v9  ;;  %v8668_v53 = vmul.f32 %v17129_v42, %v8627_v60  ;;  %v8609_v41 = vadd.f32 %v19563_v10, %v8537_v24  ;;  %v8546_v16 = vadd.f32 %v12443_v2, %v17256_v12  ;;  %v19583_v22 = vmov 0.0  }
 0x936   : > { %v8548_v3 = vadd.f32 %v8415_v15, %v8251_v40  ;;  %9850 = vrot.lane.b32.xlu1 %v17208_v6, %s12732_s26  ;;  %8725 = vst.msk [vmem:[#allocation5 + $0x40] sm:$0xff] %vm5912_vm1, %v19583_v22  ;;  %v17324_v31 = vmul.f32 %v17119_v44, %v8640_v45  ;;  %v8636_v27 = vmax.f32 %v8612_v0, 0.0  ;;  %v8641_v33 = vmax.f32 %v8617_v17, 0.0  ;;  %v8510_v54 = vpop.f32.mrf.mxu0  ;;  %v8419_v39 = vpop.f32.mrf.mxu1  ;;  %12463 = vmatprep.mubr.msk.f32.mxu1 %vm12745_vm5, %v19583_v22 }
 0x937   : > { %v8619_v62 = vadd.f32 %v19584_v11, %v8547_v23  ;;  %8701 = vst.msk [vmem:[#allocation5 + $0x18] sm:$0xff] %vm5907_vm0, %v8668_v53  ;;  %v8633_v10 = vmax.f32 %v8609_v41, 0.0  ;;  %v8618_v12 = vadd.f32 %v19582_v49, %v8546_v16  ;;  %v8543_v21 = vadd.f32 %v8510_v54, %v17268_v48 }
 0x938   : > { %v8620_v57 = vadd.f32 %v19584_v11, %v8548_v3  ;;  %8723 = vst.msk [vmem:[#allocation5 + $0x18] sm:$0xff] %vm5912_vm1, %v19583_v22  ;;  %8714 = vst [vmem:[#allocation5 + $0xd0] sm:$0xff] %v17324_v31  ;;  %v8677_v4 = vmul.f32 %v17129_v42, %v8636_v27  ;;  %v17338_v40 = vmul.f32 %v17122_v25, %v8641_v33  ;;  %v12446_v56 = vpop.f32.mrf.mxu0  ;;  %v8421_v26 = vpop.f32.mrf.mxu1 }
 0x939   : > { %v8643_v46 = vmax.f32 %v8619_v62, 0.0  ;;  %v8550_v7 = vadd.f32 %v8419_v39, %v8253_v37  ;;  %v8674_v51 = vmul.f32 %v17129_v42, %v8633_v10  ;;  %v8642_v47 = vmax.f32 %v8618_v12, 0.0 }
 0x93a   : > { %v8644_v48 = vmax.f32 %v8620_v57, 0.0  ;;  %v8615_v49 = vadd.f32 %v19580_v28, %v8543_v21  ;;  %10111 = vrot.lane.b32.xlu1 %v17208_v6, %s12731_s25  ;;  %8710 = vst.msk [vmem:[#allocation5 + $0x90] sm:$0xff] %vm5907_vm0, %v8677_v4  ;;  %8715 = vst [vmem:[#allocation5 + $0xd8] sm:$0xff] %v17338_v40  ;;  %v8552_v52 = vadd.f32 %v12446_v56, %v17271_v43  ;;  %v8520_v36 = vpop.f32.mrf.mxu0 }
 0x93b   : > { %v17347_v38 = vmul.f32 %v17119_v44, %v8643_v46  ;;  %v8622_v37 = vadd.f32 %v19586_v30, %v8550_v7  ;;  %v8551_v13 = vadd.f32 %v8421_v26, %v8254_v5  ;;  %8729 = vst.msk [vmem:[#allocation5 + $0x90] sm:$0xff] %vm5912_vm1, %v19583_v22  ;;  %v8683_v28 = vmul.f32 %v17129_v42, %v8642_v47 }
 0x93c   : > { %8707 = vst.msk [vmem:[#allocation5 + $0x68] sm:$0xff] %vm5907_vm0, %v8674_v51  ;;  %v17356_v63 = vmul.f32 %v17122_v25, %v8644_v48  ;;  %v8639_v60 = vmax.f32 %v8615_v49, 0.0  ;;  %v8549_v24 = vadd.f32 %v8520_v36, %v17274_v50  ;;  %v8624_v5 = vadd.f32 %v19586_v30, %v8552_v52  ;;  %v17372_v50 = vpop.permute.xlu1 %9894 }
 0x93d   : > { %8727 = vst.msk [vmem:[#allocation5 + $0x68] sm:$0xff] %vm5912_vm1, %v19583_v22  ;;  %8717 = vst [vmem:[#allocation5 + $0xf8] sm:$0xff] %v17347_v38  ;;  %v8646_v43 = vmax.f32 %v8622_v37, 0.0  ;;  %v8623_v45 = vadd.f32 %v19586_v30, %v8551_v13  ;;  %v17368_v23 = vld [vmem:[#allocation5 + $0x40] sm:$0xff] }
 0x93e   : > { %8716 = vst.msk [vmem:[#allocation5 + $0xe0] sm:$0xff] %vm5907_vm0, %v8683_v28  ;;  %8718 = vst [vmem:[#allocation5 + $0x100] sm:$0xff] %v17356_v63  ;;  %v8680_v0 = vmul.f32 %v17129_v42, %v8639_v60  ;;  %v8621_v17 = vadd.f32 %v19584_v11, %v8549_v24  ;;  %8818 = vrot.lane.b32.xlu1 %v17244_v29, %s12740_s22  ;;  %v8648_v15 = vmax.f32 %v8624_v5, 0.0  ;;  %8820 = vrot.lane.b32.xlu0 %v17368_v23, %s12740_s22 }
 0x93f   : > { %19587 = vst [vmem:[#allocation22_spill] sm:$0xff] %v17372_v50  ;;  %8733 = vst.msk [vmem:[#allocation5 + $0xe0] sm:$0xff] %vm5912_vm1, %v19583_v22  ;;  %v17377_v2 = vmul.f32 %v17119_v44, %v8646_v43  ;;  %v8647_v53 = vmax.f32 %v8623_v45, 0.0  ;;  %v17451_v39 = vld [vmem:[#allocation5 + $0x18] sm:$0xff]  ;;  %v17715_v50 = vld [vmem:[#allocation5 + $0xf0] sm:$0xff] }
 0x940   : > { %8713 = vst.msk [vmem:[#allocation5 + $0xb8] sm:$0xff] %vm5907_vm0, %v8680_v0  ;;  %v8645_v41 = vmax.f32 %v8621_v17, 0.0  ;;  %v8689_v16 = vmul.f32 %v17129_v42, %v8648_v15  ;;  %v17399_v27 = vpop.permute.xlu1 %9886 }
 0x941   : > { %8731 = vst.msk [vmem:[#allocation5 + $0xb8] sm:$0xff] %vm5912_vm1, %v19583_v22  ;;  %8720 = vst [vmem:[#allocation5 + $0x120] sm:$0xff] %v17377_v2  ;;  %v17387_v3 = vmul.f32 %v17122_v25, %v8647_v53 }
 0x942   : > { %v8686_v44 = vmul.f32 %v17129_v42, %v8645_v41  ;;  %9075 = vrot.lane.b32.xlu1 %v17244_v29, %s12741_s20  ;;  %8722 = vst.msk [vmem:[#allocation5 + $0x130] sm:$0xff] %vm5907_vm0, %v8689_v16  ;;  %9065 = vrot.lane.b32.xlu0 %v17192_v14, %s12741_s20  ;;  %19588 = vst [vmem:[#allocation60_spill] sm:$0xff] %v17399_v27  ;;  %v17495_v7 = vld [vmem:[#allocation5 + $0x90] sm:$0xff] }
 0x943   : > { %8721 = vst [vmem:[#allocation5 + $0x128] sm:$0xff] %v17387_v3  ;;  %8737 = vst.msk [vmem:[#allocation5 + $0x130] sm:$0xff] %vm5912_vm1, %v19583_v22 }
 0x944   : > { %8719 = vst.msk [vmem:[#allocation5 + $0x108] sm:$0xff] %vm5907_vm0, %v8686_v44  ;;  %v17409_v25 = vpop.permute.xlu1 %9878  ;;  %v17561_v36 = vld [vmem:[#allocation5 + $0x68] sm:$0xff] }
 0x945   : > { %8735 = vst.msk [vmem:[#allocation5 + $0x108] sm:$0xff] %vm5912_vm1, %v19583_v22  ;;  %19589 = vst [vmem:[#allocation13_spill] sm:$0xff] %v17409_v25 }
 0x946   : > { %9334 = vrot.lane.b32.xlu1 %v17244_v29, %s12742_s21  ;;  %9077 = vrot.lane.b32.xlu0 %v17368_v23, %s12741_s20  ;;  %v17423_v33 = vld [vmem:[#allocation5 + $0xe0] sm:$0xff] }
 0x948   : > { %v17417_v42 = vpop.permute.xlu1 %9870 }
 0x949   : > { %19590 = vst [vmem:[#allocation69_spill] sm:$0xff] %v17417_v42  ;;  %v17701_v42 = vld [vmem:[#allocation5 + $0xb8] sm:$0xff] }
 0x94a   : > { %9596 = vrot.lane.b32.xlu1 %v17244_v29, %s12743_s15  ;;  %9324 = vrot.lane.b32.xlu0 %v17192_v14, %s12742_s21  ;;  %v17465_v12 = vld [vmem:[#allocation5 + $0x130] sm:$0xff] }
 0x94c   : > { %v17427_v11 = vpop.permute.xlu1 %9862  ;;  %v17483_v4 = vld [vmem:[#allocation5 + $0x108] sm:$0xff] }
 0x94d   : > { %19591 = vst [vmem:[#allocation29_spill] sm:$0xff] %v17427_v11 }
 0x94e   : > { %9858 = vrot.lane.b32.xlu1 %v17244_v29, %s12732_s26  ;;  %9336 = vrot.lane.b32.xlu0 %v17368_v23, %s12742_s21 }
 0x950   : > { %v17435_v62 = vpop.permute.xlu1 %9854 }
 0x951   : > { %19592 = vst [vmem:[#allocation7_spill] sm:$0xff] %v17435_v62 }
 0x952   : > { %10119 = vrot.lane.b32.xlu1 %v17244_v29, %s12731_s25  ;;  %9586 = vrot.lane.b32.xlu0 %v17192_v14, %s12743_s15 }
 0x954   : > { %v17443_v54 = vpop.permute.xlu1 %9846 }
 0x955   : > { %19593 = vst [vmem:[#allocation80_spill] sm:$0xff] %v17443_v54 }
 0x956   : > { %9109 = vrot.lane.b32.xlu1 %v17423_v33, %s12741_s20  ;;  %9598 = vrot.lane.b32.xlu0 %v17368_v23, %s12743_s15 }
 0x958   : > { %v17453_v10 = vpop.permute.xlu1 %10163 }
 0x959   : > { %19594 = vst [vmem:[#allocation9_spill] sm:$0xff] %v17453_v10 }
 0x95a   : > { %8826 = vrot.lane.b32.xlu1 %v17263_v1, %s12740_s22  ;;  %9848 = vrot.lane.b32.xlu0 %v17192_v14, %s12732_s26 }
 0x95e   : > { %9083 = vrot.lane.b32.xlu1 %v17263_v1, %s12741_s20  ;;  %9860 = vrot.lane.b32.xlu0 %v17368_v23, %s12732_s26 }
 0x962   : > { %9342 = vrot.lane.b32.xlu1 %v17263_v1, %s12742_s21  ;;  %10109 = vrot.lane.b32.xlu0 %v17192_v14, %s12731_s25  ;;  %v17461_v14 = vpop.permute.xlu1 %10155 }
 0x963   : > { %19595 = vst [vmem:[#allocation55_spill] sm:$0xff] %v17461_v14 }
 0x966   : > { %9604 = vrot.lane.b32.xlu1 %v17263_v1, %s12743_s15  ;;  %10121 = vrot.lane.b32.xlu0 %v17368_v23, %s12731_s25  ;;  %v17471_v57 = vpop.permute.xlu1 %10147 }
 0x967   : > { %19596 = vst [vmem:[#allocation11_spill] sm:$0xff] %v17471_v57 }
 0x96a   : > { %9866 = vrot.lane.b32.xlu1 %v17263_v1, %s12732_s26  ;;  %8812 = vrot.lane.b32.xlu0 %v17451_v39, %s12740_s22  ;;  %v17479_v21 = vpop.permute.xlu1 %10139 }
 0x96b   : > { %19597 = vst [vmem:[#allocation21_spill] sm:$0xff] %v17479_v21 }
 0x96e   : > { %10127 = vrot.lane.b32.xlu1 %v17263_v1, %s12731_s25  ;;  %9069 = vrot.lane.b32.xlu0 %v17451_v39, %s12741_s20  ;;  %v17489_v46 = vpop.permute.xlu1 %10131 }
 0x96f   : > { %19598 = vst [vmem:[#allocation84_spill] sm:$0xff] %v17489_v46 }
 0x972   : > { %9125 = vrot.lane.b32.xlu1 %v17465_v12, %s12741_s20  ;;  %9328 = vrot.lane.b32.xlu0 %v17451_v39, %s12742_s21  ;;  %v17499_v56 = vpop.permute.xlu1 %10123 }
 0x973   : > { %19599 = vst [vmem:[#allocation85_spill] sm:$0xff] %v17499_v56 }
 0x976   : > { %8834 = vrot.lane.b32.xlu1 %v17294_v61, %s12740_s22  ;;  %9590 = vrot.lane.b32.xlu0 %v17451_v39, %s12743_s15  ;;  %v17507_v26 = vpop.permute.xlu1 %10115 }
 0x977   : > { %19600 = vst [vmem:[#allocation115_spill] sm:$0xff] %v17507_v26 }
 0x97a   : > { %9091 = vrot.lane.b32.xlu1 %v17294_v61, %s12741_s20  ;;  %9852 = vrot.lane.b32.xlu0 %v17451_v39, %s12732_s26  ;;  %v17515_v51 = vpop.permute.xlu1 %10107 }
 0x97b   : > { %19601 = vst [vmem:[#allocation116_spill] sm:$0xff] %v17515_v51 }
 0x97e   : > { %9117 = vrot.lane.b32.xlu1 %v17483_v4, %s12741_s20  ;;  %10113 = vrot.lane.b32.xlu0 %v17451_v39, %s12731_s25 }
 0x982   : > { %9350 = vrot.lane.b32.xlu1 %v17294_v61, %s12742_s21  ;;  %8816 = vrot.lane.b32.xlu0 %v17223_v35, %s12740_s22 }
 0x986   : > { %9612 = vrot.lane.b32.xlu1 %v17294_v61, %s12743_s15  ;;  %8836 = vrot.lane.b32.xlu0 %v17495_v7, %s12740_s22 }
 0x98a   : > { %9874 = vrot.lane.b32.xlu1 %v17294_v61, %s12732_s26  ;;  %9073 = vrot.lane.b32.xlu0 %v17223_v35, %s12741_s20 }
 0x98e   : > { %10135 = vrot.lane.b32.xlu1 %v17294_v61, %s12731_s25  ;;  %9093 = vrot.lane.b32.xlu0 %v17495_v7, %s12741_s20 }
 0x992   : > { %9097 = vrot.lane.b32.xlu1 %v17297_v55, %s12741_s20  ;;  %9352 = vrot.lane.b32.xlu0 %v17495_v7, %s12742_s21 }
 0x995   : > { %v17555_v13 = vpop.permute.xlu0 %8808 }
 0x996   : > { %8842 = vrot.lane.b32.xlu1 %v17310_v9, %s12740_s22  ;;  %9332 = vrot.lane.b32.xlu0 %v17223_v35, %s12742_s21 }
 0x997   : > { %v17523_v47 = vpop.permute.xlu1 %8810 }
 0x99a   : > { %9358 = vrot.lane.b32.xlu1 %v17310_v9, %s12742_s21  ;;  %9614 = vrot.lane.b32.xlu0 %v17495_v7, %s12743_s15 }
 0x99b   : > { %v17529_v48 = vpop.permute.xlu1 %9067 }
 0x99e   : > { %9620 = vrot.lane.b32.xlu1 %v17310_v9, %s12743_s15  ;;  %9594 = vrot.lane.b32.xlu0 %v17223_v35, %s12743_s15 }
 0x9a0   : > { %v17535_v49 = vpop.permute.xlu1 %9326 }
 0x9a1   : > { %19602 = vst [vmem:[#allocation36_spill] sm:$0xff] %v17535_v49 }
 0x9a2   : > { %9882 = vrot.lane.b32.xlu1 %v17310_v9, %s12732_s26  ;;  %9876 = vrot.lane.b32.xlu0 %v17495_v7, %s12732_s26 }
 0x9a4   : > { %v17541_v30 = vpop.permute.xlu1 %9588 }
 0x9a5   : > { %19603 = vst [vmem:[#allocation94_spill] sm:$0xff] %v17541_v30 }
 0x9a6   : > { %10143 = vrot.lane.b32.xlu1 %v17310_v9, %s12731_s25  ;;  %9856 = vrot.lane.b32.xlu0 %v17223_v35, %s12732_s26 }
 0x9a8   : > { %v17547_v37 = vpop.permute.xlu1 %9850 }
 0x9a9   : > { %19604 = vst [vmem:[#allocation95_spill] sm:$0xff] %v17547_v37 }
 0x9aa   : > { %9105 = vrot.lane.b32.xlu1 %v17324_v31, %s12741_s20  ;;  %10137 = vrot.lane.b32.xlu0 %v17495_v7, %s12731_s25 }
 0x9ac   : > { %v17553_v52 = vpop.permute.xlu1 %10111 }
 0x9ad   : > { %19605 = vst [vmem:[#allocation67_spill] sm:$0xff] %v17553_v52 }
 0x9ae   : > { %8850 = vrot.lane.b32.xlu1 %v17338_v40, %s12740_s22  ;;  %10117 = vrot.lane.b32.xlu0 %v17223_v35, %s12731_s25 }
 0x9b0   : > { %v17563_v28 = vpop.permute.xlu1 %8818  ;;  %v17565_v60 = vpop.permute.xlu0 %8820 }
 0x9b2   : > { %9366 = vrot.lane.b32.xlu1 %v17338_v40, %s12742_s21  ;;  %8828 = vrot.lane.b32.xlu0 %v17561_v36, %s12740_s22 }
 0x9b4   : > { %v17571_v24 = vpop.permute.xlu1 %9075  ;;  %v17573_v43 = vpop.permute.xlu0 %9065 }
 0x9b5   : > { %19606 = vst [vmem:[#allocation106_spill] sm:$0xff] %v17573_v43 }
 0x9b6   : > { %9628 = vrot.lane.b32.xlu1 %v17338_v40, %s12743_s15  ;;  %9085 = vrot.lane.b32.xlu0 %v17561_v36, %s12741_s20 }
 0x9b8   : > { %v17579_v35 = vpop.permute.xlu1 %9334  ;;  %v17581_v5 = vpop.permute.xlu0 %9077 }
 0x9b9   : > { %19607 = vst [vmem:[#allocation107_spill] sm:$0xff] %v17579_v35 }
 0x9ba   : > { %9890 = vrot.lane.b32.xlu1 %v17338_v40, %s12732_s26  ;;  %9344 = vrot.lane.b32.xlu0 %v17561_v36, %s12742_s21 }
 0x9bc   : > { %v17587_v45 = vpop.permute.xlu1 %9596  ;;  %v17589_v0 = vpop.permute.xlu0 %9324 }
 0x9bd   : > { %19608 = vst [vmem:[#allocation43_spill] sm:$0xff] %v17587_v45  ;;  %19609 = vst [vmem:[#allocation87_spill] sm:$0xff] %v17589_v0  ;;  %v17777_v0 = vld [vmem:[#allocation5 + $0x78] sm:$0xff] }
 0x9be   : > { %10151 = vrot.lane.b32.xlu1 %v17338_v40, %s12731_s25  ;;  %9606 = vrot.lane.b32.xlu0 %v17561_v36, %s12743_s15 }
 0x9c0   : > { %v17595_v17 = vpop.permute.xlu1 %9858  ;;  %v17597_v15 = vpop.permute.xlu0 %9336 }
 0x9c1   : > { %19610 = vst [vmem:[#allocation72_spill] sm:$0xff] %v17595_v17  ;;  %19611 = vst [vmem:[#allocation28_spill] sm:$0xff] %v17597_v15  ;;  %v12694_v15 = vld [vmem:[#allocation5] sm:$0xff] }
 0x9c2   : > { %9113 = vrot.lane.b32.xlu1 %v17347_v38, %s12741_s20  ;;  %9868 = vrot.lane.b32.xlu0 %v17561_v36, %s12732_s26 }
 0x9c4   : > { %v17603_v53 = vpop.permute.xlu1 %10119  ;;  %v17605_v41 = vpop.permute.xlu0 %9586 }
 0x9c5   : > { %19612 = vst [vmem:[#allocation79_spill] sm:$0xff] %v17603_v53  ;;  %19613 = vst [vmem:[#allocation76_spill] sm:$0xff] %v17605_v41 }
 0x9c6   : > { %8858 = vrot.lane.b32.xlu1 %v17356_v63, %s12740_s22  ;;  %10129 = vrot.lane.b32.xlu0 %v17561_v36, %s12731_s25 }
 0x9c8   : > { %v17611_v16 = vpop.permute.xlu1 %9109  ;;  %v17613_v44 = vpop.permute.xlu0 %9598 }
 0x9c9   : > { %19614 = vst [vmem:[#allocation63_spill] sm:$0xff] %v17613_v44 }
 0x9ca   : > { %9374 = vrot.lane.b32.xlu1 %v17356_v63, %s12742_s21  ;;  %8824 = vrot.lane.b32.xlu0 %v17248_v18, %s12740_s22 }
 0x9cc   : > { %v17619_v51 = vpop.permute.xlu1 %8826  ;;  %v17621_v52 = vpop.permute.xlu0 %9848 }
 0x9cd   : > { %19615 = vst [vmem:[#allocation40_spill] sm:$0xff] %v17621_v52 }
 0x9ce   : > { %9636 = vrot.lane.b32.xlu1 %v17356_v63, %s12743_s15  ;;  %8852 = vrot.lane.b32.xlu0 %v17423_v33, %s12740_s22 }
 0x9d0   : > { %v17627_v26 = vpop.permute.xlu1 %9083  ;;  %v17629_v53 = vpop.permute.xlu0 %9860 }
 0x9d1   : > { %19616 = vst [vmem:[#allocation38_spill] sm:$0xff] %v17629_v53 }
 0x9d2   : > { %9898 = vrot.lane.b32.xlu1 %v17356_v63, %s12732_s26  ;;  %9081 = vrot.lane.b32.xlu0 %v17248_v18, %s12741_s20 }
 0x9d4   : > { %v17635_v56 = vpop.permute.xlu1 %9342  ;;  %v17637_v46 = vpop.permute.xlu0 %10109 }
 0x9d5   : > { %19617 = vst [vmem:[#allocation77_spill] sm:$0xff] %v17635_v56  ;;  %19618 = vst [vmem:[#allocation17_spill] sm:$0xff] %v17637_v46 }
 0x9d6   : > { %10159 = vrot.lane.b32.xlu1 %v17356_v63, %s12731_s25  ;;  %9368 = vrot.lane.b32.xlu0 %v17423_v33, %s12742_s21 }
 0x9d8   : > { %v17643_v21 = vpop.permute.xlu1 %9604  ;;  %v17645_v57 = vpop.permute.xlu0 %10121 }
 0x9d9   : > { %19619 = vst [vmem:[#allocation31_spill] sm:$0xff] %v17643_v21  ;;  %19620 = vst [vmem:[#allocation93_spill] sm:$0xff] %v17645_v57  ;;  %v17759_v21 = vld [vmem:[#allocation5 + $0xa0] sm:$0xff] }
 0x9da   : > { %9380 = vrot.lane.b32.xlu1 %v17377_v2, %s12742_s21  ;;  %9340 = vrot.lane.b32.xlu0 %v17248_v18, %s12742_s21 }
 0x9dc   : > { %v17651_v14 = vpop.permute.xlu1 %9866  ;;  %v17653_v10 = vpop.permute.xlu0 %8812 }
 0x9dd   : > { %19621 = vst [vmem:[#allocation42_spill] sm:$0xff] %v17651_v14  ;;  %v17695_v14 = vld [vmem:[#allocation5 + $0x118] sm:$0xff] }
 0x9de   : > { %9642 = vrot.lane.b32.xlu1 %v17377_v2, %s12743_s15  ;;  %9630 = vrot.lane.b32.xlu0 %v17423_v33, %s12743_s15 }
 0x9e0   : > { %v17659_v46 = vpop.permute.xlu1 %10127  ;;  %v17661_v54 = vpop.permute.xlu0 %9069 }
 0x9e1   : > { %19622 = vst [vmem:[#allocation118_spill] sm:$0xff] %v17659_v46 }
 0x9e2   : > { %9904 = vrot.lane.b32.xlu1 %v17377_v2, %s12732_s26  ;;  %9602 = vrot.lane.b32.xlu0 %v17248_v18, %s12743_s15 }
 0x9e4   : > { %v17667_v57 = vpop.permute.xlu1 %9125  ;;  %v17669_v52 = vpop.permute.xlu0 %9328 }
 0x9e5   : > { %19623 = vst [vmem:[#allocation97_spill] sm:$0xff] %v17669_v52  ;;  %v12693_v52 = vld [vmem:[#allocation5 + $0x28] sm:$0xff] }
 0x9e6   : > { %10165 = vrot.lane.b32.xlu1 %v17377_v2, %s12731_s25  ;;  %9892 = vrot.lane.b32.xlu0 %v17423_v33, %s12732_s26 }
 0x9e8   : > { %v17675_v37 = vpop.permute.xlu1 %8834  ;;  %v17677_v46 = vpop.permute.xlu0 %9590 }
 0x9e9   : > { %19624 = vst [vmem:[#allocation105_spill] sm:$0xff] %v17677_v46 }
 0x9ea   : > { %10426 = vrot.lane.b32.xlu1 %v17377_v2, %s12744_s13  ;;  %9864 = vrot.lane.b32.xlu0 %v17248_v18, %s12732_s26 }
 0x9ec   : > { %v17683_v62 = vpop.permute.xlu1 %9091  ;;  %v17685_v17 = vpop.permute.xlu0 %9852 }
 0x9ed   : > { %19625 = vst [vmem:[#allocation108_spill] sm:$0xff] %v17685_v17 }
 0x9ee   : > { %8866 = vrot.lane.b32.xlu1 %v17387_v3, %s12740_s22  ;;  %10153 = vrot.lane.b32.xlu0 %v17423_v33, %s12731_s25 }
 0x9f0   : > { %v17691_v53 = vpop.permute.xlu1 %9117  ;;  %v17693_v11 = vpop.permute.xlu0 %10113 }
 0x9f1   : > { %19626 = vst [vmem:[#allocation109_spill] sm:$0xff] %v17693_v11 }
 0x9f2   : > { %10424 = vrot.lane.b32.xlu1 %v17695_v14, %s12744_s13  ;;  %10125 = vrot.lane.b32.xlu0 %v17248_v18, %s12731_s25 }
 0x9f4   : > { %v17703_v17 = vpop.permute.xlu1 %9350  ;;  %v17705_v25 = vpop.permute.xlu0 %8816 }
 0x9f5   : > { %19627 = vst [vmem:[#allocation112_spill] sm:$0xff] %v17703_v17 }
 0x9f6   : > { %10420 = vrot.lane.b32.xlu1 %v17356_v63, %s12744_s13  ;;  %8844 = vrot.lane.b32.xlu0 %v17701_v42, %s12740_s22 }
 0x9f8   : > { %v17711_v11 = vpop.permute.xlu1 %9612  ;;  %v17713_v27 = vpop.permute.xlu0 %8836 }
 0x9f9   : > { %19628 = vst [vmem:[#allocation113_spill] sm:$0xff] %v17711_v11 }
 0x9fa   : > { %10416 = vrot.lane.b32.xlu1 %v17715_v50, %s12744_s13  ;;  %9101 = vrot.lane.b32.xlu0 %v17701_v42, %s12741_s20 }
 0x9fc   : > { %v17721_v59 = vpop.permute.xlu1 %9874  ;;  %v17723_v58 = vpop.permute.xlu0 %9073 }
 0x9fd   : > { %19629 = vst [vmem:[#allocation114_spill] sm:$0xff] %v17721_v59 }
 0x9fe   : > { %9123 = vrot.lane.b32.xlu1 %v17387_v3, %s12741_s20  ;;  %9360 = vrot.lane.b32.xlu0 %v17701_v42, %s12742_s21 }
 0xa00   : > { %v17729_v41 = vpop.permute.xlu1 %10135  ;;  %v17731_v30 = vpop.permute.xlu0 %9093 }
 0xa01   : > { %19630 = vst [vmem:[#allocation117_spill] sm:$0xff] %v17729_v41 }
 0xa02   : > { %10412 = vrot.lane.b32.xlu1 %v17338_v40, %s12744_s13  ;;  %9622 = vrot.lane.b32.xlu0 %v17701_v42, %s12743_s15 }
 0xa04   : > { %v17737_v46 = vpop.permute.xlu1 %9097  ;;  %v17739_v59 = vpop.permute.xlu0 %9352 }
 0xa05   : > { %19631 = vst [vmem:[#allocation15_spill] sm:$0xff] %v17739_v59 }
 0xa06   : > { %10408 = vrot.lane.b32.xlu1 %v17741_v32, %s12744_s13  ;;  %9884 = vrot.lane.b32.xlu0 %v17701_v42, %s12732_s26 }
 0xa08   : > { %v17747_v41 = vpop.permute.xlu1 %8842  ;;  %v17749_v45 = vpop.permute.xlu0 %9332 }
 0xa09   : > { %19632 = vst [vmem:[#allocation19_spill] sm:$0xff] %v17749_v45 }
 0xa0a   : > { %10404 = vrot.lane.b32.xlu1 %v17310_v9, %s12744_s13  ;;  %10145 = vrot.lane.b32.xlu0 %v17701_v42, %s12731_s25 }
 0xa0c   : > { %v17755_v44 = vpop.permute.xlu1 %9358  ;;  %v17757_v20 = vpop.permute.xlu0 %9614 }
 0xa0d   : > { %19633 = vst [vmem:[#allocation37_spill] sm:$0xff] %v17755_v44  ;;  %19634 = vst [vmem:[#allocation18_spill] sm:$0xff] %v17757_v20 }
 0xa0e   : > { %10400 = vrot.lane.b32.xlu1 %v17759_v21, %s12744_s13  ;;  %8832 = vrot.lane.b32.xlu0 %v17279_v19, %s12740_s22 }
 0xa10   : > { %v17765_v34 = vpop.permute.xlu1 %9620  ;;  %v17767_v11 = vpop.permute.xlu0 %9594 }
 0xa11   : > { %19635 = vst [vmem:[#allocation73_spill] sm:$0xff] %v17765_v34  ;;  %19636 = vst [vmem:[#allocation88_spill] sm:$0xff] %v17767_v11 }
 0xa12   : > { %10396 = vrot.lane.b32.xlu1 %v17294_v61, %s12744_s13  ;;  %8868 = vrot.lane.b32.xlu0 %v17465_v12, %s12740_s22 }
 0xa14   : > { %v17773_v8 = vpop.permute.xlu1 %9882  ;;  %v17775_v20 = vpop.permute.xlu0 %9876 }
 0xa15   : > { %19637 = vst [vmem:[#allocation68_spill] sm:$0xff] %v17773_v8  ;;  %19638 = vst [vmem:[#allocation78_spill] sm:$0xff] %v17775_v20  ;;  %v17793_v20 = vld [vmem:[#allocation5 + $0x50] sm:$0xff] }
 0xa16   : > { %10392 = vrot.lane.b32.xlu1 %v17777_v0, %s12744_s13  ;;  %9089 = vrot.lane.b32.xlu0 %v17279_v19, %s12741_s20 }
 0xa18   : > { %v17783_v34 = vpop.permute.xlu0 %9856  ;;  %v17785_v11 = vpop.permute.xlu1 %10143 }
 0xa19   : > { %19639 = vst [vmem:[#allocation83_spill] sm:$0xff] %v17783_v34  ;;  %19640 = vst [vmem:[#allocation99_spill] sm:$0xff] %v17785_v11 }
 0xa1a   : > { %10388 = vrot.lane.b32.xlu1 %v17263_v1, %s12744_s13  ;;  %9384 = vrot.lane.b32.xlu0 %v17465_v12, %s12742_s21 }
 0xa1c   : > { %v17791_v8 = vpop.permute.xlu0 %10137  ;;  %v17799_v49 = vpop.permute.xlu1 %9105 }
 0xa1d   : > { %19641 = vst [vmem:[#allocation62_spill] sm:$0xff] %v17791_v8 }
 0xa1e   : > { %10384 = vrot.lane.b32.xlu1 %v17793_v20, %s12744_s13  ;;  %9348 = vrot.lane.b32.xlu0 %v17279_v19, %s12742_s21 }
 0xa20   : > { %v17801_v34 = vpop.permute.xlu0 %10117  ;;  %v17809_v8 = vpop.permute.xlu1 %8850 }
 0xa21   : > { %19642 = vst [vmem:[#allocation26_spill] sm:$0xff] %v17801_v34 }
 0xa22   : > { %10380 = vrot.lane.b32.xlu1 %v17244_v29, %s12744_s13  ;;  %9646 = vrot.lane.b32.xlu0 %v17465_v12, %s12743_s15 }
 0xa24   : > { %v17807_v11 = vpop.permute.xlu0 %8828  ;;  %v17820_v34 = vpop.permute.xlu1 %9366 }
 0xa25   : > { %19643 = vst [vmem:[#allocation64_spill] sm:$0xff] %v17820_v34 }
 0xa26   : > { %10376 = vrot.lane.b32.xlu1 %v12693_v52, %s12744_s13  ;;  %9610 = vrot.lane.b32.xlu0 %v17279_v19, %s12743_s15 }
 0xa28   : > { %v17814_v45 = vpop.permute.xlu0 %9085  ;;  %v17829_v17 = vpop.permute.xlu1 %9628 }
 0xa29   : > { %19646 = vst [vmem:[#allocation24_spill] sm:$0xff] %v17829_v17 }
 0xa2a   : > { %10372 = vrot.lane.b32.xlu1 %v17208_v6, %s12744_s13  ;;  %9908 = vrot.lane.b32.xlu0 %v17465_v12, %s12732_s26 }
 0xa2c   : > { %v17822_v35 = vpop.permute.xlu0 %9344 }
 0xa2d   : > { %19644 = vst [vmem:[#allocation12_spill] sm:$0xff] %v17822_v35  ;;  %v17839_v35 = vpop.permute.xlu1 %9890 }
 0xa2e   : > { %10368 = vrot.lane.b32.xlu1 %v12694_v15, %s12744_s13  ;;  %9872 = vrot.lane.b32.xlu0 %v17279_v19, %s12732_s26  ;;  %19648 = vst [vmem:[#allocation41_spill] sm:$0xff] %v17839_v35 }
 0xa30   : > { %v17827_v56 = vpop.permute.xlu0 %9606 }
 0xa31   : > { %19645 = vst [vmem:[#allocation30_spill] sm:$0xff] %v17827_v56 }
 0xa32   : > { %10688 = vrot.lane.b32.xlu1 %v17377_v2, %s12734_s28  ;;  %10169 = vrot.lane.b32.xlu0 %v17465_v12, %s12731_s25 }
 0xa34   : > { %v17835_v59 = vpop.permute.xlu0 %9868 }
 0xa35   : > { %19647 = vst [vmem:[#allocation20_spill] sm:$0xff] %v17835_v59  ;;  %v17851_v59 = vpop.permute.xlu1 %10151 }
 0xa36   : > { %10686 = vrot.lane.b32.xlu1 %v17695_v14, %s12734_s28  ;;  %10133 = vrot.lane.b32.xlu0 %v17279_v19, %s12731_s25  ;;  %19650 = vst [vmem:[#allocation82_spill] sm:$0xff] %v17851_v59 }
 0xa38   : > { %v17843_v44 = vpop.permute.xlu0 %10129 }
 0xa39   : > { %19649 = vst [vmem:[#allocation27_spill] sm:$0xff] %v17843_v44  ;;  %v17863_v35 = vpop.permute.xlu1 %9113 }
 0xa3a   : > { %10682 = vrot.lane.b32.xlu1 %v17356_v63, %s12734_s28  ;;  %8860 = vrot.lane.b32.xlu0 %v17483_v4, %s12740_s22 }
 0xa3c   : > { %v17853_v14 = vpop.permute.xlu0 %8824 }
 0xa3e   : > { %10678 = vrot.lane.b32.xlu1 %v17715_v50, %s12734_s28  ;;  %9376 = vrot.lane.b32.xlu0 %v17483_v4, %s12742_s21  ;;  %v17873_v50 = vpop.permute.xlu1 %8858 }
 0xa40   : > { %v17859_v44 = vpop.permute.xlu0 %8852 }
 0xa42   : > { %10674 = vrot.lane.b32.xlu1 %v17338_v40, %s12734_s28  ;;  %9638 = vrot.lane.b32.xlu0 %v17483_v4, %s12743_s15  ;;  %v17885_v34 = vpop.permute.xlu1 %9374 }
 0xa44   : > { %v17867_v56 = vpop.permute.xlu0 %9081 }
 0xa46   : > { %10670 = vrot.lane.b32.xlu1 %v17741_v32, %s12734_s28  ;;  %9900 = vrot.lane.b32.xlu0 %v17483_v4, %s12732_s26 }
 0xa48   : > { %v17875_v59 = vpop.permute.xlu0 %9368 }
 0xa49   : > { %19651 = vst [vmem:[#allocation75_spill] sm:$0xff] %v17875_v59  ;;  %v17895_v59 = vpop.permute.xlu1 %9636 }
 0xa4a   : > { %10666 = vrot.lane.b32.xlu1 %v17310_v9, %s12734_s28  ;;  %10161 = vrot.lane.b32.xlu0 %v17483_v4, %s12731_s25  ;;  %19653 = vst [vmem:[#allocation49_spill] sm:$0xff] %v17895_v59 }
 0xa4c   : > { %v17881_v17 = vpop.permute.xlu0 %9340 }
 0xa4e   : > { %10662 = vrot.lane.b32.xlu1 %v17759_v21, %s12734_s28  ;;  %8840 = vrot.lane.b32.xlu0 %v17297_v55, %s12740_s22 }
 0xa50   : > { %v17889_v32 = vpop.permute.xlu0 %9630 }
 0xa51   : > { %19652 = vst [vmem:[#allocation102_spill] sm:$0xff] %v17889_v32  ;;  %v17907_v32 = vpop.permute.xlu1 %9898 }
 0xa52   : > { %10658 = vrot.lane.b32.xlu1 %v17294_v61, %s12734_s28  ;;  %9356 = vrot.lane.b32.xlu0 %v17297_v55, %s12742_s21  ;;  %19656 = vst [vmem:[#allocation111_spill] sm:$0xff] %v17907_v32 }
 0xa54   : > { %v17897_v43 = vpop.permute.xlu0 %9602 }
 0xa55   : > { %19654 = vst [vmem:[#allocation98_spill] sm:$0xff] %v17897_v43 }
 0xa56   : > { %10654 = vrot.lane.b32.xlu1 %v17777_v0, %s12734_s28  ;;  %9618 = vrot.lane.b32.xlu0 %v17297_v55, %s12743_s15  ;;  %v17917_v0 = vpop.permute.xlu1 %10159 }
 0xa57   : > { %19658 = vst [vmem:[#allocation23_spill] sm:$0xff] %v17917_v0 }
 0xa58   : > { %v17903_v21 = vpop.permute.xlu0 %9892 }
 0xa59   : > { %19655 = vst [vmem:[#allocation48_spill] sm:$0xff] %v17903_v21 }
 0xa5a   : > { %10650 = vrot.lane.b32.xlu1 %v17263_v1, %s12734_s28  ;;  %9880 = vrot.lane.b32.xlu0 %v17297_v55, %s12732_s26 }
 0xa5c   : > { %v17911_v61 = vpop.permute.xlu0 %9864 }
 0xa5d   : > { %19657 = vst [vmem:[#allocation53_spill] sm:$0xff] %v17911_v61  ;;  %v17928_v61 = vpop.permute.xlu1 %9380 }
 0xa5e   : > { %10646 = vrot.lane.b32.xlu1 %v17793_v20, %s12734_s28  ;;  %10141 = vrot.lane.b32.xlu0 %v17297_v55, %s12731_s25 }
 0xa60   : > { %v17919_v43 = vpop.permute.xlu0 %10153 }
 0xa61   : > { %19659 = vst [vmem:[#allocation61_spill] sm:$0xff] %v17919_v43 }
 0xa62   : > { %10642 = vrot.lane.b32.xlu1 %v17244_v29, %s12734_s28  ;;  %9099 = vrot.lane.b32.xlu0 %v17310_v9, %s12741_s20  ;;  %v17936_v29 = vpop.permute.xlu1 %9642  ;;  %v11038_v9 = vld [vmem:[%s18945_s10] sm:$0x1f] }
 0xa63   : > { %19661 = vst [vmem:[#allocation74_spill] sm:$0xff] %v17936_v29 }
 0xa64   : > { %v17925_v1 = vpop.permute.xlu0 %10125 }
 0xa65   : > { %19660 = vst [vmem:[#allocation47_spill] sm:$0xff] %v17925_v1 }
 0xa66   : > { %10638 = vrot.lane.b32.xlu1 %v12693_v52, %s12734_s28  ;;  %8848 = vrot.lane.b32.xlu0 %v17324_v31, %s12740_s22 }
 0xa68   : > { %v8845_v20 = vpop.permute.xlu0 %8844 }
 0xa6a   : > { %10634 = vrot.lane.b32.xlu1 %v17208_v6, %s12734_s28  ;;  %9364 = vrot.lane.b32.xlu0 %v17324_v31, %s12742_s21  ;;  %v17948_v6 = vpop.permute.xlu1 %9904 }
 0xa6b   : > { %19662 = vst [vmem:[#allocation33_spill] sm:$0xff] %v17948_v6 }
 0xa6c   : > { %v17938_v43 = vpop.permute.xlu0 %9101 }
 0xa6e   : > { %10630 = vrot.lane.b32.xlu1 %v12694_v15, %s12734_s28  ;;  %9626 = vrot.lane.b32.xlu0 %v17324_v31, %s12743_s15  ;;  %v17956_v15 = vpop.permute.xlu1 %10165 }
 0xa6f   : > { %19664 = vst [vmem:[#allocation50_spill] sm:$0xff] %v17956_v15 }
 0xa70   : > { %v17946_v52 = vpop.permute.xlu0 %9360 }
 0xa72   : > { %11041 = vperm.xlu1 %12643, %v11038_v9   ;;  %9888 = vrot.lane.b32.xlu0 %v17324_v31, %s12732_s26  ;;  %v17964_v9 = vpop.permute.xlu1 %10426 }
 0xa73   : > { %19667 = vst [vmem:[#allocation119_spill] sm:$0xff] %v17964_v9 }
 0xa74   : > { %v17952_v1 = vpop.permute.xlu0 %9622 }
 0xa75   : > { %19663 = vst [vmem:[#allocation45_spill] sm:$0xff] %v17952_v1 }
 0xa76   : > { %10149 = vrot.lane.b32.xlu0 %v17324_v31, %s12731_s25  ;;  %v17972_v6 = vpop.permute.xlu1 %8866 }
 0xa78   : > { %v17958_v0 = vpop.permute.xlu0 %9884 }
 0xa79   : > { %19665 = vst [vmem:[#allocation51_spill] sm:$0xff] %v17958_v0 }
 0xa7a   : > { %9107 = vrot.lane.b32.xlu0 %v17338_v40, %s12741_s20  ;;  %v18009_v29 = vpop.permute.xlu1 %10424 }
 0xa7b   : > { %19672 = vst [vmem:[#allocation124_spill] sm:$0xff] %v18009_v29  ;;  %v8888_v29 = vsel %vm8870_vm7, %v17809_v8, %v17859_v44 }
 0xa7c   : > { %v17962_v21 = vpop.permute.xlu0 %10145 }
 0xa7d   : > { %19666 = vst [vmem:[#allocation65_spill] sm:$0xff] %v17962_v21 }
 0xa7e   : > { %8856 = vrot.lane.b32.xlu0 %v17347_v38, %s12740_s22 }
 0xa80   : > { %v17968_v32 = vpop.permute.xlu0 %8832 }
 0xa82   : > { %9372 = vrot.lane.b32.xlu0 %v17347_v38, %s12742_s21 }
 0xa84   : > { %v8869_v15 = vpop.permute.xlu0 %8868 }
 0xa85   : > { %v8894_v0 = vsel %vm8870_vm7, %v17972_v6, %v8869_v15 }
 0xa86   : > { %9634 = vrot.lane.b32.xlu0 %v17347_v38, %s12743_s15  ;;  %12448 = vmatpush3.msra.mxu1 %v8894_v0 }
 0xa87   : > { %12449 = vmatprep.subr.mxu1 %v19583_v22 }
 0xa88   : > { %v17979_v40 = vpop.permute.xlu0 %9089 }
 0xa8a   : > { %9896 = vrot.lane.b32.xlu0 %v17347_v38, %s12732_s26 }
 0xa8c   : > { %v17983_v9 = vpop.permute.xlu0 %9384 }
 0xa8e   : > { %10157 = vrot.lane.b32.xlu0 %v17347_v38, %s12731_s25 }
 0xa90   : > { %v17987_v21 = vpop.permute.xlu0 %9348 }
 0xa92   : > { %9115 = vrot.lane.b32.xlu0 %v17356_v63, %s12741_s20 }
 0xa94   : > { %v17991_v15 = vpop.permute.xlu0 %9646 }
 0xa96   : > { %8864 = vrot.lane.b32.xlu0 %v17377_v2, %s12740_s22 }
 0xa98   : > { %v17995_v0 = vpop.permute.xlu0 %9610 }
 0xa99   : > { %19668 = vst [vmem:[#allocation120_spill] sm:$0xff] %v17995_v0 }
 0xa9a   : > { %9121 = vrot.lane.b32.xlu0 %v17377_v2, %s12741_s20  ;;  %v18017_v2 = vpop.permute.xlu1 %10420 }
 0xa9b   : > { %19674 = vst [vmem:[#allocation126_spill] sm:$0xff] %v18017_v2  ;;  %v8885_v2 = vsel %vm8870_vm7, %v17747_v41, %v8845_v20 }
 0xa9c   : > { %v17999_v1 = vpop.permute.xlu0 %9908 }
 0xa9d   : > { %19669 = vst [vmem:[#allocation121_spill] sm:$0xff] %v17999_v1 }
 0xa9e   : > { %10418 = vrot.lane.b32.xlu0 %v17347_v38, %s12744_s13 }
 0xaa0   : > { %v18003_v59 = vpop.permute.xlu0 %9872 }
 0xaa1   : > { %19670 = vst [vmem:[#allocation122_spill] sm:$0xff] %v18003_v59 }
 0xaa2   : > { %10430 = vrot.lane.b32.xlu0 %v17465_v12, %s12744_s13 }
 0xaa4   : > { %v18007_v63 = vpop.permute.xlu0 %10169 }
 0xaa5   : > { %19671 = vst [vmem:[#allocation123_spill] sm:$0xff] %v18007_v63  ;;  %v18032_v63 = vpop.permute.xlu1 %10416 }
 0xaa6   : > { %10410 = vrot.lane.b32.xlu0 %v17324_v31, %s12744_s13  ;;  %19675 = vst [vmem:[#allocation127_spill] sm:$0xff] %v18032_v63 }
 0xaa8   : > { %v18013_v0 = vpop.permute.xlu0 %10133 }
 0xaa9   : > { %19673 = vst [vmem:[#allocation125_spill] sm:$0xff] %v18013_v0  ;;  %v18052_v20 = vpop.permute.xlu1 %9123 }
 0xaaa   : > { %10422 = vrot.lane.b32.xlu0 %v17483_v4, %s12744_s13 }
 0xaac   : > { %v8861_v1 = vpop.permute.xlu0 %8860 }
 0xaad   : > { %v8891_v59 = vsel %vm8870_vm7, %v17873_v50, %v8861_v1  ;;  %v8879_v1 = vsel %vm8870_vm7, %v17619_v51, %v17807_v11  ;;  %v18059_v11 = vld [vmem:[%s18944_s9 + $0x8] sm:$0x1f] }
 0xaae   : > { %10402 = vrot.lane.b32.xlu0 %v17297_v55, %s12744_s13  ;;  %12450 = vmatpush3.msra.mxu1 %v8891_v59  ;;  %v8882_v59 = vsel %vm8870_vm7, %v17675_v37, %v17713_v27  ;;  %v8876_v27 = vsel %vm8870_vm7, %v17563_v28, %v17565_v60  ;;  %v9151_v60 = vsel %vm9127_vm8, %v18052_v20, %v17667_v57 }
 0xaaf   : > { %12451 = vmatprep.subr.mxu1 %v19583_v22 }
 0xab0   : > { %v18027_v0 = vpop.permute.xlu0 %9376  ;;  %12452 = vmatpush3.msra.mxu1 %v8888_v29 }
 0xab1   : > { %12453 = vmatprep.subr.mxu1 %v19583_v22 }
 0xab2   : > { %10414 = vrot.lane.b32.xlu0 %v17423_v33, %s12744_s13  ;;  %12454 = vmatpush3.msra.mxu1 %v8885_v2  ;;  %v8873_v2 = vsel %vm8870_vm7, %v17523_v47, %v17653_v10 }
 0xab3   : > { %12455 = vmatprep.subr.mxu1 %v19583_v22 }
 0xab4   : > { %v18040_v44 = vpop.permute.xlu0 %9638  ;;  %12456 = vmatpush3.msra.mxu1 %v8882_v59 }
 0xab5   : > { %19676 = vst [vmem:[#allocation128_spill] sm:$0xff] %v18040_v44  ;;  %12457 = vmatprep.subr.mxu1 %v19583_v22 }
 0xab6   : > { %10394 = vrot.lane.b32.xlu0 %v17279_v19, %s12744_s13  ;;  %12458 = vmatpush3.msra.mxu1 %v8879_v1  ;;  %v18086_v1 = vld [vmem:[#allocation5 + $0x30] sm:$0xff] }
 0xab7   : > { %12459 = vmatprep.subr.mxu1 %v19583_v22 }
 0xab8   : > { %v18054_v29 = vpop.permute.xlu0 %9900  ;;  %12460 = vmatpush3.msra.mxu1 %v8876_v27 }
 0xab9   : > { %19677 = vst [vmem:[#allocation129_spill] sm:$0xff] %v18054_v29  ;;  %12461 = vmatprep.subr.mxu1 %v19583_v22 }
 0xaba   : > { %10406 = vrot.lane.b32.xlu0 %v17701_v42, %s12744_s13  ;;  %12462 = vmatpush3.msra.mxu1 %v8873_v2 }
 0xabb   : > { %12466 = vmatprep.subr.mxu1 %v19583_v22  ;;  %12464 = vmatmul.mubr.msk.f32.vlgmr.msra.gmra.mxu1 %vm3614_vm14, %v18059_v11 }
 0xabc   : > { %v18073_v59 = vpop.permute.xlu0 %10161  ;;  %12467 = vmatpush3.msra.mxu1 %v9151_v60  ;;  %12482 = vmatprep.mubr.msk.f32.mxu1 %vm12745_vm5, %v19583_v22  ;;  %v18100_v60 = vld [vmem:[#allocation5 + $0x8] sm:$0xff] }
 0xabd   : > { %19678 = vst [vmem:[#allocation130_spill] sm:$0xff] %v18073_v59  ;;  %12468 = vmatprep.subr.mxu1 %v19583_v22 }
 0xabe   : > { %10386 = vrot.lane.b32.xlu0 %v17248_v18, %s12744_s13 }
 0xac0   : > { %v18080_v10 = vpop.permute.xlu0 %8840 }
 0xac2   : > { %10398 = vrot.lane.b32.xlu0 %v17495_v7, %s12744_s13 }
 0xac4   : > { %v18084_v57 = vpop.permute.xlu0 %9356 }
 0xac6   : > { %10378 = vrot.lane.b32.xlu0 %v18086_v1, %s12744_s13 }
 0xac8   : > { %v18090_v27 = vpop.permute.xlu0 %9618 }
 0xac9   : > { %19679 = vst [vmem:[#allocation131_spill] sm:$0xff] %v18090_v27 }
 0xaca   : > { %9382 = vrot.lane.b32.xlu0 %v17387_v3, %s12742_s21 }
 0xacc   : > { %v18094_v2 = vpop.permute.xlu0 %9880 }
 0xacd   : > { %19680 = vst [vmem:[#allocation132_spill] sm:$0xff] %v18094_v2 }
 0xace   : > { %10390 = vrot.lane.b32.xlu0 %v17561_v36, %s12744_s13 }
 0xad0   : > { %v18098_v18 = vpop.permute.xlu0 %10141 }
 0xad1   : > { %19681 = vst [vmem:[#allocation133_spill] sm:$0xff] %v18098_v18 }
 0xad2   : > { %10370 = vrot.lane.b32.xlu0 %v18100_v60, %s12744_s13 }
 0xad4   : > { %v18104_v63 = vpop.permute.xlu0 %9099 }
 0xad6   : > { %10382 = vrot.lane.b32.xlu0 %v17368_v23, %s12744_s13 }
 0xad8   : > { %v8849_v59 = vpop.permute.xlu0 %8848 }
 0xada   : > { %9644 = vrot.lane.b32.xlu0 %v17387_v3, %s12743_s15 }
 0xadc   : > { %v18110_v2 = vpop.permute.xlu0 %9364 }
 0xade   : > { %10374 = vrot.lane.b32.xlu0 %v17451_v39, %s12744_s13 }
 0xae0   : > { %v18114_v18 = vpop.permute.xlu0 %9626 }
 0xae2   : > { %10680 = vrot.lane.b32.xlu0 %v17347_v38, %s12734_s28 }
 0xae4   : > { %v18118_v29 = vpop.permute.xlu0 %9888 }
 0xae5   : > { %19682 = vst [vmem:[#allocation134_spill] sm:$0xff] %v18118_v29 }
 0xae6   : > { %10692 = vrot.lane.b32.xlu0 %v17465_v12, %s12734_s28 }
 0xae8   : > { %v18122_v23 = vpop.permute.xlu0 %10149 }
 0xae9   : > { %19683 = vst [vmem:[#allocation135_spill] sm:$0xff] %v18122_v23 }
 0xaea   : > { %9906 = vrot.lane.b32.xlu0 %v17387_v3, %s12732_s26 }
 0xaec   : > { %v18126_v27 = vpop.permute.xlu0 %9107 }
 0xaee   : > { %10672 = vrot.lane.b32.xlu0 %v17324_v31, %s12734_s28 }
 0xaf0   : > { %v8857_v44 = vpop.permute.xlu0 %8856 }
 0xaf2   : > { %10684 = vrot.lane.b32.xlu0 %v17483_v4, %s12734_s28  ;;  %v18148_v4 = vpop.permute.xlu1 %10412 }
 0xaf3   : > { %19686 = vst [vmem:[#allocation138_spill] sm:$0xff] %v18148_v4 }
 0xaf4   : > { %v18132_v38 = vpop.permute.xlu0 %9372 }
 0xaf6   : > { %10664 = vrot.lane.b32.xlu0 %v17297_v55, %s12734_s28 }
 0xaf8   : > { %v18136_v12 = vpop.permute.xlu0 %9634 }
 0xafa   : > { %10167 = vrot.lane.b32.xlu0 %v17387_v3, %s12731_s25 }
 0xafc   : > { %v18140_v23 = vpop.permute.xlu0 %9896 }
 0xafd   : > { %19684 = vst [vmem:[#allocation136_spill] sm:$0xff] %v18140_v23  ;;  %v18166_v23 = vpop.permute.xlu1 %10408 }
 0xafe   : > { %10676 = vrot.lane.b32.xlu0 %v17423_v33, %s12734_s28  ;;  %v9145_v33 = vsel %vm9127_vm8, %v18126_v27, %v17611_v16  ;;  %v8890_v16 = vsel %vm8870_vm7, %v8857_v44, %v17873_v50  ;;  %v12697_v50 = vld [vmem:[#allocation5 + $0x58] sm:$0xff] }
 0xb00   : > { %v18144_v31 = vpop.permute.xlu0 %10157 }
 0xb01   : > { %19685 = vst [vmem:[#allocation137_spill] sm:$0xff] %v18144_v31 }
 0xb02   : > { %10656 = vrot.lane.b32.xlu0 %v17279_v19, %s12734_s28  ;;  %v19687_v19 = vld [vmem:[#allocation32_spill] sm:$0xff] }
 0xb04   : > { %v18150_v29 = vpop.permute.xlu0 %9115 }
 0xb05   : > { %v9148_v55 = vsel %vm9127_vm8, %v18150_v29, %v17691_v53 }
 0xb06   : > { %10668 = vrot.lane.b32.xlu0 %v17701_v42, %s12734_s28  ;;  %12469 = vmatpush3.msra.mxu1 %v9148_v55  ;;  %v9142_v42 = vsel %vm9127_vm8, %v18104_v63, %v17938_v43  ;;  %v9139_v55 = vsel %vm9127_vm8, %v17683_v62, %v17731_v30  ;;  %v9136_v43 = vsel %vm9127_vm8, %v17627_v26, %v17814_v45 }
 0xb07   : > { %12470 = vmatprep.subr.mxu1 %v19583_v22  ;;  %v8887_v30 = vsel %vm8870_vm7, %v8849_v59, %v17809_v8  ;;  %v8884_v45 = vsel %vm8870_vm7, %v18080_v10, %v17747_v41  ;;  %v9133_v8 = vsel %vm9127_vm8, %v17571_v24, %v17581_v5  ;;  %v9130_v41 = vsel %vm9127_vm8, %v17529_v48, %v17661_v54  ;;  %v19691_v5 = vld [vmem:[#allocation71_spill] sm:$0xff] }
 0xb08   : > { %v8865_v31 = vpop.permute.xlu0 %8864  ;;  %12471 = vmatpush3.msra.mxu1 %v9145_v33 }
 0xb09   : > { %v8892_v4 = vsel %vm8870_vm7, %v19687_v19, %v8865_v31  ;;  %12472 = vmatprep.subr.mxu1 %v19583_v22  ;;  %v8893_v53 = vsel %vm8870_vm7, %v8865_v31, %v17972_v6  ;;  %v19688_v6 = vld [vmem:[#allocation70_spill] sm:$0xff]  ;;  %v18190_v19 = vpop.permute.xlu1 %10404 }
 0xb0a   : > { %10428 = vrot.lane.b32.xlu0 %v17387_v3, %s12744_s13  ;;  %8938 = vmatprep.subr.mxu0 %v8893_v53  ;;  %v8889_v31 = vsel %vm8870_vm7, %v19688_v6, %v8857_v44  ;;  %v19689_v44 = vld [vmem:[#allocation91_spill] sm:$0xff]  ;;  %v19692_v6 = vld [vmem:[#allocation66_spill] sm:$0xff] }
 0xb0b   : > { %12473 = vmatpush3.msra.mxu1 %v9142_v42  ;;  %8939 = vmatpush1.msra.mxu0 %v8892_v4  ;;  %v8886_v4 = vsel %vm8870_vm7, %v19689_v44, %v8849_v59  ;;  %v19690_v42 = vld [vmem:[#allocation86_spill] sm:$0xff]  ;;  %v8877_v54 = vsel %vm8870_vm7, %v19692_v6, %v17853_v14 }
 0xb0c   : > { %12474 = vmatprep.subr.mxu1 %v19583_v22  ;;  %v9122_v33 = vpop.permute.xlu0 %9121  ;;  %8940 = vmatprep.subr.mxu0 %v8890_v16  ;;  %v8883_v59 = vsel %vm8870_vm7, %v19690_v42, %v18080_v10  ;;  %v8881_v16 = vsel %vm8870_vm7, %v17968_v32, %v17675_v37  ;;  %v8878_v37 = vsel %vm8870_vm7, %v17853_v14, %v17619_v51  ;;  %v19693_v51 = vld [vmem:[#allocation59_spill] sm:$0xff]  ;;  %v19695_v44 = vld [vmem:[#allocation6_spill] sm:$0xff] }
 0xb0d   : > { %12475 = vmatpush3.msra.mxu1 %v9139_v55  ;;  %8941 = vmatpush1.msra.mxu0 %v8889_v31  ;;  %v8880_v55 = vsel %vm8870_vm7, %v19691_v5, %v17968_v32  ;;  %v18230_v32 = vpop.permute.xlu1 %10400  ;;  %v8875_v31 = vsel %vm8870_vm7, %v17705_v25, %v17563_v28  ;;  %v8874_v14 = vsel %vm8870_vm7, %v19693_v51, %v17705_v25  ;;  %v19694_v28 = vld [vmem:[#allocation56_spill] sm:$0xff] }
 0xb0e   : > { %12476 = vmatprep.subr.mxu1 %v19583_v22  ;;  %10648 = vrot.lane.b32.xlu0 %v12697_v50, %s12734_s28  ;;  %v8872_v50 = vsel %vm8870_vm7, %v17555_v13, %v17523_v47  ;;  %v9149_v47 = vsel %vm9127_vm8, %v19695_v44, %v9122_v33 }
 0xb0f   : > { %8942 = vmatprep.subr.mxu0 %v8887_v30  ;;  %12477 = vmatpush3.msra.mxu1 %v9136_v43  ;;  %v9150_v30 = vsel %vm9127_vm8, %v9122_v33, %v18052_v20  ;;  %v19696_v20 = vld [vmem:[#allocation52_spill] sm:$0xff]  ;;  %v19697_v33 = vld [vmem:[#allocation90_spill] sm:$0xff] }
 0xb10   : > { %8943 = vmatpush1.msra.mxu0 %v8886_v4  ;;  %12478 = vmatprep.subr.mxu1 %v19583_v22  ;;  %v18193_v53 = vpop.permute.xlu0 %10418 }
 0xb11   : > { %8944 = vmatprep.subr.mxu0 %v8884_v45  ;;  %12479 = vmatpush3.msra.mxu1 %v9133_v8  ;;  %v10397_v25 = vpop.permute.xlu1 %10396 }
 0xb12   : > { %8945 = vmatpush1.msra.mxu0 %v8883_v59  ;;  %12480 = vmatprep.subr.mxu1 %v19583_v22 }
 0xb13   : > { %10660 = vrot.lane.b32.xlu0 %v17495_v7, %s12734_s28  ;;  %8946 = vmatprep.subr.mxu0 %v8881_v16  ;;  %v18227_v7 = vld [vmem:[%s18944_s9] sm:$0x1f]  ;;  %v19700_v16 = vld [vmem:[#allocation57_spill] sm:$0xff] }
 0xb14   : > { %12481 = vmatpush3.msra.mxu1 %v9130_v41  ;;  %8947 = vmatpush1.msra.mxu0 %v8880_v55  ;;  %v18216_v10 = vpop.permute.xlu0 %10430  ;;  %v18301_v41 = vld [vmem:[#allocation5 + $0x40] sm:$0xff] }
 0xb15   : > { %8948 = vmatprep.subr.mxu0 %v8878_v37  ;;  %12485 = vmatprep.subr.mxu1 %v19583_v22  ;;  %v10393_v8 = vpop.permute.xlu1 %10392  ;;  %v19702_v37 = vld [vmem:[#allocation106_spill] sm:$0xff] }
 0xb16   : > { %8949 = vmatpush1.msra.mxu0 %v8877_v54  ;;  %12483 = vmatmul.mubr.msk.f32.vlgmr.msra.gmra.mxu1 %vm3614_vm14, %v18227_v7  ;;  %v9129_v6 = vsel %vm9127_vm8, %v19702_v37, %v17529_v48 }
 0xb17   : > { %10640 = vrot.lane.b32.xlu0 %v18086_v1, %s12734_s28  ;;  %8950 = vmatprep.subr.mxu0 %v8875_v31  ;;  %v8871_v1 = vsel %vm8870_vm7, %v19694_v28, %v17555_v13  ;;  %v9147_v13 = vsel %vm9127_vm8, %v17863_v35, %v18150_v29  ;;  %v9143_v29 = vsel %vm9127_vm8, %v19697_v33, %v17799_v49  ;;  %v19706_v33 = vld [vmem:[#allocation75_spill] sm:$0xff] }
 0xb18   : > { %8951 = vmatpush1.msra.mxu0 %v8874_v14  ;;  %v18242_v43 = vpop.permute.xlu0 %10410  ;;  %12501 = vmatprep.mubr.msk.f32.mxu1 %vm12745_vm5, %v19583_v22 }
 0xb19   : > { %8952 = vmatprep.subr.mxu0 %v8872_v50 }
 0xb1a   : > { %8953 = vmatpush1.msra.mxu0 %v8871_v1 }
 0xb1b   : > { %10690 = vrot.lane.b32.xlu0 %v17387_v3, %s12734_s28  ;;  %9195 = vmatprep.subr.mxu0 %v9150_v30  ;;  %v9146_v3 = vsel %vm9127_vm8, %v19696_v20, %v17863_v35  ;;  %v9141_v35 = vsel %vm9127_vm8, %v17737_v46, %v18104_v63 }
 0xb1c   : > { %11632 = vmatmul.mubr.msk.f32.vlgmr.msra.gmra.mxu0 %vm3614_vm14, %v18059_v11  ;;  %v18260_v4 = vpop.permute.xlu0 %10422  ;;  %v9144_v11 = vsel %vm9127_vm8, %v17799_v49, %v18126_v27  ;;  %v9138_v49 = vsel %vm9127_vm8, %v17979_v40, %v17683_v62  ;;  %v19699_v27 = vld [vmem:[#allocation54_spill] sm:$0xff]  ;;  %v9132_v62 = vsel %vm9127_vm8, %v17723_v58, %v17571_v24  ;;  %v19703_v24 = vld [vmem:[#allocation8_spill] sm:$0xff] }
 0xb1d   : > { %9196 = vmatpush1.msra.mxu0 %v9149_v47  ;;  %9243 = vmatprep.mubr.f32.mxu0 %v19583_v22  ;;  %v9137_v59 = vsel %vm9127_vm8, %v19699_v27, %v17979_v40  ;;  %v18308_v40 = vpop.permute.xlu1 %10388  ;;  %v9128_v31 = vsel %vm9127_vm8, %v19703_v24, %v19702_v37  ;;  %v19704_v47 = vld [vmem:[#allocation101_spill] sm:$0xff]  ;;  %v19716_v24 = vld [vmem:[#allocation103_spill] sm:$0xff] }
 0xb1e   : > { %9197 = vmatprep.subr.mxu0 %v9147_v13  ;;  %v9408_v13 = vsel %vm9386_vm10, %v19704_v47, %v17928_v61  ;;  %v19710_v27 = vld [vmem:[#allocation25_spill] sm:$0xff]  ;;  %v19720_v47 = vld [vmem:[#allocation44_spill] sm:$0xff] }
 0xb1f   : > { %9198 = vmatpush1.msra.mxu0 %v9146_v3  ;;  %10652 = vrot.lane.b32.xlu0 %v17561_v36, %s12734_s28  ;;  %v19698_v36 = vld [vmem:[#allocation58_spill] sm:$0xff]  ;;  %v19705_v3 = vld [vmem:[#allocation96_spill] sm:$0xff] }
 0xb20   : > { %9199 = vmatprep.subr.mxu0 %v9144_v11  ;;  %v18277_v45 = vpop.permute.xlu0 %10402  ;;  %v9140_v42 = vsel %vm9127_vm8, %v19698_v36, %v17737_v46  ;;  %v9135_v46 = vsel %vm9127_vm8, %v17867_v56, %v17627_v26  ;;  %v19701_v26 = vld [vmem:[#allocation16_spill] sm:$0xff]  ;;  %v9405_v11 = vsel %vm9386_vm10, %v19705_v3, %v18132_v38 }
 0xb21   : > { %9200 = vmatpush1.msra.mxu0 %v9143_v29  ;;  %v9131_v5 = vsel %vm9127_vm8, %v19701_v26, %v17723_v58  ;;  %v18332_v48 = vpop.permute.xlu1 %10384  ;;  %v19707_v29 = vld [vmem:[#allocation64_spill] sm:$0xff] }
 0xb22   : > { %9201 = vmatprep.subr.mxu0 %v9141_v35  ;;  %v19708_v35 = vld [vmem:[#allocation110_spill] sm:$0xff] }
 0xb23   : > { %9202 = vmatpush1.msra.mxu0 %v9140_v42  ;;  %10632 = vrot.lane.b32.xlu0 %v18100_v60, %s12734_s28  ;;  %v9134_v60 = vsel %vm9127_vm8, %v19700_v16, %v17867_v56 }
 0xb24   : > { %9203 = vmatprep.subr.mxu0 %v9138_v49  ;;  %v18293_v63 = vpop.permute.xlu0 %10414 }
 0xb25   : > { %9204 = vmatpush1.msra.mxu0 %v9137_v59  ;;  %v18336_v14 = vpop.permute.xlu1 %10380  ;;  %v19711_v59 = vld [vmem:[#allocation15_spill] sm:$0xff] }
 0xb26   : > { %9205 = vmatprep.subr.mxu0 %v9135_v46  ;;  %v19712_v46 = vld [vmem:[#allocation112_spill] sm:$0xff] }
 0xb27   : > { %9206 = vmatpush1.msra.mxu0 %v9134_v60  ;;  %10644 = vrot.lane.b32.xlu0 %v18301_v41, %s12734_s28  ;;  %v9398_v16 = vsel %vm9386_vm10, %v19712_v46, %v19711_v59  ;;  %v19728_v59 = vld [vmem:[#allocation49_spill] sm:$0xff] }
 0xb28   : > { %9207 = vmatprep.subr.mxu0 %v9132_v62  ;;  %v10395_v55 = vpop.permute.xlu0 %10394  ;;  %v19713_v62 = vld [vmem:[#allocation10_spill] sm:$0xff] }
 0xb29   : > { %9208 = vmatpush1.msra.mxu0 %v9131_v5  ;;  %v18314_v56 = vsel %vm10432_vm9, %v10393_v8, %v10395_v55  ;;  %v18320_v54 = vsel %vm10432_vm9, %v10395_v55, %v10397_v25  ;;  %v9402_v8 = vsel %vm9386_vm10, %v19708_v35, %v18110_v2  ;;  %v9396_v26 = vsel %vm9386_vm10, %v19713_v62, %v17987_v21  ;;  %v19715_v5 = vld [vmem:[#allocation77_spill] sm:$0xff] }
 0xb2a   : > { %9209 = vmatprep.subr.mxu0 %v9129_v6  ;;  %v9394_v37 = vsel %vm9386_vm10, %v17881_v17, %v19715_v5 }
 0xb2b   : > { %9210 = vmatpush1.msra.mxu0 %v9128_v31  ;;  %10636 = vrot.lane.b32.xlu0 %v17451_v39, %s12734_s28  ;;  %v18343_v39 = vpop.permute.xlu1 %10376  ;;  %v9393_v31 = vsel %vm9386_vm10, %v19716_v24, %v17881_v17  ;;  %v11636_v17 = vld [vmem:[%s18944_s9 + $0x10] sm:$0x1f]  ;;  %v19732_v24 = vld [vmem:[#allocation104_spill] sm:$0xff]  ;;  %s18922_s28 = scalar_lea.vmem %s18946_s11, %s11662_s19 }
 0xb2c   : > { %v18327_v58 = vpop.permute.xlu0 %10406  ;;  %11634 = vmatmul.mubr.msk.f32.vlgmr.msra.gmra.mxu0 %vm3614_vm14, %v18227_v7 }
 0xb2d   : > { %9502 = vmatprep.mubr.f32.mxu0 %v19583_v22 }
 0xb2f   : > { %v18359_v20 = vpop.permute.xlu1 %10372 }
 0xb30   : > { %v18334_v51 = vpop.permute.xlu0 %10386 }
 0xb33   : > { %v18395_v60 = vpop.permute.xlu1 %10368 }
 0xb34   : > { %v10399_v50 = vpop.permute.xlu0 %10398 }
 0xb35   : > { %v18339_v28 = vsel %vm10432_vm9, %v10397_v25, %v10399_v50  ;;  %v9407_v25 = vsel %vm9386_vm10, %v17885_v34, %v18027_v0  ;;  %v9404_v0 = vsel %vm9386_vm10, %v19707_v29, %v19706_v33  ;;  %v19718_v50 = vld [vmem:[#allocation107_spill] sm:$0xff] }
 0xb38   : > { %v18341_v1 = vpop.permute.xlu0 %10378 }
 0xb3c   : > { %v9383_v30 = vpop.permute.xlu0 %9382 }
 0xb3d   : > { %v9410_v7 = vsel %vm9386_vm10, %v9383_v30, %v17983_v9  ;;  %v9409_v44 = vsel %vm9386_vm10, %v17928_v61, %v9383_v30  ;;  %v9406_v9 = vsel %vm9386_vm10, %v18132_v38, %v17885_v34  ;;  %v9403_v34 = vsel %vm9386_vm10, %v18110_v2, %v19707_v29  ;;  %v19709_v38 = vld [vmem:[#allocation37_spill] sm:$0xff]  ;;  %v18432_v29 = vpop.permute.xlu1 %10688 }
 0xb3e   : > { %9454 = vmatprep.subr.mxu0 %v9409_v44  ;;  %12486 = vmatpush3.msra.mxu1 %v9410_v7  ;;  %v9401_v36 = vsel %vm9386_vm10, %v19709_v38, %v17946_v52  ;;  %v9400_v42 = vsel %vm9386_vm10, %v18084_v57, %v19709_v38  ;;  %v9399_v2 = vsel %vm9386_vm10, %v19710_v27, %v18084_v57  ;;  %v19714_v57 = vld [vmem:[#allocation12_spill] sm:$0xff]  ;;  %v19719_v7 = vld [vmem:[#allocation19_spill] sm:$0xff]  ;;  %v19725_v38 = vld [vmem:[#allocation74_spill] sm:$0xff] }
 0xb3f   : > { %9455 = vmatpush1.msra.mxu0 %v9408_v13  ;;  %12487 = vmatprep.subr.mxu1 %v19583_v22  ;;  %v9397_v52 = vsel %vm9386_vm10, %v17987_v21, %v19712_v46  ;;  %v9395_v55 = vsel %vm9386_vm10, %v19715_v5, %v19714_v57  ;;  %v19717_v21 = vld [vmem:[#allocation28_spill] sm:$0xff]  ;;  %v9391_v44 = vsel %vm9386_vm10, %v19719_v7, %v19718_v50 }
 0xb40   : > { %v18364_v61 = vpop.permute.xlu0 %10390  ;;  %9456 = vmatprep.subr.mxu0 %v9406_v9  ;;  %12488 = vmatpush3.msra.mxu1 %v9407_v25  ;;  %v9392_v30 = vsel %vm9386_vm10, %v19718_v50, %v19717_v21  ;;  %v9390_v13 = vsel %vm9386_vm10, %v19720_v47, %v19719_v7  ;;  %v19721_v25 = vld [vmem:[#allocation97_spill] sm:$0xff]  ;;  %v19722_v9 = vld [vmem:[#allocation36_spill] sm:$0xff]  ;;  %v19735_v7 = vld [vmem:[#allocation131_spill] sm:$0xff] }
 0xb41   : > { %9457 = vmatpush1.msra.mxu0 %v9405_v11  ;;  %12489 = vmatprep.subr.mxu1 %v19583_v22  ;;  %v9389_v3 = vsel %vm9386_vm10, %v19722_v9, %v19721_v25  ;;  %v19723_v11 = vld [vmem:[#allocation87_spill] sm:$0xff]  ;;  %v19731_v57 = vld [vmem:[#allocation24_spill] sm:$0xff]  ;;  %v19734_v21 = vld [vmem:[#allocation73_spill] sm:$0xff] }
 0xb42   : > { %9458 = vmatprep.subr.mxu0 %v9403_v34  ;;  %12490 = vmatpush3.msra.mxu1 %v9404_v0  ;;  %v9388_v33 = vsel %vm9386_vm10, %v19723_v11, %v19722_v9  ;;  %v19724_v34 = vld [vmem:[#allocation14_spill] sm:$0xff]  ;;  %v19739_v9 = vld [vmem:[#allocation120_spill] sm:$0xff] }
 0xb43   : > { %9459 = vmatpush1.msra.mxu0 %v9402_v8  ;;  %12491 = vmatprep.subr.mxu1 %v19583_v22  ;;  %v9387_v35 = vsel %vm9386_vm10, %v19724_v34, %v19723_v11  ;;  %v19736_v47 = vld [vmem:[#allocation46_spill] sm:$0xff]  ;;  %v19740_v11 = vld [vmem:[#allocation100_spill] sm:$0xff]  ;;  %v19742_v34 = vld [vmem:[#allocation31_spill] sm:$0xff] }
 0xb44   : > { %v18383_v49 = vpop.permute.xlu0 %10370  ;;  %9460 = vmatprep.subr.mxu0 %v9400_v42  ;;  %12492 = vmatpush3.msra.mxu1 %v9401_v36  ;;  %v19726_v42 = vld [vmem:[#allocation81_spill] sm:$0xff] }
 0xb45   : > { %9461 = vmatpush1.msra.mxu0 %v9399_v2  ;;  %12493 = vmatprep.subr.mxu1 %v19583_v22  ;;  %v9670_v27 = vsel %vm9648_vm11, %v19726_v42, %v19725_v38  ;;  %v19727_v2 = vld [vmem:[#allocation128_spill] sm:$0xff] }
 0xb46   : > { %9462 = vmatprep.subr.mxu0 %v9397_v52  ;;  %12494 = vmatpush3.msra.mxu1 %v9398_v16  ;;  %v9668_v16 = vsel %vm9648_vm11, %v18136_v12, %v19728_v59  ;;  %v19729_v52 = vld [vmem:[#allocation92_spill] sm:$0xff] }
 0xb47   : > { %9463 = vmatpush1.msra.mxu0 %v9396_v26  ;;  %12495 = vmatprep.subr.mxu1 %v19583_v22  ;;  %v9667_v62 = vsel %vm9648_vm11, %v19729_v52, %v18136_v12  ;;  %v19730_v26 = vld [vmem:[#allocation102_spill] sm:$0xff]  ;;  %v19733_v12 = vld [vmem:[#allocation45_spill] sm:$0xff]  ;;  %v19747_v52 = vld [vmem:[#allocation88_spill] sm:$0xff] }
 0xb48   : > { %v18407_v6 = vpop.permute.xlu0 %10382  ;;  %9464 = vmatprep.subr.mxu0 %v9394_v37  ;;  %12496 = vmatpush3.msra.mxu1 %v9395_v55  ;;  %v9666_v5 = vsel %vm9648_vm11, %v19731_v57, %v19730_v26  ;;  %v18462_v55 = vpop.permute.xlu1 %10686  ;;  %v9665_v37 = vsel %vm9648_vm11, %v18114_v18, %v19731_v57  ;;  %v9663_v50 = vsel %vm9648_vm11, %v19734_v21, %v19733_v12  ;;  %v19748_v26 = vld [vmem:[#allocation35_spill] sm:$0xff]  ;;  %v19751_v12 = vld [vmem:[#allocation76_spill] sm:$0xff] }
 0xb49   : > { %9465 = vmatpush1.msra.mxu0 %v9393_v31  ;;  %12497 = vmatprep.subr.mxu1 %v19583_v22  ;;  %v9664_v31 = vsel %vm9648_vm11, %v19732_v24, %v18114_v18  ;;  %v9661_v18 = vsel %vm9648_vm11, %v19736_v47, %v19735_v7  ;;  %v9652_v57 = vsel %vm9648_vm11, %v19748_v26, %v19747_v52 }
 0xb4a   : > { %9466 = vmatprep.subr.mxu0 %v9391_v44  ;;  %12498 = vmatpush3.msra.mxu1 %v9392_v30  ;;  %v9662_v44 = vsel %vm9648_vm11, %v19735_v7, %v19734_v21  ;;  %v19752_v7 = vld [vmem:[#allocation34_spill] sm:$0xff] }
 0xb4b   : > { %9467 = vmatpush1.msra.mxu0 %v9390_v13  ;;  %12499 = vmatprep.subr.mxu1 %v19583_v22  ;;  %v19737_v13 = vld [vmem:[#allocation18_spill] sm:$0xff] }
 0xb4c   : > { %v9645_v0 = vpop.permute.xlu0 %9644  ;;  %9468 = vmatprep.subr.mxu0 %v9388_v33  ;;  %12500 = vmatpush3.msra.mxu1 %v9389_v3  ;;  %v9658_v33 = vsel %vm9648_vm11, %v19740_v11, %v19739_v9 }
 0xb4d   : > { %v9672_v8 = vsel %vm9648_vm11, %v9645_v0, %v17991_v15  ;;  %9469 = vmatpush1.msra.mxu0 %v9387_v35  ;;  %12502 = vmatmul.mubr.msk.f32.vlgmr.msra.gmra.mxu1 %vm3614_vm14, %v11636_v17  ;;  %v9671_v36 = vsel %vm9648_vm11, %v19725_v38, %v9645_v0  ;;  %v9669_v15 = vsel %vm9648_vm11, %v19728_v59, %v19727_v2  ;;  %v19741_v0 = vld [vmem:[#allocation30_spill] sm:$0xff]  ;;  %v19745_v59 = vld [vmem:[#allocation63_spill] sm:$0xff] }
 0xb4e   : > { %12504 = vmatprep.subr.mxu1 %v19583_v22  ;;  %11637 = vmatmul.mubr.msk.f32.vlgmr.msra.gmra.mxu0 %vm3614_vm14, %v11636_v17  ;;  %v19738_v17 = vld [vmem:[#allocation113_spill] sm:$0xff]  ;;  %v9657_v35 = vsel %vm9648_vm11, %v19742_v34, %v19741_v0  ;;  %v19757_v0 = vld [vmem:[#allocation111_spill] sm:$0xff] }
 0xb4f   : > { %9716 = vmatprep.subr.mxu0 %v9671_v36  ;;  %12505 = vmatpush3.msra.mxu1 %v9672_v8  ;;  %v9660_v25 = vsel %vm9648_vm11, %v19738_v17, %v19737_v13  ;;  %v9659_v3 = vsel %vm9648_vm11, %v19739_v9, %v19738_v17  ;;  %v18496_v8 = vpop.permute.xlu1 %10682  ;;  %v19743_v36 = vld [vmem:[#allocation98_spill] sm:$0xff]  ;;  %v19754_v17 = vld [vmem:[#allocation33_spill] sm:$0xff] }
 0xb50   : > { %9717 = vmatpush1.msra.mxu0 %v9670_v27  ;;  %12506 = vmatprep.subr.mxu1 %v19583_v22  ;;  %v18451_v46 = vpop.permute.xlu0 %10374  ;;  %v9656_v42 = vsel %vm9648_vm11, %v19743_v36, %v19742_v34  ;;  %v19744_v27 = vld [vmem:[#allocation89_spill] sm:$0xff] }
 0xb51   : > { %9718 = vmatprep.subr.mxu0 %v9668_v16  ;;  %12507 = vmatpush3.msra.mxu1 %v9669_v15  ;;  %v9655_v2 = vsel %vm9648_vm11, %v19744_v27, %v19743_v36  ;;  %v19746_v15 = vld [vmem:[#allocation43_spill] sm:$0xff] }
 0xb52   : > { %9719 = vmatpush1.msra.mxu0 %v9667_v62  ;;  %12508 = vmatprep.subr.mxu1 %v19583_v22  ;;  %v9654_v16 = vsel %vm9648_vm11, %v19746_v15, %v19745_v59  ;;  %v9653_v62 = vsel %vm9648_vm11, %v19747_v52, %v19746_v15  ;;  %v19761_v59 = vld [vmem:[#allocation41_spill] sm:$0xff]  ;;  %v19762_v52 = vld [vmem:[#allocation134_spill] sm:$0xff] }
 0xb53   : > { %9720 = vmatprep.subr.mxu0 %v9665_v37  ;;  %12509 = vmatpush3.msra.mxu1 %v9666_v5  ;;  %v19749_v5 = vld [vmem:[#allocation105_spill] sm:$0xff]  ;;  %v19750_v37 = vld [vmem:[#allocation94_spill] sm:$0xff]  ;;  %v18530_v47 = vpop.permute.xlu1 %10678 }
 0xb54   : > { %9721 = vmatpush1.msra.mxu0 %v9664_v31  ;;  %12510 = vmatprep.subr.mxu1 %v19583_v22  ;;  %v18475_v30 = vpop.permute.xlu0 %10680  ;;  %v9651_v24 = vsel %vm9648_vm11, %v19750_v37, %v19749_v5  ;;  %v9650_v21 = vsel %vm9648_vm11, %v19751_v12, %v19750_v37  ;;  %v19764_v37 = vld [vmem:[#allocation51_spill] sm:$0xff] }
 0xb55   : > { %9722 = vmatprep.subr.mxu0 %v9662_v44  ;;  %12511 = vmatpush3.msra.mxu1 %v9663_v50  ;;  %v11639_v50 = vld [vmem:[%s18944_s9 + $0x18] sm:$0x1f]  ;;  %v9649_v44 = vsel %vm9648_vm11, %v19752_v7, %v19751_v12  ;;  %v19766_v12 = vld [vmem:[#allocation132_spill] sm:$0xff] }
 0xb56   : > { %9723 = vmatpush1.msra.mxu0 %v9661_v18  ;;  %12512 = vmatprep.subr.mxu1 %v19583_v22  ;;  %v19753_v18 = vld [vmem:[#allocation121_spill] sm:$0xff] }
 0xb57   : > { %9724 = vmatprep.subr.mxu0 %v9659_v3  ;;  %12513 = vmatpush3.msra.mxu1 %v9660_v25  ;;  %v19755_v3 = vld [vmem:[#allocation39_spill] sm:$0xff] }
 0xb58   : > { %9725 = vmatpush1.msra.mxu0 %v9658_v33  ;;  %12514 = vmatprep.subr.mxu1 %v19583_v22  ;;  %v18499_v38 = vpop.permute.xlu0 %10692  ;;  %v9931_v11 = vsel %vm693_vm4, %v19755_v3, %v19754_v17  ;;  %v19756_v33 = vld [vmem:[#allocation129_spill] sm:$0xff] }
 0xb59   : > { %9726 = vmatprep.subr.mxu0 %v9656_v42  ;;  %12515 = vmatpush3.msra.mxu1 %v9657_v35  ;;  %v9930_v34 = vsel %vm693_vm4, %v19757_v0, %v19756_v33  ;;  %v19758_v35 = vld [vmem:[#allocation136_spill] sm:$0xff]  ;;  %v19759_v42 = vld [vmem:[#allocation22_spill] sm:$0xff] }
 0xb5a   : > { %9727 = vmatpush1.msra.mxu0 %v9655_v2  ;;  %12516 = vmatprep.subr.mxu1 %v19583_v22  ;;  %v9929_v36 = vsel %vm693_vm4, %v19758_v35, %v19757_v0  ;;  %v9928_v27 = vsel %vm693_vm4, %v19759_v42, %v19758_v35  ;;  %v19760_v2 = vld [vmem:[#allocation48_spill] sm:$0xff]  ;;  %v19774_v42 = vld [vmem:[#allocation53_spill] sm:$0xff] }
 0xb5b   : > { %9728 = vmatprep.subr.mxu0 %v9653_v62  ;;  %12517 = vmatpush3.msra.mxu1 %v9654_v16  ;;  %v9927_v15 = vsel %vm693_vm4, %v19761_v59, %v19760_v2  ;;  %v18560_v16 = vpop.permute.xlu1 %10674  ;;  %v9926_v62 = vsel %vm693_vm4, %v19762_v52, %v19761_v59  ;;  %v19772_v0 = vld [vmem:[#allocation20_spill] sm:$0xff]  ;;  %v19775_v2 = vld [vmem:[#allocation29_spill] sm:$0xff] }
 0xb5c   : > { %9729 = vmatpush1.msra.mxu0 %v9652_v57  ;;  %12518 = vmatprep.subr.mxu1 %v19583_v22  ;;  %v9907_v31 = vpop.permute.xlu0 %9906  ;;  %v19763_v57 = vld [vmem:[#allocation60_spill] sm:$0xff]  ;;  %v9916_v59 = vsel %vm693_vm4, %v19775_v2, %v19774_v42  ;;  %v19787_v2 = vld [vmem:[#allocation130_spill] sm:$0xff] }
 0xb5d   : > { %9730 = vmatprep.subr.mxu0 %v9650_v21  ;;  %12519 = vmatpush3.msra.mxu1 %v9651_v24  ;;  %v9933_v13 = vsel %vm693_vm4, %v9907_v31, %v19753_v18  ;;  %v9932_v25 = vsel %vm693_vm4, %v19754_v17, %v9907_v31  ;;  %v9925_v5 = vsel %vm693_vm4, %v19763_v57, %v19762_v52  ;;  %v19765_v24 = vld [vmem:[#allocation68_spill] sm:$0xff]  ;;  %v19769_v18 = vld [vmem:[#allocation114_spill] sm:$0xff]  ;;  %v19778_v57 = vld [vmem:[#allocation83_spill] sm:$0xff] }
 0xb5e   : > { %12520 = vmatprep.mubr.msk.f32.mxu1 %vm12745_vm5, %v19583_v22  ;;  %9731 = vmatpush1.msra.mxu0 %v9649_v44  ;;  %v9924_v31 = vsel %vm693_vm4, %v19765_v24, %v19764_v37  ;;  %v9923_v21 = vsel %vm693_vm4, %v19766_v12, %v19765_v24  ;;  %v19768_v44 = vld [vmem:[#allocation78_spill] sm:$0xff]  ;;  %v19777_v52 = vld [vmem:[#allocation72_spill] sm:$0xff]  ;;  %v19779_v24 = vld [vmem:[#allocation7_spill] sm:$0xff] }
 0xb5f   : > { %9764 = vmatprep.mubr.f32.mxu0 %v19583_v22  ;;  %12521 = vmatmul.mubr.msk.f32.vlgmr.msra.gmra.mxu1 %vm3614_vm14, %v11639_v50  ;;  %v19770_v17 = vld [vmem:[#allocation122_spill] sm:$0xff] }
 0xb60   : > { %12523 = vmatprep.subr.mxu1 %v19583_v22  ;;  %11640 = vmatmul.mubr.msk.f32.vlgmr.msra.gmra.mxu0 %vm3614_vm14, %v11639_v50  ;;  %v18542_v9 = vpop.permute.xlu0 %10672  ;;  %v19767_v50 = vld [vmem:[#allocation13_spill] sm:$0xff] }
 0xb61   : > { %9977 = vmatprep.subr.mxu0 %v9932_v25  ;;  %12524 = vmatpush3.msra.mxu1 %v9933_v13  ;;  %v9922_v7 = vsel %vm693_vm4, %v19767_v50, %v19766_v12  ;;  %v9921_v13 = vsel %vm693_vm4, %v19769_v18, %v19768_v44  ;;  %v9920_v25 = vsel %vm693_vm4, %v19770_v17, %v19769_v18  ;;  %v19780_v12 = vld [vmem:[#allocation108_spill] sm:$0xff]  ;;  %v11642_v18 = vld [vmem:[%s18944_s9 + $0x20] sm:$0x1f] }
 0xb62   : > { %9978 = vmatpush1.msra.mxu0 %v9931_v11  ;;  %12525 = vmatprep.subr.mxu1 %v19583_v22  ;;  %v19771_v11 = vld [vmem:[#allocation69_spill] sm:$0xff] }
 0xb63   : > { %9979 = vmatprep.subr.mxu0 %v9929_v36  ;;  %12526 = vmatpush3.msra.mxu1 %v9930_v34  ;;  %v9919_v33 = vsel %vm693_vm4, %v19771_v11, %v19770_v17  ;;  %v19773_v34 = vld [vmem:[#allocation42_spill] sm:$0xff]  ;;  %v18596_v36 = vpop.permute.xlu1 %10670  ;;  %v19784_v11 = vld [vmem:[#allocation123_spill] sm:$0xff] }
 0xb64   : > { %9980 = vmatpush1.msra.mxu0 %v9928_v27  ;;  %12527 = vmatprep.subr.mxu1 %v19583_v22  ;;  %v18566_v26 = vpop.permute.xlu0 %10684  ;;  %v9918_v35 = vsel %vm693_vm4, %v19773_v34, %v19772_v0  ;;  %v9917_v27 = vsel %vm693_vm4, %v19774_v42, %v19773_v34  ;;  %v19785_v0 = vld [vmem:[#allocation50_spill] sm:$0xff]  ;;  %v19786_v42 = vld [vmem:[#allocation9_spill] sm:$0xff] }
 0xb65   : > { %9981 = vmatprep.subr.mxu0 %v9926_v62  ;;  %12528 = vmatpush3.msra.mxu1 %v9927_v15  ;;  %v19776_v15 = vld [vmem:[#allocation38_spill] sm:$0xff] }
 0xb66   : > { %9982 = vmatpush1.msra.mxu0 %v9925_v5  ;;  %12529 = vmatprep.subr.mxu1 %v19583_v22  ;;  %v9915_v62 = vsel %vm693_vm4, %v19777_v52, %v19776_v15  ;;  %v9914_v5 = vsel %vm693_vm4, %v19778_v57, %v19777_v52  ;;  %v19789_v52 = vld [vmem:[#allocation137_spill] sm:$0xff] }
 0xb67   : > { %9983 = vmatprep.subr.mxu0 %v9923_v21  ;;  %12530 = vmatpush3.msra.mxu1 %v9924_v31  ;;  %v9913_v31 = vsel %vm693_vm4, %v19779_v24, %v19778_v57  ;;  %v19781_v21 = vld [vmem:[#allocation95_spill] sm:$0xff]  ;;  %v19791_v24 = vld [vmem:[#allocation61_spill] sm:$0xff] }
 0xb68   : > { %9984 = vmatpush1.msra.mxu0 %v9922_v7  ;;  %12531 = vmatprep.subr.mxu1 %v19583_v22  ;;  %v18588_v3 = vpop.permute.xlu0 %10664  ;;  %v9912_v50 = vsel %vm693_vm4, %v19781_v21, %v19780_v12  ;;  %v19782_v7 = vld [vmem:[#allocation40_spill] sm:$0xff] }
 0xb69   : > { %9985 = vmatprep.subr.mxu0 %v9920_v25  ;;  %12532 = vmatpush3.msra.mxu1 %v9921_v13  ;;  %v9911_v44 = vsel %vm693_vm4, %v19782_v7, %v19781_v21  ;;  %v19783_v13 = vld [vmem:[#allocation80_spill] sm:$0xff]  ;;  %v18628_v25 = vpop.permute.xlu1 %10666 }
 0xb6a   : > { %9986 = vmatpush1.msra.mxu0 %v9919_v33  ;;  %12533 = vmatprep.subr.mxu1 %v19583_v22  ;;  %v9910_v17 = vsel %vm693_vm4, %v19783_v13, %v19782_v7  ;;  %v19795_v13 = vld [vmem:[#allocation65_spill] sm:$0xff]  ;;  %vm11067_vm4 = vcmask 487424  }
 0xb6b   : > { %9987 = vmatprep.subr.mxu0 %v9917_v27  ;;  %12534 = vmatpush3.msra.mxu1 %v9918_v35  ;;  %v10192_v27 = vsel %vm431_vm2, %v19786_v42, %v19785_v0  ;;  %v19798_v42 = vld [vmem:[#allocation21_spill] sm:$0xff] }
 0xb6c   : > { %9988 = vmatpush1.msra.mxu0 %v9916_v59  ;;  %12535 = vmatprep.subr.mxu1 %v19583_v22  ;;  %v10168_v37 = vpop.permute.xlu0 %10167  ;;  %v19788_v59 = vld [vmem:[#allocation23_spill] sm:$0xff] }
 0xb6d   : > { %9989 = vmatprep.subr.mxu0 %v9914_v5  ;;  %12536 = vmatpush3.msra.mxu1 %v9915_v62  ;;  %v10194_v33 = vsel %vm431_vm2, %v10168_v37, %v19784_v11  ;;  %v10193_v34 = vsel %vm431_vm2, %v19785_v0, %v10168_v37  ;;  %v10191_v15 = vsel %vm431_vm2, %v19788_v59, %v19787_v2  ;;  %v19790_v5 = vld [vmem:[#allocation55_spill] sm:$0xff]  ;;  %v18660_v21 = vpop.permute.xlu1 %10662  ;;  %v19799_v2 = vld [vmem:[#allocation62_spill] sm:$0xff] }
 0xb6e   : > { %9990 = vmatpush1.msra.mxu0 %v9913_v31  ;;  %12537 = vmatprep.subr.mxu1 %v19583_v22  ;;  %v10190_v62 = vsel %vm431_vm2, %v19789_v52, %v19788_v59  ;;  %v10189_v37 = vsel %vm431_vm2, %v19790_v5, %v19789_v52  ;;  %v19792_v31 = vld [vmem:[#allocation82_spill] sm:$0xff]  ;;  %v19800_v59 = vld [vmem:[#allocation117_spill] sm:$0xff]  ;;  %v19802_v5 = vld [vmem:[#allocation84_spill] sm:$0xff] }
 0xb6f   : > { %9991 = vmatprep.subr.mxu0 %v9911_v44  ;;  %12538 = vmatpush3.msra.mxu1 %v9912_v50  ;;  %v10188_v12 = vsel %vm431_vm2, %v19792_v31, %v19791_v24  ;;  %v19793_v50 = vld [vmem:[#allocation135_spill] sm:$0xff]  ;;  %v19801_v52 = vld [vmem:[#allocation125_spill] sm:$0xff] }
 0xb70   : > { %12539 = vmatprep.mubr.msk.f32.mxu1 %vm12745_vm5, %v19583_v22  ;;  %9992 = vmatpush1.msra.mxu0 %v9910_v17  ;;  %v18636_v35 = vpop.permute.xlu0 %10676  ;;  %v10187_v7 = vsel %vm431_vm2, %v19793_v50, %v19792_v31  ;;  %v19794_v44 = vld [vmem:[#allocation11_spill] sm:$0xff] }
 0xb71   : > { %10025 = vmatprep.mubr.f32.mxu0 %v19583_v22  ;;  %12540 = vmatmul.mubr.msk.f32.vlgmr.msra.gmra.mxu1 %vm3614_vm14, %v11642_v18  ;;  %v19796_v17 = vld [vmem:[#allocation99_spill] sm:$0xff] }
 0xb72   : > { %12542 = vmatprep.subr.mxu1 %v19583_v22  ;;  %11643 = vmatmul.mubr.msk.f32.vlgmr.msra.gmra.mxu0 %vm3614_vm14, %v11642_v18  ;;  %v10186_v18 = vsel %vm431_vm2, %v19794_v44, %v19793_v50  ;;  %v10185_v11 = vsel %vm431_vm2, %v19796_v17, %v19795_v13  ;;  %v19803_v31 = vld [vmem:[#allocation27_spill] sm:$0xff] }
 0xb73   : > { %10238 = vmatprep.subr.mxu0 %v10193_v34  ;;  %12543 = vmatpush3.msra.mxu1 %v10194_v33  ;;  %v19797_v33 = vld [vmem:[#allocation133_spill] sm:$0xff]  ;;  %v19805_v44 = vld [vmem:[#allocation47_spill] sm:$0xff] }
 0xb74   : > { %10239 = vmatpush1.msra.mxu0 %v10192_v27  ;;  %12544 = vmatprep.subr.mxu1 %v19583_v22  ;;  %v18652_v57 = vpop.permute.xlu0 %10656  ;;  %v10184_v0 = vsel %vm431_vm2, %v19797_v33, %v19796_v17  ;;  %v10183_v27 = vsel %vm431_vm2, %v19798_v42, %v19797_v33  ;;  %v19806_v17 = vld [vmem:[#allocation85_spill] sm:$0xff]  ;;  %v19808_v42 = vld [vmem:[#allocation79_spill] sm:$0xff] }
 0xb75   : > { %10240 = vmatprep.subr.mxu0 %v10190_v62  ;;  %12545 = vmatpush3.msra.mxu1 %v10191_v15  ;;  %v10182_v15 = vsel %vm431_vm2, %v19800_v59, %v19799_v2  ;;  %v10181_v62 = vsel %vm431_vm2, %v19801_v52, %v19800_v59  ;;  %v19809_v2 = vld [vmem:[#allocation26_spill] sm:$0xff] }
 0xb76   : > { %10241 = vmatpush1.msra.mxu0 %v10189_v37  ;;  %12546 = vmatprep.subr.mxu1 %v19583_v22  ;;  %v10180_v37 = vsel %vm431_vm2, %v19802_v5, %v19801_v52  ;;  %v10175_v59 = vsel %vm431_vm2, %v19809_v2, %v19808_v42  ;;  %v19812_v5 = vld [vmem:[#allocation67_spill] sm:$0xff] }
 0xb77   : > { %10242 = vmatprep.subr.mxu0 %v10187_v7  ;;  %12547 = vmatpush3.msra.mxu1 %v10188_v12  ;;  %v19804_v12 = vld [vmem:[#allocation118_spill] sm:$0xff]  ;;  %v18696_v7 = vpop.permute.xlu1 %10658 }
 0xb78   : > { %10243 = vmatpush1.msra.mxu0 %v10186_v18  ;;  %12548 = vmatprep.subr.mxu1 %v19583_v22  ;;  %v18676_v34 = vpop.permute.xlu0 %10668  ;;  %v10179_v50 = vsel %vm431_vm2, %v19804_v12, %v19803_v31  ;;  %v10178_v18 = vsel %vm431_vm2, %v19805_v44, %v19804_v12  ;;  %v19813_v31 = vld [vmem:[#allocation17_spill] sm:$0xff] }
 0xb79   : > { %10244 = vmatprep.subr.mxu0 %v10184_v0  ;;  %12549 = vmatpush3.msra.mxu1 %v10185_v11  ;;  %v10177_v11 = vsel %vm431_vm2, %v19806_v17, %v19805_v44  ;;  %v19807_v0 = vld [vmem:[#allocation93_spill] sm:$0xff]  ;;  %v10172_v12 = vsel %vm431_vm2, %v19813_v31, %v19812_v5 }
 0xb7a   : > { %10245 = vmatpush1.msra.mxu0 %v10183_v27  ;;  %12550 = vmatprep.subr.mxu1 %v19583_v22  ;;  %v10176_v27 = vsel %vm431_vm2, %v19808_v42, %v19807_v0  ;;  %v19815_v0 = vld [vmem:[#allocation119_spill] sm:$0xff] }
 0xb7b   : > { %10246 = vmatprep.subr.mxu0 %v10181_v62  ;;  %12551 = vmatpush3.msra.mxu1 %v10182_v15  ;;  %v18691_v24 = vpop.f32.mrf.mxu1  ;;  %v19810_v15 = vld [vmem:[#allocation115_spill] sm:$0xff]  ;;  %v19811_v62 = vld [vmem:[#allocation109_spill] sm:$0xff] }
 0xb7c   : > { %10247 = vmatpush1.msra.mxu0 %v10180_v37  ;;  %12552 = vmatprep.subr.mxu1 %v19583_v22  ;;  %v10429_v13 = vpop.permute.xlu0 %10428  ;;  %v10174_v52 = vsel %vm431_vm2, %v19810_v15, %v19809_v2  ;;  %v10173_v37 = vsel %vm431_vm2, %v19812_v5, %v19811_v62 }
 0xb7d   : > { %10248 = vmatprep.subr.mxu0 %v10178_v18  ;;  %12553 = vmatpush3.msra.mxu1 %v10179_v50  ;;  %v12465_v33 = vpop.f32.mrf.mxu1  ;;  %v11645_v50 = vld [vmem:[%s18944_s9 + $0x28] sm:$0x1f]  ;;  %v10455_v42 = vsel %vm10432_vm9, %v19815_v0, %v10429_v13 }
 0xb7e   : > { %10249 = vmatpush1.msra.mxu0 %v10177_v11  ;;  %12554 = vmatprep.subr.mxu1 %v19583_v22  ;;  %v19814_v18 = vld [vmem:[#allocation116_spill] sm:$0xff]  ;;  %v18730_v11 = vpop.permute.xlu1 %10654  ;;  %v10456_v33 = vsel %vm10432_vm9, %v10429_v13, %v18216_v10 }
 0xb7f   : > { %10250 = vmatprep.subr.mxu0 %v10175_v59  ;;  %12555 = vmatpush3.msra.mxu1 %v10176_v27  ;;  %v10171_v17 = vsel %vm431_vm2, %v19814_v18, %v19813_v31  ;;  %v19816_v27 = vld [vmem:[#allocation124_spill] sm:$0xff]  ;;  %v19817_v59 = vld [vmem:[#allocation126_spill] sm:$0xff]  ;;  %v10445_v18 = vsel %vm10432_vm9, %v18230_v32, %v18277_v45  ;;  %v10440_v32 = vsel %vm10432_vm9, %v18334_v51, %v18308_v40  ;;  %vm396_vm2 = vcmask 126976  }
 0xb80   : > { %10251 = vmatpush1.msra.mxu0 %v10174_v52  ;;  %12556 = vmatprep.subr.mxu1 %v19583_v22  ;;  %v18725_v44 = vpop.permute.xlu0 %10648  ;;  %v10454_v2 = vsel %vm10432_vm9, %v19816_v27, %v19815_v0  ;;  %v10453_v13 = vsel %vm10432_vm9, %v19817_v59, %v18260_v4  ;;  %v10452_v15 = vsel %vm10432_vm9, %v18193_v53, %v19817_v59  ;;  %v19818_v52 = vld [vmem:[#allocation127_spill] sm:$0xff]  ;;  %v12701_v59 = vld [vmem:[#allocation5 + $0x100] sm:$0xff] }
 0xb81   : > { %10252 = vmatprep.subr.mxu0 %v10172_v12  ;;  %12557 = vmatpush3.msra.mxu1 %v10173_v37  ;;  %v10451_v62 = vsel %vm10432_vm9, %v19818_v52, %v18193_v53  ;;  %v19819_v37 = vld [vmem:[#allocation138_spill] sm:$0xff]  ;;  %v10448_v12 = vsel %vm10432_vm9, %v18166_v23, %v18242_v43  ;;  %v12704_v52 = vld [vmem:[#allocation5 + $0xd8] sm:$0xff]  ;;  %11071 = vst.msk [vmem:[%s18922_s28 + $0x18] sm:$0x1f] %vm396_vm2, %v19583_v22 }
 0xb82   : > { %12558 = vmatprep.mubr.msk.f32.mxu1 %vm12745_vm5, %v19583_v22  ;;  %10253 = vmatpush1.msra.mxu0 %v10171_v17  ;;  %v18757_v5 = vpop.permute.xlu1 %10650  ;;  %v10450_v31 = vsel %vm10432_vm9, %v19819_v37, %v18293_v63  ;;  %v10449_v4 = vsel %vm10432_vm9, %v18242_v43, %v19819_v37  ;;  %v10446_v63 = vsel %vm10432_vm9, %v18277_v45, %v18190_v19  ;;  %v12707_v37 = vld [vmem:[#allocation5 + $0xb0] sm:$0xff] }
 0xb83   : > { %10286 = vmatprep.mubr.f32.mxu0 %v19583_v22  ;;  %12559 = vmatmul.mubr.msk.f32.vlgmr.msra.gmra.mxu1 %vm3614_vm14, %v11645_v50  ;;  %v10439_v45 = vsel %vm10432_vm9, %v18332_v48, %v18334_v51  ;;  %v10435_v48 = vsel %vm10432_vm9, %v18359_v20, %v18451_v46  ;;  %v10434_v51 = vsel %vm10432_vm9, %v18383_v49, %v18359_v20 }
 0xb84   : > { %12561 = vmatprep.subr.mxu1 %v19583_v22  ;;  %11646 = vmatmul.mubr.msk.f32.vlgmr.msra.gmra.mxu0 %vm3614_vm14, %v11645_v50  ;;  %v10447_v50 = vsel %vm10432_vm9, %v18190_v19, %v18327_v58  ;;  %v10441_v19 = vsel %vm10432_vm9, %v18308_v40, %v18364_v61  ;;  %v10436_v40 = vsel %vm10432_vm9, %v18343_v39, %v18341_v1 }
 0xb85   : > { %10500 = vmatprep.subr.mxu0 %v10455_v42  ;;  %12562 = vmatpush3.msra.mxu1 %v10456_v33  ;;  %v18745_v10 = vpop.permute.xlu0 %10660  ;;  %v10712_v46 = vsel %vm1255_vm6, %v18530_v47, %v18475_v30  ;;  %v10707_v47 = vsel %vm1255_vm6, %v18588_v3, %v18628_v25 }
 0xb86   : > { %10501 = vmatpush1.msra.mxu0 %v10454_v2  ;;  %12563 = vmatprep.subr.mxu1 %v19583_v22  ;;  %v18784_v43 = vpop.permute.xlu1 %10646  ;;  %v12699_v2 = vld [vmem:[#allocation5 + $0x128] sm:$0xff] }
 0xb87   : > { %10502 = vmatprep.subr.mxu0 %v10452_v15  ;;  %12564 = vmatpush3.msra.mxu1 %v10453_v13  ;;  %v12702_v13 = vld [vmem:[#allocation5 + $0x130] sm:$0xff]  ;;  %v12703_v15 = vld [vmem:[#allocation5 + $0xf8] sm:$0xff] }
 0xb88   : > { %10503 = vmatpush1.msra.mxu0 %v10451_v62  ;;  %12565 = vmatprep.subr.mxu1 %v19583_v22  ;;  %v12705_v62 = vld [vmem:[#allocation5 + $0x108] sm:$0xff] }
 0xb89   : > { %10504 = vmatprep.subr.mxu0 %v10449_v4  ;;  %12566 = vmatpush3.msra.mxu1 %v10450_v31  ;;  %v18769_v53 = vpop.permute.xlu0 %10640  ;;  %v12708_v31 = vld [vmem:[#allocation5 + $0xe0] sm:$0xff]  ;;  %v12709_v4 = vld [vmem:[#allocation5 + $0xa8] sm:$0xff] }
 0xb8a   : > { %10505 = vmatpush1.msra.mxu0 %v10448_v12  ;;  %12567 = vmatprep.subr.mxu1 %v19583_v22  ;;  %v12710_v12 = vld [vmem:[#allocation5 + $0x88] sm:$0xff] }
 0xb8b   : > { %10506 = vmatprep.subr.mxu0 %v10446_v63  ;;  %12568 = vmatpush3.msra.mxu1 %v10447_v50  ;;  %v12712_v50 = vld [vmem:[#allocation5 + $0x80] sm:$0xff] }
 0xb8c   : > { %10507 = vmatpush1.msra.mxu0 %v10445_v18  ;;  %12569 = vmatprep.subr.mxu1 %v19583_v22  ;;  %v12713_v63 = vld [vmem:[#allocation5 + $0x60] sm:$0xff]  ;;  %v12714_v18 = vld [vmem:[#allocation5 + $0x90] sm:$0xff] }
 0xb8d   : > { %10508 = vmatprep.subr.mxu0 %v18320_v54  ;;  %12570 = vmatpush3.msra.mxu1 %v18339_v28  ;;  %v10691_v23 = vpop.permute.xlu0 %10690  ;;  %v10438_v54 = vsel %vm10432_vm9, %v18336_v14, %v18407_v6  ;;  %v10433_v28 = vsel %vm10432_vm9, %v18395_v60, %v18383_v49  ;;  %v10715_v49 = vsel %vm1255_vm6, %v18462_v55, %v18432_v29 }
 0xb8e   : > { %10509 = vmatpush1.msra.mxu0 %v18314_v56  ;;  %12571 = vmatprep.subr.mxu1 %v19583_v22  ;;  %v10437_v56 = vsel %vm10432_vm9, %v18341_v1, %v18336_v14  ;;  %v11648_v14 = vld [vmem:[%s18944_s9 + $0x30] sm:$0x1f]  ;;  %v10643_v1 = vpop.permute.xlu1 %10642  ;;  %v10717_v39 = vsel %vm1255_vm6, %v10691_v23, %v18499_v38  ;;  %v10716_v20 = vsel %vm1255_vm6, %v18432_v29, %v10691_v23 }
 0xb8f   : > { %10510 = vmatprep.subr.mxu0 %v10440_v32  ;;  %12572 = vmatpush3.msra.mxu1 %v10441_v19  ;;  %v10714_v60 = vsel %vm1255_vm6, %v18496_v8, %v18566_v26  ;;  %v10713_v6 = vsel %vm1255_vm6, %v18475_v30, %v18496_v8  ;;  %v10711_v55 = vsel %vm1255_vm6, %v18560_v16, %v18636_v35  ;;  %v12715_v23 = vld [vmem:[#allocation5 + $0x58] sm:$0xff]  ;;  %v12717_v19 = vld [vmem:[#allocation5 + $0x68] sm:$0xff]  ;;  %v12718_v32 = vld [vmem:[#allocation5 + $0x30] sm:$0xff] }
 0xb90   : > { %10511 = vmatpush1.msra.mxu0 %v10439_v45  ;;  %12573 = vmatprep.subr.mxu1 %v19583_v22  ;;  %v10710_v38 = vsel %vm1255_vm6, %v18542_v9, %v18560_v16  ;;  %v10709_v8 = vsel %vm1255_vm6, %v18596_v36, %v18542_v9  ;;  %v10708_v30 = vsel %vm1255_vm6, %v18628_v25, %v18676_v34  ;;  %v11654_v45 = vld [vmem:[%s18944_s9 + $0x40] sm:$0x1f] }
 0xb91   : > { %10512 = vmatprep.subr.mxu0 %v10437_v56  ;;  %12574 = vmatpush3.msra.mxu1 %v10438_v54  ;;  %v10653_v58 = vpop.permute.xlu0 %10652  ;;  %v10706_v16 = vsel %vm1255_vm6, %v18660_v21, %v18588_v3  ;;  %v10705_v9 = vsel %vm1255_vm6, %v18696_v7, %v18745_v10  ;;  %v10704_v36 = vsel %vm1255_vm6, %v18652_v57, %v18696_v7  ;;  %v12700_v10 = vld [vmem:[#allocation5 + $0x120] sm:$0xff]  ;;  %v12719_v54 = vld [vmem:[#allocation5 + $0x10] sm:$0xff]  ;;  %v12720_v56 = vld [vmem:[#allocation5 + $0x8] sm:$0xff] }
 0xb92   : > { %10513 = vmatpush1.msra.mxu0 %v10436_v40  ;;  %12575 = vmatprep.subr.mxu1 %v19583_v22  ;;  %v10639_v29 = vpop.permute.xlu1 %10638  ;;  %v10703_v25 = vsel %vm1255_vm6, %v18730_v11, %v18652_v57  ;;  %v10702_v35 = vsel %vm1255_vm6, %v18757_v5, %v10653_v58  ;;  %v10701_v34 = vsel %vm1255_vm6, %v18725_v44, %v18757_v5  ;;  %v12706_v5 = vld [vmem:[#allocation5 + $0xd0] sm:$0xff]  ;;  %v12721_v40 = vld [vmem:[#allocation5 + $0x18] sm:$0xff] }
 0xb93   : > { %10514 = vmatprep.subr.mxu0 %v10434_v51  ;;  %12576 = vmatpush3.msra.mxu1 %v10435_v48  ;;  %v10700_v57 = vsel %vm1255_vm6, %v18784_v43, %v18725_v44  ;;  %v10698_v17 = vsel %vm1255_vm6, %v18769_v53, %v10643_v1  ;;  %v10697_v11 = vsel %vm1255_vm6, %v10639_v29, %v18769_v53  ;;  %v11651_v44 = vld [vmem:[%s18944_s9 + $0x38] sm:$0x1f]  ;;  %v12711_v53 = vld [vmem:[#allocation5 + $0xb8] sm:$0xff] }
 0xb94   : > { %12577 = vmatprep.mubr.msk.f32.mxu1 %vm12745_vm5, %v19583_v22  ;;  %10515 = vmatpush1.msra.mxu0 %v10433_v28  ;;  %v12716_v43 = vld [vmem:[#allocation5 + $0x38] sm:$0xff] }
 0xb95   : > { %10548 = vmatprep.mubr.f32.mxu0 %v19583_v22  ;;  %12578 = vmatmul.mubr.msk.f32.vlgmr.msra.gmra.mxu1 %vm3614_vm14, %v11648_v14  ;;  %v10633_v61 = vpop.permute.xlu0 %10632 }
 0xb96   : > { %12580 = vmatprep.subr.mxu1 %v19583_v22  ;;  %11649 = vmatmul.mubr.msk.f32.vlgmr.msra.gmra.mxu0 %vm3614_vm14, %v11648_v14  ;;  %v10635_v3 = vpop.permute.xlu1 %10634 }
 0xb97   : > { %10761 = vmatprep.subr.mxu0 %v10716_v20  ;;  %12581 = vmatpush3.msra.mxu1 %v10717_v39  ;;  %v10695_v42 = vsel %vm1255_vm6, %v10633_v61, %v10635_v3 }
 0xb98   : > { %10762 = vmatpush1.msra.mxu0 %v10715_v49  ;;  %12582 = vmatprep.subr.mxu1 %v19583_v22 }
 0xb99   : > { %10763 = vmatprep.subr.mxu0 %v10713_v6  ;;  %12583 = vmatpush3.msra.mxu1 %v10714_v60  ;;  %v10645_v26 = vpop.permute.xlu0 %10644 }
 0xb9a   : > { %10764 = vmatpush1.msra.mxu0 %v10712_v46  ;;  %12584 = vmatprep.subr.mxu1 %v19583_v22  ;;  %v10699_v21 = vsel %vm1255_vm6, %v10643_v1, %v10645_v26  ;;  %v10631_v0 = vpop.permute.xlu1 %10630 }
 0xb9b   : > { %10765 = vmatprep.subr.mxu0 %v10710_v38  ;;  %12585 = vmatpush3.msra.mxu1 %v10711_v55  ;;  %v10694_v27 = vsel %vm1255_vm6, %v10631_v0, %v10633_v61 }
 0xb9c   : > { %10766 = vmatpush1.msra.mxu0 %v10709_v8  ;;  %12586 = vmatprep.subr.mxu1 %v19583_v22 }
 0xb9d   : > { %10767 = vmatprep.subr.mxu0 %v10707_v47  ;;  %12587 = vmatpush3.msra.mxu1 %v10708_v30  ;;  %v10637_v7 = vpop.permute.xlu0 %10636 }
 0xb9e   : > { %10768 = vmatpush1.msra.mxu0 %v10706_v16  ;;  %12588 = vmatprep.subr.mxu1 %v19583_v22  ;;  %v10696_v33 = vsel %vm1255_vm6, %v10635_v3, %v10637_v7  ;;  %vm11069_vm6 = vcmask 1044960  }
 0xb9f   : > { %10769 = vmatprep.subr.mxu0 %v10704_v36  ;;  %12589 = vmatpush3.msra.mxu1 %v10705_v9 }
 0xba0   : > { %10770 = vmatpush1.msra.mxu0 %v10703_v25  ;;  %12590 = vmatprep.subr.mxu1 %v19583_v22 }
 0xba1   : > { %10771 = vmatprep.subr.mxu0 %v10701_v34  ;;  %12591 = vmatpush3.msra.mxu1 %v10702_v35 }
 0xba2   : > { %10772 = vmatpush1.msra.mxu0 %v10700_v57  ;;  %12592 = vmatprep.subr.mxu1 %v19583_v22 }
 0xba3   : > { %10773 = vmatprep.subr.mxu0 %v10698_v17  ;;  %12593 = vmatpush3.msra.mxu1 %v10699_v21 }
 0xba4   : > { %10774 = vmatpush1.msra.mxu0 %v10697_v11  ;;  %10809 = vmatprep.mubr.f32.mxu0 %v19583_v22 }
 0xba5   : > { %10775 = vmatprep.subr.mxu0 %v10695_v42  ;;  %12594 = vmatprep.subr.mxu1 %v19583_v22 }
 0xba6   : > { %10776 = vmatpush1.msra.mxu0 %v10694_v27  ;;  %12595 = vmatpush3.msra.mxu1 %v10696_v33 }
 0xba7   : > { %11652 = vmatmul.mubr.msk.f32.vlgmr.msra.gmra.mxu0 %vm3614_vm14, %v11651_v44  ;;  %12596 = vmatprep.mubr.msk.f32.mxu1 %vm12745_vm5, %v19583_v22 }
 0xba8   : > { %10910 = vmatprep.subr.mxu0 %v12699_v2  ;;  %12597 = vmatmul.mubr.msk.f32.vlgmr.msra.gmra.mxu1 %vm3614_vm14, %v11651_v44 }
 0xba9   : > { %10911 = vmatpush1.msra.mxu0 %v12700_v10  ;;  %12599 = vmatprep.subr.mxu1 %v19583_v22 }
 0xbaa   : > { %10912 = vmatprep.subr.mxu0 %v12701_v59  ;;  %12600 = vmatpush3.msra.mxu1 %v12702_v13 }
 0xbab   : > { %10913 = vmatpush1.msra.mxu0 %v12703_v15  ;;  %12601 = vmatprep.subr.mxu1 %v19583_v22 }
 0xbac   : > { %10914 = vmatprep.subr.mxu0 %v12704_v52  ;;  %12602 = vmatpush3.msra.mxu1 %v12705_v62 }
 0xbad   : > { %10915 = vmatpush1.msra.mxu0 %v12706_v5  ;;  %12603 = vmatprep.subr.mxu1 %v19583_v22 }
 0xbae   : > { %10916 = vmatprep.subr.mxu0 %v12707_v37  ;;  %12604 = vmatpush3.msra.mxu1 %v12708_v31 }
 0xbaf   : > { %10917 = vmatpush1.msra.mxu0 %v12709_v4  ;;  %12605 = vmatprep.subr.mxu1 %v19583_v22 }
 0xbb0   : > { %10918 = vmatprep.subr.mxu0 %v12710_v12  ;;  %12606 = vmatpush3.msra.mxu1 %v12711_v53  ;;  %v11042_v12 = vpop.permute.xlu1 %11041 }
 0xbb1   : > { %10919 = vmatpush1.msra.mxu0 %v12712_v50  ;;  %12607 = vmatprep.subr.mxu1 %v19583_v22 }
 0xbb2   : > { %10920 = vmatprep.subr.mxu0 %v12713_v63  ;;  %12608 = vmatpush3.msra.mxu1 %v12714_v18 }
 0xbb3   : > { %10921 = vmatpush1.msra.mxu0 %v12715_v23  ;;  %12609 = vmatprep.subr.mxu1 %v19583_v22 }
 0xbb4   : > { %10922 = vmatprep.subr.mxu0 %v12716_v43  ;;  %12610 = vmatpush3.msra.mxu1 %v12717_v19 }
 0xbb5   : > { %10923 = vmatpush1.msra.mxu0 %v12718_v32  ;;  %12611 = vmatprep.subr.mxu1 %v19583_v22 }
 0xbb6   : > { %10924 = vmatprep.subr.mxu0 %v12719_v54  ;;  %12612 = vmatpush3.msra.mxu1 %v18301_v41 }
 0xbb7   : > { %10925 = vmatpush1.msra.mxu0 %v12720_v56  ;;  %10958 = vmatprep.mubr.f32.mxu0 %v19583_v22 }
 0xbb8   : > { %12613 = vmatprep.subr.mxu1 %v19583_v22  ;;  %11655 = vmatmul.mubr.msk.f32.vlgmr.msra.gmra.mxu0 %vm3614_vm14, %v11654_v45 }
 0xbb9   : > { %12614 = vmatpush3.msra.mxu1 %v12721_v40  ;;  %12615 = vmatprep.mubr.msk.f32.mxu1 %vm12745_vm5, %v19583_v22 }
 0xbba   : > { %12616 = vmatmul.mubr.msk.f32.vlgmr.msra.gmra.mxu1 %vm3614_vm14, %v11654_v45 }
 0xbd6   : > { %v9316_v58 = vpop.f32.mrf.mxu1 }
 0xbd7   : > { %v9317_v41 = vadd.f32 %v9316_v58, %v18691_v24 }
 0xbd8   : > { %v12484_v48 = vpop.f32.mrf.mxu1 }
 0xbdc   : > { %v8988_v29 = vpop.f32.mrf.mxu0 }
 0xbde   : > { %v8990_v55 = vpop.f32.mrf.mxu0 }
 0xbec   : > { %v9245_v38 = vpop.f32.mrf.mxu0 }
 0xbed   : > { %v9246_v7 = vadd.f32 %v9245_v38, %v8988_v29 }
 0xbee   : > { %v9247_v26 = vpop.f32.mrf.mxu0 }
 0xbef   : > { %v9248_v17 = vadd.f32 %v9247_v26, %v8990_v55 }
 0xc0d   : > { %v9575_v51 = vpop.f32.mrf.mxu1 }
 0xc0e   : > { %v9581_v14 = vadd.f32 %v9575_v51, %v9317_v41  ;;  %v9504_v8 = vpop.f32.mrf.mxu0 }
 0xc0f   : > { %v12503_v28 = vpop.f32.mrf.mxu1  ;;  %v9579_v11 = vadd.f32 %v9504_v8, %v9246_v7 }
 0xc10   : > { %v9506_v16 = vpop.f32.mrf.mxu0 }
 0xc11   : > { %v9580_v33 = vadd.f32 %v9506_v16, %v9248_v17 }
 0xc1f   : > { %v9837_v1 = vpop.f32.mrf.mxu1 }
 0xc20   : > { %v9843_v39 = vadd.f32 %v9837_v1, %v9581_v14  ;;  %v9766_v24 = vpop.f32.mrf.mxu0 }
 0xc21   : > { %v12522_v20 = vpop.f32.mrf.mxu1  ;;  %v9841_v0 = vadd.f32 %v9766_v24, %v9579_v11 }
 0xc22   : > { %v9768_v9 = vpop.f32.mrf.mxu0 }
 0xc23   : > { %v9842_v44 = vadd.f32 %v9768_v9, %v9580_v33 }
 0xc31   : > { %v10098_v61 = vpop.f32.mrf.mxu1 }
 0xc32   : > { %v10104_v49 = vadd.f32 %v10098_v61, %v9843_v39  ;;  %v10027_v36 = vpop.f32.mrf.mxu0 }
 0xc33   : > { %v12541_v60 = vpop.f32.mrf.mxu1  ;;  %v10102_v27 = vadd.f32 %v10027_v36, %v9841_v0 }
 0xc34   : > { %v10029_v25 = vpop.f32.mrf.mxu0 }
 0xc35   : > { %v10103_v10 = vadd.f32 %v10029_v25, %v9842_v44 }
 0xc43   : > { %v10359_v6 = vpop.f32.mrf.mxu1 }
 0xc44   : > { %v10288_v3 = vpop.f32.mrf.mxu0  ;;  %v10365_v13 = vadd.f32 %v10359_v6, %v10104_v49 }
 0xc45   : > { %v12560_v46 = vpop.f32.mrf.mxu1  ;;  %v10363_v59 = vadd.f32 %v10288_v3, %v10102_v27 }
 0xc46   : > { %v10290_v21 = vpop.f32.mrf.mxu0 }
 0xc47   : > { %v10364_v15 = vadd.f32 %v10290_v21, %v10103_v10 }
 0xc55   : > { %v10621_v30 = vpop.f32.mrf.mxu1 }
 0xc56   : > { %v10550_v57 = vpop.f32.mrf.mxu0  ;;  %v10627_v5 = vadd.f32 %v10621_v30, %v10365_v13 }
 0xc57   : > { %v12579_v47 = vpop.f32.mrf.mxu1  ;;  %v10625_v52 = vadd.f32 %v10550_v57, %v10363_v59 }
 0xc58   : > { %v10552_v42 = vpop.f32.mrf.mxu0 }
 0xc59   : > { %v10626_v37 = vadd.f32 %v10552_v42, %v10364_v15 }
 0xc67   : > { %v10811_v2 = vpop.f32.mrf.mxu0 }
 0xc68   : > { %v10882_v35 = vpop.f32.mrf.mxu1  ;;  %v10886_v31 = vadd.f32 %v10811_v2, %v10625_v52 }
 0xc69   : > { %v10813_v62 = vpop.f32.mrf.mxu0  ;;  %v10888_v53 = vadd.f32 %v10882_v35, %v10627_v5 }
 0xc6a   : > { %v12598_v34 = vpop.f32.mrf.mxu1  ;;  %v10887_v50 = vadd.f32 %v10813_v62, %v10626_v37 }
 0xc78   : > { %v10960_v4 = vpop.f32.mrf.mxu0 }
 0xc79   : > { %v11035_v63 = vadd.f32 %v10960_v4, %v10886_v31 }
 0xc7a   : > { %v11031_v18 = vpop.f32.mrf.mxu1  ;;  %v10962_v23 = vpop.f32.mrf.mxu0 }
 0xc7b   : > { %v11044_v43 = vadd.f32 %v11042_v12, %v11035_v63  ;;  %v11037_v19 = vadd.f32 %v11031_v18, %v10888_v53  ;;  %v11036_v32 = vadd.f32 %v10962_v23, %v10887_v50 }
 0xc7c   : > { %v12617_v45 = vpop.f32.mrf.mxu1 }
 0xc7d   : > { %v11657_v54 = vmul.f32 -1.442695, %v11044_v43  ;;  %v11046_v56 = vadd.f32 %v11042_v12, %v11037_v19  ;;  %v11045_v40 = vadd.f32 %v11042_v12, %v11036_v32 }
 0xc7f   : > { %12644 = vpow2.f32 %v11657_v54  ;;  %v11659_v58 = vmul.f32 -1.442695, %v11046_v56  ;;  %v11658_v48 = vmul.f32 -1.442695, %v11045_v40 }
 0xc81   : > { %12646 = vpow2.f32 %v11659_v58 }
 0xc82   : > { %12648 = vpow2.f32 %v11658_v48 }
 0xc8c   : > { %v12645_v41 = vpop.eup %12644 }
 0xc8d   : > { %v11056_v51 = vadd.f32 1.0, %v12645_v41 }
 0xc8e   : > { %v12647_v14 = vpop.eup %12646 }
 0xc8f   : > { %v12649_v28 = vpop.eup %12648  ;;  %12650 = vrcp.f32 %v11056_v51  ;;  %v11058_v1 = vadd.f32 1.0, %v12647_v14 }
 0xc90   : > { %v11057_v39 = vadd.f32 1.0, %v12649_v28 }
 0xc91   : > { %12652 = vrcp.f32 %v11058_v1 }
 0xc92   : > { %12654 = vrcp.f32 %v11057_v39 }
 0xc9c   : > { %v12651_v20 = vpop.eup %12650 }
 0xc9d   : > { %11065 = vst [vmem:[%s18922_s28] sm:$0x1f] %v12651_v20 }
 0xc9e   : > { %v12653_v61 = vpop.eup %12652 }
 0xc9f   : > { %v12655_v49 = vpop.eup %12654  ;;  %11068 = vst.msk [vmem:[%s18922_s28 + $0x10] sm:$0x1f] %vm11067_vm4, %v12653_v61 }
 0xca0   : > { %11070 = vst.msk [vmem:[%s18922_s28 + $0x10] sm:$0x1f] %vm11069_vm6, %v19583_v22  ;;  %11066 = vst [vmem:[%s18922_s28 + $0x8] sm:$0x1f] %v12655_v49 }
 0xca1 PF: > { %s21_s17 = sadd.s32 1, %s12728_s17  }
 0xca2   : > { %p18_p4 = scmp.ge.s32.totalorder %s21_s17, 4  }
 0xca4   :  { %20 = sbr.rel (!%p18_p4) target bundleno = 1 (0x1), region = 126 }

</bundles_post_ra>
